<compile_context>
chip_gen: v5e
topology: v5e:2x2
jax: 0.10.0
libtpu: 0.0.40
codegen_flags: <defaults>
</compile_context>

<pallas_src>
import functools
import math

import numpy as np

import jax
import jax.numpy as jnp
from jax.experimental import pallas as pl
from jax.experimental.pallas import tpu as pltpu

# ----------------------------- configuration (module-consistent, small) ------
BATCH = 2
CHANNELS = 3
IMAGE_SIZE = 16
PATCH_SIZE = 4
NUM_CLASSES = 10
DIM = 32
DEPTH = 2
ATTN_NUM_HEAVY_Q = 8
ATTN_NUM_HEAVY_KV = 8
ATTN_HEAVY_DIM_HEAD = 16
ATTN_HEAVY_HEADS = 2
ATTN_LIGHT_DIM_HEAD = 8
ATTN_LIGHT_HEADS = 2
ATTN_LIGHT_WINDOW = 2          # local-attention window over the patch grid
FF_NUM_HEAVY = 8
FF_HEAVY_MULT = 4
FF_LIGHT_MULT = 0.5
COOR_DESCENT_EPS = 1.0         # default_coor_descent_eps
LN_EPS = 1e-5

FETCH_K_RATIO = 9.0 / 8.0
ROUTER_N_ITERS = 20
ROUTER_EPS_INIT = 4.0
ROUTER_EPS_DECAY = 0.7

PATCH_GRID = IMAGE_SIZE // PATCH_SIZE            # 4 x 4 patches -> 16 tokens
NUM_TOKENS = PATCH_GRID * PATCH_GRID
PATCH_DIM = CHANNELS * PATCH_SIZE * PATCH_SIZE   # 48

_NEG = -1e30
_PAR = pltpu.CompilerParams(dimension_semantics=("parallel",))


# ----------------------------- in-kernel helpers ------------------------------
def _layernorm(x, g, b):
    mu = jnp.mean(x, axis=-1, keepdims=True)
    var = jnp.mean(jnp.square(x - mu), axis=-1, keepdims=True)
    return (x - mu) * jax.lax.rsqrt(var + LN_EPS) * g + b


def _gelu(x):
    # TODO(synk): tanh-approx GELU (EUP tanh); torch nn.GELU() default is erf-exact.
    return 0.5 * x * (1.0 + jnp.tanh(0.7978845608028654 * (x + 0.044715 * x * x * x)))


def _dot_nt(a, b):
    """a (m, k) @ b (n, k)^T -> (m, n) with f32 accumulation (MXU)."""
    return jax.lax.dot_general(a, b, (((1,), (1,)), ((), ())),
                               preferred_element_type=jnp.float32)


def _coor_descent(s, k_eff):
    """Faithful port of colt5_attention.coor_descent (mask=None).  s: (1, N)."""
    logk = math.log(k_eff)
    b = -s
    a = jnp.zeros_like(s[:, :1])
    cur = max(ROUTER_EPS_INIT, COOR_DESCENT_EPS)
    for _ in range(ROUTER_N_ITERS):
        sb = (s + b) * (1.0 / cur)
        m = jnp.max(sb, axis=-1, keepdims=True)
        lse = m + jnp.log(jnp.sum(jnp.exp(sb - m), axis=-1, keepdims=True))
        a = cur * (logk - lse)
        b = -jnp.maximum(s + a, 0.0)
        cur = max(cur * ROUTER_EPS_DECAY, COOR_DESCENT_EPS)
    return jnp.exp((s + a + b) * (1.0 / cur))


def _route_topk(x, router, k, k_eff, rank_row, rank_col):
    """Router scores + coor-descent + top-k, fully in-kernel.

    Returns one-hot selection matrices oh (k, N) and oh^T (N, k); the routed
    gather/scatter is then a pair of tiny matmuls.  Ties break toward the
    lowest rank (rank = window-major order for attention, raster for FF),
    matching lax.top_k on the original token ordering.
    """
    n = x.shape[0]
    s = _dot_nt(router, x)                                   # (1, N)
    scores = _coor_descent(s, k_eff)
    krow = jax.lax.broadcasted_iota(jnp.int32, (k, 1), 0)
    kcol = jax.lax.broadcasted_iota(jnp.int32, (1, k), 1)
    work = scores
    oh = jnp.zeros((k, n), jnp.float32)
    oht = jnp.zeros((n, k), jnp.float32)
    for t in range(k):
        mx = jnp.max(work, axis=-1, keepdims=True)
        sel = jnp.min(jnp.where(work == mx, rank_row, float(n)),
                      axis=-1, keepdims=True)                # (1, 1) winner rank
        hit_r = (rank_row == sel).astype(jnp.float32)        # (1, N)
        hit_c = (rank_col == sel).astype(jnp.float32)        # (N, 1)
        oh = oh + jnp.where(krow == t, 1.0, 0.0) * hit_r
        oht = oht + hit_c * jnp.where(kcol == t, 1.0, 0.0)
        work = jnp.where(hit_r > 0.5, jnp.full_like(work, _NEG), work)
    return oh, oht


def _attend_one_head(q, k, v, null_k, null_v, w_out, *, mask):
    """Single-head softmax attention with a learned null kv token.

    q is pre-scaled.  The null token is folded in analytically (no concat).
    Returns the per-head contribution already projected by its w_out slice.
    """
    s = _dot_nt(q, k)                                        # (nq, nk)
    if mask is not None:
        s = jnp.where(mask > 0.5, s, _NEG)
    s_null = jnp.sum(q * null_k, axis=-1, keepdims=True)     # (nq, 1)
    m = jnp.maximum(jnp.max(s, axis=-1, keepdims=True), s_null)
    p = jnp.exp(s - m)
    p_null = jnp.exp(s_null - m)
    inv = pl.reciprocal(jnp.sum(p, axis=-1, keepdims=True) + p_null, approx=True)
    o = (jnp.dot(p, v, preferred_element_type=jnp.float32) + p_null * null_v) * inv
    return jnp.dot(o, w_out, preferred_element_type=jnp.float32)


# ----------------------------- Pallas kernels ---------------------------------
def _patch_embed_kernel(p_ref, pe_ref, g0_ref, b0_ref, w_ref, bias_ref,
                        g1_ref, b1_ref, o_ref):
    x = _layernorm(p_ref[...], g0_ref[...], b0_ref[...])
    y = jnp.dot(x, w_ref[...], preferred_element_type=jnp.float32) + bias_ref[...]
    y = _layernorm(y, g1_ref[...], b1_ref[...])
    o_ref[...] = (y + pe_ref[...]).astype(o_ref.dtype)


def _attn_block_kernel(x_ref, mask_ref, rrow_ref, rcol_ref,
                       qrt_ref, kvrt_ref, nullq_ref,
                       lg_ref, lb_ref, lqkv_ref, lout_ref, lnk_ref, lnv_ref,
                       hg_ref, hb_ref, hcg_ref, hcb_ref,
                       hwq_ref, hwkv_ref, hout_ref, hnk_ref, hnv_ref,
                       o_ref, *, num_q, num_kv, k_eff_q, k_eff_kv):
    """One ConditionalRoutedImageAttention block (+ residual) for one image."""
    n, d = x_ref.shape[1], x_ref.shape[2]
    x = x_ref[0]                                             # (N, D)
    mask = mask_ref[...]                                     # (N, N) same-window
    rrow = rrow_ref[...]                                     # (1, N) window rank
    rcol = rcol_ref[...]                                     # (N, 1)

    # ----- light branch: non-overlapping window attention via block-diag mask
    # TODO(synk): colt5's light path is LocalMHA with look-around; plain
    # non-overlapping window attention is implemented here (as before).
    lheads, ldh = lnk_ref.shape
    lnk, lnv, lout_w = lnk_ref[...], lnv_ref[...], lout_ref[...]
    xn = _layernorm(x, lg_ref[...], lb_ref[...])
    qkv = jnp.dot(xn, lqkv_ref[...], preferred_element_type=jnp.float32)
    inner = lheads * ldh
    q_l, k_l, v_l = qkv[:, :inner], qkv[:, inner:2 * inner], qkv[:, 2 * inner:]
    lscale = ldh ** -0.5
    light = jnp.zeros((n, d), jnp.float32)
    for h in range(lheads):
        cs = slice(h * ldh, (h + 1) * ldh)
        light = light + _attend_one_head(
            q_l[:, cs] * lscale, k_l[:, cs], v_l[:, cs],
            lnk[h:h + 1, :], lnv[h:h + 1, :], lout_w[cs, :], mask=mask)

    # ----- heavy branch: routed full attention (gather/scatter = one-hot matmuls)
    ohq, ohqT = _route_topk(x, qrt_ref[...], num_q, k_eff_q, rrow, rcol)
    ohkv, _ = _route_topk(x, kvrt_ref[...], num_kv, k_eff_kv, rrow, rcol)
    rq = jnp.dot(ohq, x, preferred_element_type=jnp.float32)     # (num_q, D)
    rkv = jnp.dot(ohkv, x, preferred_element_type=jnp.float32)   # (num_kv, D)

    hheads, hdh = hnk_ref.shape
    hnk, hnv, hout_w = hnk_ref[...], hnv_ref[...], hout_ref[...]
    qn = _layernorm(rq, hg_ref[...], hb_ref[...])
    cn = _layernorm(rkv, hcg_ref[...], hcb_ref[...])
    q_h = jnp.dot(qn, hwq_ref[...], preferred_element_type=jnp.float32)
    kv_h = jnp.dot(cn, hwkv_ref[...], preferred_element_type=jnp.float32)
    inner_h = hheads * hdh
    k_h, v_h = kv_h[:, :inner_h], kv_h[:, inner_h:]
    hscale = hdh ** -0.5
    rout = jnp.zeros((num_q, d), jnp.float32)
    for h in range(hheads):
        cs = slice(h * hdh, (h + 1) * hdh)
        rout = rout + _attend_one_head(
            q_h[:, cs] * hscale, k_h[:, cs], v_h[:, cs],
            hnk[h:h + 1, :], hnv[h:h + 1, :], hout_w[cs, :], mask=None)
    # straight-through router scores are exactly 1.0 -> no extra multiplies.

    sel = jnp.sum(ohqT, axis=-1, keepdims=True)                  # (N, 1)
    heavy = jnp.dot(ohqT, rout, preferred_element_type=jnp.float32)
    heavy = heavy + (1.0 - sel) * nullq_ref[...]                 # null q tokens

    o_ref[0] = (x + light + heavy).astype(o_ref.dtype)           # + residual


def _ff_block_kernel(x_ref, rt_ref,
                     lg_ref, lb_ref, lw1_ref, lb1_ref, lw2_ref, lb2_ref,
                     hg_ref, hb_ref, hw1_ref, hb1_ref, hw2_ref, hb2_ref,
                     o_ref, *, num_heavy, k_eff):
    """One ConditionalRoutedFeedForward block (+ residual) for one image."""
    n = x_ref.shape[1]
    x = x_ref[0]                                                 # (N, D)

    # light FFN over all tokens
    xn = _layernorm(x, lg_ref[...], lb_ref[...])
    h1 = _gelu(jnp.dot(xn, lw1_ref[...], preferred_element_type=jnp.float32)
               + lb1_ref[...])
    light = jnp.dot(h1, lw2_ref[...], preferred_element_type=jnp.float32) + lb2_ref[...]

    # heavy FFN over routed tokens (raster-order tie-break, as before)
    rrow = jax.lax.broadcasted_iota(jnp.int32, (1, n), 1).astype(jnp.float32)
    rcol = jax.lax.broadcasted_iota(jnp.int32, (n, 1), 0).astype(jnp.float32)
    oh, oht = _route_topk(x, rt_ref[...], num_heavy, k_eff, rrow, rcol)
    r = jnp.dot(oh, x, preferred_element_type=jnp.float32)
    rn = _layernorm(r, hg_ref[...], hb_ref[...])
    hh = _gelu(jnp.dot(rn, hw1_ref[...], preferred_element_type=jnp.float32)
               + hb1_ref[...])
    heavy_r = jnp.dot(hh, hw2_ref[...], preferred_element_type=jnp.float32) + hb2_ref[...]
    heavy = jnp.dot(oht, heavy_r, preferred_element_type=jnp.float32)

    o_ref[0] = (x + light + heavy).astype(o_ref.dtype)           # + residual


def _head_kernel(x_ref, g_ref, b_ref, w_ref, bias_ref, o_ref):
    x = x_ref[0]                                                 # (N, D)
    pooled = jnp.mean(x, axis=0, keepdims=True)                  # 'b h w c -> b c'
    pooled = _layernorm(pooled, g_ref[...], b_ref[...])
    y = jnp.dot(pooled, w_ref[...], preferred_element_type=jnp.float32) + bias_ref[...]
    o_ref[0] = y.astype(o_ref.dtype)


# ----------------------------- pallas_call wrappers ---------------------------
def _const_spec(arr):
    nd = arr.ndim
    return pl.BlockSpec(arr.shape, lambda i, _nd=nd: (0,) * _nd)


def patch_embed(p, patches, posemb):
    bn, pd = patches.shape
    n_tok = posemb.shape[0]
    b = bn // n_tok
    consts = (posemb, p['g0'], p['b0'], p['w'], p['bias'], p['g1'], p['b1'])
    return pl.pallas_call(
        _patch_embed_kernel,
        out_shape=jax.ShapeDtypeStruct((bn, DIM), patches.dtype),
        grid=(b,),
        in_specs=[pl.BlockSpec((n_tok, pd), lambda i: (i, 0))]
        + [_const_spec(c) for c in consts],
        out_specs=pl.BlockSpec((n_tok, DIM), lambda i: (i, 0)),
        compiler_params=_PAR,
    )(patches, *consts)


def attn_block(p, x, win_mask, rank_row, rank_col):
    B, N, D = x.shape
    lp, hp = p['light'], p['heavy']
    kernel = functools.partial(
        _attn_block_kernel,
        num_q=ATTN_NUM_HEAVY_Q, num_kv=ATTN_NUM_HEAVY_KV,
        k_eff_q=min(ATTN_NUM_HEAVY_Q * FETCH_K_RATIO, float(N)),
        k_eff_kv=min(ATTN_NUM_HEAVY_KV * FETCH_K_RATIO, float(N)))
    consts = (win_mask, rank_row, rank_col,
              p['q_router'], p['kv_router'], p['null_q'],
              lp['g'], lp['b'], lp['wqkv'], lp['wout'], lp['null_k'], lp['null_v'],
              hp['g'], hp['b'], hp['ctx_g'], hp['ctx_b'],
              hp['wq'], hp['wkv'], hp['wout'], hp['null_k'], hp['null_v'])
    return pl.pallas_call(
        kernel,
        out_shape=jax.ShapeDtypeStruct((B, N, D), x.dtype),
        grid=(B,),
        in_specs=[pl.BlockSpec((1, N, D), lambda i: (i, 0, 0))]
        + [_const_spec(c) for c in consts],
        out_specs=pl.BlockSpec((1, N, D), lambda i: (i, 0, 0)),
        compiler_params=_PAR,
    )(x, *consts)


def ff_block(p, x):
    B, N, D = x.shape
    lp, hp = p['light'], p['heavy']
    kernel = functools.partial(_ff_block_kernel, num_heavy=FF_NUM_HEAVY,
                               k_eff=min(FF_NUM_HEAVY * FETCH_K_RATIO, float(N)))
    consts = (p['router'],
              lp['g'], lp['b'], lp['w1'], lp['b1'], lp['w2'], lp['b2'],
              hp['g'], hp['b'], hp['w1'], hp['b1'], hp['w2'], hp['b2'])
    return pl.pallas_call(
        kernel,
        out_shape=jax.ShapeDtypeStruct((B, N, D), x.dtype),
        grid=(B,),
        in_specs=[pl.BlockSpec((1, N, D), lambda i: (i, 0, 0))]
        + [_const_spec(c) for c in consts],
        out_specs=pl.BlockSpec((1, N, D), lambda i: (i, 0, 0)),
        compiler_params=_PAR,
    )(x, *consts)


def head_block(p, x):
    B, N, D = x.shape
    C = p['w'].shape[1]
    consts = (p['g'], p['b'], p['w'], p['bias'])
    out = pl.pallas_call(
        _head_kernel,
        out_shape=jax.ShapeDtypeStruct((B, 1, C), x.dtype),
        grid=(B,),
        in_specs=[pl.BlockSpec((1, N, D), lambda i: (i, 0, 0))]
        + [_const_spec(c) for c in consts],
        out_specs=pl.BlockSpec((1, 1, C), lambda i: (i, 0, 0)),
        compiler_params=_PAR,
    )(x, *consts)
    return out[:, 0, :]


# ----------------------------- host-side constants & glue ---------------------
def to_patches(img, p):
    # einops: 'b c (h p1) (w p2) -> b h w (p1 p2 c)'
    B, C, H, W = img.shape
    gh, gw = H // p, W // p
    x = img.reshape(B, C, gh, p, gw, p)
    x = jnp.transpose(x, (0, 2, 4, 3, 5, 1))
    return x.reshape(B, gh, gw, p * p * C)


def _posemb_sincos_2d_np(h, w, dim, temperature=10000.0):
    y, x = np.meshgrid(np.arange(h), np.arange(w), indexing='ij')
    omega = np.arange(dim // 4) / (dim // 4 - 1)
    omega = 1.0 / (temperature ** omega)
    y = y.flatten()[:, None] * omega[None, :]
    x = x.flatten()[:, None] * omega[None, :]
    pe = np.concatenate((np.sin(x), np.cos(x), np.sin(y), np.cos(y)), axis=1)
    return pe.astype(np.float32)                                  # (h*w, dim)


def _window_constants_np(gh, gw, ws):
    """Same-window mask (N,N) + window-major rank of each raster token."""
    r = np.arange(gh)[:, None]
    c = np.arange(gw)[None, :]
    win_id = ((r // ws) * (gw // ws) + (c // ws)).reshape(-1)
    mask = (win_id[:, None] == win_id[None, :]).astype(np.float32)
    within = ((r % ws) * ws + (c % ws)).reshape(-1)
    rank = (win_id * (ws * ws) + within).astype(np.float32)
    return mask, rank.reshape(1, -1), rank.reshape(-1, 1)


def vit_forward(params, img, win_mask, rank_row, rank_col, posemb):
    B = img.shape[0]
    patches = to_patches(img, PATCH_SIZE).reshape(B * NUM_TOKENS, PATCH_DIM)
    x = patch_embed(params['patch'], patches, posemb)             # (B*N, DIM)
    x = x.reshape(B, NUM_TOKENS, DIM)
    for layer in params['layers']:
        x = attn_block(layer['attn'], x, win_mask, rank_row, rank_col)
        x = ff_block(layer['ff'], x)
    return head_block(params['head'], x)


# ----------------------------- deterministic parameter init -------------------
def init_params(key):
    kiter = iter(jax.random.split(key, 256))

    def w_init(shape, scale=0.02):
        return jax.random.normal(next(kiter), shape, jnp.float32) * scale

    def randn(shape):
        return jax.random.normal(next(kiter), shape, jnp.float32)

    ones2 = lambda n: jnp.ones((1, n), jnp.float32)
    zeros2 = lambda n: jnp.zeros((1, n), jnp.float32)

    def attn_params(dim, heads, dh):
        # TODO(synk): separate context LayerNorm assumed for cross-attn context.
        null_kv = randn((2, heads, dh))
        wq = w_init((dim, heads * dh))
        wkv = w_init((dim, 2 * heads * dh))
        return dict(g=ones2(dim), b=zeros2(dim),
                    ctx_g=ones2(dim), ctx_b=zeros2(dim),
                    null_k=null_kv[0], null_v=null_kv[1],
                    wq=wq, wkv=wkv,
                    wqkv=jnp.concatenate([wq, wkv], axis=1),   # fused q|k|v proj
                    wout=w_init((heads * dh, dim)))

    def ff_params(dim, hidden):
        return dict(g=ones2(dim), b=zeros2(dim),
                    w1=w_init((dim, hidden)), b1=zeros2(hidden),
                    w2=w_init((hidden, dim)), b2=zeros2(dim))

    layers = []
    for _ in range(DEPTH):
        layers.append(dict(
            attn=dict(null_q=randn((1, DIM)),
                      q_router=randn((1, DIM)),
                      kv_router=randn((1, DIM)),
                      light=attn_params(DIM, ATTN_LIGHT_HEADS, ATTN_LIGHT_DIM_HEAD),
                      heavy=attn_params(DIM, ATTN_HEAVY_HEADS, ATTN_HEAVY_DIM_HEAD)),
            ff=dict(router=randn((1, DIM)),
                    light=ff_params(DIM, int(DIM * FF_LIGHT_MULT)),
                    heavy=ff_params(DIM, int(DIM * FF_HEAVY_MULT)))))

    return dict(
        patch=dict(g0=ones2(PATCH_DIM), b0=zeros2(PATCH_DIM),
                   w=w_init((PATCH_DIM, DIM)), bias=zeros2(DIM),
                   g1=ones2(DIM), b1=zeros2(DIM)),
        layers=layers,
        head=dict(g=ones2(DIM), b=zeros2(DIM),
                  w=w_init((DIM, NUM_CLASSES)), bias=zeros2(NUM_CLASSES)))


# ----------------------------- main -------------------------------------------
if __name__ == "__main__":
    key = jax.random.PRNGKey(0)
    pkey, xkey = jax.random.split(key)
    params = init_params(pkey)
    img = jax.random.normal(xkey, (BATCH, CHANNELS, IMAGE_SIZE, IMAGE_SIZE),
                            jnp.float32)

    mask_np, rrow_np, rcol_np = _window_constants_np(PATCH_GRID, PATCH_GRID,
                                                     ATTN_LIGHT_WINDOW)
    win_mask = jnp.asarray(mask_np)
    rank_row = jnp.asarray(rrow_np)
    rank_col = jnp.asarray(rcol_np)
    posemb = jnp.asarray(_posemb_sincos_2d_np(PATCH_GRID, PATCH_GRID, DIM))

    fwd = jax.jit(lambda im: vit_forward(params, im, win_mask, rank_row,
                                         rank_col, posemb))
    logits = fwd(img)
    jax.block_until_ready(logits)

    assert logits.shape == (BATCH, NUM_CLASSES), logits.shape
    assert bool(jnp.all(jnp.isfinite(logits)))
    print("KERNEL_OK")
</pallas_src>

<mosaic_0001>
module attributes {stable_mosaic.version = 11 : i64} {
  func.func @_patch_embed_kernel(%arg0: i32, %arg1: memref<16x48xf32, #tpu.memory_space<vmem>>, %arg2: memref<16x32xf32, #tpu.memory_space<vmem>>, %arg3: memref<1x48xf32, #tpu.memory_space<vmem>>, %arg4: memref<1x48xf32, #tpu.memory_space<vmem>>, %arg5: memref<48x32xf32, #tpu.memory_space<vmem>>, %arg6: memref<1x32xf32, #tpu.memory_space<vmem>>, %arg7: memref<1x32xf32, #tpu.memory_space<vmem>>, %arg8: memref<1x32xf32, #tpu.memory_space<vmem>>, %arg9: memref<16x32xf32, #tpu.memory_space<vmem>>) attributes {dimension_semantics = [#tpu.dimension_semantics<parallel>], iteration_bounds = array<i64: 2>, scalar_prefetch = 0 : i64, scratch_operands = 0 : i64, tpu.core_type = #tpu.core_type<tc>, window_params = [{transform_indices = @transform_0, window_bounds = array<i64: 16, 48>}, {pipeline_mode = #tpu.pipeline_mode<synchronous>, transform_indices = @transform_1, window_bounds = array<i64: 16, 32>}, {pipeline_mode = #tpu.pipeline_mode<synchronous>, transform_indices = @transform_2, window_bounds = array<i64: 1, 48>}, {pipeline_mode = #tpu.pipeline_mode<synchronous>, transform_indices = @transform_3, window_bounds = array<i64: 1, 48>}, {pipeline_mode = #tpu.pipeline_mode<synchronous>, transform_indices = @transform_4, window_bounds = array<i64: 48, 32>}, {pipeline_mode = #tpu.pipeline_mode<synchronous>, transform_indices = @transform_5, window_bounds = array<i64: 1, 32>}, {pipeline_mode = #tpu.pipeline_mode<synchronous>, transform_indices = @transform_6, window_bounds = array<i64: 1, 32>}, {pipeline_mode = #tpu.pipeline_mode<synchronous>, transform_indices = @transform_7, window_bounds = array<i64: 1, 32>}, {transform_indices = @transform_8, window_bounds = array<i64: 16, 32>}]} {
    %c0 = arith.constant 0 : index
    %c0_0 = arith.constant 0 : index
    %0 = vector.load %arg1[%c0, %c0_0] : memref<16x48xf32, #tpu.memory_space<vmem>>, vector<16x48xf32>
    %c0_1 = arith.constant 0 : index
    %c0_2 = arith.constant 0 : index
    %1 = vector.load %arg3[%c0_1, %c0_2] : memref<1x48xf32, #tpu.memory_space<vmem>>, vector<1x48xf32>
    %c0_3 = arith.constant 0 : index
    %c0_4 = arith.constant 0 : index
    %2 = vector.load %arg4[%c0_3, %c0_4] : memref<1x48xf32, #tpu.memory_space<vmem>>, vector<1x48xf32>
    %cst = arith.constant dense<0.000000e+00> : vector<16xf32>
    %3 = vector.multi_reduction <add>, %0, %cst [1] : vector<16x48xf32> to vector<16xf32>
    %4 = vector.shape_cast %3 : vector<16xf32> to vector<16x1xf32>
    %cst_5 = arith.constant 4.800000e+01 : f32
    %5 = vector.broadcast %cst_5 : f32 to vector<16x1xf32>
    %6 = arith.divf %4, %5 : vector<16x1xf32>
    %7 = vector.broadcast %6 : vector<16x1xf32> to vector<16x48xf32>
    %8 = arith.subf %0, %7 : vector<16x48xf32>
    %9 = arith.mulf %8, %8 : vector<16x48xf32>
    %cst_6 = arith.constant dense<0.000000e+00> : vector<16xf32>
    %10 = vector.multi_reduction <add>, %9, %cst_6 [1] : vector<16x48xf32> to vector<16xf32>
    %11 = vector.shape_cast %10 : vector<16xf32> to vector<16x1xf32>
    %cst_7 = arith.constant 4.800000e+01 : f32
    %12 = vector.broadcast %cst_7 : f32 to vector<16x1xf32>
    %13 = arith.divf %11, %12 : vector<16x1xf32>
    %14 = vector.broadcast %6 : vector<16x1xf32> to vector<16x48xf32>
    %15 = arith.subf %0, %14 : vector<16x48xf32>
    %cst_8 = arith.constant 9.99999974E-6 : f32
    %16 = vector.broadcast %cst_8 : f32 to vector<16x1xf32>
    %17 = arith.addf %13, %16 : vector<16x1xf32>
    %18 = math.rsqrt %17 : vector<16x1xf32>
    %19 = vector.broadcast %18 : vector<16x1xf32> to vector<16x48xf32>
    %20 = arith.mulf %15, %19 : vector<16x48xf32>
    %21 = vector.broadcast %1 : vector<1x48xf32> to vector<16x48xf32>
    %22 = arith.mulf %20, %21 : vector<16x48xf32>
    %23 = vector.broadcast %2 : vector<1x48xf32> to vector<16x48xf32>
    %24 = arith.addf %22, %23 : vector<16x48xf32>
    %c0_9 = arith.constant 0 : index
    %c0_10 = arith.constant 0 : index
    %25 = vector.load %arg5[%c0_9, %c0_10] : memref<48x32xf32, #tpu.memory_space<vmem>>, vector<48x32xf32>
    %cst_11 = arith.constant dense<0.000000e+00> : vector<16x32xf32>
    %26 = tpu.matmul %24, %25, %cst_11 {dimension_numbers = #tpu.dot_dimension_numbers<[1], [0], [0], [1], [0, 0, 1, 1], [], []>} : vector<16x48xf32>, vector<48x32xf32>, vector<16x32xf32> -> vector<16x32xf32>
    %c0_12 = arith.constant 0 : index
    %c0_13 = arith.constant 0 : index
    %27 = vector.load %arg6[%c0_12, %c0_13] : memref<1x32xf32, #tpu.memory_space<vmem>>, vector<1x32xf32>
    %28 = vector.broadcast %27 : vector<1x32xf32> to vector<16x32xf32>
    %29 = arith.addf %26, %28 : vector<16x32xf32>
    %c0_14 = arith.constant 0 : index
    %c0_15 = arith.constant 0 : index
    %30 = vector.load %arg7[%c0_14, %c0_15] : memref<1x32xf32, #tpu.memory_space<vmem>>, vector<1x32xf32>
    %c0_16 = arith.constant 0 : index
    %c0_17 = arith.constant 0 : index
    %31 = vector.load %arg8[%c0_16, %c0_17] : memref<1x32xf32, #tpu.memory_space<vmem>>, vector<1x32xf32>
    %cst_18 = arith.constant dense<0.000000e+00> : vector<16xf32>
    %32 = vector.multi_reduction <add>, %29, %cst_18 [1] : vector<16x32xf32> to vector<16xf32>
    %33 = vector.shape_cast %32 : vector<16xf32> to vector<16x1xf32>
    %cst_19 = arith.constant 3.200000e+01 : f32
    %34 = vector.broadcast %cst_19 : f32 to vector<16x1xf32>
    %35 = arith.divf %33, %34 : vector<16x1xf32>
    %36 = vector.broadcast %35 : vector<16x1xf32> to vector<16x32xf32>
    %37 = arith.subf %29, %36 : vector<16x32xf32>
    %38 = arith.mulf %37, %37 : vector<16x32xf32>
    %cst_20 = arith.constant dense<0.000000e+00> : vector<16xf32>
    %39 = vector.multi_reduction <add>, %38, %cst_20 [1] : vector<16x32xf32> to vector<16xf32>
    %40 = vector.shape_cast %39 : vector<16xf32> to vector<16x1xf32>
    %cst_21 = arith.constant 3.200000e+01 : f32
    %41 = vector.broadcast %cst_21 : f32 to vector<16x1xf32>
    %42 = arith.divf %40, %41 : vector<16x1xf32>
    %43 = vector.broadcast %35 : vector<16x1xf32> to vector<16x32xf32>
    %44 = arith.subf %29, %43 : vector<16x32xf32>
    %cst_22 = arith.constant 9.99999974E-6 : f32
    %45 = vector.broadcast %cst_22 : f32 to vector<16x1xf32>
    %46 = arith.addf %42, %45 : vector<16x1xf32>
    %47 = math.rsqrt %46 : vector<16x1xf32>
    %48 = vector.broadcast %47 : vector<16x1xf32> to vector<16x32xf32>
    %49 = arith.mulf %44, %48 : vector<16x32xf32>
    %50 = vector.broadcast %30 : vector<1x32xf32> to vector<16x32xf32>
    %51 = arith.mulf %49, %50 : vector<16x32xf32>
    %52 = vector.broadcast %31 : vector<1x32xf32> to vector<16x32xf32>
    %53 = arith.addf %51, %52 : vector<16x32xf32>
    %c0_23 = arith.constant 0 : index
    %c0_24 = arith.constant 0 : index
    %54 = vector.load %arg2[%c0_23, %c0_24] : memref<16x32xf32, #tpu.memory_space<vmem>>, vector<16x32xf32>
    %55 = arith.addf %53, %54 : vector<16x32xf32>
    %c0_25 = arith.constant 0 : index
    %c0_26 = arith.constant 0 : index
    %56 = vector.load %arg9[%c0_25, %c0_26] : memref<16x32xf32, #tpu.memory_space<vmem>>, vector<16x32xf32>
    tpu.vector_store %arg9[%c0_25, %c0_26], %55 {strides = array<i32>} : memref<16x32xf32, #tpu.memory_space<vmem>>, vector<16x32xf32>,
    return
  }
  func.func @transform_0(%arg0: i32) -> (i32, i32) {
    %c0_i32 = arith.constant 0 : i32
    %c0_i32_0 = arith.constant 0 : i32
    return %arg0, %c0_i32 : i32, i32
  }
  func.func @transform_1(%arg0: i32) -> (i32, i32) {
    %c0_i32 = arith.constant 0 : i32
    %c0_i32_0 = arith.constant 0 : i32
    %c0_i32_1 = arith.constant 0 : i32
    return %c0_i32, %c0_i32_0 : i32, i32
  }
  func.func @transform_2(%arg0: i32) -> (i32, i32) {
    %c0_i32 = arith.constant 0 : i32
    %c0_i32_0 = arith.constant 0 : i32
    %c0_i32_1 = arith.constant 0 : i32
    return %c0_i32, %c0_i32_0 : i32, i32
  }
  func.func @transform_3(%arg0: i32) -> (i32, i32) {
    %c0_i32 = arith.constant 0 : i32
    %c0_i32_0 = arith.constant 0 : i32
    %c0_i32_1 = arith.constant 0 : i32
    return %c0_i32, %c0_i32_0 : i32, i32
  }
  func.func @transform_4(%arg0: i32) -> (i32, i32) {
    %c0_i32 = arith.constant 0 : i32
    %c0_i32_0 = arith.constant 0 : i32
    %c0_i32_1 = arith.constant 0 : i32
    return %c0_i32, %c0_i32_0 : i32, i32
  }
  func.func @transform_5(%arg0: i32) -> (i32, i32) {
    %c0_i32 = arith.constant 0 : i32
    %c0_i32_0 = arith.constant 0 : i32
    %c0_i32_1 = arith.constant 0 : i32
    return %c0_i32, %c0_i32_0 : i32, i32
  }
  func.func @transform_6(%arg0: i32) -> (i32, i32) {
    %c0_i32 = arith.constant 0 : i32
    %c0_i32_0 = arith.constant 0 : i32
    %c0_i32_1 = arith.constant 0 : i32
    return %c0_i32, %c0_i32_0 : i32, i32
  }
  func.func @transform_7(%arg0: i32) -> (i32, i32) {
    %c0_i32 = arith.constant 0 : i32
    %c0_i32_0 = arith.constant 0 : i32
    %c0_i32_1 = arith.constant 0 : i32
    return %c0_i32, %c0_i32_0 : i32, i32
  }
  func.func @transform_8(%arg0: i32) -> (i32, i32) {
    %c0_i32 = arith.constant 0 : i32
    %c0_i32_0 = arith.constant 0 : i32
    return %arg0, %c0_i32 : i32, i32
  }
}

module attributes {stable_mosaic.version = 11 : i64} {
  func.func @_ff_block_kernel(%arg0: i32, %arg1: memref<1x16x32xf32, #tpu.memory_space<vmem>>, %arg2: memref<1x32xf32, #tpu.memory_space<vmem>>, %arg3: memref<1x32xf32, #tpu.memory_space<vmem>>, %arg4: memref<1x32xf32, #tpu.memory_space<vmem>>, %arg5: memref<32x16xf32, #tpu.memory_space<vmem>>, %arg6: memref<1x16xf32, #tpu.memory_space<vmem>>, %arg7: memref<16x32xf32, #tpu.memory_space<vmem>>, %arg8: memref<1x32xf32, #tpu.memory_space<vmem>>, %arg9: memref<1x32xf32, #tpu.memory_space<vmem>>, %arg10: memref<1x32xf32, #tpu.memory_space<vmem>>, %arg11: memref<32x128xf32, #tpu.memory_space<vmem>>, %arg12: memref<1x128xf32, #tpu.memory_space<vmem>>, %arg13: memref<128x32xf32, #tpu.memory_space<vmem>>, %arg14: memref<1x32xf32, #tpu.memory_space<vmem>>, %arg15: memref<1x16x32xf32, #tpu.memory_space<vmem>>) attributes {dimension_semantics = [#tpu.dimension_semantics<parallel>], iteration_bounds = array<i64: 2>, scalar_prefetch = 0 : i64, scratch_operands = 0 : i64, tpu.core_type = #tpu.core_type<tc>, window_params = [{transform_indices = @transform_0, window_bounds = array<i64: 1, 16, 32>}, {pipeline_mode = #tpu.pipeline_mode<synchronous>, transform_indices = @transform_1, window_bounds = array<i64: 1, 32>}, {pipeline_mode = #tpu.pipeline_mode<synchronous>, transform_indices = @transform_2, window_bounds = array<i64: 1, 32>}, {pipeline_mode = #tpu.pipeline_mode<synchronous>, transform_indices = @transform_3, window_bounds = array<i64: 1, 32>}, {pipeline_mode = #tpu.pipeline_mode<synchronous>, transform_indices = @transform_4, window_bounds = array<i64: 32, 16>}, {pipeline_mode = #tpu.pipeline_mode<synchronous>, transform_indices = @transform_5, window_bounds = array<i64: 1, 16>}, {pipeline_mode = #tpu.pipeline_mode<synchronous>, transform_indices = @transform_6, window_bounds = array<i64: 16, 32>}, {pipeline_mode = #tpu.pipeline_mode<synchronous>, transform_indices = @transform_7, window_bounds = array<i64: 1, 32>}, {pipeline_mode = #tpu.pipeline_mode<synchronous>, transform_indices = @transform_8, window_bounds = array<i64: 1, 32>}, {pipeline_mode = #tpu.pipeline_mode<synchronous>, transform_indices = @transform_9, window_bounds = array<i64: 1, 32>}, {pipeline_mode = #tpu.pipeline_mode<synchronous>, transform_indices = @transform_10, window_bounds = array<i64: 32, 128>}, {pipeline_mode = #tpu.pipeline_mode<synchronous>, transform_indices = @transform_11, window_bounds = array<i64: 1, 128>}, {pipeline_mode = #tpu.pipeline_mode<synchronous>, transform_indices = @transform_12, window_bounds = array<i64: 128, 32>}, {pipeline_mode = #tpu.pipeline_mode<synchronous>, transform_indices = @transform_13, window_bounds = array<i64: 1, 32>}, {transform_indices = @transform_14, window_bounds = array<i64: 1, 16, 32>}]} {
    %c0 = arith.constant 0 : index
    %c0_0 = arith.constant 0 : index
    %c0_1 = arith.constant 0 : index
    %0 = vector.load %arg1[%c0, %c0_0, %c0_1] : memref<1x16x32xf32, #tpu.memory_space<vmem>>, vector<1x16x32xf32>
    %1 = vector.shape_cast %0 : vector<1x16x32xf32> to vector<16x32xf32>
    %c0_2 = arith.constant 0 : index
    %c0_3 = arith.constant 0 : index
    %2 = vector.load %arg3[%c0_2, %c0_3] : memref<1x32xf32, #tpu.memory_space<vmem>>, vector<1x32xf32>
    %c0_4 = arith.constant 0 : index
    %c0_5 = arith.constant 0 : index
    %3 = vector.load %arg4[%c0_4, %c0_5] : memref<1x32xf32, #tpu.memory_space<vmem>>, vector<1x32xf32>
    %cst = arith.constant dense<0.000000e+00> : vector<16xf32>
    %4 = vector.multi_reduction <add>, %1, %cst [1] : vector<16x32xf32> to vector<16xf32>
    %5 = vector.shape_cast %4 : vector<16xf32> to vector<16x1xf32>
    %cst_6 = arith.constant 3.200000e+01 : f32
    %6 = vector.broadcast %cst_6 : f32 to vector<16x1xf32>
    %7 = arith.divf %5, %6 : vector<16x1xf32>
    %8 = vector.broadcast %7 : vector<16x1xf32> to vector<16x32xf32>
    %9 = arith.subf %1, %8 : vector<16x32xf32>
    %10 = arith.mulf %9, %9 : vector<16x32xf32>
    %cst_7 = arith.constant dense<0.000000e+00> : vector<16xf32>
    %11 = vector.multi_reduction <add>, %10, %cst_7 [1] : vector<16x32xf32> to vector<16xf32>
    %12 = vector.shape_cast %11 : vector<16xf32> to vector<16x1xf32>
    %cst_8 = arith.constant 3.200000e+01 : f32
    %13 = vector.broadcast %cst_8 : f32 to vector<16x1xf32>
    %14 = arith.divf %12, %13 : vector<16x1xf32>
    %15 = vector.broadcast %7 : vector<16x1xf32> to vector<16x32xf32>
    %16 = arith.subf %1, %15 : vector<16x32xf32>
    %cst_9 = arith.constant 9.99999974E-6 : f32
    %17 = vector.broadcast %cst_9 : f32 to vector<16x1xf32>
    %18 = arith.addf %14, %17 : vector<16x1xf32>
    %19 = math.rsqrt %18 : vector<16x1xf32>
    %20 = vector.broadcast %19 : vector<16x1xf32> to vector<16x32xf32>
    %21 = arith.mulf %16, %20 : vector<16x32xf32>
    %22 = vector.broadcast %2 : vector<1x32xf32> to vector<16x32xf32>
    %23 = arith.mulf %21, %22 : vector<16x32xf32>
    %24 = vector.broadcast %3 : vector<1x32xf32> to vector<16x32xf32>
    %25 = arith.addf %23, %24 : vector<16x32xf32>
    %c0_10 = arith.constant 0 : index
    %c0_11 = arith.constant 0 : index
    %26 = vector.load %arg5[%c0_10, %c0_11] : memref<32x16xf32, #tpu.memory_space<vmem>>, vector<32x16xf32>
    %cst_12 = arith.constant dense<0.000000e+00> : vector<16x16xf32>
    %27 = tpu.matmul %25, %26, %cst_12 {dimension_numbers = #tpu.dot_dimension_numbers<[1], [0], [0], [1], [0, 0, 1, 1], [], []>} : vector<16x32xf32>, vector<32x16xf32>, vector<16x16xf32> -> vector<16x16xf32>
    %c0_13 = arith.constant 0 : index
    %c0_14 = arith.constant 0 : index
    %28 = vector.load %arg6[%c0_13, %c0_14] : memref<1x16xf32, #tpu.memory_space<vmem>>, vector<1x16xf32>
    %29 = vector.broadcast %28 : vector<1x16xf32> to vector<16x16xf32>
    %30 = arith.addf %27, %29 : vector<16x16xf32>
    %cst_15 = arith.constant 5.000000e-01 : f32
    %31 = vector.broadcast %cst_15 : f32 to vector<16x16xf32>
    %32 = arith.mulf %31, %30 : vector<16x16xf32>
    %cst_16 = arith.constant 4.471500e-02 : f32
    %33 = vector.broadcast %cst_16 : f32 to vector<16x16xf32>
    %34 = arith.mulf %33, %30 : vector<16x16xf32>
    %35 = arith.mulf %34, %30 : vector<16x16xf32>
    %36 = arith.mulf %35, %30 : vector<16x16xf32>
    %37 = arith.addf %30, %36 : vector<16x16xf32>
    %cst_17 = arith.constant 0.797884583 : f32
    %38 = vector.broadcast %cst_17 : f32 to vector<16x16xf32>
    %39 = arith.mulf %38, %37 : vector<16x16xf32>
    %40 = math.tanh %39 : vector<16x16xf32>
    %cst_18 = arith.constant 1.000000e+00 : f32
    %41 = vector.broadcast %cst_18 : f32 to vector<16x16xf32>
    %42 = arith.addf %41, %40 : vector<16x16xf32>
    %43 = arith.mulf %32, %42 : vector<16x16xf32>
    %c0_19 = arith.constant 0 : index
    %c0_20 = arith.constant 0 : index
    %44 = vector.load %arg7[%c0_19, %c0_20] : memref<16x32xf32, #tpu.memory_space<vmem>>, vector<16x32xf32>
    %cst_21 = arith.constant dense<0.000000e+00> : vector<16x32xf32>
    %45 = tpu.matmul %43, %44, %cst_21 {dimension_numbers = #tpu.dot_dimension_numbers<[1], [0], [0], [1], [0, 0, 1, 1], [], []>} : vector<16x16xf32>, vector<16x32xf32>, vector<16x32xf32> -> vector<16x32xf32>
    %c0_22 = arith.constant 0 : index
    %c0_23 = arith.constant 0 : index
    %46 = vector.load %arg8[%c0_22, %c0_23] : memref<1x32xf32, #tpu.memory_space<vmem>>, vector<1x32xf32>
    %47 = vector.broadcast %46 : vector<1x32xf32> to vector<16x32xf32>
    %48 = arith.addf %45, %47 : vector<16x32xf32>
    %49 = tpu.iota {dimensions = array<i32: 1>} : vector<1x16xi32>
    %50 = arith.sitofp %49 : vector<1x16xi32> to vector<1x16xf32>
    %51 = tpu.iota {dimensions = array<i32: 0>} : vector<16x1xi32>
    %52 = arith.sitofp %51 : vector<16x1xi32> to vector<16x1xf32>
    %c0_24 = arith.constant 0 : index
    %c0_25 = arith.constant 0 : index
    %53 = vector.load %arg2[%c0_24, %c0_25] : memref<1x32xf32, #tpu.memory_space<vmem>>, vector<1x32xf32>
    %cst_26 = arith.constant dense<0.000000e+00> : vector<1x16xf32>
    %54 = tpu.matmul %53, %1, %cst_26 {dimension_numbers = #tpu.dot_dimension_numbers<[1], [1], [0], [0], [0, 0, 1, 0], [], []>} : vector<1x32xf32>, vector<16x32xf32>, vector<1x16xf32> -> vector<1x16xf32>
    %cst_27 = arith.constant 0.000000e+00 : f32
    %55 = vector.broadcast %cst_27 : f32 to vector<1x16xf32>
    %56 = arith.subf %55, %54 : vector<1x16xf32>
    %57 = arith.addf %54, %56 : vector<1x16xf32>
    %cst_28 = arith.constant 2.500000e-01 : f32
    %58 = vector.broadcast %cst_28 : f32 to vector<1x16xf32>
    %59 = arith.mulf %57, %58 : vector<1x16xf32>
    %cst_29 = arith.constant dense<0xFF800000> : vector<1xf32>
    %60 = vector.multi_reduction <maximumf>, %59, %cst_29 [1] : vector<1x16xf32> to vector<1xf32>
    %61 = vector.shape_cast %60 : vector<1xf32> to vector<1x1xf32>
    %62 = vector.broadcast %61 : vector<1x1xf32> to vector<1x16xf32>
    %63 = arith.subf %59, %62 : vector<1x16xf32>
    %64 = math.exp %63 : vector<1x16xf32>
    %cst_30 = arith.constant dense<0.000000e+00> : vector<1xf32>
    %65 = vector.multi_reduction <add>, %64, %cst_30 [1] : vector<1x16xf32> to vector<1xf32>
    %66 = vector.shape_cast %65 : vector<1xf32> to vector<1x1xf32>
    %67 = math.log %66 : vector<1x1xf32>
    %68 = arith.addf %61, %67 : vector<1x1xf32>
    %cst_31 = arith.constant 2.19722462 : f32
    %69 = vector.broadcast %cst_31 : f32 to vector<1x1xf32>
    %70 = arith.subf %69, %68 : vector<1x1xf32>
    %cst_32 = arith.constant 4.000000e+00 : f32
    %71 = vector.broadcast %cst_32 : f32 to vector<1x1xf32>
    %72 = arith.mulf %71, %70 : vector<1x1xf32>
    %73 = vector.broadcast %72 : vector<1x1xf32> to vector<1x16xf32>
    %74 = arith.addf %54, %73 : vector<1x16xf32>
    %cst_33 = arith.constant 0.000000e+00 : f32
    %75 = vector.broadcast %cst_33 : f32 to vector<1x16xf32>
    %76 = arith.maximumf %74, %75 : vector<1x16xf32>
    %cst_34 = arith.constant 0.000000e+00 : f32
    %77 = vector.broadcast %cst_34 : f32 to vector<1x16xf32>
    %78 = arith.subf %77, %76 : vector<1x16xf32>
    %79 = arith.addf %54, %78 : vector<1x16xf32>
    %cst_35 = arith.constant 0.357142866 : f32
    %80 = vector.broadcast %cst_35 : f32 to vector<1x16xf32>
    %81 = arith.mulf %79, %80 : vector<1x16xf32>
    %cst_36 = arith.constant dense<0xFF800000> : vector<1xf32>
    %82 = vector.multi_reduction <maximumf>, %81, %cst_36 [1] : vector<1x16xf32> to vector<1xf32>
    %83 = vector.shape_cast %82 : vector<1xf32> to vector<1x1xf32>
    %84 = vector.broadcast %83 : vector<1x1xf32> to vector<1x16xf32>
    %85 = arith.subf %81, %84 : vector<1x16xf32>
    %86 = math.exp %85 : vector<1x16xf32>
    %cst_37 = arith.constant dense<0.000000e+00> : vector<1xf32>
    %87 = vector.multi_reduction <add>, %86, %cst_37 [1] : vector<1x16xf32> to vector<1xf32>
    %88 = vector.shape_cast %87 : vector<1xf32> to vector<1x1xf32>
    %89 = math.log %88 : vector<1x1xf32>
    %90 = arith.addf %83, %89 : vector<1x1xf32>
    %cst_38 = arith.constant 2.19722462 : f32
    %91 = vector.broadcast %cst_38 : f32 to vector<1x1xf32>
    %92 = arith.subf %91, %90 : vector<1x1xf32>
    %cst_39 = arith.constant 2.800000e+00 : f32
    %93 = vector.broadcast %cst_39 : f32 to vector<1x1xf32>
    %94 = arith.mulf %93, %92 : vector<1x1xf32>
    %95 = vector.broadcast %94 : vector<1x1xf32> to vector<1x16xf32>
    %96 = arith.addf %54, %95 : vector<1x16xf32>
    %cst_40 = arith.constant 0.000000e+00 : f32
    %97 = vector.broadcast %cst_40 : f32 to vector<1x16xf32>
    %98 = arith.maximumf %96, %97 : vector<1x16xf32>
    %cst_41 = arith.constant 0.000000e+00 : f32
    %99 = vector.broadcast %cst_41 : f32 to vector<1x16xf32>
    %100 = arith.subf %99, %98 : vector<1x16xf32>
    %101 = arith.addf %54, %100 : vector<1x16xf32>
    %cst_42 = arith.constant 0.510204077 : f32
    %102 = vector.broadcast %cst_42 : f32 to vector<1x16xf32>
    %103 = arith.mulf %101, %102 : vector<1x16xf32>
    %cst_43 = arith.constant dense<0xFF800000> : vector<1xf32>
    %104 = vector.multi_reduction <maximumf>, %103, %cst_43 [1] : vector<1x16xf32> to vector<1xf32>
    %105 = vector.shape_cast %104 : vector<1xf32> to vector<1x1xf32>
    %106 = vector.broadcast %105 : vector<1x1xf32> to vector<1x16xf32>
    %107 = arith.subf %103, %106 : vector<1x16xf32>
    %108 = math.exp %107 : vector<1x16xf32>
    %cst_44 = arith.constant dense<0.000000e+00> : vector<1xf32>
    %109 = vector.multi_reduction <add>, %108, %cst_44 [1] : vector<1x16xf32> to vector<1xf32>
    %110 = vector.shape_cast %109 : vector<1xf32> to vector<1x1xf32>
    %111 = math.log %110 : vector<1x1xf32>
    %112 = arith.addf %105, %111 : vector<1x1xf32>
    %cst_45 = arith.constant 2.19722462 : f32
    %113 = vector.broadcast %cst_45 : f32 to vector<1x1xf32>
    %114 = arith.subf %113, %112 : vector<1x1xf32>
    %cst_46 = arith.constant 1.960000e+00 : f32
    %115 = vector.broadcast %cst_46 : f32 to vector<1x1xf32>
    %116 = arith.mulf %115, %114 : vector<1x1xf32>
    %117 = vector.broadcast %116 : vector<1x1xf32> to vector<1x16xf32>
    %118 = arith.addf %54, %117 : vector<1x16xf32>
    %cst_47 = arith.constant 0.000000e+00 : f32
    %119 = vector.broadcast %cst_47 : f32 to vector<1x16xf32>
    %120 = arith.maximumf %118, %119 : vector<1x16xf32>
    %cst_48 = arith.constant 0.000000e+00 : f32
    %121 = vector.broadcast %cst_48 : f32 to vector<1x16xf32>
    %122 = arith.subf %121, %120 : vector<1x16xf32>
    %123 = arith.addf %54, %122 : vector<1x16xf32>
    %cst_49 = arith.constant 7.288630e-01 : f32
    %124 = vector.broadcast %cst_49 : f32 to vector<1x16xf32>
    %125 = arith.mulf %123, %124 : vector<1x16xf32>
    %cst_50 = arith.constant dense<0xFF800000> : vector<1xf32>
    %126 = vector.multi_reduction <maximumf>, %125, %cst_50 [1] : vector<1x16xf32> to vector<1xf32>
    %127 = vector.shape_cast %126 : vector<1xf32> to vector<1x1xf32>
    %128 = vector.broadcast %127 : vector<1x1xf32> to vector<1x16xf32>
    %129 = arith.subf %125, %128 : vector<1x16xf32>
    %130 = math.exp %129 : vector<1x16xf32>
    %cst_51 = arith.constant dense<0.000000e+00> : vector<1xf32>
    %131 = vector.multi_reduction <add>, %130, %cst_51 [1] : vector<1x16xf32> to vector<1xf32>
    %132 = vector.shape_cast %131 : vector<1xf32> to vector<1x1xf32>
    %133 = math.log %132 : vector<1x1xf32>
    %134 = arith.addf %127, %133 : vector<1x1xf32>
    %cst_52 = arith.constant 2.19722462 : f32
    %135 = vector.broadcast %cst_52 : f32 to vector<1x1xf32>
    %136 = arith.subf %135, %134 : vector<1x1xf32>
    %cst_53 = arith.constant 1.372000e+00 : f32
    %137 = vector.broadcast %cst_53 : f32 to vector<1x1xf32>
    %138 = arith.mulf %137, %136 : vector<1x1xf32>
    %139 = vector.broadcast %138 : vector<1x1xf32> to vector<1x16xf32>
    %140 = arith.addf %54, %139 : vector<1x16xf32>
    %cst_54 = arith.constant 0.000000e+00 : f32
    %141 = vector.broadcast %cst_54 : f32 to vector<1x16xf32>
    %142 = arith.maximumf %140, %141 : vector<1x16xf32>
    %cst_55 = arith.constant 0.000000e+00 : f32
    %143 = vector.broadcast %cst_55 : f32 to vector<1x16xf32>
    %144 = arith.subf %143, %142 : vector<1x16xf32>
    %145 = arith.addf %54, %144 : vector<1x16xf32>
    %cst_56 = arith.constant 1.000000e+00 : f32
    %146 = vector.broadcast %cst_56 : f32 to vector<1x16xf32>
    %147 = arith.mulf %145, %146 : vector<1x16xf32>
    %cst_57 = arith.constant dense<0xFF800000> : vector<1xf32>
    %148 = vector.multi_reduction <maximumf>, %147, %cst_57 [1] : vector<1x16xf32> to vector<1xf32>
    %149 = vector.shape_cast %148 : vector<1xf32> to vector<1x1xf32>
    %150 = vector.broadcast %149 : vector<1x1xf32> to vector<1x16xf32>
    %151 = arith.subf %147, %150 : vector<1x16xf32>
    %152 = math.exp %151 : vector<1x16xf32>
    %cst_58 = arith.constant dense<0.000000e+00> : vector<1xf32>
    %153 = vector.multi_reduction <add>, %152, %cst_58 [1] : vector<1x16xf32> to vector<1xf32>
    %154 = vector.shape_cast %153 : vector<1xf32> to vector<1x1xf32>
    %155 = math.log %154 : vector<1x1xf32>
    %156 = arith.addf %149, %155 : vector<1x1xf32>
    %cst_59 = arith.constant 2.19722462 : f32
    %157 = vector.broadcast %cst_59 : f32 to vector<1x1xf32>
    %158 = arith.subf %157, %156 : vector<1x1xf32>
    %cst_60 = arith.constant 1.000000e+00 : f32
    %159 = vector.broadcast %cst_60 : f32 to vector<1x1xf32>
    %160 = arith.mulf %159, %158 : vector<1x1xf32>
    %161 = vector.broadcast %160 : vector<1x1xf32> to vector<1x16xf32>
    %162 = arith.addf %54, %161 : vector<1x16xf32>
    %cst_61 = arith.constant 0.000000e+00 : f32
    %163 = vector.broadcast %cst_61 : f32 to vector<1x16xf32>
    %164 = arith.maximumf %162, %163 : vector<1x16xf32>
    %cst_62 = arith.constant 0.000000e+00 : f32
    %165 = vector.broadcast %cst_62 : f32 to vector<1x16xf32>
    %166 = arith.subf %165, %164 : vector<1x16xf32>
    %167 = arith.addf %54, %166 : vector<1x16xf32>
    %cst_63 = arith.constant 1.000000e+00 : f32
    %168 = vector.broadcast %cst_63 : f32 to vector<1x16xf32>
    %169 = arith.mulf %167, %168 : vector<1x16xf32>
    %cst_64 = arith.constant dense<0xFF800000> : vector<1xf32>
    %170 = vector.multi_reduction <maximumf>, %169, %cst_64 [1] : vector<1x16xf32> to vector<1xf32>
    %171 = vector.shape_cast %170 : vector<1xf32> to vector<1x1xf32>
    %172 = vector.broadcast %171 : vector<1x1xf32> to vector<1x16xf32>
    %173 = arith.subf %169, %172 : vector<1x16xf32>
    %174 = math.exp %173 : vector<1x16xf32>
    %cst_65 = arith.constant dense<0.000000e+00> : vector<1xf32>
    %175 = vector.multi_reduction <add>, %174, %cst_65 [1] : vector<1x16xf32> to vector<1xf32>
    %176 = vector.shape_cast %175 : vector<1xf32> to vector<1x1xf32>
    %177 = math.log %176 : vector<1x1xf32>
    %178 = arith.addf %171, %177 : vector<1x1xf32>
    %cst_66 = arith.constant 2.19722462 : f32
    %179 = vector.broadcast %cst_66 : f32 to vector<1x1xf32>
    %180 = arith.subf %179, %178 : vector<1x1xf32>
    %cst_67 = arith.constant 1.000000e+00 : f32
    %181 = vector.broadcast %cst_67 : f32 to vector<1x1xf32>
    %182 = arith.mulf %181, %180 : vector<1x1xf32>
    %183 = vector.broadcast %182 : vector<1x1xf32> to vector<1x16xf32>
    %184 = arith.addf %54, %183 : vector<1x16xf32>
    %cst_68 = arith.constant 0.000000e+00 : f32
    %185 = vector.broadcast %cst_68 : f32 to vector<1x16xf32>
    %186 = arith.maximumf %184, %185 : vector<1x16xf32>
    %cst_69 = arith.constant 0.000000e+00 : f32
    %187 = vector.broadcast %cst_69 : f32 to vector<1x16xf32>
    %188 = arith.subf %187, %186 : vector<1x16xf32>
    %189 = arith.addf %54, %188 : vector<1x16xf32>
    %cst_70 = arith.constant 1.000000e+00 : f32
    %190 = vector.broadcast %cst_70 : f32 to vector<1x16xf32>
    %191 = arith.mulf %189, %190 : vector<1x16xf32>
    %cst_71 = arith.constant dense<0xFF800000> : vector<1xf32>
    %192 = vector.multi_reduction <maximumf>, %191, %cst_71 [1] : vector<1x16xf32> to vector<1xf32>
    %193 = vector.shape_cast %192 : vector<1xf32> to vector<1x1xf32>
    %194 = vector.broadcast %193 : vector<1x1xf32> to vector<1x16xf32>
    %195 = arith.subf %191, %194 : vector<1x16xf32>
    %196 = math.exp %195 : vector<1x16xf32>
    %cst_72 = arith.constant dense<0.000000e+00> : vector<1xf32>
    %197 = vector.multi_reduction <add>, %196, %cst_72 [1] : vector<1x16xf32> to vector<1xf32>
    %198 = vector.shape_cast %197 : vector<1xf32> to vector<1x1xf32>
    %199 = math.log %198 : vector<1x1xf32>
    %200 = arith.addf %193, %199 : vector<1x1xf32>
    %cst_73 = arith.constant 2.19722462 : f32
    %201 = vector.broadcast %cst_73 : f32 to vector<1x1xf32>
    %202 = arith.subf %201, %200 : vector<1x1xf32>
    %cst_74 = arith.constant 1.000000e+00 : f32
    %203 = vector.broadcast %cst_74 : f32 to vector<1x1xf32>
    %204 = arith.mulf %203, %202 : vector<1x1xf32>
    %205 = vector.broadcast %204 : vector<1x1xf32> to vector<1x16xf32>
    %206 = arith.addf %54, %205 : vector<1x16xf32>
    %cst_75 = arith.constant 0.000000e+00 : f32
    %207 = vector.broadcast %cst_75 : f32 to vector<1x16xf32>
    %208 = arith.maximumf %206, %207 : vector<1x16xf32>
    %cst_76 = arith.constant 0.000000e+00 : f32
    %209 = vector.broadcast %cst_76 : f32 to vector<1x16xf32>
    %210 = arith.subf %209, %208 : vector<1x16xf32>
    %211 = arith.addf %54, %210 : vector<1x16xf32>
    %cst_77 = arith.constant 1.000000e+00 : f32
    %212 = vector.broadcast %cst_77 : f32 to vector<1x16xf32>
    %213 = arith.mulf %211, %212 : vector<1x16xf32>
    %cst_78 = arith.constant dense<0xFF800000> : vector<1xf32>
    %214 = vector.multi_reduction <maximumf>, %213, %cst_78 [1] : vector<1x16xf32> to vector<1xf32>
    %215 = vector.shape_cast %214 : vector<1xf32> to vector<1x1xf32>
    %216 = vector.broadcast %215 : vector<1x1xf32> to vector<1x16xf32>
    %217 = arith.subf %213, %216 : vector<1x16xf32>
    %218 = math.exp %217 : vector<1x16xf32>
    %cst_79 = arith.constant dense<0.000000e+00> : vector<1xf32>
    %219 = vector.multi_reduction <add>, %218, %cst_79 [1] : vector<1x16xf32> to vector<1xf32>
    %220 = vector.shape_cast %219 : vector<1xf32> to vector<1x1xf32>
    %221 = math.log %220 : vector<1x1xf32>
    %222 = arith.addf %215, %221 : vector<1x1xf32>
    %cst_80 = arith.constant 2.19722462 : f32
    %223 = vector.broadcast %cst_80 : f32 to vector<1x1xf32>
    %224 = arith.subf %223, %222 : vector<1x1xf32>
    %cst_81 = arith.constant 1.000000e+00 : f32
    %225 = vector.broadcast %cst_81 : f32 to vector<1x1xf32>
    %226 = arith.mulf %225, %224 : vector<1x1xf32>
    %227 = vector.broadcast %226 : vector<1x1xf32> to vector<1x16xf32>
    %228 = arith.addf %54, %227 : vector<1x16xf32>
    %cst_82 = arith.constant 0.000000e+00 : f32
    %229 = vector.broadcast %cst_82 : f32 to vector<1x16xf32>
    %230 = arith.maximumf %228, %229 : vector<1x16xf32>
    %cst_83 = arith.constant 0.000000e+00 : f32
    %231 = vector.broadcast %cst_83 : f32 to vector<1x16xf32>
    %232 = arith.subf %231, %230 : vector<1x16xf32>
    %233 = arith.addf %54, %232 : vector<1x16xf32>
    %cst_84 = arith.constant 1.000000e+00 : f32
    %234 = vector.broadcast %cst_84 : f32 to vector<1x16xf32>
    %235 = arith.mulf %233, %234 : vector<1x16xf32>
    %cst_85 = arith.constant dense<0xFF800000> : vector<1xf32>
    %236 = vector.multi_reduction <maximumf>, %235, %cst_85 [1] : vector<1x16xf32> to vector<1xf32>
    %237 = vector.shape_cast %236 : vector<1xf32> to vector<1x1xf32>
    %238 = vector.broadcast %237 : vector<1x1xf32> to vector<1x16xf32>
    %239 = arith.subf %235, %238 : vector<1x16xf32>
    %240 = math.exp %239 : vector<1x16xf32>
    %cst_86 = arith.constant dense<0.000000e+00> : vector<1xf32>
    %241 = vector.multi_reduction <add>, %240, %cst_86 [1] : vector<1x16xf32> to vector<1xf32>
    %242 = vector.shape_cast %241 : vector<1xf32> to vector<1x1xf32>
    %243 = math.log %242 : vector<1x1xf32>
    %244 = arith.addf %237, %243 : vector<1x1xf32>
    %cst_87 = arith.constant 2.19722462 : f32
    %245 = vector.broadcast %cst_87 : f32 to vector<1x1xf32>
    %246 = arith.subf %245, %244 : vector<1x1xf32>
    %cst_88 = arith.constant 1.000000e+00 : f32
    %247 = vector.broadcast %cst_88 : f32 to vector<1x1xf32>
    %248 = arith.mulf %247, %246 : vector<1x1xf32>
    %249 = vector.broadcast %248 : vector<1x1xf32> to vector<1x16xf32>
    %250 = arith.addf %54, %249 : vector<1x16xf32>
    %cst_89 = arith.constant 0.000000e+00 : f32
    %251 = vector.broadcast %cst_89 : f32 to vector<1x16xf32>
    %252 = arith.maximumf %250, %251 : vector<1x16xf32>
    %cst_90 = arith.constant 0.000000e+00 : f32
    %253 = vector.broadcast %cst_90 : f32 to vector<1x16xf32>
    %254 = arith.subf %253, %252 : vector<1x16xf32>
    %255 = arith.addf %54, %254 : vector<1x16xf32>
    %cst_91 = arith.constant 1.000000e+00 : f32
    %256 = vector.broadcast %cst_91 : f32 to vector<1x16xf32>
    %257 = arith.mulf %255, %256 : vector<1x16xf32>
    %cst_92 = arith.constant dense<0xFF800000> : vector<1xf32>
    %258 = vector.multi_reduction <maximumf>, %257, %cst_92 [1] : vector<1x16xf32> to vector<1xf32>
    %259 = vector.shape_cast %258 : vector<1xf32> to vector<1x1xf32>
    %260 = vector.broadcast %259 : vector<1x1xf32> to vector<1x16xf32>
    %261 = arith.subf %257, %260 : vector<1x16xf32>
    %262 = math.exp %261 : vector<1x16xf32>
    %cst_93 = arith.constant dense<0.000000e+00> : vector<1xf32>
    %263 = vector.multi_reduction <add>, %262, %cst_93 [1] : vector<1x16xf32> to vector<1xf32>
    %264 = vector.shape_cast %263 : vector<1xf32> to vector<1x1xf32>
    %265 = math.log %264 : vector<1x1xf32>
    %266 = arith.addf %259, %265 : vector<1x1xf32>
    %cst_94 = arith.constant 2.19722462 : f32
    %267 = vector.broadcast %cst_94 : f32 to vector<1x1xf32>
    %268 = arith.subf %267, %266 : vector<1x1xf32>
    %cst_95 = arith.constant 1.000000e+00 : f32
    %269 = vector.broadcast %cst_95 : f32 to vector<1x1xf32>
    %270 = arith.mulf %269, %268 : vector<1x1xf32>
    %271 = vector.broadcast %270 : vector<1x1xf32> to vector<1x16xf32>
    %272 = arith.addf %54, %271 : vector<1x16xf32>
    %cst_96 = arith.constant 0.000000e+00 : f32
    %273 = vector.broadcast %cst_96 : f32 to vector<1x16xf32>
    %274 = arith.maximumf %272, %273 : vector<1x16xf32>
    %cst_97 = arith.constant 0.000000e+00 : f32
    %275 = vector.broadcast %cst_97 : f32 to vector<1x16xf32>
    %276 = arith.subf %275, %274 : vector<1x16xf32>
    %277 = arith.addf %54, %276 : vector<1x16xf32>
    %cst_98 = arith.constant 1.000000e+00 : f32
    %278 = vector.broadcast %cst_98 : f32 to vector<1x16xf32>
    %279 = arith.mulf %277, %278 : vector<1x16xf32>
    %cst_99 = arith.constant dense<0xFF800000> : vector<1xf32>
    %280 = vector.multi_reduction <maximumf>, %279, %cst_99 [1] : vector<1x16xf32> to vector<1xf32>
    %281 = vector.shape_cast %280 : vector<1xf32> to vector<1x1xf32>
    %282 = vector.broadcast %281 : vector<1x1xf32> to vector<1x16xf32>
    %283 = arith.subf %279, %282 : vector<1x16xf32>
    %284 = math.exp %283 : vector<1x16xf32>
    %cst_100 = arith.constant dense<0.000000e+00> : vector<1xf32>
    %285 = vector.multi_reduction <add>, %284, %cst_100 [1] : vector<1x16xf32> to vector<1xf32>
    %286 = vector.shape_cast %285 : vector<1xf32> to vector<1x1xf32>
    %287 = math.log %286 : vector<1x1xf32>
    %288 = arith.addf %281, %287 : vector<1x1xf32>
    %cst_101 = arith.constant 2.19722462 : f32
    %289 = vector.broadcast %cst_101 : f32 to vector<1x1xf32>
    %290 = arith.subf %289, %288 : vector<1x1xf32>
    %cst_102 = arith.constant 1.000000e+00 : f32
    %291 = vector.broadcast %cst_102 : f32 to vector<1x1xf32>
    %292 = arith.mulf %291, %290 : vector<1x1xf32>
    %293 = vector.broadcast %292 : vector<1x1xf32> to vector<1x16xf32>
    %294 = arith.addf %54, %293 : vector<1x16xf32>
    %cst_103 = arith.constant 0.000000e+00 : f32
    %295 = vector.broadcast %cst_103 : f32 to vector<1x16xf32>
    %296 = arith.maximumf %294, %295 : vector<1x16xf32>
    %cst_104 = arith.constant 0.000000e+00 : f32
    %297 = vector.broadcast %cst_104 : f32 to vector<1x16xf32>
    %298 = arith.subf %297, %296 : vector<1x16xf32>
    %299 = arith.addf %54, %298 : vector<1x16xf32>
    %cst_105 = arith.constant 1.000000e+00 : f32
    %300 = vector.broadcast %cst_105 : f32 to vector<1x16xf32>
    %301 = arith.mulf %299, %300 : vector<1x16xf32>
    %cst_106 = arith.constant dense<0xFF800000> : vector<1xf32>
    %302 = vector.multi_reduction <maximumf>, %301, %cst_106 [1] : vector<1x16xf32> to vector<1xf32>
    %303 = vector.shape_cast %302 : vector<1xf32> to vector<1x1xf32>
    %304 = vector.broadcast %303 : vector<1x1xf32> to vector<1x16xf32>
    %305 = arith.subf %301, %304 : vector<1x16xf32>
    %306 = math.exp %305 : vector<1x16xf32>
    %cst_107 = arith.constant dense<0.000000e+00> : vector<1xf32>
    %307 = vector.multi_reduction <add>, %306, %cst_107 [1] : vector<1x16xf32> to vector<1xf32>
    %308 = vector.shape_cast %307 : vector<1xf32> to vector<1x1xf32>
    %309 = math.log %308 : vector<1x1xf32>
    %310 = arith.addf %303, %309 : vector<1x1xf32>
    %cst_108 = arith.constant 2.19722462 : f32
    %311 = vector.broadcast %cst_108 : f32 to vector<1x1xf32>
    %312 = arith.subf %311, %310 : vector<1x1xf32>
    %cst_109 = arith.constant 1.000000e+00 : f32
    %313 = vector.broadcast %cst_109 : f32 to vector<1x1xf32>
    %314 = arith.mulf %313, %312 : vector<1x1xf32>
    %315 = vector.broadcast %314 : vector<1x1xf32> to vector<1x16xf32>
    %316 = arith.addf %54, %315 : vector<1x16xf32>
    %cst_110 = arith.constant 0.000000e+00 : f32
    %317 = vector.broadcast %cst_110 : f32 to vector<1x16xf32>
    %318 = arith.maximumf %316, %317 : vector<1x16xf32>
    %cst_111 = arith.constant 0.000000e+00 : f32
    %319 = vector.broadcast %cst_111 : f32 to vector<1x16xf32>
    %320 = arith.subf %319, %318 : vector<1x16xf32>
    %321 = arith.addf %54, %320 : vector<1x16xf32>
    %cst_112 = arith.constant 1.000000e+00 : f32
    %322 = vector.broadcast %cst_112 : f32 to vector<1x16xf32>
    %323 = arith.mulf %321, %322 : vector<1x16xf32>
    %cst_113 = arith.constant dense<0xFF800000> : vector<1xf32>
    %324 = vector.multi_reduction <maximumf>, %323, %cst_113 [1] : vector<1x16xf32> to vector<1xf32>
    %325 = vector.shape_cast %324 : vector<1xf32> to vector<1x1xf32>
    %326 = vector.broadcast %325 : vector<1x1xf32> to vector<1x16xf32>
    %327 = arith.subf %323, %326 : vector<1x16xf32>
    %328 = math.exp %327 : vector<1x16xf32>
    %cst_114 = arith.constant dense<0.000000e+00> : vector<1xf32>
    %329 = vector.multi_reduction <add>, %328, %cst_114 [1] : vector<1x16xf32> to vector<1xf32>
    %330 = vector.shape_cast %329 : vector<1xf32> to vector<1x1xf32>
    %331 = math.log %330 : vector<1x1xf32>
    %332 = arith.addf %325, %331 : vector<1x1xf32>
    %cst_115 = arith.constant 2.19722462 : f32
    %333 = vector.broadcast %cst_115 : f32 to vector<1x1xf32>
    %334 = arith.subf %333, %332 : vector<1x1xf32>
    %cst_116 = arith.constant 1.000000e+00 : f32
    %335 = vector.broadcast %cst_116 : f32 to vector<1x1xf32>
    %336 = arith.mulf %335, %334 : vector<1x1xf32>
    %337 = vector.broadcast %336 : vector<1x1xf32> to vector<1x16xf32>
    %338 = arith.addf %54, %337 : vector<1x16xf32>
    %cst_117 = arith.constant 0.000000e+00 : f32
    %339 = vector.broadcast %cst_117 : f32 to vector<1x16xf32>
    %340 = arith.maximumf %338, %339 : vector<1x16xf32>
    %cst_118 = arith.constant 0.000000e+00 : f32
    %341 = vector.broadcast %cst_118 : f32 to vector<1x16xf32>
    %342 = arith.subf %341, %340 : vector<1x16xf32>
    %343 = arith.addf %54, %342 : vector<1x16xf32>
    %cst_119 = arith.constant 1.000000e+00 : f32
    %344 = vector.broadcast %cst_119 : f32 to vector<1x16xf32>
    %345 = arith.mulf %343, %344 : vector<1x16xf32>
    %cst_120 = arith.constant dense<0xFF800000> : vector<1xf32>
    %346 = vector.multi_reduction <maximumf>, %345, %cst_120 [1] : vector<1x16xf32> to vector<1xf32>
    %347 = vector.shape_cast %346 : vector<1xf32> to vector<1x1xf32>
    %348 = vector.broadcast %347 : vector<1x1xf32> to vector<1x16xf32>
    %349 = arith.subf %345, %348 : vector<1x16xf32>
    %350 = math.exp %349 : vector<1x16xf32>
    %cst_121 = arith.constant dense<0.000000e+00> : vector<1xf32>
    %351 = vector.multi_reduction <add>, %350, %cst_121 [1] : vector<1x16xf32> to vector<1xf32>
    %352 = vector.shape_cast %351 : vector<1xf32> to vector<1x1xf32>
    %353 = math.log %352 : vector<1x1xf32>
    %354 = arith.addf %347, %353 : vector<1x1xf32>
    %cst_122 = arith.constant 2.19722462 : f32
    %355 = vector.broadcast %cst_122 : f32 to vector<1x1xf32>
    %356 = arith.subf %355, %354 : vector<1x1xf32>
    %cst_123 = arith.constant 1.000000e+00 : f32
    %357 = vector.broadcast %cst_123 : f32 to vector<1x1xf32>
    %358 = arith.mulf %357, %356 : vector<1x1xf32>
    %359 = vector.broadcast %358 : vector<1x1xf32> to vector<1x16xf32>
    %360 = arith.addf %54, %359 : vector<1x16xf32>
    %cst_124 = arith.constant 0.000000e+00 : f32
    %361 = vector.broadcast %cst_124 : f32 to vector<1x16xf32>
    %362 = arith.maximumf %360, %361 : vector<1x16xf32>
    %cst_125 = arith.constant 0.000000e+00 : f32
    %363 = vector.broadcast %cst_125 : f32 to vector<1x16xf32>
    %364 = arith.subf %363, %362 : vector<1x16xf32>
    %365 = arith.addf %54, %364 : vector<1x16xf32>
    %cst_126 = arith.constant 1.000000e+00 : f32
    %366 = vector.broadcast %cst_126 : f32 to vector<1x16xf32>
    %367 = arith.mulf %365, %366 : vector<1x16xf32>
    %cst_127 = arith.constant dense<0xFF800000> : vector<1xf32>
    %368 = vector.multi_reduction <maximumf>, %367, %cst_127 [1] : vector<1x16xf32> to vector<1xf32>
    %369 = vector.shape_cast %368 : vector<1xf32> to vector<1x1xf32>
    %370 = vector.broadcast %369 : vector<1x1xf32> to vector<1x16xf32>
    %371 = arith.subf %367, %370 : vector<1x16xf32>
    %372 = math.exp %371 : vector<1x16xf32>
    %cst_128 = arith.constant dense<0.000000e+00> : vector<1xf32>
    %373 = vector.multi_reduction <add>, %372, %cst_128 [1] : vector<1x16xf32> to vector<1xf32>
    %374 = vector.shape_cast %373 : vector<1xf32> to vector<1x1xf32>
    %375 = math.log %374 : vector<1x1xf32>
    %376 = arith.addf %369, %375 : vector<1x1xf32>
    %cst_129 = arith.constant 2.19722462 : f32
    %377 = vector.broadcast %cst_129 : f32 to vector<1x1xf32>
    %378 = arith.subf %377, %376 : vector<1x1xf32>
    %cst_130 = arith.constant 1.000000e+00 : f32
    %379 = vector.broadcast %cst_130 : f32 to vector<1x1xf32>
    %380 = arith.mulf %379, %378 : vector<1x1xf32>
    %381 = vector.broadcast %380 : vector<1x1xf32> to vector<1x16xf32>
    %382 = arith.addf %54, %381 : vector<1x16xf32>
    %cst_131 = arith.constant 0.000000e+00 : f32
    %383 = vector.broadcast %cst_131 : f32 to vector<1x16xf32>
    %384 = arith.maximumf %382, %383 : vector<1x16xf32>
    %cst_132 = arith.constant 0.000000e+00 : f32
    %385 = vector.broadcast %cst_132 : f32 to vector<1x16xf32>
    %386 = arith.subf %385, %384 : vector<1x16xf32>
    %387 = arith.addf %54, %386 : vector<1x16xf32>
    %cst_133 = arith.constant 1.000000e+00 : f32
    %388 = vector.broadcast %cst_133 : f32 to vector<1x16xf32>
    %389 = arith.mulf %387, %388 : vector<1x16xf32>
    %cst_134 = arith.constant dense<0xFF800000> : vector<1xf32>
    %390 = vector.multi_reduction <maximumf>, %389, %cst_134 [1] : vector<1x16xf32> to vector<1xf32>
    %391 = vector.shape_cast %390 : vector<1xf32> to vector<1x1xf32>
    %392 = vector.broadcast %391 : vector<1x1xf32> to vector<1x16xf32>
    %393 = arith.subf %389, %392 : vector<1x16xf32>
    %394 = math.exp %393 : vector<1x16xf32>
    %cst_135 = arith.constant dense<0.000000e+00> : vector<1xf32>
    %395 = vector.multi_reduction <add>, %394, %cst_135 [1] : vector<1x16xf32> to vector<1xf32>
    %396 = vector.shape_cast %395 : vector<1xf32> to vector<1x1xf32>
    %397 = math.log %396 : vector<1x1xf32>
    %398 = arith.addf %391, %397 : vector<1x1xf32>
    %cst_136 = arith.constant 2.19722462 : f32
    %399 = vector.broadcast %cst_136 : f32 to vector<1x1xf32>
    %400 = arith.subf %399, %398 : vector<1x1xf32>
    %cst_137 = arith.constant 1.000000e+00 : f32
    %401 = vector.broadcast %cst_137 : f32 to vector<1x1xf32>
    %402 = arith.mulf %401, %400 : vector<1x1xf32>
    %403 = vector.broadcast %402 : vector<1x1xf32> to vector<1x16xf32>
    %404 = arith.addf %54, %403 : vector<1x16xf32>
    %cst_138 = arith.constant 0.000000e+00 : f32
    %405 = vector.broadcast %cst_138 : f32 to vector<1x16xf32>
    %406 = arith.maximumf %404, %405 : vector<1x16xf32>
    %cst_139 = arith.constant 0.000000e+00 : f32
    %407 = vector.broadcast %cst_139 : f32 to vector<1x16xf32>
    %408 = arith.subf %407, %406 : vector<1x16xf32>
    %409 = arith.addf %54, %408 : vector<1x16xf32>
    %cst_140 = arith.constant 1.000000e+00 : f32
    %410 = vector.broadcast %cst_140 : f32 to vector<1x16xf32>
    %411 = arith.mulf %409, %410 : vector<1x16xf32>
    %cst_141 = arith.constant dense<0xFF800000> : vector<1xf32>
    %412 = vector.multi_reduction <maximumf>, %411, %cst_141 [1] : vector<1x16xf32> to vector<1xf32>
    %413 = vector.shape_cast %412 : vector<1xf32> to vector<1x1xf32>
    %414 = vector.broadcast %413 : vector<1x1xf32> to vector<1x16xf32>
    %415 = arith.subf %411, %414 : vector<1x16xf32>
    %416 = math.exp %415 : vector<1x16xf32>
    %cst_142 = arith.constant dense<0.000000e+00> : vector<1xf32>
    %417 = vector.multi_reduction <add>, %416, %cst_142 [1] : vector<1x16xf32> to vector<1xf32>
    %418 = vector.shape_cast %417 : vector<1xf32> to vector<1x1xf32>
    %419 = math.log %418 : vector<1x1xf32>
    %420 = arith.addf %413, %419 : vector<1x1xf32>
    %cst_143 = arith.constant 2.19722462 : f32
    %421 = vector.broadcast %cst_143 : f32 to vector<1x1xf32>
    %422 = arith.subf %421, %420 : vector<1x1xf32>
    %cst_144 = arith.constant 1.000000e+00 : f32
    %423 = vector.broadcast %cst_144 : f32 to vector<1x1xf32>
    %424 = arith.mulf %423, %422 : vector<1x1xf32>
    %425 = vector.broadcast %424 : vector<1x1xf32> to vector<1x16xf32>
    %426 = arith.addf %54, %425 : vector<1x16xf32>
    %cst_145 = arith.constant 0.000000e+00 : f32
    %427 = vector.broadcast %cst_145 : f32 to vector<1x16xf32>
    %428 = arith.maximumf %426, %427 : vector<1x16xf32>
    %cst_146 = arith.constant 0.000000e+00 : f32
    %429 = vector.broadcast %cst_146 : f32 to vector<1x16xf32>
    %430 = arith.subf %429, %428 : vector<1x16xf32>
    %431 = arith.addf %54, %430 : vector<1x16xf32>
    %cst_147 = arith.constant 1.000000e+00 : f32
    %432 = vector.broadcast %cst_147 : f32 to vector<1x16xf32>
    %433 = arith.mulf %431, %432 : vector<1x16xf32>
    %cst_148 = arith.constant dense<0xFF800000> : vector<1xf32>
    %434 = vector.multi_reduction <maximumf>, %433, %cst_148 [1] : vector<1x16xf32> to vector<1xf32>
    %435 = vector.shape_cast %434 : vector<1xf32> to vector<1x1xf32>
    %436 = vector.broadcast %435 : vector<1x1xf32> to vector<1x16xf32>
    %437 = arith.subf %433, %436 : vector<1x16xf32>
    %438 = math.exp %437 : vector<1x16xf32>
    %cst_149 = arith.constant dense<0.000000e+00> : vector<1xf32>
    %439 = vector.multi_reduction <add>, %438, %cst_149 [1] : vector<1x16xf32> to vector<1xf32>
    %440 = vector.shape_cast %439 : vector<1xf32> to vector<1x1xf32>
    %441 = math.log %440 : vector<1x1xf32>
    %442 = arith.addf %435, %441 : vector<1x1xf32>
    %cst_150 = arith.constant 2.19722462 : f32
    %443 = vector.broadcast %cst_150 : f32 to vector<1x1xf32>
    %444 = arith.subf %443, %442 : vector<1x1xf32>
    %cst_151 = arith.constant 1.000000e+00 : f32
    %445 = vector.broadcast %cst_151 : f32 to vector<1x1xf32>
    %446 = arith.mulf %445, %444 : vector<1x1xf32>
    %447 = vector.broadcast %446 : vector<1x1xf32> to vector<1x16xf32>
    %448 = arith.addf %54, %447 : vector<1x16xf32>
    %cst_152 = arith.constant 0.000000e+00 : f32
    %449 = vector.broadcast %cst_152 : f32 to vector<1x16xf32>
    %450 = arith.maximumf %448, %449 : vector<1x16xf32>
    %cst_153 = arith.constant 0.000000e+00 : f32
    %451 = vector.broadcast %cst_153 : f32 to vector<1x16xf32>
    %452 = arith.subf %451, %450 : vector<1x16xf32>
    %453 = arith.addf %54, %452 : vector<1x16xf32>
    %cst_154 = arith.constant 1.000000e+00 : f32
    %454 = vector.broadcast %cst_154 : f32 to vector<1x16xf32>
    %455 = arith.mulf %453, %454 : vector<1x16xf32>
    %cst_155 = arith.constant dense<0xFF800000> : vector<1xf32>
    %456 = vector.multi_reduction <maximumf>, %455, %cst_155 [1] : vector<1x16xf32> to vector<1xf32>
    %457 = vector.shape_cast %456 : vector<1xf32> to vector<1x1xf32>
    %458 = vector.broadcast %457 : vector<1x1xf32> to vector<1x16xf32>
    %459 = arith.subf %455, %458 : vector<1x16xf32>
    %460 = math.exp %459 : vector<1x16xf32>
    %cst_156 = arith.constant dense<0.000000e+00> : vector<1xf32>
    %461 = vector.multi_reduction <add>, %460, %cst_156 [1] : vector<1x16xf32> to vector<1xf32>
    %462 = vector.shape_cast %461 : vector<1xf32> to vector<1x1xf32>
    %463 = math.log %462 : vector<1x1xf32>
    %464 = arith.addf %457, %463 : vector<1x1xf32>
    %cst_157 = arith.constant 2.19722462 : f32
    %465 = vector.broadcast %cst_157 : f32 to vector<1x1xf32>
    %466 = arith.subf %465, %464 : vector<1x1xf32>
    %cst_158 = arith.constant 1.000000e+00 : f32
    %467 = vector.broadcast %cst_158 : f32 to vector<1x1xf32>
    %468 = arith.mulf %467, %466 : vector<1x1xf32>
    %469 = vector.broadcast %468 : vector<1x1xf32> to vector<1x16xf32>
    %470 = arith.addf %54, %469 : vector<1x16xf32>
    %cst_159 = arith.constant 0.000000e+00 : f32
    %471 = vector.broadcast %cst_159 : f32 to vector<1x16xf32>
    %472 = arith.maximumf %470, %471 : vector<1x16xf32>
    %cst_160 = arith.constant 0.000000e+00 : f32
    %473 = vector.broadcast %cst_160 : f32 to vector<1x16xf32>
    %474 = arith.subf %473, %472 : vector<1x16xf32>
    %475 = arith.addf %54, %474 : vector<1x16xf32>
    %cst_161 = arith.constant 1.000000e+00 : f32
    %476 = vector.broadcast %cst_161 : f32 to vector<1x16xf32>
    %477 = arith.mulf %475, %476 : vector<1x16xf32>
    %cst_162 = arith.constant dense<0xFF800000> : vector<1xf32>
    %478 = vector.multi_reduction <maximumf>, %477, %cst_162 [1] : vector<1x16xf32> to vector<1xf32>
    %479 = vector.shape_cast %478 : vector<1xf32> to vector<1x1xf32>
    %480 = vector.broadcast %479 : vector<1x1xf32> to vector<1x16xf32>
    %481 = arith.subf %477, %480 : vector<1x16xf32>
    %482 = math.exp %481 : vector<1x16xf32>
    %cst_163 = arith.constant dense<0.000000e+00> : vector<1xf32>
    %483 = vector.multi_reduction <add>, %482, %cst_163 [1] : vector<1x16xf32> to vector<1xf32>
    %484 = vector.shape_cast %483 : vector<1xf32> to vector<1x1xf32>
    %485 = math.log %484 : vector<1x1xf32>
    %486 = arith.addf %479, %485 : vector<1x1xf32>
    %cst_164 = arith.constant 2.19722462 : f32
    %487 = vector.broadcast %cst_164 : f32 to vector<1x1xf32>
    %488 = arith.subf %487, %486 : vector<1x1xf32>
    %cst_165 = arith.constant 1.000000e+00 : f32
    %489 = vector.broadcast %cst_165 : f32 to vector<1x1xf32>
    %490 = arith.mulf %489, %488 : vector<1x1xf32>
    %491 = vector.broadcast %490 : vector<1x1xf32> to vector<1x16xf32>
    %492 = arith.addf %54, %491 : vector<1x16xf32>
    %cst_166 = arith.constant 0.000000e+00 : f32
    %493 = vector.broadcast %cst_166 : f32 to vector<1x16xf32>
    %494 = arith.maximumf %492, %493 : vector<1x16xf32>
    %cst_167 = arith.constant 0.000000e+00 : f32
    %495 = vector.broadcast %cst_167 : f32 to vector<1x16xf32>
    %496 = arith.subf %495, %494 : vector<1x16xf32>
    %497 = vector.broadcast %490 : vector<1x1xf32> to vector<1x16xf32>
    %498 = arith.addf %54, %497 : vector<1x16xf32>
    %499 = arith.addf %498, %496 : vector<1x16xf32>
    %cst_168 = arith.constant 1.000000e+00 : f32
    %500 = vector.broadcast %cst_168 : f32 to vector<1x16xf32>
    %501 = arith.mulf %499, %500 : vector<1x16xf32>
    %502 = math.exp %501 : vector<1x16xf32>
    %503 = tpu.iota {dimensions = array<i32: 0>} : vector<8x1xi32>
    %504 = tpu.iota {dimensions = array<i32: 1>} : vector<1x8xi32>
    %cst_169 = arith.constant 0.000000e+00 : f32
    %505 = vector.broadcast %cst_169 : f32 to vector<8x16xf32>
    %cst_170 = arith.constant 0.000000e+00 : f32
    %506 = vector.broadcast %cst_170 : f32 to vector<16x8xf32>
    %cst_171 = arith.constant dense<0xFF800000> : vector<1xf32>
    %507 = vector.multi_reduction <maximumf>, %502, %cst_171 [1] : vector<1x16xf32> to vector<1xf32>
    %508 = vector.shape_cast %507 : vector<1xf32> to vector<1x1xf32>
    %509 = vector.broadcast %508 : vector<1x1xf32> to vector<1x16xf32>
    %510 = arith.cmpf oeq, %502, %509 : vector<1x16xf32>
    %cst_172 = arith.constant 1.600000e+01 : f32
    %511 = vector.broadcast %cst_172 : f32 to vector<1x16xf32>
    %512 = arith.select %510, %50, %511 : vector<1x16xi1>, vector<1x16xf32>
    %cst_173 = arith.constant dense<0x7F800000> : vector<1xf32>
    %513 = vector.multi_reduction <minimumf>, %512, %cst_173 [1] : vector<1x16xf32> to vector<1xf32>
    %514 = vector.shape_cast %513 : vector<1xf32> to vector<1x1xf32>
    %515 = vector.broadcast %514 : vector<1x1xf32> to vector<1x16xf32>
    %516 = arith.cmpf oeq, %50, %515 : vector<1x16xf32>
    %517 = arith.extui %516 : vector<1x16xi1> to vector<1x16xi32>
    %518 = arith.sitofp %517 : vector<1x16xi32> to vector<1x16xf32>
    %519 = vector.broadcast %514 : vector<1x1xf32> to vector<16x1xf32>
    %520 = arith.cmpf oeq, %52, %519 : vector<16x1xf32>
    %521 = arith.extui %520 : vector<16x1xi1> to vector<16x1xi32>
    %522 = arith.sitofp %521 : vector<16x1xi32> to vector<16x1xf32>
    %c0_i32 = arith.constant 0 : i32
    %523 = vector.broadcast %c0_i32 : i32 to vector<8x1xi32>
    %524 = arith.cmpi eq, %503, %523 : vector<8x1xi32>
    %cst_174 = arith.constant 1.000000e+00 : f32
    %cst_175 = arith.constant 0.000000e+00 : f32
    %525 = vector.broadcast %cst_174 : f32 to vector<8x1xf32>
    %526 = vector.broadcast %cst_175 : f32 to vector<8x1xf32>
    %527 = arith.select %524, %525, %526 : vector<8x1xi1>, vector<8x1xf32>
    %528 = vector.broadcast %527 : vector<8x1xf32> to vector<8x16xf32>
    %529 = vector.broadcast %518 : vector<1x16xf32> to vector<8x16xf32>
    %530 = arith.mulf %528, %529 : vector<8x16xf32>
    %531 = arith.addf %505, %530 : vector<8x16xf32>
    %c0_i32_176 = arith.constant 0 : i32
    %532 = vector.broadcast %c0_i32_176 : i32 to vector<1x8xi32>
    %533 = arith.cmpi eq, %504, %532 : vector<1x8xi32>
    %cst_177 = arith.constant 1.000000e+00 : f32
    %cst_178 = arith.constant 0.000000e+00 : f32
    %534 = vector.broadcast %cst_177 : f32 to vector<1x8xf32>
    %535 = vector.broadcast %cst_178 : f32 to vector<1x8xf32>
    %536 = arith.select %533, %534, %535 : vector<1x8xi1>, vector<1x8xf32>
    %537 = vector.broadcast %522 : vector<16x1xf32> to vector<16x8xf32>
    %538 = vector.broadcast %536 : vector<1x8xf32> to vector<16x8xf32>
    %539 = arith.mulf %537, %538 : vector<16x8xf32>
    %540 = arith.addf %506, %539 : vector<16x8xf32>
    %cst_179 = arith.constant 5.000000e-01 : f32
    %541 = vector.broadcast %cst_179 : f32 to vector<1x16xf32>
    %542 = arith.cmpf ogt, %518, %541 : vector<1x16xf32>
    %cst_180 = arith.constant -1.000000e+30 : f32
    %543 = vector.broadcast %cst_180 : f32 to vector<1x16xf32>
    %544 = arith.select %542, %543, %502 : vector<1x16xi1>, vector<1x16xf32>
    %cst_181 = arith.constant dense<0xFF800000> : vector<1xf32>
    %545 = vector.multi_reduction <maximumf>, %544, %cst_181 [1] : vector<1x16xf32> to vector<1xf32>
    %546 = vector.shape_cast %545 : vector<1xf32> to vector<1x1xf32>
    %547 = vector.broadcast %546 : vector<1x1xf32> to vector<1x16xf32>
    %548 = arith.cmpf oeq, %544, %547 : vector<1x16xf32>
    %cst_182 = arith.constant 1.600000e+01 : f32
    %549 = vector.broadcast %cst_182 : f32 to vector<1x16xf32>
    %550 = arith.select %548, %50, %549 : vector<1x16xi1>, vector<1x16xf32>
    %cst_183 = arith.constant dense<0x7F800000> : vector<1xf32>
    %551 = vector.multi_reduction <minimumf>, %550, %cst_183 [1] : vector<1x16xf32> to vector<1xf32>
    %552 = vector.shape_cast %551 : vector<1xf32> to vector<1x1xf32>
    %553 = vector.broadcast %552 : vector<1x1xf32> to vector<1x16xf32>
    %554 = arith.cmpf oeq, %50, %553 : vector<1x16xf32>
    %555 = arith.extui %554 : vector<1x16xi1> to vector<1x16xi32>
    %556 = arith.sitofp %555 : vector<1x16xi32> to vector<1x16xf32>
    %557 = vector.broadcast %552 : vector<1x1xf32> to vector<16x1xf32>
    %558 = arith.cmpf oeq, %52, %557 : vector<16x1xf32>
    %559 = arith.extui %558 : vector<16x1xi1> to vector<16x1xi32>
    %560 = arith.sitofp %559 : vector<16x1xi32> to vector<16x1xf32>
    %c1_i32 = arith.constant 1 : i32
    %561 = vector.broadcast %c1_i32 : i32 to vector<8x1xi32>
    %562 = arith.cmpi eq, %503, %561 : vector<8x1xi32>
    %cst_184 = arith.constant 1.000000e+00 : f32
    %cst_185 = arith.constant 0.000000e+00 : f32
    %563 = vector.broadcast %cst_184 : f32 to vector<8x1xf32>
    %564 = vector.broadcast %cst_185 : f32 to vector<8x1xf32>
    %565 = arith.select %562, %563, %564 : vector<8x1xi1>, vector<8x1xf32>
    %566 = vector.broadcast %565 : vector<8x1xf32> to vector<8x16xf32>
    %567 = vector.broadcast %556 : vector<1x16xf32> to vector<8x16xf32>
    %568 = arith.mulf %566, %567 : vector<8x16xf32>
    %569 = arith.addf %531, %568 : vector<8x16xf32>
    %c1_i32_186 = arith.constant 1 : i32
    %570 = vector.broadcast %c1_i32_186 : i32 to vector<1x8xi32>
    %571 = arith.cmpi eq, %504, %570 : vector<1x8xi32>
    %cst_187 = arith.constant 1.000000e+00 : f32
    %cst_188 = arith.constant 0.000000e+00 : f32
    %572 = vector.broadcast %cst_187 : f32 to vector<1x8xf32>
    %573 = vector.broadcast %cst_188 : f32 to vector<1x8xf32>
    %574 = arith.select %571, %572, %573 : vector<1x8xi1>, vector<1x8xf32>
    %575 = vector.broadcast %560 : vector<16x1xf32> to vector<16x8xf32>
    %576 = vector.broadcast %574 : vector<1x8xf32> to vector<16x8xf32>
    %577 = arith.mulf %575, %576 : vector<16x8xf32>
    %578 = arith.addf %540, %577 : vector<16x8xf32>
    %cst_189 = arith.constant 5.000000e-01 : f32
    %579 = vector.broadcast %cst_189 : f32 to vector<1x16xf32>
    %580 = arith.cmpf ogt, %556, %579 : vector<1x16xf32>
    %cst_190 = arith.constant -1.000000e+30 : f32
    %581 = vector.broadcast %cst_190 : f32 to vector<1x16xf32>
    %582 = arith.select %580, %581, %544 : vector<1x16xi1>, vector<1x16xf32>
    %cst_191 = arith.constant dense<0xFF800000> : vector<1xf32>
    %583 = vector.multi_reduction <maximumf>, %582, %cst_191 [1] : vector<1x16xf32> to vector<1xf32>
    %584 = vector.shape_cast %583 : vector<1xf32> to vector<1x1xf32>
    %585 = vector.broadcast %584 : vector<1x1xf32> to vector<1x16xf32>
    %586 = arith.cmpf oeq, %582, %585 : vector<1x16xf32>
    %cst_192 = arith.constant 1.600000e+01 : f32
    %587 = vector.broadcast %cst_192 : f32 to vector<1x16xf32>
    %588 = arith.select %586, %50, %587 : vector<1x16xi1>, vector<1x16xf32>
    %cst_193 = arith.constant dense<0x7F800000> : vector<1xf32>
    %589 = vector.multi_reduction <minimumf>, %588, %cst_193 [1] : vector<1x16xf32> to vector<1xf32>
    %590 = vector.shape_cast %589 : vector<1xf32> to vector<1x1xf32>
    %591 = vector.broadcast %590 : vector<1x1xf32> to vector<1x16xf32>
    %592 = arith.cmpf oeq, %50, %591 : vector<1x16xf32>
    %593 = arith.extui %592 : vector<1x16xi1> to vector<1x16xi32>
    %594 = arith.sitofp %593 : vector<1x16xi32> to vector<1x16xf32>
    %595 = vector.broadcast %590 : vector<1x1xf32> to vector<16x1xf32>
    %596 = arith.cmpf oeq, %52, %595 : vector<16x1xf32>
    %597 = arith.extui %596 : vector<16x1xi1> to vector<16x1xi32>
    %598 = arith.sitofp %597 : vector<16x1xi32> to vector<16x1xf32>
    %c2_i32 = arith.constant 2 : i32
    %599 = vector.broadcast %c2_i32 : i32 to vector<8x1xi32>
    %600 = arith.cmpi eq, %503, %599 : vector<8x1xi32>
    %cst_194 = arith.constant 1.000000e+00 : f32
    %cst_195 = arith.constant 0.000000e+00 : f32
    %601 = vector.broadcast %cst_194 : f32 to vector<8x1xf32>
    %602 = vector.broadcast %cst_195 : f32 to vector<8x1xf32>
    %603 = arith.select %600, %601, %602 : vector<8x1xi1>, vector<8x1xf32>
    %604 = vector.broadcast %603 : vector<8x1xf32> to vector<8x16xf32>
    %605 = vector.broadcast %594 : vector<1x16xf32> to vector<8x16xf32>
    %606 = arith.mulf %604, %605 : vector<8x16xf32>
    %607 = arith.addf %569, %606 : vector<8x16xf32>
    %c2_i32_196 = arith.constant 2 : i32
    %608 = vector.broadcast %c2_i32_196 : i32 to vector<1x8xi32>
    %609 = arith.cmpi eq, %504, %608 : vector<1x8xi32>
    %cst_197 = arith.constant 1.000000e+00 : f32
    %cst_198 = arith.constant 0.000000e+00 : f32
    %610 = vector.broadcast %cst_197 : f32 to vector<1x8xf32>
    %611 = vector.broadcast %cst_198 : f32 to vector<1x8xf32>
    %612 = arith.select %609, %610, %611 : vector<1x8xi1>, vector<1x8xf32>
    %613 = vector.broadcast %598 : vector<16x1xf32> to vector<16x8xf32>
    %614 = vector.broadcast %612 : vector<1x8xf32> to vector<16x8xf32>
    %615 = arith.mulf %613, %614 : vector<16x8xf32>
    %616 = arith.addf %578, %615 : vector<16x8xf32>
    %cst_199 = arith.constant 5.000000e-01 : f32
    %617 = vector.broadcast %cst_199 : f32 to vector<1x16xf32>
    %618 = arith.cmpf ogt, %594, %617 : vector<1x16xf32>
    %cst_200 = arith.constant -1.000000e+30 : f32
    %619 = vector.broadcast %cst_200 : f32 to vector<1x16xf32>
    %620 = arith.select %618, %619, %582 : vector<1x16xi1>, vector<1x16xf32>
    %cst_201 = arith.constant dense<0xFF800000> : vector<1xf32>
    %621 = vector.multi_reduction <maximumf>, %620, %cst_201 [1] : vector<1x16xf32> to vector<1xf32>
    %622 = vector.shape_cast %621 : vector<1xf32> to vector<1x1xf32>
    %623 = vector.broadcast %622 : vector<1x1xf32> to vector<1x16xf32>
    %624 = arith.cmpf oeq, %620, %623 : vector<1x16xf32>
    %cst_202 = arith.constant 1.600000e+01 : f32
    %625 = vector.broadcast %cst_202 : f32 to vector<1x16xf32>
    %626 = arith.select %624, %50, %625 : vector<1x16xi1>, vector<1x16xf32>
    %cst_203 = arith.constant dense<0x7F800000> : vector<1xf32>
    %627 = vector.multi_reduction <minimumf>, %626, %cst_203 [1] : vector<1x16xf32> to vector<1xf32>
    %628 = vector.shape_cast %627 : vector<1xf32> to vector<1x1xf32>
    %629 = vector.broadcast %628 : vector<1x1xf32> to vector<1x16xf32>
    %630 = arith.cmpf oeq, %50, %629 : vector<1x16xf32>
    %631 = arith.extui %630 : vector<1x16xi1> to vector<1x16xi32>
    %632 = arith.sitofp %631 : vector<1x16xi32> to vector<1x16xf32>
    %633 = vector.broadcast %628 : vector<1x1xf32> to vector<16x1xf32>
    %634 = arith.cmpf oeq, %52, %633 : vector<16x1xf32>
    %635 = arith.extui %634 : vector<16x1xi1> to vector<16x1xi32>
    %636 = arith.sitofp %635 : vector<16x1xi32> to vector<16x1xf32>
    %c3_i32 = arith.constant 3 : i32
    %637 = vector.broadcast %c3_i32 : i32 to vector<8x1xi32>
    %638 = arith.cmpi eq, %503, %637 : vector<8x1xi32>
    %cst_204 = arith.constant 1.000000e+00 : f32
    %cst_205 = arith.constant 0.000000e+00 : f32
    %639 = vector.broadcast %cst_204 : f32 to vector<8x1xf32>
    %640 = vector.broadcast %cst_205 : f32 to vector<8x1xf32>
    %641 = arith.select %638, %639, %640 : vector<8x1xi1>, vector<8x1xf32>
    %642 = vector.broadcast %641 : vector<8x1xf32> to vector<8x16xf32>
    %643 = vector.broadcast %632 : vector<1x16xf32> to vector<8x16xf32>
    %644 = arith.mulf %642, %643 : vector<8x16xf32>
    %645 = arith.addf %607, %644 : vector<8x16xf32>
    %c3_i32_206 = arith.constant 3 : i32
    %646 = vector.broadcast %c3_i32_206 : i32 to vector<1x8xi32>
    %647 = arith.cmpi eq, %504, %646 : vector<1x8xi32>
    %cst_207 = arith.constant 1.000000e+00 : f32
    %cst_208 = arith.constant 0.000000e+00 : f32
    %648 = vector.broadcast %cst_207 : f32 to vector<1x8xf32>
    %649 = vector.broadcast %cst_208 : f32 to vector<1x8xf32>
    %650 = arith.select %647, %648, %649 : vector<1x8xi1>, vector<1x8xf32>
    %651 = vector.broadcast %636 : vector<16x1xf32> to vector<16x8xf32>
    %652 = vector.broadcast %650 : vector<1x8xf32> to vector<16x8xf32>
    %653 = arith.mulf %651, %652 : vector<16x8xf32>
    %654 = arith.addf %616, %653 : vector<16x8xf32>
    %cst_209 = arith.constant 5.000000e-01 : f32
    %655 = vector.broadcast %cst_209 : f32 to vector<1x16xf32>
    %656 = arith.cmpf ogt, %632, %655 : vector<1x16xf32>
    %cst_210 = arith.constant -1.000000e+30 : f32
    %657 = vector.broadcast %cst_210 : f32 to vector<1x16xf32>
    %658 = arith.select %656, %657, %620 : vector<1x16xi1>, vector<1x16xf32>
    %cst_211 = arith.constant dense<0xFF800000> : vector<1xf32>
    %659 = vector.multi_reduction <maximumf>, %658, %cst_211 [1] : vector<1x16xf32> to vector<1xf32>
    %660 = vector.shape_cast %659 : vector<1xf32> to vector<1x1xf32>
    %661 = vector.broadcast %660 : vector<1x1xf32> to vector<1x16xf32>
    %662 = arith.cmpf oeq, %658, %661 : vector<1x16xf32>
    %cst_212 = arith.constant 1.600000e+01 : f32
    %663 = vector.broadcast %cst_212 : f32 to vector<1x16xf32>
    %664 = arith.select %662, %50, %663 : vector<1x16xi1>, vector<1x16xf32>
    %cst_213 = arith.constant dense<0x7F800000> : vector<1xf32>
    %665 = vector.multi_reduction <minimumf>, %664, %cst_213 [1] : vector<1x16xf32> to vector<1xf32>
    %666 = vector.shape_cast %665 : vector<1xf32> to vector<1x1xf32>
    %667 = vector.broadcast %666 : vector<1x1xf32> to vector<1x16xf32>
    %668 = arith.cmpf oeq, %50, %667 : vector<1x16xf32>
    %669 = arith.extui %668 : vector<1x16xi1> to vector<1x16xi32>
    %670 = arith.sitofp %669 : vector<1x16xi32> to vector<1x16xf32>
    %671 = vector.broadcast %666 : vector<1x1xf32> to vector<16x1xf32>
    %672 = arith.cmpf oeq, %52, %671 : vector<16x1xf32>
    %673 = arith.extui %672 : vector<16x1xi1> to vector<16x1xi32>
    %674 = arith.sitofp %673 : vector<16x1xi32> to vector<16x1xf32>
    %c4_i32 = arith.constant 4 : i32
    %675 = vector.broadcast %c4_i32 : i32 to vector<8x1xi32>
    %676 = arith.cmpi eq, %503, %675 : vector<8x1xi32>
    %cst_214 = arith.constant 1.000000e+00 : f32
    %cst_215 = arith.constant 0.000000e+00 : f32
    %677 = vector.broadcast %cst_214 : f32 to vector<8x1xf32>
    %678 = vector.broadcast %cst_215 : f32 to vector<8x1xf32>
    %679 = arith.select %676, %677, %678 : vector<8x1xi1>, vector<8x1xf32>
    %680 = vector.broadcast %679 : vector<8x1xf32> to vector<8x16xf32>
    %681 = vector.broadcast %670 : vector<1x16xf32> to vector<8x16xf32>
    %682 = arith.mulf %680, %681 : vector<8x16xf32>
    %683 = arith.addf %645, %682 : vector<8x16xf32>
    %c4_i32_216 = arith.constant 4 : i32
    %684 = vector.broadcast %c4_i32_216 : i32 to vector<1x8xi32>
    %685 = arith.cmpi eq, %504, %684 : vector<1x8xi32>
    %cst_217 = arith.constant 1.000000e+00 : f32
    %cst_218 = arith.constant 0.000000e+00 : f32
    %686 = vector.broadcast %cst_217 : f32 to vector<1x8xf32>
    %687 = vector.broadcast %cst_218 : f32 to vector<1x8xf32>
    %688 = arith.select %685, %686, %687 : vector<1x8xi1>, vector<1x8xf32>
    %689 = vector.broadcast %674 : vector<16x1xf32> to vector<16x8xf32>
    %690 = vector.broadcast %688 : vector<1x8xf32> to vector<16x8xf32>
    %691 = arith.mulf %689, %690 : vector<16x8xf32>
    %692 = arith.addf %654, %691 : vector<16x8xf32>
    %cst_219 = arith.constant 5.000000e-01 : f32
    %693 = vector.broadcast %cst_219 : f32 to vector<1x16xf32>
    %694 = arith.cmpf ogt, %670, %693 : vector<1x16xf32>
    %cst_220 = arith.constant -1.000000e+30 : f32
    %695 = vector.broadcast %cst_220 : f32 to vector<1x16xf32>
    %696 = arith.select %694, %695, %658 : vector<1x16xi1>, vector<1x16xf32>
    %cst_221 = arith.constant dense<0xFF800000> : vector<1xf32>
    %697 = vector.multi_reduction <maximumf>, %696, %cst_221 [1] : vector<1x16xf32> to vector<1xf32>
    %698 = vector.shape_cast %697 : vector<1xf32> to vector<1x1xf32>
    %699 = vector.broadcast %698 : vector<1x1xf32> to vector<1x16xf32>
    %700 = arith.cmpf oeq, %696, %699 : vector<1x16xf32>
    %cst_222 = arith.constant 1.600000e+01 : f32
    %701 = vector.broadcast %cst_222 : f32 to vector<1x16xf32>
    %702 = arith.select %700, %50, %701 : vector<1x16xi1>, vector<1x16xf32>
    %cst_223 = arith.constant dense<0x7F800000> : vector<1xf32>
    %703 = vector.multi_reduction <minimumf>, %702, %cst_223 [1] : vector<1x16xf32> to vector<1xf32>
    %704 = vector.shape_cast %703 : vector<1xf32> to vector<1x1xf32>
    %705 = vector.broadcast %704 : vector<1x1xf32> to vector<1x16xf32>
    %706 = arith.cmpf oeq, %50, %705 : vector<1x16xf32>
    %707 = arith.extui %706 : vector<1x16xi1> to vector<1x16xi32>
    %708 = arith.sitofp %707 : vector<1x16xi32> to vector<1x16xf32>
    %709 = vector.broadcast %704 : vector<1x1xf32> to vector<16x1xf32>
    %710 = arith.cmpf oeq, %52, %709 : vector<16x1xf32>
    %711 = arith.extui %710 : vector<16x1xi1> to vector<16x1xi32>
    %712 = arith.sitofp %711 : vector<16x1xi32> to vector<16x1xf32>
    %c5_i32 = arith.constant 5 : i32
    %713 = vector.broadcast %c5_i32 : i32 to vector<8x1xi32>
    %714 = arith.cmpi eq, %503, %713 : vector<8x1xi32>
    %cst_224 = arith.constant 1.000000e+00 : f32
    %cst_225 = arith.constant 0.000000e+00 : f32
    %715 = vector.broadcast %cst_224 : f32 to vector<8x1xf32>
    %716 = vector.broadcast %cst_225 : f32 to vector<8x1xf32>
    %717 = arith.select %714, %715, %716 : vector<8x1xi1>, vector<8x1xf32>
    %718 = vector.broadcast %717 : vector<8x1xf32> to vector<8x16xf32>
    %719 = vector.broadcast %708 : vector<1x16xf32> to vector<8x16xf32>
    %720 = arith.mulf %718, %719 : vector<8x16xf32>
    %721 = arith.addf %683, %720 : vector<8x16xf32>
    %c5_i32_226 = arith.constant 5 : i32
    %722 = vector.broadcast %c5_i32_226 : i32 to vector<1x8xi32>
    %723 = arith.cmpi eq, %504, %722 : vector<1x8xi32>
    %cst_227 = arith.constant 1.000000e+00 : f32
    %cst_228 = arith.constant 0.000000e+00 : f32
    %724 = vector.broadcast %cst_227 : f32 to vector<1x8xf32>
    %725 = vector.broadcast %cst_228 : f32 to vector<1x8xf32>
    %726 = arith.select %723, %724, %725 : vector<1x8xi1>, vector<1x8xf32>
    %727 = vector.broadcast %712 : vector<16x1xf32> to vector<16x8xf32>
    %728 = vector.broadcast %726 : vector<1x8xf32> to vector<16x8xf32>
    %729 = arith.mulf %727, %728 : vector<16x8xf32>
    %730 = arith.addf %692, %729 : vector<16x8xf32>
    %cst_229 = arith.constant 5.000000e-01 : f32
    %731 = vector.broadcast %cst_229 : f32 to vector<1x16xf32>
    %732 = arith.cmpf ogt, %708, %731 : vector<1x16xf32>
    %cst_230 = arith.constant -1.000000e+30 : f32
    %733 = vector.broadcast %cst_230 : f32 to vector<1x16xf32>
    %734 = arith.select %732, %733, %696 : vector<1x16xi1>, vector<1x16xf32>
    %cst_231 = arith.constant dense<0xFF800000> : vector<1xf32>
    %735 = vector.multi_reduction <maximumf>, %734, %cst_231 [1] : vector<1x16xf32> to vector<1xf32>
    %736 = vector.shape_cast %735 : vector<1xf32> to vector<1x1xf32>
    %737 = vector.broadcast %736 : vector<1x1xf32> to vector<1x16xf32>
    %738 = arith.cmpf oeq, %734, %737 : vector<1x16xf32>
    %cst_232 = arith.constant 1.600000e+01 : f32
    %739 = vector.broadcast %cst_232 : f32 to vector<1x16xf32>
    %740 = arith.select %738, %50, %739 : vector<1x16xi1>, vector<1x16xf32>
    %cst_233 = arith.constant dense<0x7F800000> : vector<1xf32>
    %741 = vector.multi_reduction <minimumf>, %740, %cst_233 [1] : vector<1x16xf32> to vector<1xf32>
    %742 = vector.shape_cast %741 : vector<1xf32> to vector<1x1xf32>
    %743 = vector.broadcast %742 : vector<1x1xf32> to vector<1x16xf32>
    %744 = arith.cmpf oeq, %50, %743 : vector<1x16xf32>
    %745 = arith.extui %744 : vector<1x16xi1> to vector<1x16xi32>
    %746 = arith.sitofp %745 : vector<1x16xi32> to vector<1x16xf32>
    %747 = vector.broadcast %742 : vector<1x1xf32> to vector<16x1xf32>
    %748 = arith.cmpf oeq, %52, %747 : vector<16x1xf32>
    %749 = arith.extui %748 : vector<16x1xi1> to vector<16x1xi32>
    %750 = arith.sitofp %749 : vector<16x1xi32> to vector<16x1xf32>
    %c6_i32 = arith.constant 6 : i32
    %751 = vector.broadcast %c6_i32 : i32 to vector<8x1xi32>
    %752 = arith.cmpi eq, %503, %751 : vector<8x1xi32>
    %cst_234 = arith.constant 1.000000e+00 : f32
    %cst_235 = arith.constant 0.000000e+00 : f32
    %753 = vector.broadcast %cst_234 : f32 to vector<8x1xf32>
    %754 = vector.broadcast %cst_235 : f32 to vector<8x1xf32>
    %755 = arith.select %752, %753, %754 : vector<8x1xi1>, vector<8x1xf32>
    %756 = vector.broadcast %755 : vector<8x1xf32> to vector<8x16xf32>
    %757 = vector.broadcast %746 : vector<1x16xf32> to vector<8x16xf32>
    %758 = arith.mulf %756, %757 : vector<8x16xf32>
    %759 = arith.addf %721, %758 : vector<8x16xf32>
    %c6_i32_236 = arith.constant 6 : i32
    %760 = vector.broadcast %c6_i32_236 : i32 to vector<1x8xi32>
    %761 = arith.cmpi eq, %504, %760 : vector<1x8xi32>
    %cst_237 = arith.constant 1.000000e+00 : f32
    %cst_238 = arith.constant 0.000000e+00 : f32
    %762 = vector.broadcast %cst_237 : f32 to vector<1x8xf32>
    %763 = vector.broadcast %cst_238 : f32 to vector<1x8xf32>
    %764 = arith.select %761, %762, %763 : vector<1x8xi1>, vector<1x8xf32>
    %765 = vector.broadcast %750 : vector<16x1xf32> to vector<16x8xf32>
    %766 = vector.broadcast %764 : vector<1x8xf32> to vector<16x8xf32>
    %767 = arith.mulf %765, %766 : vector<16x8xf32>
    %768 = arith.addf %730, %767 : vector<16x8xf32>
    %cst_239 = arith.constant 5.000000e-01 : f32
    %769 = vector.broadcast %cst_239 : f32 to vector<1x16xf32>
    %770 = arith.cmpf ogt, %746, %769 : vector<1x16xf32>
    %cst_240 = arith.constant -1.000000e+30 : f32
    %771 = vector.broadcast %cst_240 : f32 to vector<1x16xf32>
    %772 = arith.select %770, %771, %734 : vector<1x16xi1>, vector<1x16xf32>
    %cst_241 = arith.constant dense<0xFF800000> : vector<1xf32>
    %773 = vector.multi_reduction <maximumf>, %772, %cst_241 [1] : vector<1x16xf32> to vector<1xf32>
    %774 = vector.shape_cast %773 : vector<1xf32> to vector<1x1xf32>
    %775 = vector.broadcast %774 : vector<1x1xf32> to vector<1x16xf32>
    %776 = arith.cmpf oeq, %772, %775 : vector<1x16xf32>
    %cst_242 = arith.constant 1.600000e+01 : f32
    %777 = vector.broadcast %cst_242 : f32 to vector<1x16xf32>
    %778 = arith.select %776, %50, %777 : vector<1x16xi1>, vector<1x16xf32>
    %cst_243 = arith.constant dense<0x7F800000> : vector<1xf32>
    %779 = vector.multi_reduction <minimumf>, %778, %cst_243 [1] : vector<1x16xf32> to vector<1xf32>
    %780 = vector.shape_cast %779 : vector<1xf32> to vector<1x1xf32>
    %781 = vector.broadcast %780 : vector<1x1xf32> to vector<1x16xf32>
    %782 = arith.cmpf oeq, %50, %781 : vector<1x16xf32>
    %783 = arith.extui %782 : vector<1x16xi1> to vector<1x16xi32>
    %784 = arith.sitofp %783 : vector<1x16xi32> to vector<1x16xf32>
    %785 = vector.broadcast %780 : vector<1x1xf32> to vector<16x1xf32>
    %786 = arith.cmpf oeq, %52, %785 : vector<16x1xf32>
    %787 = arith.extui %786 : vector<16x1xi1> to vector<16x1xi32>
    %788 = arith.sitofp %787 : vector<16x1xi32> to vector<16x1xf32>
    %c7_i32 = arith.constant 7 : i32
    %789 = vector.broadcast %c7_i32 : i32 to vector<8x1xi32>
    %790 = arith.cmpi eq, %503, %789 : vector<8x1xi32>
    %cst_244 = arith.constant 1.000000e+00 : f32
    %cst_245 = arith.constant 0.000000e+00 : f32
    %791 = vector.broadcast %cst_244 : f32 to vector<8x1xf32>
    %792 = vector.broadcast %cst_245 : f32 to vector<8x1xf32>
    %793 = arith.select %790, %791, %792 : vector<8x1xi1>, vector<8x1xf32>
    %794 = vector.broadcast %793 : vector<8x1xf32> to vector<8x16xf32>
    %795 = vector.broadcast %784 : vector<1x16xf32> to vector<8x16xf32>
    %796 = arith.mulf %794, %795 : vector<8x16xf32>
    %797 = arith.addf %759, %796 : vector<8x16xf32>
    %c7_i32_246 = arith.constant 7 : i32
    %798 = vector.broadcast %c7_i32_246 : i32 to vector<1x8xi32>
    %799 = arith.cmpi eq, %504, %798 : vector<1x8xi32>
    %cst_247 = arith.constant 1.000000e+00 : f32
    %cst_248 = arith.constant 0.000000e+00 : f32
    %800 = vector.broadcast %cst_247 : f32 to vector<1x8xf32>
    %801 = vector.broadcast %cst_248 : f32 to vector<1x8xf32>
    %802 = arith.select %799, %800, %801 : vector<1x8xi1>, vector<1x8xf32>
    %803 = vector.broadcast %788 : vector<16x1xf32> to vector<16x8xf32>
    %804 = vector.broadcast %802 : vector<1x8xf32> to vector<16x8xf32>
    %805 = arith.mulf %803, %804 : vector<16x8xf32>
    %806 = arith.addf %768, %805 : vector<16x8xf32>
    %cst_249 = arith.constant dense<0.000000e+00> : vector<8x32xf32>
    %807 = tpu.matmul %797, %1, %cst_249 {dimension_numbers = #tpu.dot_dimension_numbers<[1], [0], [0], [1], [0, 0, 1, 1], [], []>} : vector<8x16xf32>, vector<16x32xf32>, vector<8x32xf32> -> vector<8x32xf32>
    %c0_250 = arith.constant 0 : index
    %c0_251 = arith.constant 0 : index
    %808 = vector.load %arg9[%c0_250, %c0_251] : memref<1x32xf32, #tpu.memory_space<vmem>>, vector<1x32xf32>
    %c0_252 = arith.constant 0 : index
    %c0_253 = arith.constant 0 : index
    %809 = vector.load %arg10[%c0_252, %c0_253] : memref<1x32xf32, #tpu.memory_space<vmem>>, vector<1x32xf32>
    %cst_254 = arith.constant dense<0.000000e+00> : vector<8xf32>
    %810 = vector.multi_reduction <add>, %807, %cst_254 [1] : vector<8x32xf32> to vector<8xf32>
    %811 = vector.shape_cast %810 : vector<8xf32> to vector<8x1xf32>
    %cst_255 = arith.constant 3.200000e+01 : f32
    %812 = vector.broadcast %cst_255 : f32 to vector<8x1xf32>
    %813 = arith.divf %811, %812 : vector<8x1xf32>
    %814 = vector.broadcast %813 : vector<8x1xf32> to vector<8x32xf32>
    %815 = arith.subf %807, %814 : vector<8x32xf32>
    %816 = arith.mulf %815, %815 : vector<8x32xf32>
    %cst_256 = arith.constant dense<0.000000e+00> : vector<8xf32>
    %817 = vector.multi_reduction <add>, %816, %cst_256 [1] : vector<8x32xf32> to vector<8xf32>
    %818 = vector.shape_cast %817 : vector<8xf32> to vector<8x1xf32>
    %cst_257 = arith.constant 3.200000e+01 : f32
    %819 = vector.broadcast %cst_257 : f32 to vector<8x1xf32>
    %820 = arith.divf %818, %819 : vector<8x1xf32>
    %821 = vector.broadcast %813 : vector<8x1xf32> to vector<8x32xf32>
    %822 = arith.subf %807, %821 : vector<8x32xf32>
    %cst_258 = arith.constant 9.99999974E-6 : f32
    %823 = vector.broadcast %cst_258 : f32 to vector<8x1xf32>
    %824 = arith.addf %820, %823 : vector<8x1xf32>
    %825 = math.rsqrt %824 : vector<8x1xf32>
    %826 = vector.broadcast %825 : vector<8x1xf32> to vector<8x32xf32>
    %827 = arith.mulf %822, %826 : vector<8x32xf32>
    %828 = vector.broadcast %808 : vector<1x32xf32> to vector<8x32xf32>
    %829 = arith.mulf %827, %828 : vector<8x32xf32>
    %830 = vector.broadcast %809 : vector<1x32xf32> to vector<8x32xf32>
    %831 = arith.addf %829, %830 : vector<8x32xf32>
    %c0_259 = arith.constant 0 : index
    %c0_260 = arith.constant 0 : index
    %832 = vector.load %arg11[%c0_259, %c0_260] : memref<32x128xf32, #tpu.memory_space<vmem>>, vector<32x128xf32>
    %cst_261 = arith.constant dense<0.000000e+00> : vector<8x128xf32>
    %833 = tpu.matmul %831, %832, %cst_261 {dimension_numbers = #tpu.dot_dimension_numbers<[1], [0], [0], [1], [0, 0, 1, 1], [], []>} : vector<8x32xf32>, vector<32x128xf32>, vector<8x128xf32> -> vector<8x128xf32>
    %c0_262 = arith.constant 0 : index
    %c0_263 = arith.constant 0 : index
    %834 = vector.load %arg12[%c0_262, %c0_263] : memref<1x128xf32, #tpu.memory_space<vmem>>, vector<1x128xf32>
    %835 = vector.broadcast %834 : vector<1x128xf32> to vector<8x128xf32>
    %836 = arith.addf %833, %835 : vector<8x128xf32>
    %cst_264 = arith.constant 5.000000e-01 : f32
    %837 = vector.broadcast %cst_264 : f32 to vector<8x128xf32>
    %838 = arith.mulf %837, %836 : vector<8x128xf32>
    %cst_265 = arith.constant 4.471500e-02 : f32
    %839 = vector.broadcast %cst_265 : f32 to vector<8x128xf32>
    %840 = arith.mulf %839, %836 : vector<8x128xf32>
    %841 = arith.mulf %840, %836 : vector<8x128xf32>
    %842 = arith.mulf %841, %836 : vector<8x128xf32>
    %843 = arith.addf %836, %842 : vector<8x128xf32>
    %cst_266 = arith.constant 0.797884583 : f32
    %844 = vector.broadcast %cst_266 : f32 to vector<8x128xf32>
    %845 = arith.mulf %844, %843 : vector<8x128xf32>
    %846 = math.tanh %845 : vector<8x128xf32>
    %cst_267 = arith.constant 1.000000e+00 : f32
    %847 = vector.broadcast %cst_267 : f32 to vector<8x128xf32>
    %848 = arith.addf %847, %846 : vector<8x128xf32>
    %849 = arith.mulf %838, %848 : vector<8x128xf32>
    %c0_268 = arith.constant 0 : index
    %c0_269 = arith.constant 0 : index
    %850 = vector.load %arg13[%c0_268, %c0_269] : memref<128x32xf32, #tpu.memory_space<vmem>>, vector<128x32xf32>
    %cst_270 = arith.constant dense<0.000000e+00> : vector<8x32xf32>
    %851 = tpu.matmul %849, %850, %cst_270 {dimension_numbers = #tpu.dot_dimension_numbers<[1], [0], [0], [1], [0, 0, 1, 1], [], []>} : vector<8x128xf32>, vector<128x32xf32>, vector<8x32xf32> -> vector<8x32xf32>
    %c0_271 = arith.constant 0 : index
    %c0_272 = arith.constant 0 : index
    %852 = vector.load %arg14[%c0_271, %c0_272] : memref<1x32xf32, #tpu.memory_space<vmem>>, vector<1x32xf32>
    %853 = vector.broadcast %852 : vector<1x32xf32> to vector<8x32xf32>
    %854 = arith.addf %851, %853 : vector<8x32xf32>
    %cst_273 = arith.constant dense<0.000000e+00> : vector<16x32xf32>
    %855 = tpu.matmul %806, %854, %cst_273 {dimension_numbers = #tpu.dot_dimension_numbers<[1], [0], [0], [1], [0, 0, 1, 1], [], []>} : vector<16x8xf32>, vector<8x32xf32>, vector<16x32xf32> -> vector<16x32xf32>
    %856 = arith.addf %1, %48 : vector<16x32xf32>
    %857 = arith.addf %856, %855 : vector<16x32xf32>
    %c0_274 = arith.constant 0 : index
    %c0_275 = arith.constant 0 : index
    %c0_276 = arith.constant 0 : index
    %858 = vector.load %arg15[%c0_274, %c0_275, %c0_276] : memref<1x16x32xf32, #tpu.memory_space<vmem>>, vector<1x16x32xf32>
    %859 = vector.shape_cast %858 : vector<1x16x32xf32> to vector<16x32xf32>
    %860 = vector.shape_cast %857 : vector<16x32xf32> to vector<1x16x32xf32>
    tpu.vector_store %arg15[%c0_274, %c0_275, %c0_276], %860 {strides = array<i32>} : memref<1x16x32xf32, #tpu.memory_space<vmem>>, vector<1x16x32xf32>,
    return
  }
  func.func @transform_0(%arg0: i32) -> (i32, i32, i32) {
    %c0_i32 = arith.constant 0 : i32
    %c0_i32_0 = arith.constant 0 : i32
    %c0_i32_1 = arith.constant 0 : i32
    return %arg0, %c0_i32, %c0_i32_0 : i32, i32, i32
  }
  func.func @transform_1(%arg0: i32) -> (i32, i32) {
    %c0_i32 = arith.constant 0 : i32
    %c0_i32_0 = arith.constant 0 : i32
    %c0_i32_1 = arith.constant 0 : i32
    return %c0_i32, %c0_i32_0 : i32, i32
  }
  func.func @transform_2(%arg0: i32) -> (i32, i32) {
    %c0_i32 = arith.constant 0 : i32
    %c0_i32_0 = arith.constant 0 : i32
    %c0_i32_1 = arith.constant 0 : i32
    return %c0_i32, %c0_i32_0 : i32, i32
  }
  func.func @transform_3(%arg0: i32) -> (i32, i32) {
    %c0_i32 = arith.constant 0 : i32
    %c0_i32_0 = arith.constant 0 : i32
    %c0_i32_1 = arith.constant 0 : i32
    return %c0_i32, %c0_i32_0 : i32, i32
  }
  func.func @transform_4(%arg0: i32) -> (i32, i32) {
    %c0_i32 = arith.constant 0 : i32
    %c0_i32_0 = arith.constant 0 : i32
    %c0_i32_1 = arith.constant 0 : i32
    return %c0_i32, %c0_i32_0 : i32, i32
  }
  func.func @transform_5(%arg0: i32) -> (i32, i32) {
    %c0_i32 = arith.constant 0 : i32
    %c0_i32_0 = arith.constant 0 : i32
    %c0_i32_1 = arith.constant 0 : i32
    return %c0_i32, %c0_i32_0 : i32, i32
  }
  func.func @transform_6(%arg0: i32) -> (i32, i32) {
    %c0_i32 = arith.constant 0 : i32
    %c0_i32_0 = arith.constant 0 : i32
    %c0_i32_1 = arith.constant 0 : i32
    return %c0_i32, %c0_i32_0 : i32, i32
  }
  func.func @transform_7(%arg0: i32) -> (i32, i32) {
    %c0_i32 = arith.constant 0 : i32
    %c0_i32_0 = arith.constant 0 : i32
    %c0_i32_1 = arith.constant 0 : i32
    return %c0_i32, %c0_i32_0 : i32, i32
  }
  func.func @transform_8(%arg0: i32) -> (i32, i32) {
    %c0_i32 = arith.constant 0 : i32
    %c0_i32_0 = arith.constant 0 : i32
    %c0_i32_1 = arith.constant 0 : i32
    return %c0_i32, %c0_i32_0 : i32, i32
  }
  func.func @transform_9(%arg0: i32) -> (i32, i32) {
    %c0_i32 = arith.constant 0 : i32
    %c0_i32_0 = arith.constant 0 : i32
    %c0_i32_1 = arith.constant 0 : i32
    return %c0_i32, %c0_i32_0 : i32, i32
  }
  func.func @transform_10(%arg0: i32) -> (i32, i32) {
    %c0_i32 = arith.constant 0 : i32
    %c0_i32_0 = arith.constant 0 : i32
    %c0_i32_1 = arith.constant 0 : i32
    return %c0_i32, %c0_i32_0 : i32, i32
  }
  func.func @transform_11(%arg0: i32) -> (i32, i32) {
    %c0_i32 = arith.constant 0 : i32
    %c0_i32_0 = arith.constant 0 : i32
    %c0_i32_1 = arith.constant 0 : i32
    return %c0_i32, %c0_i32_0 : i32, i32
  }
  func.func @transform_12(%arg0: i32) -> (i32, i32) {
    %c0_i32 = arith.constant 0 : i32
    %c0_i32_0 = arith.constant 0 : i32
    %c0_i32_1 = arith.constant 0 : i32
    return %c0_i32, %c0_i32_0 : i32, i32
  }
  func.func @transform_13(%arg0: i32) -> (i32, i32) {
    %c0_i32 = arith.constant 0 : i32
    %c0_i32_0 = arith.constant 0 : i32
    %c0_i32_1 = arith.constant 0 : i32
    return %c0_i32, %c0_i32_0 : i32, i32
  }
  func.func @transform_14(%arg0: i32) -> (i32, i32, i32) {
    %c0_i32 = arith.constant 0 : i32
    %c0_i32_0 = arith.constant 0 : i32
    %c0_i32_1 = arith.constant 0 : i32
    return %arg0, %c0_i32, %c0_i32_0 : i32, i32, i32
  }
}

module attributes {stable_mosaic.version = 11 : i64} {
  func.func @_attn_block_kernel(%arg0: i32, %arg1: memref<1x16x32xf32, #tpu.memory_space<vmem>>, %arg2: memref<16x16xf32, #tpu.memory_space<vmem>>, %arg3: memref<1x16xf32, #tpu.memory_space<vmem>>, %arg4: memref<16x1xf32, #tpu.memory_space<vmem>>, %arg5: memref<1x32xf32, #tpu.memory_space<vmem>>, %arg6: memref<1x32xf32, #tpu.memory_space<vmem>>, %arg7: memref<1x32xf32, #tpu.memory_space<vmem>>, %arg8: memref<1x32xf32, #tpu.memory_space<vmem>>, %arg9: memref<1x32xf32, #tpu.memory_space<vmem>>, %arg10: memref<32x48xf32, #tpu.memory_space<vmem>>, %arg11: memref<16x32xf32, #tpu.memory_space<vmem>>, %arg12: memref<2x8xf32, #tpu.memory_space<vmem>>, %arg13: memref<2x8xf32, #tpu.memory_space<vmem>>, %arg14: memref<1x32xf32, #tpu.memory_space<vmem>>, %arg15: memref<1x32xf32, #tpu.memory_space<vmem>>, %arg16: memref<1x32xf32, #tpu.memory_space<vmem>>, %arg17: memref<1x32xf32, #tpu.memory_space<vmem>>, %arg18: memref<32x32xf32, #tpu.memory_space<vmem>>, %arg19: memref<32x64xf32, #tpu.memory_space<vmem>>, %arg20: memref<32x32xf32, #tpu.memory_space<vmem>>, %arg21: memref<2x16xf32, #tpu.memory_space<vmem>>, %arg22: memref<2x16xf32, #tpu.memory_space<vmem>>, %arg23: memref<1x16x32xf32, #tpu.memory_space<vmem>>) attributes {dimension_semantics = [#tpu.dimension_semantics<parallel>], iteration_bounds = array<i64: 2>, scalar_prefetch = 0 : i64, scratch_operands = 0 : i64, tpu.core_type = #tpu.core_type<tc>, window_params = [{transform_indices = @transform_0, window_bounds = array<i64: 1, 16, 32>}, {pipeline_mode = #tpu.pipeline_mode<synchronous>, transform_indices = @transform_1, window_bounds = array<i64: 16, 16>}, {pipeline_mode = #tpu.pipeline_mode<synchronous>, transform_indices = @transform_2, window_bounds = array<i64: 1, 16>}, {pipeline_mode = #tpu.pipeline_mode<synchronous>, transform_indices = @transform_3, window_bounds = array<i64: 16, 1>}, {pipeline_mode = #tpu.pipeline_mode<synchronous>, transform_indices = @transform_4, window_bounds = array<i64: 1, 32>}, {pipeline_mode = #tpu.pipeline_mode<synchronous>, transform_indices = @transform_5, window_bounds = array<i64: 1, 32>}, {pipeline_mode = #tpu.pipeline_mode<synchronous>, transform_indices = @transform_6, window_bounds = array<i64: 1, 32>}, {pipeline_mode = #tpu.pipeline_mode<synchronous>, transform_indices = @transform_7, window_bounds = array<i64: 1, 32>}, {pipeline_mode = #tpu.pipeline_mode<synchronous>, transform_indices = @transform_8, window_bounds = array<i64: 1, 32>}, {pipeline_mode = #tpu.pipeline_mode<synchronous>, transform_indices = @transform_9, window_bounds = array<i64: 32, 48>}, {pipeline_mode = #tpu.pipeline_mode<synchronous>, transform_indices = @transform_10, window_bounds = array<i64: 16, 32>}, {pipeline_mode = #tpu.pipeline_mode<synchronous>, transform_indices = @transform_11, window_bounds = array<i64: 2, 8>}, {pipeline_mode = #tpu.pipeline_mode<synchronous>, transform_indices = @transform_12, window_bounds = array<i64: 2, 8>}, {pipeline_mode = #tpu.pipeline_mode<synchronous>, transform_indices = @transform_13, window_bounds = array<i64: 1, 32>}, {pipeline_mode = #tpu.pipeline_mode<synchronous>, transform_indices = @transform_14, window_bounds = array<i64: 1, 32>}, {pipeline_mode = #tpu.pipeline_mode<synchronous>, transform_indices = @transform_15, window_bounds = array<i64: 1, 32>}, {pipeline_mode = #tpu.pipeline_mode<synchronous>, transform_indices = @transform_16, window_bounds = array<i64: 1, 32>}, {pipeline_mode = #tpu.pipeline_mode<synchronous>, transform_indices = @transform_17, window_bounds = array<i64: 32, 32>}, {pipeline_mode = #tpu.pipeline_mode<synchronous>, transform_indices = @transform_18, window_bounds = array<i64: 32, 64>}, {pipeline_mode = #tpu.pipeline_mode<synchronous>, transform_indices = @transform_19, window_bounds = array<i64: 32, 32>}, {pipeline_mode = #tpu.pipeline_mode<synchronous>, transform_indices = @transform_20, window_bounds = array<i64: 2, 16>}, {pipeline_mode = #tpu.pipeline_mode<synchronous>, transform_indices = @transform_21, window_bounds = array<i64: 2, 16>}, {transform_indices = @transform_22, window_bounds = array<i64: 1, 16, 32>}]} {
    %c0 = arith.constant 0 : index
    %c0_0 = arith.constant 0 : index
    %c0_1 = arith.constant 0 : index
    %0 = vector.load %arg1[%c0, %c0_0, %c0_1] : memref<1x16x32xf32, #tpu.memory_space<vmem>>, vector<1x16x32xf32>
    %1 = vector.shape_cast %0 : vector<1x16x32xf32> to vector<16x32xf32>
    %c0_2 = arith.constant 0 : index
    %c0_3 = arith.constant 0 : index
    %2 = vector.load %arg2[%c0_2, %c0_3] : memref<16x16xf32, #tpu.memory_space<vmem>>, vector<16x16xf32>
    %c0_4 = arith.constant 0 : index
    %c0_5 = arith.constant 0 : index
    %3 = vector.load %arg3[%c0_4, %c0_5] : memref<1x16xf32, #tpu.memory_space<vmem>>, vector<1x16xf32>
    %c0_6 = arith.constant 0 : index
    %c0_7 = arith.constant 0 : index
    %4 = vector.load %arg4[%c0_6, %c0_7] : memref<16x1xf32, #tpu.memory_space<vmem>>, vector<16x1xf32>
    %c0_8 = arith.constant 0 : index
    %c0_9 = arith.constant 0 : index
    %5 = vector.load %arg12[%c0_8, %c0_9] : memref<2x8xf32, #tpu.memory_space<vmem>>, vector<2x8xf32>
    %c0_10 = arith.constant 0 : index
    %c0_11 = arith.constant 0 : index
    %6 = vector.load %arg13[%c0_10, %c0_11] : memref<2x8xf32, #tpu.memory_space<vmem>>, vector<2x8xf32>
    %c0_12 = arith.constant 0 : index
    %c0_13 = arith.constant 0 : index
    %7 = vector.load %arg11[%c0_12, %c0_13] : memref<16x32xf32, #tpu.memory_space<vmem>>, vector<16x32xf32>
    %c0_14 = arith.constant 0 : index
    %c0_15 = arith.constant 0 : index
    %8 = vector.load %arg8[%c0_14, %c0_15] : memref<1x32xf32, #tpu.memory_space<vmem>>, vector<1x32xf32>
    %c0_16 = arith.constant 0 : index
    %c0_17 = arith.constant 0 : index
    %9 = vector.load %arg9[%c0_16, %c0_17] : memref<1x32xf32, #tpu.memory_space<vmem>>, vector<1x32xf32>
    %cst = arith.constant dense<0.000000e+00> : vector<16xf32>
    %10 = vector.multi_reduction <add>, %1, %cst [1] : vector<16x32xf32> to vector<16xf32>
    %11 = vector.shape_cast %10 : vector<16xf32> to vector<16x1xf32>
    %cst_18 = arith.constant 3.200000e+01 : f32
    %12 = vector.broadcast %cst_18 : f32 to vector<16x1xf32>
    %13 = arith.divf %11, %12 : vector<16x1xf32>
    %14 = vector.broadcast %13 : vector<16x1xf32> to vector<16x32xf32>
    %15 = arith.subf %1, %14 : vector<16x32xf32>
    %16 = arith.mulf %15, %15 : vector<16x32xf32>
    %cst_19 = arith.constant dense<0.000000e+00> : vector<16xf32>
    %17 = vector.multi_reduction <add>, %16, %cst_19 [1] : vector<16x32xf32> to vector<16xf32>
    %18 = vector.shape_cast %17 : vector<16xf32> to vector<16x1xf32>
    %cst_20 = arith.constant 3.200000e+01 : f32
    %19 = vector.broadcast %cst_20 : f32 to vector<16x1xf32>
    %20 = arith.divf %18, %19 : vector<16x1xf32>
    %21 = vector.broadcast %13 : vector<16x1xf32> to vector<16x32xf32>
    %22 = arith.subf %1, %21 : vector<16x32xf32>
    %cst_21 = arith.constant 9.99999974E-6 : f32
    %23 = vector.broadcast %cst_21 : f32 to vector<16x1xf32>
    %24 = arith.addf %20, %23 : vector<16x1xf32>
    %25 = math.rsqrt %24 : vector<16x1xf32>
    %26 = vector.broadcast %25 : vector<16x1xf32> to vector<16x32xf32>
    %27 = arith.mulf %22, %26 : vector<16x32xf32>
    %28 = vector.broadcast %8 : vector<1x32xf32> to vector<16x32xf32>
    %29 = arith.mulf %27, %28 : vector<16x32xf32>
    %30 = vector.broadcast %9 : vector<1x32xf32> to vector<16x32xf32>
    %31 = arith.addf %29, %30 : vector<16x32xf32>
    %c0_22 = arith.constant 0 : index
    %c0_23 = arith.constant 0 : index
    %32 = vector.load %arg10[%c0_22, %c0_23] : memref<32x48xf32, #tpu.memory_space<vmem>>, vector<32x48xf32>
    %cst_24 = arith.constant dense<0.000000e+00> : vector<16x48xf32>
    %33 = tpu.matmul %31, %32, %cst_24 {dimension_numbers = #tpu.dot_dimension_numbers<[1], [0], [0], [1], [0, 0, 1, 1], [], []>} : vector<16x32xf32>, vector<32x48xf32>, vector<16x48xf32> -> vector<16x48xf32>
    %34 = vector.extract_strided_slice %33 {offsets = [0, 0], sizes = [16, 16], strides = [1, 1]} : vector<16x48xf32> to vector<16x16xf32>
    %35 = vector.extract_strided_slice %33 {offsets = [0, 16], sizes = [16, 16], strides = [1, 1]} : vector<16x48xf32> to vector<16x16xf32>
    %36 = vector.extract_strided_slice %33 {offsets = [0, 32], sizes = [16, 16], strides = [1, 1]} : vector<16x48xf32> to vector<16x16xf32>
    %cst_25 = arith.constant 0.000000e+00 : f32
    %37 = vector.broadcast %cst_25 : f32 to vector<16x32xf32>
    %38 = vector.extract_strided_slice %34 {offsets = [0, 0], sizes = [16, 8], strides = [1, 1]} : vector<16x16xf32> to vector<16x8xf32>
    %cst_26 = arith.constant 0.353553385 : f32
    %39 = vector.broadcast %cst_26 : f32 to vector<16x8xf32>
    %40 = arith.mulf %38, %39 : vector<16x8xf32>
    %41 = vector.extract_strided_slice %35 {offsets = [0, 0], sizes = [16, 8], strides = [1, 1]} : vector<16x16xf32> to vector<16x8xf32>
    %42 = vector.extract_strided_slice %36 {offsets = [0, 0], sizes = [16, 8], strides = [1, 1]} : vector<16x16xf32> to vector<16x8xf32>
    %43 = vector.extract_strided_slice %5 {offsets = [0, 0], sizes = [1, 8], strides = [1, 1]} : vector<2x8xf32> to vector<1x8xf32>
    %44 = vector.extract_strided_slice %6 {offsets = [0, 0], sizes = [1, 8], strides = [1, 1]} : vector<2x8xf32> to vector<1x8xf32>
    %45 = vector.extract_strided_slice %7 {offsets = [0, 0], sizes = [8, 32], strides = [1, 1]} : vector<16x32xf32> to vector<8x32xf32>
    %cst_27 = arith.constant dense<0.000000e+00> : vector<16x16xf32>
    %46 = tpu.matmul %40, %41, %cst_27 {dimension_numbers = #tpu.dot_dimension_numbers<[1], [1], [0], [0], [0, 0, 1, 0], [], []>} : vector<16x8xf32>, vector<16x8xf32>, vector<16x16xf32> -> vector<16x16xf32>
    %cst_28 = arith.constant 5.000000e-01 : f32
    %47 = vector.broadcast %cst_28 : f32 to vector<16x16xf32>
    %48 = arith.cmpf ogt, %2, %47 : vector<16x16xf32>
    %cst_29 = arith.constant -1.000000e+30 : f32
    %49 = vector.broadcast %cst_29 : f32 to vector<16x16xf32>
    %50 = arith.select %48, %46, %49 : vector<16x16xi1>, vector<16x16xf32>
    %51 = vector.broadcast %43 : vector<1x8xf32> to vector<16x8xf32>
    %52 = arith.mulf %40, %51 : vector<16x8xf32>
    %cst_30 = arith.constant dense<0.000000e+00> : vector<16xf32>
    %53 = vector.multi_reduction <add>, %52, %cst_30 [1] : vector<16x8xf32> to vector<16xf32>
    %54 = vector.shape_cast %53 : vector<16xf32> to vector<16x1xf32>
    %cst_31 = arith.constant dense<0xFF800000> : vector<16xf32>
    %55 = vector.multi_reduction <maximumf>, %50, %cst_31 [1] : vector<16x16xf32> to vector<16xf32>
    %56 = vector.shape_cast %55 : vector<16xf32> to vector<16x1xf32>
    %57 = arith.maximumf %56, %54 : vector<16x1xf32>
    %58 = vector.broadcast %57 : vector<16x1xf32> to vector<16x16xf32>
    %59 = arith.subf %50, %58 : vector<16x16xf32>
    %60 = math.exp %59 : vector<16x16xf32>
    %61 = arith.subf %54, %57 : vector<16x1xf32>
    %62 = math.exp %61 : vector<16x1xf32>
    %cst_32 = arith.constant dense<0.000000e+00> : vector<16xf32>
    %63 = vector.multi_reduction <add>, %60, %cst_32 [1] : vector<16x16xf32> to vector<16xf32>
    %64 = vector.shape_cast %63 : vector<16xf32> to vector<16x1xf32>
    %65 = arith.addf %64, %62 : vector<16x1xf32>
    %66 = tpu.reciprocal %65 {approx = true} : vector<16x1xf32> -> vector<16x1xf32>
    %cst_33 = arith.constant dense<0.000000e+00> : vector<16x8xf32>
    %67 = tpu.matmul %60, %42, %cst_33 {dimension_numbers = #tpu.dot_dimension_numbers<[1], [0], [0], [1], [0, 0, 1, 1], [], []>} : vector<16x16xf32>, vector<16x8xf32>, vector<16x8xf32> -> vector<16x8xf32>
    %68 = vector.broadcast %62 : vector<16x1xf32> to vector<16x8xf32>
    %69 = vector.broadcast %44 : vector<1x8xf32> to vector<16x8xf32>
    %70 = arith.mulf %68, %69 : vector<16x8xf32>
    %71 = arith.addf %67, %70 : vector<16x8xf32>
    %72 = vector.broadcast %66 : vector<16x1xf32> to vector<16x8xf32>
    %73 = arith.mulf %71, %72 : vector<16x8xf32>
    %cst_34 = arith.constant dense<0.000000e+00> : vector<16x32xf32>
    %74 = tpu.matmul %73, %45, %cst_34 {dimension_numbers = #tpu.dot_dimension_numbers<[1], [0], [0], [1], [0, 0, 1, 1], [], []>} : vector<16x8xf32>, vector<8x32xf32>, vector<16x32xf32> -> vector<16x32xf32>
    %75 = arith.addf %37, %74 : vector<16x32xf32>
    %76 = vector.extract_strided_slice %34 {offsets = [0, 8], sizes = [16, 8], strides = [1, 1]} : vector<16x16xf32> to vector<16x8xf32>
    %cst_35 = arith.constant 0.353553385 : f32
    %77 = vector.broadcast %cst_35 : f32 to vector<16x8xf32>
    %78 = arith.mulf %76, %77 : vector<16x8xf32>
    %79 = vector.extract_strided_slice %35 {offsets = [0, 8], sizes = [16, 8], strides = [1, 1]} : vector<16x16xf32> to vector<16x8xf32>
    %80 = vector.extract_strided_slice %36 {offsets = [0, 8], sizes = [16, 8], strides = [1, 1]} : vector<16x16xf32> to vector<16x8xf32>
    %81 = vector.extract_strided_slice %5 {offsets = [1, 0], sizes = [1, 8], strides = [1, 1]} : vector<2x8xf32> to vector<1x8xf32>
    %82 = vector.extract_strided_slice %6 {offsets = [1, 0], sizes = [1, 8], strides = [1, 1]} : vector<2x8xf32> to vector<1x8xf32>
    %83 = vector.extract_strided_slice %7 {offsets = [8, 0], sizes = [8, 32], strides = [1, 1]} : vector<16x32xf32> to vector<8x32xf32>
    %cst_36 = arith.constant dense<0.000000e+00> : vector<16x16xf32>
    %84 = tpu.matmul %78, %79, %cst_36 {dimension_numbers = #tpu.dot_dimension_numbers<[1], [1], [0], [0], [0, 0, 1, 0], [], []>} : vector<16x8xf32>, vector<16x8xf32>, vector<16x16xf32> -> vector<16x16xf32>
    %cst_37 = arith.constant 5.000000e-01 : f32
    %85 = vector.broadcast %cst_37 : f32 to vector<16x16xf32>
    %86 = arith.cmpf ogt, %2, %85 : vector<16x16xf32>
    %cst_38 = arith.constant -1.000000e+30 : f32
    %87 = vector.broadcast %cst_38 : f32 to vector<16x16xf32>
    %88 = arith.select %86, %84, %87 : vector<16x16xi1>, vector<16x16xf32>
    %89 = vector.broadcast %81 : vector<1x8xf32> to vector<16x8xf32>
    %90 = arith.mulf %78, %89 : vector<16x8xf32>
    %cst_39 = arith.constant dense<0.000000e+00> : vector<16xf32>
    %91 = vector.multi_reduction <add>, %90, %cst_39 [1] : vector<16x8xf32> to vector<16xf32>
    %92 = vector.shape_cast %91 : vector<16xf32> to vector<16x1xf32>
    %cst_40 = arith.constant dense<0xFF800000> : vector<16xf32>
    %93 = vector.multi_reduction <maximumf>, %88, %cst_40 [1] : vector<16x16xf32> to vector<16xf32>
    %94 = vector.shape_cast %93 : vector<16xf32> to vector<16x1xf32>
    %95 = arith.maximumf %94, %92 : vector<16x1xf32>
    %96 = vector.broadcast %95 : vector<16x1xf32> to vector<16x16xf32>
    %97 = arith.subf %88, %96 : vector<16x16xf32>
    %98 = math.exp %97 : vector<16x16xf32>
    %99 = arith.subf %92, %95 : vector<16x1xf32>
    %100 = math.exp %99 : vector<16x1xf32>
    %cst_41 = arith.constant dense<0.000000e+00> : vector<16xf32>
    %101 = vector.multi_reduction <add>, %98, %cst_41 [1] : vector<16x16xf32> to vector<16xf32>
    %102 = vector.shape_cast %101 : vector<16xf32> to vector<16x1xf32>
    %103 = arith.addf %102, %100 : vector<16x1xf32>
    %104 = tpu.reciprocal %103 {approx = true} : vector<16x1xf32> -> vector<16x1xf32>
    %cst_42 = arith.constant dense<0.000000e+00> : vector<16x8xf32>
    %105 = tpu.matmul %98, %80, %cst_42 {dimension_numbers = #tpu.dot_dimension_numbers<[1], [0], [0], [1], [0, 0, 1, 1], [], []>} : vector<16x16xf32>, vector<16x8xf32>, vector<16x8xf32> -> vector<16x8xf32>
    %106 = vector.broadcast %100 : vector<16x1xf32> to vector<16x8xf32>
    %107 = vector.broadcast %82 : vector<1x8xf32> to vector<16x8xf32>
    %108 = arith.mulf %106, %107 : vector<16x8xf32>
    %109 = arith.addf %105, %108 : vector<16x8xf32>
    %110 = vector.broadcast %104 : vector<16x1xf32> to vector<16x8xf32>
    %111 = arith.mulf %109, %110 : vector<16x8xf32>
    %cst_43 = arith.constant dense<0.000000e+00> : vector<16x32xf32>
    %112 = tpu.matmul %111, %83, %cst_43 {dimension_numbers = #tpu.dot_dimension_numbers<[1], [0], [0], [1], [0, 0, 1, 1], [], []>} : vector<16x8xf32>, vector<8x32xf32>, vector<16x32xf32> -> vector<16x32xf32>
    %113 = arith.addf %75, %112 : vector<16x32xf32>
    %c0_44 = arith.constant 0 : index
    %c0_45 = arith.constant 0 : index
    %114 = vector.load %arg5[%c0_44, %c0_45] : memref<1x32xf32, #tpu.memory_space<vmem>>, vector<1x32xf32>
    %cst_46 = arith.constant dense<0.000000e+00> : vector<1x16xf32>
    %115 = tpu.matmul %114, %1, %cst_46 {dimension_numbers = #tpu.dot_dimension_numbers<[1], [1], [0], [0], [0, 0, 1, 0], [], []>} : vector<1x32xf32>, vector<16x32xf32>, vector<1x16xf32> -> vector<1x16xf32>
    %cst_47 = arith.constant 0.000000e+00 : f32
    %116 = vector.broadcast %cst_47 : f32 to vector<1x16xf32>
    %117 = arith.subf %116, %115 : vector<1x16xf32>
    %118 = arith.addf %115, %117 : vector<1x16xf32>
    %cst_48 = arith.constant 2.500000e-01 : f32
    %119 = vector.broadcast %cst_48 : f32 to vector<1x16xf32>
    %120 = arith.mulf %118, %119 : vector<1x16xf32>
    %cst_49 = arith.constant dense<0xFF800000> : vector<1xf32>
    %121 = vector.multi_reduction <maximumf>, %120, %cst_49 [1] : vector<1x16xf32> to vector<1xf32>
    %122 = vector.shape_cast %121 : vector<1xf32> to vector<1x1xf32>
    %123 = vector.broadcast %122 : vector<1x1xf32> to vector<1x16xf32>
    %124 = arith.subf %120, %123 : vector<1x16xf32>
    %125 = math.exp %124 : vector<1x16xf32>
    %cst_50 = arith.constant dense<0.000000e+00> : vector<1xf32>
    %126 = vector.multi_reduction <add>, %125, %cst_50 [1] : vector<1x16xf32> to vector<1xf32>
    %127 = vector.shape_cast %126 : vector<1xf32> to vector<1x1xf32>
    %128 = math.log %127 : vector<1x1xf32>
    %129 = arith.addf %122, %128 : vector<1x1xf32>
    %cst_51 = arith.constant 2.19722462 : f32
    %130 = vector.broadcast %cst_51 : f32 to vector<1x1xf32>
    %131 = arith.subf %130, %129 : vector<1x1xf32>
    %cst_52 = arith.constant 4.000000e+00 : f32
    %132 = vector.broadcast %cst_52 : f32 to vector<1x1xf32>
    %133 = arith.mulf %132, %131 : vector<1x1xf32>
    %134 = vector.broadcast %133 : vector<1x1xf32> to vector<1x16xf32>
    %135 = arith.addf %115, %134 : vector<1x16xf32>
    %cst_53 = arith.constant 0.000000e+00 : f32
    %136 = vector.broadcast %cst_53 : f32 to vector<1x16xf32>
    %137 = arith.maximumf %135, %136 : vector<1x16xf32>
    %cst_54 = arith.constant 0.000000e+00 : f32
    %138 = vector.broadcast %cst_54 : f32 to vector<1x16xf32>
    %139 = arith.subf %138, %137 : vector<1x16xf32>
    %140 = arith.addf %115, %139 : vector<1x16xf32>
    %cst_55 = arith.constant 0.357142866 : f32
    %141 = vector.broadcast %cst_55 : f32 to vector<1x16xf32>
    %142 = arith.mulf %140, %141 : vector<1x16xf32>
    %cst_56 = arith.constant dense<0xFF800000> : vector<1xf32>
    %143 = vector.multi_reduction <maximumf>, %142, %cst_56 [1] : vector<1x16xf32> to vector<1xf32>
    %144 = vector.shape_cast %143 : vector<1xf32> to vector<1x1xf32>
    %145 = vector.broadcast %144 : vector<1x1xf32> to vector<1x16xf32>
    %146 = arith.subf %142, %145 : vector<1x16xf32>
    %147 = math.exp %146 : vector<1x16xf32>
    %cst_57 = arith.constant dense<0.000000e+00> : vector<1xf32>
    %148 = vector.multi_reduction <add>, %147, %cst_57 [1] : vector<1x16xf32> to vector<1xf32>
    %149 = vector.shape_cast %148 : vector<1xf32> to vector<1x1xf32>
    %150 = math.log %149 : vector<1x1xf32>
    %151 = arith.addf %144, %150 : vector<1x1xf32>
    %cst_58 = arith.constant 2.19722462 : f32
    %152 = vector.broadcast %cst_58 : f32 to vector<1x1xf32>
    %153 = arith.subf %152, %151 : vector<1x1xf32>
    %cst_59 = arith.constant 2.800000e+00 : f32
    %154 = vector.broadcast %cst_59 : f32 to vector<1x1xf32>
    %155 = arith.mulf %154, %153 : vector<1x1xf32>
    %156 = vector.broadcast %155 : vector<1x1xf32> to vector<1x16xf32>
    %157 = arith.addf %115, %156 : vector<1x16xf32>
    %cst_60 = arith.constant 0.000000e+00 : f32
    %158 = vector.broadcast %cst_60 : f32 to vector<1x16xf32>
    %159 = arith.maximumf %157, %158 : vector<1x16xf32>
    %cst_61 = arith.constant 0.000000e+00 : f32
    %160 = vector.broadcast %cst_61 : f32 to vector<1x16xf32>
    %161 = arith.subf %160, %159 : vector<1x16xf32>
    %162 = arith.addf %115, %161 : vector<1x16xf32>
    %cst_62 = arith.constant 0.510204077 : f32
    %163 = vector.broadcast %cst_62 : f32 to vector<1x16xf32>
    %164 = arith.mulf %162, %163 : vector<1x16xf32>
    %cst_63 = arith.constant dense<0xFF800000> : vector<1xf32>
    %165 = vector.multi_reduction <maximumf>, %164, %cst_63 [1] : vector<1x16xf32> to vector<1xf32>
    %166 = vector.shape_cast %165 : vector<1xf32> to vector<1x1xf32>
    %167 = vector.broadcast %166 : vector<1x1xf32> to vector<1x16xf32>
    %168 = arith.subf %164, %167 : vector<1x16xf32>
    %169 = math.exp %168 : vector<1x16xf32>
    %cst_64 = arith.constant dense<0.000000e+00> : vector<1xf32>
    %170 = vector.multi_reduction <add>, %169, %cst_64 [1] : vector<1x16xf32> to vector<1xf32>
    %171 = vector.shape_cast %170 : vector<1xf32> to vector<1x1xf32>
    %172 = math.log %171 : vector<1x1xf32>
    %173 = arith.addf %166, %172 : vector<1x1xf32>
    %cst_65 = arith.constant 2.19722462 : f32
    %174 = vector.broadcast %cst_65 : f32 to vector<1x1xf32>
    %175 = arith.subf %174, %173 : vector<1x1xf32>
    %cst_66 = arith.constant 1.960000e+00 : f32
    %176 = vector.broadcast %cst_66 : f32 to vector<1x1xf32>
    %177 = arith.mulf %176, %175 : vector<1x1xf32>
    %178 = vector.broadcast %177 : vector<1x1xf32> to vector<1x16xf32>
    %179 = arith.addf %115, %178 : vector<1x16xf32>
    %cst_67 = arith.constant 0.000000e+00 : f32
    %180 = vector.broadcast %cst_67 : f32 to vector<1x16xf32>
    %181 = arith.maximumf %179, %180 : vector<1x16xf32>
    %cst_68 = arith.constant 0.000000e+00 : f32
    %182 = vector.broadcast %cst_68 : f32 to vector<1x16xf32>
    %183 = arith.subf %182, %181 : vector<1x16xf32>
    %184 = arith.addf %115, %183 : vector<1x16xf32>
    %cst_69 = arith.constant 7.288630e-01 : f32
    %185 = vector.broadcast %cst_69 : f32 to vector<1x16xf32>
    %186 = arith.mulf %184, %185 : vector<1x16xf32>
    %cst_70 = arith.constant dense<0xFF800000> : vector<1xf32>
    %187 = vector.multi_reduction <maximumf>, %186, %cst_70 [1] : vector<1x16xf32> to vector<1xf32>
    %188 = vector.shape_cast %187 : vector<1xf32> to vector<1x1xf32>
    %189 = vector.broadcast %188 : vector<1x1xf32> to vector<1x16xf32>
    %190 = arith.subf %186, %189 : vector<1x16xf32>
    %191 = math.exp %190 : vector<1x16xf32>
    %cst_71 = arith.constant dense<0.000000e+00> : vector<1xf32>
    %192 = vector.multi_reduction <add>, %191, %cst_71 [1] : vector<1x16xf32> to vector<1xf32>
    %193 = vector.shape_cast %192 : vector<1xf32> to vector<1x1xf32>
    %194 = math.log %193 : vector<1x1xf32>
    %195 = arith.addf %188, %194 : vector<1x1xf32>
    %cst_72 = arith.constant 2.19722462 : f32
    %196 = vector.broadcast %cst_72 : f32 to vector<1x1xf32>
    %197 = arith.subf %196, %195 : vector<1x1xf32>
    %cst_73 = arith.constant 1.372000e+00 : f32
    %198 = vector.broadcast %cst_73 : f32 to vector<1x1xf32>
    %199 = arith.mulf %198, %197 : vector<1x1xf32>
    %200 = vector.broadcast %199 : vector<1x1xf32> to vector<1x16xf32>
    %201 = arith.addf %115, %200 : vector<1x16xf32>
    %cst_74 = arith.constant 0.000000e+00 : f32
    %202 = vector.broadcast %cst_74 : f32 to vector<1x16xf32>
    %203 = arith.maximumf %201, %202 : vector<1x16xf32>
    %cst_75 = arith.constant 0.000000e+00 : f32
    %204 = vector.broadcast %cst_75 : f32 to vector<1x16xf32>
    %205 = arith.subf %204, %203 : vector<1x16xf32>
    %206 = arith.addf %115, %205 : vector<1x16xf32>
    %cst_76 = arith.constant 1.000000e+00 : f32
    %207 = vector.broadcast %cst_76 : f32 to vector<1x16xf32>
    %208 = arith.mulf %206, %207 : vector<1x16xf32>
    %cst_77 = arith.constant dense<0xFF800000> : vector<1xf32>
    %209 = vector.multi_reduction <maximumf>, %208, %cst_77 [1] : vector<1x16xf32> to vector<1xf32>
    %210 = vector.shape_cast %209 : vector<1xf32> to vector<1x1xf32>
    %211 = vector.broadcast %210 : vector<1x1xf32> to vector<1x16xf32>
    %212 = arith.subf %208, %211 : vector<1x16xf32>
    %213 = math.exp %212 : vector<1x16xf32>
    %cst_78 = arith.constant dense<0.000000e+00> : vector<1xf32>
    %214 = vector.multi_reduction <add>, %213, %cst_78 [1] : vector<1x16xf32> to vector<1xf32>
    %215 = vector.shape_cast %214 : vector<1xf32> to vector<1x1xf32>
    %216 = math.log %215 : vector<1x1xf32>
    %217 = arith.addf %210, %216 : vector<1x1xf32>
    %cst_79 = arith.constant 2.19722462 : f32
    %218 = vector.broadcast %cst_79 : f32 to vector<1x1xf32>
    %219 = arith.subf %218, %217 : vector<1x1xf32>
    %cst_80 = arith.constant 1.000000e+00 : f32
    %220 = vector.broadcast %cst_80 : f32 to vector<1x1xf32>
    %221 = arith.mulf %220, %219 : vector<1x1xf32>
    %222 = vector.broadcast %221 : vector<1x1xf32> to vector<1x16xf32>
    %223 = arith.addf %115, %222 : vector<1x16xf32>
    %cst_81 = arith.constant 0.000000e+00 : f32
    %224 = vector.broadcast %cst_81 : f32 to vector<1x16xf32>
    %225 = arith.maximumf %223, %224 : vector<1x16xf32>
    %cst_82 = arith.constant 0.000000e+00 : f32
    %226 = vector.broadcast %cst_82 : f32 to vector<1x16xf32>
    %227 = arith.subf %226, %225 : vector<1x16xf32>
    %228 = arith.addf %115, %227 : vector<1x16xf32>
    %cst_83 = arith.constant 1.000000e+00 : f32
    %229 = vector.broadcast %cst_83 : f32 to vector<1x16xf32>
    %230 = arith.mulf %228, %229 : vector<1x16xf32>
    %cst_84 = arith.constant dense<0xFF800000> : vector<1xf32>
    %231 = vector.multi_reduction <maximumf>, %230, %cst_84 [1] : vector<1x16xf32> to vector<1xf32>
    %232 = vector.shape_cast %231 : vector<1xf32> to vector<1x1xf32>
    %233 = vector.broadcast %232 : vector<1x1xf32> to vector<1x16xf32>
    %234 = arith.subf %230, %233 : vector<1x16xf32>
    %235 = math.exp %234 : vector<1x16xf32>
    %cst_85 = arith.constant dense<0.000000e+00> : vector<1xf32>
    %236 = vector.multi_reduction <add>, %235, %cst_85 [1] : vector<1x16xf32> to vector<1xf32>
    %237 = vector.shape_cast %236 : vector<1xf32> to vector<1x1xf32>
    %238 = math.log %237 : vector<1x1xf32>
    %239 = arith.addf %232, %238 : vector<1x1xf32>
    %cst_86 = arith.constant 2.19722462 : f32
    %240 = vector.broadcast %cst_86 : f32 to vector<1x1xf32>
    %241 = arith.subf %240, %239 : vector<1x1xf32>
    %cst_87 = arith.constant 1.000000e+00 : f32
    %242 = vector.broadcast %cst_87 : f32 to vector<1x1xf32>
    %243 = arith.mulf %242, %241 : vector<1x1xf32>
    %244 = vector.broadcast %243 : vector<1x1xf32> to vector<1x16xf32>
    %245 = arith.addf %115, %244 : vector<1x16xf32>
    %cst_88 = arith.constant 0.000000e+00 : f32
    %246 = vector.broadcast %cst_88 : f32 to vector<1x16xf32>
    %247 = arith.maximumf %245, %246 : vector<1x16xf32>
    %cst_89 = arith.constant 0.000000e+00 : f32
    %248 = vector.broadcast %cst_89 : f32 to vector<1x16xf32>
    %249 = arith.subf %248, %247 : vector<1x16xf32>
    %250 = arith.addf %115, %249 : vector<1x16xf32>
    %cst_90 = arith.constant 1.000000e+00 : f32
    %251 = vector.broadcast %cst_90 : f32 to vector<1x16xf32>
    %252 = arith.mulf %250, %251 : vector<1x16xf32>
    %cst_91 = arith.constant dense<0xFF800000> : vector<1xf32>
    %253 = vector.multi_reduction <maximumf>, %252, %cst_91 [1] : vector<1x16xf32> to vector<1xf32>
    %254 = vector.shape_cast %253 : vector<1xf32> to vector<1x1xf32>
    %255 = vector.broadcast %254 : vector<1x1xf32> to vector<1x16xf32>
    %256 = arith.subf %252, %255 : vector<1x16xf32>
    %257 = math.exp %256 : vector<1x16xf32>
    %cst_92 = arith.constant dense<0.000000e+00> : vector<1xf32>
    %258 = vector.multi_reduction <add>, %257, %cst_92 [1] : vector<1x16xf32> to vector<1xf32>
    %259 = vector.shape_cast %258 : vector<1xf32> to vector<1x1xf32>
    %260 = math.log %259 : vector<1x1xf32>
    %261 = arith.addf %254, %260 : vector<1x1xf32>
    %cst_93 = arith.constant 2.19722462 : f32
    %262 = vector.broadcast %cst_93 : f32 to vector<1x1xf32>
    %263 = arith.subf %262, %261 : vector<1x1xf32>
    %cst_94 = arith.constant 1.000000e+00 : f32
    %264 = vector.broadcast %cst_94 : f32 to vector<1x1xf32>
    %265 = arith.mulf %264, %263 : vector<1x1xf32>
    %266 = vector.broadcast %265 : vector<1x1xf32> to vector<1x16xf32>
    %267 = arith.addf %115, %266 : vector<1x16xf32>
    %cst_95 = arith.constant 0.000000e+00 : f32
    %268 = vector.broadcast %cst_95 : f32 to vector<1x16xf32>
    %269 = arith.maximumf %267, %268 : vector<1x16xf32>
    %cst_96 = arith.constant 0.000000e+00 : f32
    %270 = vector.broadcast %cst_96 : f32 to vector<1x16xf32>
    %271 = arith.subf %270, %269 : vector<1x16xf32>
    %272 = arith.addf %115, %271 : vector<1x16xf32>
    %cst_97 = arith.constant 1.000000e+00 : f32
    %273 = vector.broadcast %cst_97 : f32 to vector<1x16xf32>
    %274 = arith.mulf %272, %273 : vector<1x16xf32>
    %cst_98 = arith.constant dense<0xFF800000> : vector<1xf32>
    %275 = vector.multi_reduction <maximumf>, %274, %cst_98 [1] : vector<1x16xf32> to vector<1xf32>
    %276 = vector.shape_cast %275 : vector<1xf32> to vector<1x1xf32>
    %277 = vector.broadcast %276 : vector<1x1xf32> to vector<1x16xf32>
    %278 = arith.subf %274, %277 : vector<1x16xf32>
    %279 = math.exp %278 : vector<1x16xf32>
    %cst_99 = arith.constant dense<0.000000e+00> : vector<1xf32>
    %280 = vector.multi_reduction <add>, %279, %cst_99 [1] : vector<1x16xf32> to vector<1xf32>
    %281 = vector.shape_cast %280 : vector<1xf32> to vector<1x1xf32>
    %282 = math.log %281 : vector<1x1xf32>
    %283 = arith.addf %276, %282 : vector<1x1xf32>
    %cst_100 = arith.constant 2.19722462 : f32
    %284 = vector.broadcast %cst_100 : f32 to vector<1x1xf32>
    %285 = arith.subf %284, %283 : vector<1x1xf32>
    %cst_101 = arith.constant 1.000000e+00 : f32
    %286 = vector.broadcast %cst_101 : f32 to vector<1x1xf32>
    %287 = arith.mulf %286, %285 : vector<1x1xf32>
    %288 = vector.broadcast %287 : vector<1x1xf32> to vector<1x16xf32>
    %289 = arith.addf %115, %288 : vector<1x16xf32>
    %cst_102 = arith.constant 0.000000e+00 : f32
    %290 = vector.broadcast %cst_102 : f32 to vector<1x16xf32>
    %291 = arith.maximumf %289, %290 : vector<1x16xf32>
    %cst_103 = arith.constant 0.000000e+00 : f32
    %292 = vector.broadcast %cst_103 : f32 to vector<1x16xf32>
    %293 = arith.subf %292, %291 : vector<1x16xf32>
    %294 = arith.addf %115, %293 : vector<1x16xf32>
    %cst_104 = arith.constant 1.000000e+00 : f32
    %295 = vector.broadcast %cst_104 : f32 to vector<1x16xf32>
    %296 = arith.mulf %294, %295 : vector<1x16xf32>
    %cst_105 = arith.constant dense<0xFF800000> : vector<1xf32>
    %297 = vector.multi_reduction <maximumf>, %296, %cst_105 [1] : vector<1x16xf32> to vector<1xf32>
    %298 = vector.shape_cast %297 : vector<1xf32> to vector<1x1xf32>
    %299 = vector.broadcast %298 : vector<1x1xf32> to vector<1x16xf32>
    %300 = arith.subf %296, %299 : vector<1x16xf32>
    %301 = math.exp %300 : vector<1x16xf32>
    %cst_106 = arith.constant dense<0.000000e+00> : vector<1xf32>
    %302 = vector.multi_reduction <add>, %301, %cst_106 [1] : vector<1x16xf32> to vector<1xf32>
    %303 = vector.shape_cast %302 : vector<1xf32> to vector<1x1xf32>
    %304 = math.log %303 : vector<1x1xf32>
    %305 = arith.addf %298, %304 : vector<1x1xf32>
    %cst_107 = arith.constant 2.19722462 : f32
    %306 = vector.broadcast %cst_107 : f32 to vector<1x1xf32>
    %307 = arith.subf %306, %305 : vector<1x1xf32>
    %cst_108 = arith.constant 1.000000e+00 : f32
    %308 = vector.broadcast %cst_108 : f32 to vector<1x1xf32>
    %309 = arith.mulf %308, %307 : vector<1x1xf32>
    %310 = vector.broadcast %309 : vector<1x1xf32> to vector<1x16xf32>
    %311 = arith.addf %115, %310 : vector<1x16xf32>
    %cst_109 = arith.constant 0.000000e+00 : f32
    %312 = vector.broadcast %cst_109 : f32 to vector<1x16xf32>
    %313 = arith.maximumf %311, %312 : vector<1x16xf32>
    %cst_110 = arith.constant 0.000000e+00 : f32
    %314 = vector.broadcast %cst_110 : f32 to vector<1x16xf32>
    %315 = arith.subf %314, %313 : vector<1x16xf32>
    %316 = arith.addf %115, %315 : vector<1x16xf32>
    %cst_111 = arith.constant 1.000000e+00 : f32
    %317 = vector.broadcast %cst_111 : f32 to vector<1x16xf32>
    %318 = arith.mulf %316, %317 : vector<1x16xf32>
    %cst_112 = arith.constant dense<0xFF800000> : vector<1xf32>
    %319 = vector.multi_reduction <maximumf>, %318, %cst_112 [1] : vector<1x16xf32> to vector<1xf32>
    %320 = vector.shape_cast %319 : vector<1xf32> to vector<1x1xf32>
    %321 = vector.broadcast %320 : vector<1x1xf32> to vector<1x16xf32>
    %322 = arith.subf %318, %321 : vector<1x16xf32>
    %323 = math.exp %322 : vector<1x16xf32>
    %cst_113 = arith.constant dense<0.000000e+00> : vector<1xf32>
    %324 = vector.multi_reduction <add>, %323, %cst_113 [1] : vector<1x16xf32> to vector<1xf32>
    %325 = vector.shape_cast %324 : vector<1xf32> to vector<1x1xf32>
    %326 = math.log %325 : vector<1x1xf32>
    %327 = arith.addf %320, %326 : vector<1x1xf32>
    %cst_114 = arith.constant 2.19722462 : f32
    %328 = vector.broadcast %cst_114 : f32 to vector<1x1xf32>
    %329 = arith.subf %328, %327 : vector<1x1xf32>
    %cst_115 = arith.constant 1.000000e+00 : f32
    %330 = vector.broadcast %cst_115 : f32 to vector<1x1xf32>
    %331 = arith.mulf %330, %329 : vector<1x1xf32>
    %332 = vector.broadcast %331 : vector<1x1xf32> to vector<1x16xf32>
    %333 = arith.addf %115, %332 : vector<1x16xf32>
    %cst_116 = arith.constant 0.000000e+00 : f32
    %334 = vector.broadcast %cst_116 : f32 to vector<1x16xf32>
    %335 = arith.maximumf %333, %334 : vector<1x16xf32>
    %cst_117 = arith.constant 0.000000e+00 : f32
    %336 = vector.broadcast %cst_117 : f32 to vector<1x16xf32>
    %337 = arith.subf %336, %335 : vector<1x16xf32>
    %338 = arith.addf %115, %337 : vector<1x16xf32>
    %cst_118 = arith.constant 1.000000e+00 : f32
    %339 = vector.broadcast %cst_118 : f32 to vector<1x16xf32>
    %340 = arith.mulf %338, %339 : vector<1x16xf32>
    %cst_119 = arith.constant dense<0xFF800000> : vector<1xf32>
    %341 = vector.multi_reduction <maximumf>, %340, %cst_119 [1] : vector<1x16xf32> to vector<1xf32>
    %342 = vector.shape_cast %341 : vector<1xf32> to vector<1x1xf32>
    %343 = vector.broadcast %342 : vector<1x1xf32> to vector<1x16xf32>
    %344 = arith.subf %340, %343 : vector<1x16xf32>
    %345 = math.exp %344 : vector<1x16xf32>
    %cst_120 = arith.constant dense<0.000000e+00> : vector<1xf32>
    %346 = vector.multi_reduction <add>, %345, %cst_120 [1] : vector<1x16xf32> to vector<1xf32>
    %347 = vector.shape_cast %346 : vector<1xf32> to vector<1x1xf32>
    %348 = math.log %347 : vector<1x1xf32>
    %349 = arith.addf %342, %348 : vector<1x1xf32>
    %cst_121 = arith.constant 2.19722462 : f32
    %350 = vector.broadcast %cst_121 : f32 to vector<1x1xf32>
    %351 = arith.subf %350, %349 : vector<1x1xf32>
    %cst_122 = arith.constant 1.000000e+00 : f32
    %352 = vector.broadcast %cst_122 : f32 to vector<1x1xf32>
    %353 = arith.mulf %352, %351 : vector<1x1xf32>
    %354 = vector.broadcast %353 : vector<1x1xf32> to vector<1x16xf32>
    %355 = arith.addf %115, %354 : vector<1x16xf32>
    %cst_123 = arith.constant 0.000000e+00 : f32
    %356 = vector.broadcast %cst_123 : f32 to vector<1x16xf32>
    %357 = arith.maximumf %355, %356 : vector<1x16xf32>
    %cst_124 = arith.constant 0.000000e+00 : f32
    %358 = vector.broadcast %cst_124 : f32 to vector<1x16xf32>
    %359 = arith.subf %358, %357 : vector<1x16xf32>
    %360 = arith.addf %115, %359 : vector<1x16xf32>
    %cst_125 = arith.constant 1.000000e+00 : f32
    %361 = vector.broadcast %cst_125 : f32 to vector<1x16xf32>
    %362 = arith.mulf %360, %361 : vector<1x16xf32>
    %cst_126 = arith.constant dense<0xFF800000> : vector<1xf32>
    %363 = vector.multi_reduction <maximumf>, %362, %cst_126 [1] : vector<1x16xf32> to vector<1xf32>
    %364 = vector.shape_cast %363 : vector<1xf32> to vector<1x1xf32>
    %365 = vector.broadcast %364 : vector<1x1xf32> to vector<1x16xf32>
    %366 = arith.subf %362, %365 : vector<1x16xf32>
    %367 = math.exp %366 : vector<1x16xf32>
    %cst_127 = arith.constant dense<0.000000e+00> : vector<1xf32>
    %368 = vector.multi_reduction <add>, %367, %cst_127 [1] : vector<1x16xf32> to vector<1xf32>
    %369 = vector.shape_cast %368 : vector<1xf32> to vector<1x1xf32>
    %370 = math.log %369 : vector<1x1xf32>
    %371 = arith.addf %364, %370 : vector<1x1xf32>
    %cst_128 = arith.constant 2.19722462 : f32
    %372 = vector.broadcast %cst_128 : f32 to vector<1x1xf32>
    %373 = arith.subf %372, %371 : vector<1x1xf32>
    %cst_129 = arith.constant 1.000000e+00 : f32
    %374 = vector.broadcast %cst_129 : f32 to vector<1x1xf32>
    %375 = arith.mulf %374, %373 : vector<1x1xf32>
    %376 = vector.broadcast %375 : vector<1x1xf32> to vector<1x16xf32>
    %377 = arith.addf %115, %376 : vector<1x16xf32>
    %cst_130 = arith.constant 0.000000e+00 : f32
    %378 = vector.broadcast %cst_130 : f32 to vector<1x16xf32>
    %379 = arith.maximumf %377, %378 : vector<1x16xf32>
    %cst_131 = arith.constant 0.000000e+00 : f32
    %380 = vector.broadcast %cst_131 : f32 to vector<1x16xf32>
    %381 = arith.subf %380, %379 : vector<1x16xf32>
    %382 = arith.addf %115, %381 : vector<1x16xf32>
    %cst_132 = arith.constant 1.000000e+00 : f32
    %383 = vector.broadcast %cst_132 : f32 to vector<1x16xf32>
    %384 = arith.mulf %382, %383 : vector<1x16xf32>
    %cst_133 = arith.constant dense<0xFF800000> : vector<1xf32>
    %385 = vector.multi_reduction <maximumf>, %384, %cst_133 [1] : vector<1x16xf32> to vector<1xf32>
    %386 = vector.shape_cast %385 : vector<1xf32> to vector<1x1xf32>
    %387 = vector.broadcast %386 : vector<1x1xf32> to vector<1x16xf32>
    %388 = arith.subf %384, %387 : vector<1x16xf32>
    %389 = math.exp %388 : vector<1x16xf32>
    %cst_134 = arith.constant dense<0.000000e+00> : vector<1xf32>
    %390 = vector.multi_reduction <add>, %389, %cst_134 [1] : vector<1x16xf32> to vector<1xf32>
    %391 = vector.shape_cast %390 : vector<1xf32> to vector<1x1xf32>
    %392 = math.log %391 : vector<1x1xf32>
    %393 = arith.addf %386, %392 : vector<1x1xf32>
    %cst_135 = arith.constant 2.19722462 : f32
    %394 = vector.broadcast %cst_135 : f32 to vector<1x1xf32>
    %395 = arith.subf %394, %393 : vector<1x1xf32>
    %cst_136 = arith.constant 1.000000e+00 : f32
    %396 = vector.broadcast %cst_136 : f32 to vector<1x1xf32>
    %397 = arith.mulf %396, %395 : vector<1x1xf32>
    %398 = vector.broadcast %397 : vector<1x1xf32> to vector<1x16xf32>
    %399 = arith.addf %115, %398 : vector<1x16xf32>
    %cst_137 = arith.constant 0.000000e+00 : f32
    %400 = vector.broadcast %cst_137 : f32 to vector<1x16xf32>
    %401 = arith.maximumf %399, %400 : vector<1x16xf32>
    %cst_138 = arith.constant 0.000000e+00 : f32
    %402 = vector.broadcast %cst_138 : f32 to vector<1x16xf32>
    %403 = arith.subf %402, %401 : vector<1x16xf32>
    %404 = arith.addf %115, %403 : vector<1x16xf32>
    %cst_139 = arith.constant 1.000000e+00 : f32
    %405 = vector.broadcast %cst_139 : f32 to vector<1x16xf32>
    %406 = arith.mulf %404, %405 : vector<1x16xf32>
    %cst_140 = arith.constant dense<0xFF800000> : vector<1xf32>
    %407 = vector.multi_reduction <maximumf>, %406, %cst_140 [1] : vector<1x16xf32> to vector<1xf32>
    %408 = vector.shape_cast %407 : vector<1xf32> to vector<1x1xf32>
    %409 = vector.broadcast %408 : vector<1x1xf32> to vector<1x16xf32>
    %410 = arith.subf %406, %409 : vector<1x16xf32>
    %411 = math.exp %410 : vector<1x16xf32>
    %cst_141 = arith.constant dense<0.000000e+00> : vector<1xf32>
    %412 = vector.multi_reduction <add>, %411, %cst_141 [1] : vector<1x16xf32> to vector<1xf32>
    %413 = vector.shape_cast %412 : vector<1xf32> to vector<1x1xf32>
    %414 = math.log %413 : vector<1x1xf32>
    %415 = arith.addf %408, %414 : vector<1x1xf32>
    %cst_142 = arith.constant 2.19722462 : f32
    %416 = vector.broadcast %cst_142 : f32 to vector<1x1xf32>
    %417 = arith.subf %416, %415 : vector<1x1xf32>
    %cst_143 = arith.constant 1.000000e+00 : f32
    %418 = vector.broadcast %cst_143 : f32 to vector<1x1xf32>
    %419 = arith.mulf %418, %417 : vector<1x1xf32>
    %420 = vector.broadcast %419 : vector<1x1xf32> to vector<1x16xf32>
    %421 = arith.addf %115, %420 : vector<1x16xf32>
    %cst_144 = arith.constant 0.000000e+00 : f32
    %422 = vector.broadcast %cst_144 : f32 to vector<1x16xf32>
    %423 = arith.maximumf %421, %422 : vector<1x16xf32>
    %cst_145 = arith.constant 0.000000e+00 : f32
    %424 = vector.broadcast %cst_145 : f32 to vector<1x16xf32>
    %425 = arith.subf %424, %423 : vector<1x16xf32>
    %426 = arith.addf %115, %425 : vector<1x16xf32>
    %cst_146 = arith.constant 1.000000e+00 : f32
    %427 = vector.broadcast %cst_146 : f32 to vector<1x16xf32>
    %428 = arith.mulf %426, %427 : vector<1x16xf32>
    %cst_147 = arith.constant dense<0xFF800000> : vector<1xf32>
    %429 = vector.multi_reduction <maximumf>, %428, %cst_147 [1] : vector<1x16xf32> to vector<1xf32>
    %430 = vector.shape_cast %429 : vector<1xf32> to vector<1x1xf32>
    %431 = vector.broadcast %430 : vector<1x1xf32> to vector<1x16xf32>
    %432 = arith.subf %428, %431 : vector<1x16xf32>
    %433 = math.exp %432 : vector<1x16xf32>
    %cst_148 = arith.constant dense<0.000000e+00> : vector<1xf32>
    %434 = vector.multi_reduction <add>, %433, %cst_148 [1] : vector<1x16xf32> to vector<1xf32>
    %435 = vector.shape_cast %434 : vector<1xf32> to vector<1x1xf32>
    %436 = math.log %435 : vector<1x1xf32>
    %437 = arith.addf %430, %436 : vector<1x1xf32>
    %cst_149 = arith.constant 2.19722462 : f32
    %438 = vector.broadcast %cst_149 : f32 to vector<1x1xf32>
    %439 = arith.subf %438, %437 : vector<1x1xf32>
    %cst_150 = arith.constant 1.000000e+00 : f32
    %440 = vector.broadcast %cst_150 : f32 to vector<1x1xf32>
    %441 = arith.mulf %440, %439 : vector<1x1xf32>
    %442 = vector.broadcast %441 : vector<1x1xf32> to vector<1x16xf32>
    %443 = arith.addf %115, %442 : vector<1x16xf32>
    %cst_151 = arith.constant 0.000000e+00 : f32
    %444 = vector.broadcast %cst_151 : f32 to vector<1x16xf32>
    %445 = arith.maximumf %443, %444 : vector<1x16xf32>
    %cst_152 = arith.constant 0.000000e+00 : f32
    %446 = vector.broadcast %cst_152 : f32 to vector<1x16xf32>
    %447 = arith.subf %446, %445 : vector<1x16xf32>
    %448 = arith.addf %115, %447 : vector<1x16xf32>
    %cst_153 = arith.constant 1.000000e+00 : f32
    %449 = vector.broadcast %cst_153 : f32 to vector<1x16xf32>
    %450 = arith.mulf %448, %449 : vector<1x16xf32>
    %cst_154 = arith.constant dense<0xFF800000> : vector<1xf32>
    %451 = vector.multi_reduction <maximumf>, %450, %cst_154 [1] : vector<1x16xf32> to vector<1xf32>
    %452 = vector.shape_cast %451 : vector<1xf32> to vector<1x1xf32>
    %453 = vector.broadcast %452 : vector<1x1xf32> to vector<1x16xf32>
    %454 = arith.subf %450, %453 : vector<1x16xf32>
    %455 = math.exp %454 : vector<1x16xf32>
    %cst_155 = arith.constant dense<0.000000e+00> : vector<1xf32>
    %456 = vector.multi_reduction <add>, %455, %cst_155 [1] : vector<1x16xf32> to vector<1xf32>
    %457 = vector.shape_cast %456 : vector<1xf32> to vector<1x1xf32>
    %458 = math.log %457 : vector<1x1xf32>
    %459 = arith.addf %452, %458 : vector<1x1xf32>
    %cst_156 = arith.constant 2.19722462 : f32
    %460 = vector.broadcast %cst_156 : f32 to vector<1x1xf32>
    %461 = arith.subf %460, %459 : vector<1x1xf32>
    %cst_157 = arith.constant 1.000000e+00 : f32
    %462 = vector.broadcast %cst_157 : f32 to vector<1x1xf32>
    %463 = arith.mulf %462, %461 : vector<1x1xf32>
    %464 = vector.broadcast %463 : vector<1x1xf32> to vector<1x16xf32>
    %465 = arith.addf %115, %464 : vector<1x16xf32>
    %cst_158 = arith.constant 0.000000e+00 : f32
    %466 = vector.broadcast %cst_158 : f32 to vector<1x16xf32>
    %467 = arith.maximumf %465, %466 : vector<1x16xf32>
    %cst_159 = arith.constant 0.000000e+00 : f32
    %468 = vector.broadcast %cst_159 : f32 to vector<1x16xf32>
    %469 = arith.subf %468, %467 : vector<1x16xf32>
    %470 = arith.addf %115, %469 : vector<1x16xf32>
    %cst_160 = arith.constant 1.000000e+00 : f32
    %471 = vector.broadcast %cst_160 : f32 to vector<1x16xf32>
    %472 = arith.mulf %470, %471 : vector<1x16xf32>
    %cst_161 = arith.constant dense<0xFF800000> : vector<1xf32>
    %473 = vector.multi_reduction <maximumf>, %472, %cst_161 [1] : vector<1x16xf32> to vector<1xf32>
    %474 = vector.shape_cast %473 : vector<1xf32> to vector<1x1xf32>
    %475 = vector.broadcast %474 : vector<1x1xf32> to vector<1x16xf32>
    %476 = arith.subf %472, %475 : vector<1x16xf32>
    %477 = math.exp %476 : vector<1x16xf32>
    %cst_162 = arith.constant dense<0.000000e+00> : vector<1xf32>
    %478 = vector.multi_reduction <add>, %477, %cst_162 [1] : vector<1x16xf32> to vector<1xf32>
    %479 = vector.shape_cast %478 : vector<1xf32> to vector<1x1xf32>
    %480 = math.log %479 : vector<1x1xf32>
    %481 = arith.addf %474, %480 : vector<1x1xf32>
    %cst_163 = arith.constant 2.19722462 : f32
    %482 = vector.broadcast %cst_163 : f32 to vector<1x1xf32>
    %483 = arith.subf %482, %481 : vector<1x1xf32>
    %cst_164 = arith.constant 1.000000e+00 : f32
    %484 = vector.broadcast %cst_164 : f32 to vector<1x1xf32>
    %485 = arith.mulf %484, %483 : vector<1x1xf32>
    %486 = vector.broadcast %485 : vector<1x1xf32> to vector<1x16xf32>
    %487 = arith.addf %115, %486 : vector<1x16xf32>
    %cst_165 = arith.constant 0.000000e+00 : f32
    %488 = vector.broadcast %cst_165 : f32 to vector<1x16xf32>
    %489 = arith.maximumf %487, %488 : vector<1x16xf32>
    %cst_166 = arith.constant 0.000000e+00 : f32
    %490 = vector.broadcast %cst_166 : f32 to vector<1x16xf32>
    %491 = arith.subf %490, %489 : vector<1x16xf32>
    %492 = arith.addf %115, %491 : vector<1x16xf32>
    %cst_167 = arith.constant 1.000000e+00 : f32
    %493 = vector.broadcast %cst_167 : f32 to vector<1x16xf32>
    %494 = arith.mulf %492, %493 : vector<1x16xf32>
    %cst_168 = arith.constant dense<0xFF800000> : vector<1xf32>
    %495 = vector.multi_reduction <maximumf>, %494, %cst_168 [1] : vector<1x16xf32> to vector<1xf32>
    %496 = vector.shape_cast %495 : vector<1xf32> to vector<1x1xf32>
    %497 = vector.broadcast %496 : vector<1x1xf32> to vector<1x16xf32>
    %498 = arith.subf %494, %497 : vector<1x16xf32>
    %499 = math.exp %498 : vector<1x16xf32>
    %cst_169 = arith.constant dense<0.000000e+00> : vector<1xf32>
    %500 = vector.multi_reduction <add>, %499, %cst_169 [1] : vector<1x16xf32> to vector<1xf32>
    %501 = vector.shape_cast %500 : vector<1xf32> to vector<1x1xf32>
    %502 = math.log %501 : vector<1x1xf32>
    %503 = arith.addf %496, %502 : vector<1x1xf32>
    %cst_170 = arith.constant 2.19722462 : f32
    %504 = vector.broadcast %cst_170 : f32 to vector<1x1xf32>
    %505 = arith.subf %504, %503 : vector<1x1xf32>
    %cst_171 = arith.constant 1.000000e+00 : f32
    %506 = vector.broadcast %cst_171 : f32 to vector<1x1xf32>
    %507 = arith.mulf %506, %505 : vector<1x1xf32>
    %508 = vector.broadcast %507 : vector<1x1xf32> to vector<1x16xf32>
    %509 = arith.addf %115, %508 : vector<1x16xf32>
    %cst_172 = arith.constant 0.000000e+00 : f32
    %510 = vector.broadcast %cst_172 : f32 to vector<1x16xf32>
    %511 = arith.maximumf %509, %510 : vector<1x16xf32>
    %cst_173 = arith.constant 0.000000e+00 : f32
    %512 = vector.broadcast %cst_173 : f32 to vector<1x16xf32>
    %513 = arith.subf %512, %511 : vector<1x16xf32>
    %514 = arith.addf %115, %513 : vector<1x16xf32>
    %cst_174 = arith.constant 1.000000e+00 : f32
    %515 = vector.broadcast %cst_174 : f32 to vector<1x16xf32>
    %516 = arith.mulf %514, %515 : vector<1x16xf32>
    %cst_175 = arith.constant dense<0xFF800000> : vector<1xf32>
    %517 = vector.multi_reduction <maximumf>, %516, %cst_175 [1] : vector<1x16xf32> to vector<1xf32>
    %518 = vector.shape_cast %517 : vector<1xf32> to vector<1x1xf32>
    %519 = vector.broadcast %518 : vector<1x1xf32> to vector<1x16xf32>
    %520 = arith.subf %516, %519 : vector<1x16xf32>
    %521 = math.exp %520 : vector<1x16xf32>
    %cst_176 = arith.constant dense<0.000000e+00> : vector<1xf32>
    %522 = vector.multi_reduction <add>, %521, %cst_176 [1] : vector<1x16xf32> to vector<1xf32>
    %523 = vector.shape_cast %522 : vector<1xf32> to vector<1x1xf32>
    %524 = math.log %523 : vector<1x1xf32>
    %525 = arith.addf %518, %524 : vector<1x1xf32>
    %cst_177 = arith.constant 2.19722462 : f32
    %526 = vector.broadcast %cst_177 : f32 to vector<1x1xf32>
    %527 = arith.subf %526, %525 : vector<1x1xf32>
    %cst_178 = arith.constant 1.000000e+00 : f32
    %528 = vector.broadcast %cst_178 : f32 to vector<1x1xf32>
    %529 = arith.mulf %528, %527 : vector<1x1xf32>
    %530 = vector.broadcast %529 : vector<1x1xf32> to vector<1x16xf32>
    %531 = arith.addf %115, %530 : vector<1x16xf32>
    %cst_179 = arith.constant 0.000000e+00 : f32
    %532 = vector.broadcast %cst_179 : f32 to vector<1x16xf32>
    %533 = arith.maximumf %531, %532 : vector<1x16xf32>
    %cst_180 = arith.constant 0.000000e+00 : f32
    %534 = vector.broadcast %cst_180 : f32 to vector<1x16xf32>
    %535 = arith.subf %534, %533 : vector<1x16xf32>
    %536 = arith.addf %115, %535 : vector<1x16xf32>
    %cst_181 = arith.constant 1.000000e+00 : f32
    %537 = vector.broadcast %cst_181 : f32 to vector<1x16xf32>
    %538 = arith.mulf %536, %537 : vector<1x16xf32>
    %cst_182 = arith.constant dense<0xFF800000> : vector<1xf32>
    %539 = vector.multi_reduction <maximumf>, %538, %cst_182 [1] : vector<1x16xf32> to vector<1xf32>
    %540 = vector.shape_cast %539 : vector<1xf32> to vector<1x1xf32>
    %541 = vector.broadcast %540 : vector<1x1xf32> to vector<1x16xf32>
    %542 = arith.subf %538, %541 : vector<1x16xf32>
    %543 = math.exp %542 : vector<1x16xf32>
    %cst_183 = arith.constant dense<0.000000e+00> : vector<1xf32>
    %544 = vector.multi_reduction <add>, %543, %cst_183 [1] : vector<1x16xf32> to vector<1xf32>
    %545 = vector.shape_cast %544 : vector<1xf32> to vector<1x1xf32>
    %546 = math.log %545 : vector<1x1xf32>
    %547 = arith.addf %540, %546 : vector<1x1xf32>
    %cst_184 = arith.constant 2.19722462 : f32
    %548 = vector.broadcast %cst_184 : f32 to vector<1x1xf32>
    %549 = arith.subf %548, %547 : vector<1x1xf32>
    %cst_185 = arith.constant 1.000000e+00 : f32
    %550 = vector.broadcast %cst_185 : f32 to vector<1x1xf32>
    %551 = arith.mulf %550, %549 : vector<1x1xf32>
    %552 = vector.broadcast %551 : vector<1x1xf32> to vector<1x16xf32>
    %553 = arith.addf %115, %552 : vector<1x16xf32>
    %cst_186 = arith.constant 0.000000e+00 : f32
    %554 = vector.broadcast %cst_186 : f32 to vector<1x16xf32>
    %555 = arith.maximumf %553, %554 : vector<1x16xf32>
    %cst_187 = arith.constant 0.000000e+00 : f32
    %556 = vector.broadcast %cst_187 : f32 to vector<1x16xf32>
    %557 = arith.subf %556, %555 : vector<1x16xf32>
    %558 = vector.broadcast %551 : vector<1x1xf32> to vector<1x16xf32>
    %559 = arith.addf %115, %558 : vector<1x16xf32>
    %560 = arith.addf %559, %557 : vector<1x16xf32>
    %cst_188 = arith.constant 1.000000e+00 : f32
    %561 = vector.broadcast %cst_188 : f32 to vector<1x16xf32>
    %562 = arith.mulf %560, %561 : vector<1x16xf32>
    %563 = math.exp %562 : vector<1x16xf32>
    %564 = tpu.iota {dimensions = array<i32: 0>} : vector<8x1xi32>
    %565 = tpu.iota {dimensions = array<i32: 1>} : vector<1x8xi32>
    %cst_189 = arith.constant 0.000000e+00 : f32
    %566 = vector.broadcast %cst_189 : f32 to vector<8x16xf32>
    %cst_190 = arith.constant 0.000000e+00 : f32
    %567 = vector.broadcast %cst_190 : f32 to vector<16x8xf32>
    %cst_191 = arith.constant dense<0xFF800000> : vector<1xf32>
    %568 = vector.multi_reduction <maximumf>, %563, %cst_191 [1] : vector<1x16xf32> to vector<1xf32>
    %569 = vector.shape_cast %568 : vector<1xf32> to vector<1x1xf32>
    %570 = vector.broadcast %569 : vector<1x1xf32> to vector<1x16xf32>
    %571 = arith.cmpf oeq, %563, %570 : vector<1x16xf32>
    %cst_192 = arith.constant 1.600000e+01 : f32
    %572 = vector.broadcast %cst_192 : f32 to vector<1x16xf32>
    %573 = arith.select %571, %3, %572 : vector<1x16xi1>, vector<1x16xf32>
    %cst_193 = arith.constant dense<0x7F800000> : vector<1xf32>
    %574 = vector.multi_reduction <minimumf>, %573, %cst_193 [1] : vector<1x16xf32> to vector<1xf32>
    %575 = vector.shape_cast %574 : vector<1xf32> to vector<1x1xf32>
    %576 = vector.broadcast %575 : vector<1x1xf32> to vector<1x16xf32>
    %577 = arith.cmpf oeq, %3, %576 : vector<1x16xf32>
    %578 = arith.extui %577 : vector<1x16xi1> to vector<1x16xi32>
    %579 = arith.sitofp %578 : vector<1x16xi32> to vector<1x16xf32>
    %580 = vector.broadcast %575 : vector<1x1xf32> to vector<16x1xf32>
    %581 = arith.cmpf oeq, %4, %580 : vector<16x1xf32>
    %582 = arith.extui %581 : vector<16x1xi1> to vector<16x1xi32>
    %583 = arith.sitofp %582 : vector<16x1xi32> to vector<16x1xf32>
    %c0_i32 = arith.constant 0 : i32
    %584 = vector.broadcast %c0_i32 : i32 to vector<8x1xi32>
    %585 = arith.cmpi eq, %564, %584 : vector<8x1xi32>
    %cst_194 = arith.constant 1.000000e+00 : f32
    %cst_195 = arith.constant 0.000000e+00 : f32
    %586 = vector.broadcast %cst_194 : f32 to vector<8x1xf32>
    %587 = vector.broadcast %cst_195 : f32 to vector<8x1xf32>
    %588 = arith.select %585, %586, %587 : vector<8x1xi1>, vector<8x1xf32>
    %589 = vector.broadcast %588 : vector<8x1xf32> to vector<8x16xf32>
    %590 = vector.broadcast %579 : vector<1x16xf32> to vector<8x16xf32>
    %591 = arith.mulf %589, %590 : vector<8x16xf32>
    %592 = arith.addf %566, %591 : vector<8x16xf32>
    %c0_i32_196 = arith.constant 0 : i32
    %593 = vector.broadcast %c0_i32_196 : i32 to vector<1x8xi32>
    %594 = arith.cmpi eq, %565, %593 : vector<1x8xi32>
    %cst_197 = arith.constant 1.000000e+00 : f32
    %cst_198 = arith.constant 0.000000e+00 : f32
    %595 = vector.broadcast %cst_197 : f32 to vector<1x8xf32>
    %596 = vector.broadcast %cst_198 : f32 to vector<1x8xf32>
    %597 = arith.select %594, %595, %596 : vector<1x8xi1>, vector<1x8xf32>
    %598 = vector.broadcast %583 : vector<16x1xf32> to vector<16x8xf32>
    %599 = vector.broadcast %597 : vector<1x8xf32> to vector<16x8xf32>
    %600 = arith.mulf %598, %599 : vector<16x8xf32>
    %601 = arith.addf %567, %600 : vector<16x8xf32>
    %cst_199 = arith.constant 5.000000e-01 : f32
    %602 = vector.broadcast %cst_199 : f32 to vector<1x16xf32>
    %603 = arith.cmpf ogt, %579, %602 : vector<1x16xf32>
    %cst_200 = arith.constant -1.000000e+30 : f32
    %604 = vector.broadcast %cst_200 : f32 to vector<1x16xf32>
    %605 = arith.select %603, %604, %563 : vector<1x16xi1>, vector<1x16xf32>
    %cst_201 = arith.constant dense<0xFF800000> : vector<1xf32>
    %606 = vector.multi_reduction <maximumf>, %605, %cst_201 [1] : vector<1x16xf32> to vector<1xf32>
    %607 = vector.shape_cast %606 : vector<1xf32> to vector<1x1xf32>
    %608 = vector.broadcast %607 : vector<1x1xf32> to vector<1x16xf32>
    %609 = arith.cmpf oeq, %605, %608 : vector<1x16xf32>
    %cst_202 = arith.constant 1.600000e+01 : f32
    %610 = vector.broadcast %cst_202 : f32 to vector<1x16xf32>
    %611 = arith.select %609, %3, %610 : vector<1x16xi1>, vector<1x16xf32>
    %cst_203 = arith.constant dense<0x7F800000> : vector<1xf32>
    %612 = vector.multi_reduction <minimumf>, %611, %cst_203 [1] : vector<1x16xf32> to vector<1xf32>
    %613 = vector.shape_cast %612 : vector<1xf32> to vector<1x1xf32>
    %614 = vector.broadcast %613 : vector<1x1xf32> to vector<1x16xf32>
    %615 = arith.cmpf oeq, %3, %614 : vector<1x16xf32>
    %616 = arith.extui %615 : vector<1x16xi1> to vector<1x16xi32>
    %617 = arith.sitofp %616 : vector<1x16xi32> to vector<1x16xf32>
    %618 = vector.broadcast %613 : vector<1x1xf32> to vector<16x1xf32>
    %619 = arith.cmpf oeq, %4, %618 : vector<16x1xf32>
    %620 = arith.extui %619 : vector<16x1xi1> to vector<16x1xi32>
    %621 = arith.sitofp %620 : vector<16x1xi32> to vector<16x1xf32>
    %c1_i32 = arith.constant 1 : i32
    %622 = vector.broadcast %c1_i32 : i32 to vector<8x1xi32>
    %623 = arith.cmpi eq, %564, %622 : vector<8x1xi32>
    %cst_204 = arith.constant 1.000000e+00 : f32
    %cst_205 = arith.constant 0.000000e+00 : f32
    %624 = vector.broadcast %cst_204 : f32 to vector<8x1xf32>
    %625 = vector.broadcast %cst_205 : f32 to vector<8x1xf32>
    %626 = arith.select %623, %624, %625 : vector<8x1xi1>, vector<8x1xf32>
    %627 = vector.broadcast %626 : vector<8x1xf32> to vector<8x16xf32>
    %628 = vector.broadcast %617 : vector<1x16xf32> to vector<8x16xf32>
    %629 = arith.mulf %627, %628 : vector<8x16xf32>
    %630 = arith.addf %592, %629 : vector<8x16xf32>
    %c1_i32_206 = arith.constant 1 : i32
    %631 = vector.broadcast %c1_i32_206 : i32 to vector<1x8xi32>
    %632 = arith.cmpi eq, %565, %631 : vector<1x8xi32>
    %cst_207 = arith.constant 1.000000e+00 : f32
    %cst_208 = arith.constant 0.000000e+00 : f32
    %633 = vector.broadcast %cst_207 : f32 to vector<1x8xf32>
    %634 = vector.broadcast %cst_208 : f32 to vector<1x8xf32>
    %635 = arith.select %632, %633, %634 : vector<1x8xi1>, vector<1x8xf32>
    %636 = vector.broadcast %621 : vector<16x1xf32> to vector<16x8xf32>
    %637 = vector.broadcast %635 : vector<1x8xf32> to vector<16x8xf32>
    %638 = arith.mulf %636, %637 : vector<16x8xf32>
    %639 = arith.addf %601, %638 : vector<16x8xf32>
    %cst_209 = arith.constant 5.000000e-01 : f32
    %640 = vector.broadcast %cst_209 : f32 to vector<1x16xf32>
    %641 = arith.cmpf ogt, %617, %640 : vector<1x16xf32>
    %cst_210 = arith.constant -1.000000e+30 : f32
    %642 = vector.broadcast %cst_210 : f32 to vector<1x16xf32>
    %643 = arith.select %641, %642, %605 : vector<1x16xi1>, vector<1x16xf32>
    %cst_211 = arith.constant dense<0xFF800000> : vector<1xf32>
    %644 = vector.multi_reduction <maximumf>, %643, %cst_211 [1] : vector<1x16xf32> to vector<1xf32>
    %645 = vector.shape_cast %644 : vector<1xf32> to vector<1x1xf32>
    %646 = vector.broadcast %645 : vector<1x1xf32> to vector<1x16xf32>
    %647 = arith.cmpf oeq, %643, %646 : vector<1x16xf32>
    %cst_212 = arith.constant 1.600000e+01 : f32
    %648 = vector.broadcast %cst_212 : f32 to vector<1x16xf32>
    %649 = arith.select %647, %3, %648 : vector<1x16xi1>, vector<1x16xf32>
    %cst_213 = arith.constant dense<0x7F800000> : vector<1xf32>
    %650 = vector.multi_reduction <minimumf>, %649, %cst_213 [1] : vector<1x16xf32> to vector<1xf32>
    %651 = vector.shape_cast %650 : vector<1xf32> to vector<1x1xf32>
    %652 = vector.broadcast %651 : vector<1x1xf32> to vector<1x16xf32>
    %653 = arith.cmpf oeq, %3, %652 : vector<1x16xf32>
    %654 = arith.extui %653 : vector<1x16xi1> to vector<1x16xi32>
    %655 = arith.sitofp %654 : vector<1x16xi32> to vector<1x16xf32>
    %656 = vector.broadcast %651 : vector<1x1xf32> to vector<16x1xf32>
    %657 = arith.cmpf oeq, %4, %656 : vector<16x1xf32>
    %658 = arith.extui %657 : vector<16x1xi1> to vector<16x1xi32>
    %659 = arith.sitofp %658 : vector<16x1xi32> to vector<16x1xf32>
    %c2_i32 = arith.constant 2 : i32
    %660 = vector.broadcast %c2_i32 : i32 to vector<8x1xi32>
    %661 = arith.cmpi eq, %564, %660 : vector<8x1xi32>
    %cst_214 = arith.constant 1.000000e+00 : f32
    %cst_215 = arith.constant 0.000000e+00 : f32
    %662 = vector.broadcast %cst_214 : f32 to vector<8x1xf32>
    %663 = vector.broadcast %cst_215 : f32 to vector<8x1xf32>
    %664 = arith.select %661, %662, %663 : vector<8x1xi1>, vector<8x1xf32>
    %665 = vector.broadcast %664 : vector<8x1xf32> to vector<8x16xf32>
    %666 = vector.broadcast %655 : vector<1x16xf32> to vector<8x16xf32>
    %667 = arith.mulf %665, %666 : vector<8x16xf32>
    %668 = arith.addf %630, %667 : vector<8x16xf32>
    %c2_i32_216 = arith.constant 2 : i32
    %669 = vector.broadcast %c2_i32_216 : i32 to vector<1x8xi32>
    %670 = arith.cmpi eq, %565, %669 : vector<1x8xi32>
    %cst_217 = arith.constant 1.000000e+00 : f32
    %cst_218 = arith.constant 0.000000e+00 : f32
    %671 = vector.broadcast %cst_217 : f32 to vector<1x8xf32>
    %672 = vector.broadcast %cst_218 : f32 to vector<1x8xf32>
    %673 = arith.select %670, %671, %672 : vector<1x8xi1>, vector<1x8xf32>
    %674 = vector.broadcast %659 : vector<16x1xf32> to vector<16x8xf32>
    %675 = vector.broadcast %673 : vector<1x8xf32> to vector<16x8xf32>
    %676 = arith.mulf %674, %675 : vector<16x8xf32>
    %677 = arith.addf %639, %676 : vector<16x8xf32>
    %cst_219 = arith.constant 5.000000e-01 : f32
    %678 = vector.broadcast %cst_219 : f32 to vector<1x16xf32>
    %679 = arith.cmpf ogt, %655, %678 : vector<1x16xf32>
    %cst_220 = arith.constant -1.000000e+30 : f32
    %680 = vector.broadcast %cst_220 : f32 to vector<1x16xf32>
    %681 = arith.select %679, %680, %643 : vector<1x16xi1>, vector<1x16xf32>
    %cst_221 = arith.constant dense<0xFF800000> : vector<1xf32>
    %682 = vector.multi_reduction <maximumf>, %681, %cst_221 [1] : vector<1x16xf32> to vector<1xf32>
    %683 = vector.shape_cast %682 : vector<1xf32> to vector<1x1xf32>
    %684 = vector.broadcast %683 : vector<1x1xf32> to vector<1x16xf32>
    %685 = arith.cmpf oeq, %681, %684 : vector<1x16xf32>
    %cst_222 = arith.constant 1.600000e+01 : f32
    %686 = vector.broadcast %cst_222 : f32 to vector<1x16xf32>
    %687 = arith.select %685, %3, %686 : vector<1x16xi1>, vector<1x16xf32>
    %cst_223 = arith.constant dense<0x7F800000> : vector<1xf32>
    %688 = vector.multi_reduction <minimumf>, %687, %cst_223 [1] : vector<1x16xf32> to vector<1xf32>
    %689 = vector.shape_cast %688 : vector<1xf32> to vector<1x1xf32>
    %690 = vector.broadcast %689 : vector<1x1xf32> to vector<1x16xf32>
    %691 = arith.cmpf oeq, %3, %690 : vector<1x16xf32>
    %692 = arith.extui %691 : vector<1x16xi1> to vector<1x16xi32>
    %693 = arith.sitofp %692 : vector<1x16xi32> to vector<1x16xf32>
    %694 = vector.broadcast %689 : vector<1x1xf32> to vector<16x1xf32>
    %695 = arith.cmpf oeq, %4, %694 : vector<16x1xf32>
    %696 = arith.extui %695 : vector<16x1xi1> to vector<16x1xi32>
    %697 = arith.sitofp %696 : vector<16x1xi32> to vector<16x1xf32>
    %c3_i32 = arith.constant 3 : i32
    %698 = vector.broadcast %c3_i32 : i32 to vector<8x1xi32>
    %699 = arith.cmpi eq, %564, %698 : vector<8x1xi32>
    %cst_224 = arith.constant 1.000000e+00 : f32
    %cst_225 = arith.constant 0.000000e+00 : f32
    %700 = vector.broadcast %cst_224 : f32 to vector<8x1xf32>
    %701 = vector.broadcast %cst_225 : f32 to vector<8x1xf32>
    %702 = arith.select %699, %700, %701 : vector<8x1xi1>, vector<8x1xf32>
    %703 = vector.broadcast %702 : vector<8x1xf32> to vector<8x16xf32>
    %704 = vector.broadcast %693 : vector<1x16xf32> to vector<8x16xf32>
    %705 = arith.mulf %703, %704 : vector<8x16xf32>
    %706 = arith.addf %668, %705 : vector<8x16xf32>
    %c3_i32_226 = arith.constant 3 : i32
    %707 = vector.broadcast %c3_i32_226 : i32 to vector<1x8xi32>
    %708 = arith.cmpi eq, %565, %707 : vector<1x8xi32>
    %cst_227 = arith.constant 1.000000e+00 : f32
    %cst_228 = arith.constant 0.000000e+00 : f32
    %709 = vector.broadcast %cst_227 : f32 to vector<1x8xf32>
    %710 = vector.broadcast %cst_228 : f32 to vector<1x8xf32>
    %711 = arith.select %708, %709, %710 : vector<1x8xi1>, vector<1x8xf32>
    %712 = vector.broadcast %697 : vector<16x1xf32> to vector<16x8xf32>
    %713 = vector.broadcast %711 : vector<1x8xf32> to vector<16x8xf32>
    %714 = arith.mulf %712, %713 : vector<16x8xf32>
    %715 = arith.addf %677, %714 : vector<16x8xf32>
    %cst_229 = arith.constant 5.000000e-01 : f32
    %716 = vector.broadcast %cst_229 : f32 to vector<1x16xf32>
    %717 = arith.cmpf ogt, %693, %716 : vector<1x16xf32>
    %cst_230 = arith.constant -1.000000e+30 : f32
    %718 = vector.broadcast %cst_230 : f32 to vector<1x16xf32>
    %719 = arith.select %717, %718, %681 : vector<1x16xi1>, vector<1x16xf32>
    %cst_231 = arith.constant dense<0xFF800000> : vector<1xf32>
    %720 = vector.multi_reduction <maximumf>, %719, %cst_231 [1] : vector<1x16xf32> to vector<1xf32>
    %721 = vector.shape_cast %720 : vector<1xf32> to vector<1x1xf32>
    %722 = vector.broadcast %721 : vector<1x1xf32> to vector<1x16xf32>
    %723 = arith.cmpf oeq, %719, %722 : vector<1x16xf32>
    %cst_232 = arith.constant 1.600000e+01 : f32
    %724 = vector.broadcast %cst_232 : f32 to vector<1x16xf32>
    %725 = arith.select %723, %3, %724 : vector<1x16xi1>, vector<1x16xf32>
    %cst_233 = arith.constant dense<0x7F800000> : vector<1xf32>
    %726 = vector.multi_reduction <minimumf>, %725, %cst_233 [1] : vector<1x16xf32> to vector<1xf32>
    %727 = vector.shape_cast %726 : vector<1xf32> to vector<1x1xf32>
    %728 = vector.broadcast %727 : vector<1x1xf32> to vector<1x16xf32>
    %729 = arith.cmpf oeq, %3, %728 : vector<1x16xf32>
    %730 = arith.extui %729 : vector<1x16xi1> to vector<1x16xi32>
    %731 = arith.sitofp %730 : vector<1x16xi32> to vector<1x16xf32>
    %732 = vector.broadcast %727 : vector<1x1xf32> to vector<16x1xf32>
    %733 = arith.cmpf oeq, %4, %732 : vector<16x1xf32>
    %734 = arith.extui %733 : vector<16x1xi1> to vector<16x1xi32>
    %735 = arith.sitofp %734 : vector<16x1xi32> to vector<16x1xf32>
    %c4_i32 = arith.constant 4 : i32
    %736 = vector.broadcast %c4_i32 : i32 to vector<8x1xi32>
    %737 = arith.cmpi eq, %564, %736 : vector<8x1xi32>
    %cst_234 = arith.constant 1.000000e+00 : f32
    %cst_235 = arith.constant 0.000000e+00 : f32
    %738 = vector.broadcast %cst_234 : f32 to vector<8x1xf32>
    %739 = vector.broadcast %cst_235 : f32 to vector<8x1xf32>
    %740 = arith.select %737, %738, %739 : vector<8x1xi1>, vector<8x1xf32>
    %741 = vector.broadcast %740 : vector<8x1xf32> to vector<8x16xf32>
    %742 = vector.broadcast %731 : vector<1x16xf32> to vector<8x16xf32>
    %743 = arith.mulf %741, %742 : vector<8x16xf32>
    %744 = arith.addf %706, %743 : vector<8x16xf32>
    %c4_i32_236 = arith.constant 4 : i32
    %745 = vector.broadcast %c4_i32_236 : i32 to vector<1x8xi32>
    %746 = arith.cmpi eq, %565, %745 : vector<1x8xi32>
    %cst_237 = arith.constant 1.000000e+00 : f32
    %cst_238 = arith.constant 0.000000e+00 : f32
    %747 = vector.broadcast %cst_237 : f32 to vector<1x8xf32>
    %748 = vector.broadcast %cst_238 : f32 to vector<1x8xf32>
    %749 = arith.select %746, %747, %748 : vector<1x8xi1>, vector<1x8xf32>
    %750 = vector.broadcast %735 : vector<16x1xf32> to vector<16x8xf32>
    %751 = vector.broadcast %749 : vector<1x8xf32> to vector<16x8xf32>
    %752 = arith.mulf %750, %751 : vector<16x8xf32>
    %753 = arith.addf %715, %752 : vector<16x8xf32>
    %cst_239 = arith.constant 5.000000e-01 : f32
    %754 = vector.broadcast %cst_239 : f32 to vector<1x16xf32>
    %755 = arith.cmpf ogt, %731, %754 : vector<1x16xf32>
    %cst_240 = arith.constant -1.000000e+30 : f32
    %756 = vector.broadcast %cst_240 : f32 to vector<1x16xf32>
    %757 = arith.select %755, %756, %719 : vector<1x16xi1>, vector<1x16xf32>
    %cst_241 = arith.constant dense<0xFF800000> : vector<1xf32>
    %758 = vector.multi_reduction <maximumf>, %757, %cst_241 [1] : vector<1x16xf32> to vector<1xf32>
    %759 = vector.shape_cast %758 : vector<1xf32> to vector<1x1xf32>
    %760 = vector.broadcast %759 : vector<1x1xf32> to vector<1x16xf32>
    %761 = arith.cmpf oeq, %757, %760 : vector<1x16xf32>
    %cst_242 = arith.constant 1.600000e+01 : f32
    %762 = vector.broadcast %cst_242 : f32 to vector<1x16xf32>
    %763 = arith.select %761, %3, %762 : vector<1x16xi1>, vector<1x16xf32>
    %cst_243 = arith.constant dense<0x7F800000> : vector<1xf32>
    %764 = vector.multi_reduction <minimumf>, %763, %cst_243 [1] : vector<1x16xf32> to vector<1xf32>
    %765 = vector.shape_cast %764 : vector<1xf32> to vector<1x1xf32>
    %766 = vector.broadcast %765 : vector<1x1xf32> to vector<1x16xf32>
    %767 = arith.cmpf oeq, %3, %766 : vector<1x16xf32>
    %768 = arith.extui %767 : vector<1x16xi1> to vector<1x16xi32>
    %769 = arith.sitofp %768 : vector<1x16xi32> to vector<1x16xf32>
    %770 = vector.broadcast %765 : vector<1x1xf32> to vector<16x1xf32>
    %771 = arith.cmpf oeq, %4, %770 : vector<16x1xf32>
    %772 = arith.extui %771 : vector<16x1xi1> to vector<16x1xi32>
    %773 = arith.sitofp %772 : vector<16x1xi32> to vector<16x1xf32>
    %c5_i32 = arith.constant 5 : i32
    %774 = vector.broadcast %c5_i32 : i32 to vector<8x1xi32>
    %775 = arith.cmpi eq, %564, %774 : vector<8x1xi32>
    %cst_244 = arith.constant 1.000000e+00 : f32
    %cst_245 = arith.constant 0.000000e+00 : f32
    %776 = vector.broadcast %cst_244 : f32 to vector<8x1xf32>
    %777 = vector.broadcast %cst_245 : f32 to vector<8x1xf32>
    %778 = arith.select %775, %776, %777 : vector<8x1xi1>, vector<8x1xf32>
    %779 = vector.broadcast %778 : vector<8x1xf32> to vector<8x16xf32>
    %780 = vector.broadcast %769 : vector<1x16xf32> to vector<8x16xf32>
    %781 = arith.mulf %779, %780 : vector<8x16xf32>
    %782 = arith.addf %744, %781 : vector<8x16xf32>
    %c5_i32_246 = arith.constant 5 : i32
    %783 = vector.broadcast %c5_i32_246 : i32 to vector<1x8xi32>
    %784 = arith.cmpi eq, %565, %783 : vector<1x8xi32>
    %cst_247 = arith.constant 1.000000e+00 : f32
    %cst_248 = arith.constant 0.000000e+00 : f32
    %785 = vector.broadcast %cst_247 : f32 to vector<1x8xf32>
    %786 = vector.broadcast %cst_248 : f32 to vector<1x8xf32>
    %787 = arith.select %784, %785, %786 : vector<1x8xi1>, vector<1x8xf32>
    %788 = vector.broadcast %773 : vector<16x1xf32> to vector<16x8xf32>
    %789 = vector.broadcast %787 : vector<1x8xf32> to vector<16x8xf32>
    %790 = arith.mulf %788, %789 : vector<16x8xf32>
    %791 = arith.addf %753, %790 : vector<16x8xf32>
    %cst_249 = arith.constant 5.000000e-01 : f32
    %792 = vector.broadcast %cst_249 : f32 to vector<1x16xf32>
    %793 = arith.cmpf ogt, %769, %792 : vector<1x16xf32>
    %cst_250 = arith.constant -1.000000e+30 : f32
    %794 = vector.broadcast %cst_250 : f32 to vector<1x16xf32>
    %795 = arith.select %793, %794, %757 : vector<1x16xi1>, vector<1x16xf32>
    %cst_251 = arith.constant dense<0xFF800000> : vector<1xf32>
    %796 = vector.multi_reduction <maximumf>, %795, %cst_251 [1] : vector<1x16xf32> to vector<1xf32>
    %797 = vector.shape_cast %796 : vector<1xf32> to vector<1x1xf32>
    %798 = vector.broadcast %797 : vector<1x1xf32> to vector<1x16xf32>
    %799 = arith.cmpf oeq, %795, %798 : vector<1x16xf32>
    %cst_252 = arith.constant 1.600000e+01 : f32
    %800 = vector.broadcast %cst_252 : f32 to vector<1x16xf32>
    %801 = arith.select %799, %3, %800 : vector<1x16xi1>, vector<1x16xf32>
    %cst_253 = arith.constant dense<0x7F800000> : vector<1xf32>
    %802 = vector.multi_reduction <minimumf>, %801, %cst_253 [1] : vector<1x16xf32> to vector<1xf32>
    %803 = vector.shape_cast %802 : vector<1xf32> to vector<1x1xf32>
    %804 = vector.broadcast %803 : vector<1x1xf32> to vector<1x16xf32>
    %805 = arith.cmpf oeq, %3, %804 : vector<1x16xf32>
    %806 = arith.extui %805 : vector<1x16xi1> to vector<1x16xi32>
    %807 = arith.sitofp %806 : vector<1x16xi32> to vector<1x16xf32>
    %808 = vector.broadcast %803 : vector<1x1xf32> to vector<16x1xf32>
    %809 = arith.cmpf oeq, %4, %808 : vector<16x1xf32>
    %810 = arith.extui %809 : vector<16x1xi1> to vector<16x1xi32>
    %811 = arith.sitofp %810 : vector<16x1xi32> to vector<16x1xf32>
    %c6_i32 = arith.constant 6 : i32
    %812 = vector.broadcast %c6_i32 : i32 to vector<8x1xi32>
    %813 = arith.cmpi eq, %564, %812 : vector<8x1xi32>
    %cst_254 = arith.constant 1.000000e+00 : f32
    %cst_255 = arith.constant 0.000000e+00 : f32
    %814 = vector.broadcast %cst_254 : f32 to vector<8x1xf32>
    %815 = vector.broadcast %cst_255 : f32 to vector<8x1xf32>
    %816 = arith.select %813, %814, %815 : vector<8x1xi1>, vector<8x1xf32>
    %817 = vector.broadcast %816 : vector<8x1xf32> to vector<8x16xf32>
    %818 = vector.broadcast %807 : vector<1x16xf32> to vector<8x16xf32>
    %819 = arith.mulf %817, %818 : vector<8x16xf32>
    %820 = arith.addf %782, %819 : vector<8x16xf32>
    %c6_i32_256 = arith.constant 6 : i32
    %821 = vector.broadcast %c6_i32_256 : i32 to vector<1x8xi32>
    %822 = arith.cmpi eq, %565, %821 : vector<1x8xi32>
    %cst_257 = arith.constant 1.000000e+00 : f32
    %cst_258 = arith.constant 0.000000e+00 : f32
    %823 = vector.broadcast %cst_257 : f32 to vector<1x8xf32>
    %824 = vector.broadcast %cst_258 : f32 to vector<1x8xf32>
    %825 = arith.select %822, %823, %824 : vector<1x8xi1>, vector<1x8xf32>
    %826 = vector.broadcast %811 : vector<16x1xf32> to vector<16x8xf32>
    %827 = vector.broadcast %825 : vector<1x8xf32> to vector<16x8xf32>
    %828 = arith.mulf %826, %827 : vector<16x8xf32>
    %829 = arith.addf %791, %828 : vector<16x8xf32>
    %cst_259 = arith.constant 5.000000e-01 : f32
    %830 = vector.broadcast %cst_259 : f32 to vector<1x16xf32>
    %831 = arith.cmpf ogt, %807, %830 : vector<1x16xf32>
    %cst_260 = arith.constant -1.000000e+30 : f32
    %832 = vector.broadcast %cst_260 : f32 to vector<1x16xf32>
    %833 = arith.select %831, %832, %795 : vector<1x16xi1>, vector<1x16xf32>
    %cst_261 = arith.constant dense<0xFF800000> : vector<1xf32>
    %834 = vector.multi_reduction <maximumf>, %833, %cst_261 [1] : vector<1x16xf32> to vector<1xf32>
    %835 = vector.shape_cast %834 : vector<1xf32> to vector<1x1xf32>
    %836 = vector.broadcast %835 : vector<1x1xf32> to vector<1x16xf32>
    %837 = arith.cmpf oeq, %833, %836 : vector<1x16xf32>
    %cst_262 = arith.constant 1.600000e+01 : f32
    %838 = vector.broadcast %cst_262 : f32 to vector<1x16xf32>
    %839 = arith.select %837, %3, %838 : vector<1x16xi1>, vector<1x16xf32>
    %cst_263 = arith.constant dense<0x7F800000> : vector<1xf32>
    %840 = vector.multi_reduction <minimumf>, %839, %cst_263 [1] : vector<1x16xf32> to vector<1xf32>
    %841 = vector.shape_cast %840 : vector<1xf32> to vector<1x1xf32>
    %842 = vector.broadcast %841 : vector<1x1xf32> to vector<1x16xf32>
    %843 = arith.cmpf oeq, %3, %842 : vector<1x16xf32>
    %844 = arith.extui %843 : vector<1x16xi1> to vector<1x16xi32>
    %845 = arith.sitofp %844 : vector<1x16xi32> to vector<1x16xf32>
    %846 = vector.broadcast %841 : vector<1x1xf32> to vector<16x1xf32>
    %847 = arith.cmpf oeq, %4, %846 : vector<16x1xf32>
    %848 = arith.extui %847 : vector<16x1xi1> to vector<16x1xi32>
    %849 = arith.sitofp %848 : vector<16x1xi32> to vector<16x1xf32>
    %c7_i32 = arith.constant 7 : i32
    %850 = vector.broadcast %c7_i32 : i32 to vector<8x1xi32>
    %851 = arith.cmpi eq, %564, %850 : vector<8x1xi32>
    %cst_264 = arith.constant 1.000000e+00 : f32
    %cst_265 = arith.constant 0.000000e+00 : f32
    %852 = vector.broadcast %cst_264 : f32 to vector<8x1xf32>
    %853 = vector.broadcast %cst_265 : f32 to vector<8x1xf32>
    %854 = arith.select %851, %852, %853 : vector<8x1xi1>, vector<8x1xf32>
    %855 = vector.broadcast %854 : vector<8x1xf32> to vector<8x16xf32>
    %856 = vector.broadcast %845 : vector<1x16xf32> to vector<8x16xf32>
    %857 = arith.mulf %855, %856 : vector<8x16xf32>
    %858 = arith.addf %820, %857 : vector<8x16xf32>
    %c7_i32_266 = arith.constant 7 : i32
    %859 = vector.broadcast %c7_i32_266 : i32 to vector<1x8xi32>
    %860 = arith.cmpi eq, %565, %859 : vector<1x8xi32>
    %cst_267 = arith.constant 1.000000e+00 : f32
    %cst_268 = arith.constant 0.000000e+00 : f32
    %861 = vector.broadcast %cst_267 : f32 to vector<1x8xf32>
    %862 = vector.broadcast %cst_268 : f32 to vector<1x8xf32>
    %863 = arith.select %860, %861, %862 : vector<1x8xi1>, vector<1x8xf32>
    %864 = vector.broadcast %849 : vector<16x1xf32> to vector<16x8xf32>
    %865 = vector.broadcast %863 : vector<1x8xf32> to vector<16x8xf32>
    %866 = arith.mulf %864, %865 : vector<16x8xf32>
    %867 = arith.addf %829, %866 : vector<16x8xf32>
    %c0_269 = arith.constant 0 : index
    %c0_270 = arith.constant 0 : index
    %868 = vector.load %arg6[%c0_269, %c0_270] : memref<1x32xf32, #tpu.memory_space<vmem>>, vector<1x32xf32>
    %cst_271 = arith.constant dense<0.000000e+00> : vector<1x16xf32>
    %869 = tpu.matmul %868, %1, %cst_271 {dimension_numbers = #tpu.dot_dimension_numbers<[1], [1], [0], [0], [0, 0, 1, 0], [], []>} : vector<1x32xf32>, vector<16x32xf32>, vector<1x16xf32> -> vector<1x16xf32>
    %cst_272 = arith.constant 0.000000e+00 : f32
    %870 = vector.broadcast %cst_272 : f32 to vector<1x16xf32>
    %871 = arith.subf %870, %869 : vector<1x16xf32>
    %872 = arith.addf %869, %871 : vector<1x16xf32>
    %cst_273 = arith.constant 2.500000e-01 : f32
    %873 = vector.broadcast %cst_273 : f32 to vector<1x16xf32>
    %874 = arith.mulf %872, %873 : vector<1x16xf32>
    %cst_274 = arith.constant dense<0xFF800000> : vector<1xf32>
    %875 = vector.multi_reduction <maximumf>, %874, %cst_274 [1] : vector<1x16xf32> to vector<1xf32>
    %876 = vector.shape_cast %875 : vector<1xf32> to vector<1x1xf32>
    %877 = vector.broadcast %876 : vector<1x1xf32> to vector<1x16xf32>
    %878 = arith.subf %874, %877 : vector<1x16xf32>
    %879 = math.exp %878 : vector<1x16xf32>
    %cst_275 = arith.constant dense<0.000000e+00> : vector<1xf32>
    %880 = vector.multi_reduction <add>, %879, %cst_275 [1] : vector<1x16xf32> to vector<1xf32>
    %881 = vector.shape_cast %880 : vector<1xf32> to vector<1x1xf32>
    %882 = math.log %881 : vector<1x1xf32>
    %883 = arith.addf %876, %882 : vector<1x1xf32>
    %cst_276 = arith.constant 2.19722462 : f32
    %884 = vector.broadcast %cst_276 : f32 to vector<1x1xf32>
    %885 = arith.subf %884, %883 : vector<1x1xf32>
    %cst_277 = arith.constant 4.000000e+00 : f32
    %886 = vector.broadcast %cst_277 : f32 to vector<1x1xf32>
    %887 = arith.mulf %886, %885 : vector<1x1xf32>
    %888 = vector.broadcast %887 : vector<1x1xf32> to vector<1x16xf32>
    %889 = arith.addf %869, %888 : vector<1x16xf32>
    %cst_278 = arith.constant 0.000000e+00 : f32
    %890 = vector.broadcast %cst_278 : f32 to vector<1x16xf32>
    %891 = arith.maximumf %889, %890 : vector<1x16xf32>
    %cst_279 = arith.constant 0.000000e+00 : f32
    %892 = vector.broadcast %cst_279 : f32 to vector<1x16xf32>
    %893 = arith.subf %892, %891 : vector<1x16xf32>
    %894 = arith.addf %869, %893 : vector<1x16xf32>
    %cst_280 = arith.constant 0.357142866 : f32
    %895 = vector.broadcast %cst_280 : f32 to vector<1x16xf32>
    %896 = arith.mulf %894, %895 : vector<1x16xf32>
    %cst_281 = arith.constant dense<0xFF800000> : vector<1xf32>
    %897 = vector.multi_reduction <maximumf>, %896, %cst_281 [1] : vector<1x16xf32> to vector<1xf32>
    %898 = vector.shape_cast %897 : vector<1xf32> to vector<1x1xf32>
    %899 = vector.broadcast %898 : vector<1x1xf32> to vector<1x16xf32>
    %900 = arith.subf %896, %899 : vector<1x16xf32>
    %901 = math.exp %900 : vector<1x16xf32>
    %cst_282 = arith.constant dense<0.000000e+00> : vector<1xf32>
    %902 = vector.multi_reduction <add>, %901, %cst_282 [1] : vector<1x16xf32> to vector<1xf32>
    %903 = vector.shape_cast %902 : vector<1xf32> to vector<1x1xf32>
    %904 = math.log %903 : vector<1x1xf32>
    %905 = arith.addf %898, %904 : vector<1x1xf32>
    %cst_283 = arith.constant 2.19722462 : f32
    %906 = vector.broadcast %cst_283 : f32 to vector<1x1xf32>
    %907 = arith.subf %906, %905 : vector<1x1xf32>
    %cst_284 = arith.constant 2.800000e+00 : f32
    %908 = vector.broadcast %cst_284 : f32 to vector<1x1xf32>
    %909 = arith.mulf %908, %907 : vector<1x1xf32>
    %910 = vector.broadcast %909 : vector<1x1xf32> to vector<1x16xf32>
    %911 = arith.addf %869, %910 : vector<1x16xf32>
    %cst_285 = arith.constant 0.000000e+00 : f32
    %912 = vector.broadcast %cst_285 : f32 to vector<1x16xf32>
    %913 = arith.maximumf %911, %912 : vector<1x16xf32>
    %cst_286 = arith.constant 0.000000e+00 : f32
    %914 = vector.broadcast %cst_286 : f32 to vector<1x16xf32>
    %915 = arith.subf %914, %913 : vector<1x16xf32>
    %916 = arith.addf %869, %915 : vector<1x16xf32>
    %cst_287 = arith.constant 0.510204077 : f32
    %917 = vector.broadcast %cst_287 : f32 to vector<1x16xf32>
    %918 = arith.mulf %916, %917 : vector<1x16xf32>
    %cst_288 = arith.constant dense<0xFF800000> : vector<1xf32>
    %919 = vector.multi_reduction <maximumf>, %918, %cst_288 [1] : vector<1x16xf32> to vector<1xf32>
    %920 = vector.shape_cast %919 : vector<1xf32> to vector<1x1xf32>
    %921 = vector.broadcast %920 : vector<1x1xf32> to vector<1x16xf32>
    %922 = arith.subf %918, %921 : vector<1x16xf32>
    %923 = math.exp %922 : vector<1x16xf32>
    %cst_289 = arith.constant dense<0.000000e+00> : vector<1xf32>
    %924 = vector.multi_reduction <add>, %923, %cst_289 [1] : vector<1x16xf32> to vector<1xf32>
    %925 = vector.shape_cast %924 : vector<1xf32> to vector<1x1xf32>
    %926 = math.log %925 : vector<1x1xf32>
    %927 = arith.addf %920, %926 : vector<1x1xf32>
    %cst_290 = arith.constant 2.19722462 : f32
    %928 = vector.broadcast %cst_290 : f32 to vector<1x1xf32>
    %929 = arith.subf %928, %927 : vector<1x1xf32>
    %cst_291 = arith.constant 1.960000e+00 : f32
    %930 = vector.broadcast %cst_291 : f32 to vector<1x1xf32>
    %931 = arith.mulf %930, %929 : vector<1x1xf32>
    %932 = vector.broadcast %931 : vector<1x1xf32> to vector<1x16xf32>
    %933 = arith.addf %869, %932 : vector<1x16xf32>
    %cst_292 = arith.constant 0.000000e+00 : f32
    %934 = vector.broadcast %cst_292 : f32 to vector<1x16xf32>
    %935 = arith.maximumf %933, %934 : vector<1x16xf32>
    %cst_293 = arith.constant 0.000000e+00 : f32
    %936 = vector.broadcast %cst_293 : f32 to vector<1x16xf32>
    %937 = arith.subf %936, %935 : vector<1x16xf32>
    %938 = arith.addf %869, %937 : vector<1x16xf32>
    %cst_294 = arith.constant 7.288630e-01 : f32
    %939 = vector.broadcast %cst_294 : f32 to vector<1x16xf32>
    %940 = arith.mulf %938, %939 : vector<1x16xf32>
    %cst_295 = arith.constant dense<0xFF800000> : vector<1xf32>
    %941 = vector.multi_reduction <maximumf>, %940, %cst_295 [1] : vector<1x16xf32> to vector<1xf32>
    %942 = vector.shape_cast %941 : vector<1xf32> to vector<1x1xf32>
    %943 = vector.broadcast %942 : vector<1x1xf32> to vector<1x16xf32>
    %944 = arith.subf %940, %943 : vector<1x16xf32>
    %945 = math.exp %944 : vector<1x16xf32>
    %cst_296 = arith.constant dense<0.000000e+00> : vector<1xf32>
    %946 = vector.multi_reduction <add>, %945, %cst_296 [1] : vector<1x16xf32> to vector<1xf32>
    %947 = vector.shape_cast %946 : vector<1xf32> to vector<1x1xf32>
    %948 = math.log %947 : vector<1x1xf32>
    %949 = arith.addf %942, %948 : vector<1x1xf32>
    %cst_297 = arith.constant 2.19722462 : f32
    %950 = vector.broadcast %cst_297 : f32 to vector<1x1xf32>
    %951 = arith.subf %950, %949 : vector<1x1xf32>
    %cst_298 = arith.constant 1.372000e+00 : f32
    %952 = vector.broadcast %cst_298 : f32 to vector<1x1xf32>
    %953 = arith.mulf %952, %951 : vector<1x1xf32>
    %954 = vector.broadcast %953 : vector<1x1xf32> to vector<1x16xf32>
    %955 = arith.addf %869, %954 : vector<1x16xf32>
    %cst_299 = arith.constant 0.000000e+00 : f32
    %956 = vector.broadcast %cst_299 : f32 to vector<1x16xf32>
    %957 = arith.maximumf %955, %956 : vector<1x16xf32>
    %cst_300 = arith.constant 0.000000e+00 : f32
    %958 = vector.broadcast %cst_300 : f32 to vector<1x16xf32>
    %959 = arith.subf %958, %957 : vector<1x16xf32>
    %960 = arith.addf %869, %959 : vector<1x16xf32>
    %cst_301 = arith.constant 1.000000e+00 : f32
    %961 = vector.broadcast %cst_301 : f32 to vector<1x16xf32>
    %962 = arith.mulf %960, %961 : vector<1x16xf32>
    %cst_302 = arith.constant dense<0xFF800000> : vector<1xf32>
    %963 = vector.multi_reduction <maximumf>, %962, %cst_302 [1] : vector<1x16xf32> to vector<1xf32>
    %964 = vector.shape_cast %963 : vector<1xf32> to vector<1x1xf32>
    %965 = vector.broadcast %964 : vector<1x1xf32> to vector<1x16xf32>
    %966 = arith.subf %962, %965 : vector<1x16xf32>
    %967 = math.exp %966 : vector<1x16xf32>
    %cst_303 = arith.constant dense<0.000000e+00> : vector<1xf32>
    %968 = vector.multi_reduction <add>, %967, %cst_303 [1] : vector<1x16xf32> to vector<1xf32>
    %969 = vector.shape_cast %968 : vector<1xf32> to vector<1x1xf32>
    %970 = math.log %969 : vector<1x1xf32>
    %971 = arith.addf %964, %970 : vector<1x1xf32>
    %cst_304 = arith.constant 2.19722462 : f32
    %972 = vector.broadcast %cst_304 : f32 to vector<1x1xf32>
    %973 = arith.subf %972, %971 : vector<1x1xf32>
    %cst_305 = arith.constant 1.000000e+00 : f32
    %974 = vector.broadcast %cst_305 : f32 to vector<1x1xf32>
    %975 = arith.mulf %974, %973 : vector<1x1xf32>
    %976 = vector.broadcast %975 : vector<1x1xf32> to vector<1x16xf32>
    %977 = arith.addf %869, %976 : vector<1x16xf32>
    %cst_306 = arith.constant 0.000000e+00 : f32
    %978 = vector.broadcast %cst_306 : f32 to vector<1x16xf32>
    %979 = arith.maximumf %977, %978 : vector<1x16xf32>
    %cst_307 = arith.constant 0.000000e+00 : f32
    %980 = vector.broadcast %cst_307 : f32 to vector<1x16xf32>
    %981 = arith.subf %980, %979 : vector<1x16xf32>
    %982 = arith.addf %869, %981 : vector<1x16xf32>
    %cst_308 = arith.constant 1.000000e+00 : f32
    %983 = vector.broadcast %cst_308 : f32 to vector<1x16xf32>
    %984 = arith.mulf %982, %983 : vector<1x16xf32>
    %cst_309 = arith.constant dense<0xFF800000> : vector<1xf32>
    %985 = vector.multi_reduction <maximumf>, %984, %cst_309 [1] : vector<1x16xf32> to vector<1xf32>
    %986 = vector.shape_cast %985 : vector<1xf32> to vector<1x1xf32>
    %987 = vector.broadcast %986 : vector<1x1xf32> to vector<1x16xf32>
    %988 = arith.subf %984, %987 : vector<1x16xf32>
    %989 = math.exp %988 : vector<1x16xf32>
    %cst_310 = arith.constant dense<0.000000e+00> : vector<1xf32>
    %990 = vector.multi_reduction <add>, %989, %cst_310 [1] : vector<1x16xf32> to vector<1xf32>
    %991 = vector.shape_cast %990 : vector<1xf32> to vector<1x1xf32>
    %992 = math.log %991 : vector<1x1xf32>
    %993 = arith.addf %986, %992 : vector<1x1xf32>
    %cst_311 = arith.constant 2.19722462 : f32
    %994 = vector.broadcast %cst_311 : f32 to vector<1x1xf32>
    %995 = arith.subf %994, %993 : vector<1x1xf32>
    %cst_312 = arith.constant 1.000000e+00 : f32
    %996 = vector.broadcast %cst_312 : f32 to vector<1x1xf32>
    %997 = arith.mulf %996, %995 : vector<1x1xf32>
    %998 = vector.broadcast %997 : vector<1x1xf32> to vector<1x16xf32>
    %999 = arith.addf %869, %998 : vector<1x16xf32>
    %cst_313 = arith.constant 0.000000e+00 : f32
    %1000 = vector.broadcast %cst_313 : f32 to vector<1x16xf32>
    %1001 = arith.maximumf %999, %1000 : vector<1x16xf32>
    %cst_314 = arith.constant 0.000000e+00 : f32
    %1002 = vector.broadcast %cst_314 : f32 to vector<1x16xf32>
    %1003 = arith.subf %1002, %1001 : vector<1x16xf32>
    %1004 = arith.addf %869, %1003 : vector<1x16xf32>
    %cst_315 = arith.constant 1.000000e+00 : f32
    %1005 = vector.broadcast %cst_315 : f32 to vector<1x16xf32>
    %1006 = arith.mulf %1004, %1005 : vector<1x16xf32>
    %cst_316 = arith.constant dense<0xFF800000> : vector<1xf32>
    %1007 = vector.multi_reduction <maximumf>, %1006, %cst_316 [1] : vector<1x16xf32> to vector<1xf32>
    %1008 = vector.shape_cast %1007 : vector<1xf32> to vector<1x1xf32>
    %1009 = vector.broadcast %1008 : vector<1x1xf32> to vector<1x16xf32>
    %1010 = arith.subf %1006, %1009 : vector<1x16xf32>
    %1011 = math.exp %1010 : vector<1x16xf32>
    %cst_317 = arith.constant dense<0.000000e+00> : vector<1xf32>
    %1012 = vector.multi_reduction <add>, %1011, %cst_317 [1] : vector<1x16xf32> to vector<1xf32>
    %1013 = vector.shape_cast %1012 : vector<1xf32> to vector<1x1xf32>
    %1014 = math.log %1013 : vector<1x1xf32>
    %1015 = arith.addf %1008, %1014 : vector<1x1xf32>
    %cst_318 = arith.constant 2.19722462 : f32
    %1016 = vector.broadcast %cst_318 : f32 to vector<1x1xf32>
    %1017 = arith.subf %1016, %1015 : vector<1x1xf32>
    %cst_319 = arith.constant 1.000000e+00 : f32
    %1018 = vector.broadcast %cst_319 : f32 to vector<1x1xf32>
    %1019 = arith.mulf %1018, %1017 : vector<1x1xf32>
    %1020 = vector.broadcast %1019 : vector<1x1xf32> to vector<1x16xf32>
    %1021 = arith.addf %869, %1020 : vector<1x16xf32>
    %cst_320 = arith.constant 0.000000e+00 : f32
    %1022 = vector.broadcast %cst_320 : f32 to vector<1x16xf32>
    %1023 = arith.maximumf %1021, %1022 : vector<1x16xf32>
    %cst_321 = arith.constant 0.000000e+00 : f32
    %1024 = vector.broadcast %cst_321 : f32 to vector<1x16xf32>
    %1025 = arith.subf %1024, %1023 : vector<1x16xf32>
    %1026 = arith.addf %869, %1025 : vector<1x16xf32>
    %cst_322 = arith.constant 1.000000e+00 : f32
    %1027 = vector.broadcast %cst_322 : f32 to vector<1x16xf32>
    %1028 = arith.mulf %1026, %1027 : vector<1x16xf32>
    %cst_323 = arith.constant dense<0xFF800000> : vector<1xf32>
    %1029 = vector.multi_reduction <maximumf>, %1028, %cst_323 [1] : vector<1x16xf32> to vector<1xf32>
    %1030 = vector.shape_cast %1029 : vector<1xf32> to vector<1x1xf32>
    %1031 = vector.broadcast %1030 : vector<1x1xf32> to vector<1x16xf32>
    %1032 = arith.subf %1028, %1031 : vector<1x16xf32>
    %1033 = math.exp %1032 : vector<1x16xf32>
    %cst_324 = arith.constant dense<0.000000e+00> : vector<1xf32>
    %1034 = vector.multi_reduction <add>, %1033, %cst_324 [1] : vector<1x16xf32> to vector<1xf32>
    %1035 = vector.shape_cast %1034 : vector<1xf32> to vector<1x1xf32>
    %1036 = math.log %1035 : vector<1x1xf32>
    %1037 = arith.addf %1030, %1036 : vector<1x1xf32>
    %cst_325 = arith.constant 2.19722462 : f32
    %1038 = vector.broadcast %cst_325 : f32 to vector<1x1xf32>
    %1039 = arith.subf %1038, %1037 : vector<1x1xf32>
    %cst_326 = arith.constant 1.000000e+00 : f32
    %1040 = vector.broadcast %cst_326 : f32 to vector<1x1xf32>
    %1041 = arith.mulf %1040, %1039 : vector<1x1xf32>
    %1042 = vector.broadcast %1041 : vector<1x1xf32> to vector<1x16xf32>
    %1043 = arith.addf %869, %1042 : vector<1x16xf32>
    %cst_327 = arith.constant 0.000000e+00 : f32
    %1044 = vector.broadcast %cst_327 : f32 to vector<1x16xf32>
    %1045 = arith.maximumf %1043, %1044 : vector<1x16xf32>
    %cst_328 = arith.constant 0.000000e+00 : f32
    %1046 = vector.broadcast %cst_328 : f32 to vector<1x16xf32>
    %1047 = arith.subf %1046, %1045 : vector<1x16xf32>
    %1048 = arith.addf %869, %1047 : vector<1x16xf32>
    %cst_329 = arith.constant 1.000000e+00 : f32
    %1049 = vector.broadcast %cst_329 : f32 to vector<1x16xf32>
    %1050 = arith.mulf %1048, %1049 : vector<1x16xf32>
    %cst_330 = arith.constant dense<0xFF800000> : vector<1xf32>
    %1051 = vector.multi_reduction <maximumf>, %1050, %cst_330 [1] : vector<1x16xf32> to vector<1xf32>
    %1052 = vector.shape_cast %1051 : vector<1xf32> to vector<1x1xf32>
    %1053 = vector.broadcast %1052 : vector<1x1xf32> to vector<1x16xf32>
    %1054 = arith.subf %1050, %1053 : vector<1x16xf32>
    %1055 = math.exp %1054 : vector<1x16xf32>
    %cst_331 = arith.constant dense<0.000000e+00> : vector<1xf32>
    %1056 = vector.multi_reduction <add>, %1055, %cst_331 [1] : vector<1x16xf32> to vector<1xf32>
    %1057 = vector.shape_cast %1056 : vector<1xf32> to vector<1x1xf32>
    %1058 = math.log %1057 : vector<1x1xf32>
    %1059 = arith.addf %1052, %1058 : vector<1x1xf32>
    %cst_332 = arith.constant 2.19722462 : f32
    %1060 = vector.broadcast %cst_332 : f32 to vector<1x1xf32>
    %1061 = arith.subf %1060, %1059 : vector<1x1xf32>
    %cst_333 = arith.constant 1.000000e+00 : f32
    %1062 = vector.broadcast %cst_333 : f32 to vector<1x1xf32>
    %1063 = arith.mulf %1062, %1061 : vector<1x1xf32>
    %1064 = vector.broadcast %1063 : vector<1x1xf32> to vector<1x16xf32>
    %1065 = arith.addf %869, %1064 : vector<1x16xf32>
    %cst_334 = arith.constant 0.000000e+00 : f32
    %1066 = vector.broadcast %cst_334 : f32 to vector<1x16xf32>
    %1067 = arith.maximumf %1065, %1066 : vector<1x16xf32>
    %cst_335 = arith.constant 0.000000e+00 : f32
    %1068 = vector.broadcast %cst_335 : f32 to vector<1x16xf32>
    %1069 = arith.subf %1068, %1067 : vector<1x16xf32>
    %1070 = arith.addf %869, %1069 : vector<1x16xf32>
    %cst_336 = arith.constant 1.000000e+00 : f32
    %1071 = vector.broadcast %cst_336 : f32 to vector<1x16xf32>
    %1072 = arith.mulf %1070, %1071 : vector<1x16xf32>
    %cst_337 = arith.constant dense<0xFF800000> : vector<1xf32>
    %1073 = vector.multi_reduction <maximumf>, %1072, %cst_337 [1] : vector<1x16xf32> to vector<1xf32>
    %1074 = vector.shape_cast %1073 : vector<1xf32> to vector<1x1xf32>
    %1075 = vector.broadcast %1074 : vector<1x1xf32> to vector<1x16xf32>
    %1076 = arith.subf %1072, %1075 : vector<1x16xf32>
    %1077 = math.exp %1076 : vector<1x16xf32>
    %cst_338 = arith.constant dense<0.000000e+00> : vector<1xf32>
    %1078 = vector.multi_reduction <add>, %1077, %cst_338 [1] : vector<1x16xf32> to vector<1xf32>
    %1079 = vector.shape_cast %1078 : vector<1xf32> to vector<1x1xf32>
    %1080 = math.log %1079 : vector<1x1xf32>
    %1081 = arith.addf %1074, %1080 : vector<1x1xf32>
    %cst_339 = arith.constant 2.19722462 : f32
    %1082 = vector.broadcast %cst_339 : f32 to vector<1x1xf32>
    %1083 = arith.subf %1082, %1081 : vector<1x1xf32>
    %cst_340 = arith.constant 1.000000e+00 : f32
    %1084 = vector.broadcast %cst_340 : f32 to vector<1x1xf32>
    %1085 = arith.mulf %1084, %1083 : vector<1x1xf32>
    %1086 = vector.broadcast %1085 : vector<1x1xf32> to vector<1x16xf32>
    %1087 = arith.addf %869, %1086 : vector<1x16xf32>
    %cst_341 = arith.constant 0.000000e+00 : f32
    %1088 = vector.broadcast %cst_341 : f32 to vector<1x16xf32>
    %1089 = arith.maximumf %1087, %1088 : vector<1x16xf32>
    %cst_342 = arith.constant 0.000000e+00 : f32
    %1090 = vector.broadcast %cst_342 : f32 to vector<1x16xf32>
    %1091 = arith.subf %1090, %1089 : vector<1x16xf32>
    %1092 = arith.addf %869, %1091 : vector<1x16xf32>
    %cst_343 = arith.constant 1.000000e+00 : f32
    %1093 = vector.broadcast %cst_343 : f32 to vector<1x16xf32>
    %1094 = arith.mulf %1092, %1093 : vector<1x16xf32>
    %cst_344 = arith.constant dense<0xFF800000> : vector<1xf32>
    %1095 = vector.multi_reduction <maximumf>, %1094, %cst_344 [1] : vector<1x16xf32> to vector<1xf32>
    %1096 = vector.shape_cast %1095 : vector<1xf32> to vector<1x1xf32>
    %1097 = vector.broadcast %1096 : vector<1x1xf32> to vector<1x16xf32>
    %1098 = arith.subf %1094, %1097 : vector<1x16xf32>
    %1099 = math.exp %1098 : vector<1x16xf32>
    %cst_345 = arith.constant dense<0.000000e+00> : vector<1xf32>
    %1100 = vector.multi_reduction <add>, %1099, %cst_345 [1] : vector<1x16xf32> to vector<1xf32>
    %1101 = vector.shape_cast %1100 : vector<1xf32> to vector<1x1xf32>
    %1102 = math.log %1101 : vector<1x1xf32>
    %1103 = arith.addf %1096, %1102 : vector<1x1xf32>
    %cst_346 = arith.constant 2.19722462 : f32
    %1104 = vector.broadcast %cst_346 : f32 to vector<1x1xf32>
    %1105 = arith.subf %1104, %1103 : vector<1x1xf32>
    %cst_347 = arith.constant 1.000000e+00 : f32
    %1106 = vector.broadcast %cst_347 : f32 to vector<1x1xf32>
    %1107 = arith.mulf %1106, %1105 : vector<1x1xf32>
    %1108 = vector.broadcast %1107 : vector<1x1xf32> to vector<1x16xf32>
    %1109 = arith.addf %869, %1108 : vector<1x16xf32>
    %cst_348 = arith.constant 0.000000e+00 : f32
    %1110 = vector.broadcast %cst_348 : f32 to vector<1x16xf32>
    %1111 = arith.maximumf %1109, %1110 : vector<1x16xf32>
    %cst_349 = arith.constant 0.000000e+00 : f32
    %1112 = vector.broadcast %cst_349 : f32 to vector<1x16xf32>
    %1113 = arith.subf %1112, %1111 : vector<1x16xf32>
    %1114 = arith.addf %869, %1113 : vector<1x16xf32>
    %cst_350 = arith.constant 1.000000e+00 : f32
    %1115 = vector.broadcast %cst_350 : f32 to vector<1x16xf32>
    %1116 = arith.mulf %1114, %1115 : vector<1x16xf32>
    %cst_351 = arith.constant dense<0xFF800000> : vector<1xf32>
    %1117 = vector.multi_reduction <maximumf>, %1116, %cst_351 [1] : vector<1x16xf32> to vector<1xf32>
    %1118 = vector.shape_cast %1117 : vector<1xf32> to vector<1x1xf32>
    %1119 = vector.broadcast %1118 : vector<1x1xf32> to vector<1x16xf32>
    %1120 = arith.subf %1116, %1119 : vector<1x16xf32>
    %1121 = math.exp %1120 : vector<1x16xf32>
    %cst_352 = arith.constant dense<0.000000e+00> : vector<1xf32>
    %1122 = vector.multi_reduction <add>, %1121, %cst_352 [1] : vector<1x16xf32> to vector<1xf32>
    %1123 = vector.shape_cast %1122 : vector<1xf32> to vector<1x1xf32>
    %1124 = math.log %1123 : vector<1x1xf32>
    %1125 = arith.addf %1118, %1124 : vector<1x1xf32>
    %cst_353 = arith.constant 2.19722462 : f32
    %1126 = vector.broadcast %cst_353 : f32 to vector<1x1xf32>
    %1127 = arith.subf %1126, %1125 : vector<1x1xf32>
    %cst_354 = arith.constant 1.000000e+00 : f32
    %1128 = vector.broadcast %cst_354 : f32 to vector<1x1xf32>
    %1129 = arith.mulf %1128, %1127 : vector<1x1xf32>
    %1130 = vector.broadcast %1129 : vector<1x1xf32> to vector<1x16xf32>
    %1131 = arith.addf %869, %1130 : vector<1x16xf32>
    %cst_355 = arith.constant 0.000000e+00 : f32
    %1132 = vector.broadcast %cst_355 : f32 to vector<1x16xf32>
    %1133 = arith.maximumf %1131, %1132 : vector<1x16xf32>
    %cst_356 = arith.constant 0.000000e+00 : f32
    %1134 = vector.broadcast %cst_356 : f32 to vector<1x16xf32>
    %1135 = arith.subf %1134, %1133 : vector<1x16xf32>
    %1136 = arith.addf %869, %1135 : vector<1x16xf32>
    %cst_357 = arith.constant 1.000000e+00 : f32
    %1137 = vector.broadcast %cst_357 : f32 to vector<1x16xf32>
    %1138 = arith.mulf %1136, %1137 : vector<1x16xf32>
    %cst_358 = arith.constant dense<0xFF800000> : vector<1xf32>
    %1139 = vector.multi_reduction <maximumf>, %1138, %cst_358 [1] : vector<1x16xf32> to vector<1xf32>
    %1140 = vector.shape_cast %1139 : vector<1xf32> to vector<1x1xf32>
    %1141 = vector.broadcast %1140 : vector<1x1xf32> to vector<1x16xf32>
    %1142 = arith.subf %1138, %1141 : vector<1x16xf32>
    %1143 = math.exp %1142 : vector<1x16xf32>
    %cst_359 = arith.constant dense<0.000000e+00> : vector<1xf32>
    %1144 = vector.multi_reduction <add>, %1143, %cst_359 [1] : vector<1x16xf32> to vector<1xf32>
    %1145 = vector.shape_cast %1144 : vector<1xf32> to vector<1x1xf32>
    %1146 = math.log %1145 : vector<1x1xf32>
    %1147 = arith.addf %1140, %1146 : vector<1x1xf32>
    %cst_360 = arith.constant 2.19722462 : f32
    %1148 = vector.broadcast %cst_360 : f32 to vector<1x1xf32>
    %1149 = arith.subf %1148, %1147 : vector<1x1xf32>
    %cst_361 = arith.constant 1.000000e+00 : f32
    %1150 = vector.broadcast %cst_361 : f32 to vector<1x1xf32>
    %1151 = arith.mulf %1150, %1149 : vector<1x1xf32>
    %1152 = vector.broadcast %1151 : vector<1x1xf32> to vector<1x16xf32>
    %1153 = arith.addf %869, %1152 : vector<1x16xf32>
    %cst_362 = arith.constant 0.000000e+00 : f32
    %1154 = vector.broadcast %cst_362 : f32 to vector<1x16xf32>
    %1155 = arith.maximumf %1153, %1154 : vector<1x16xf32>
    %cst_363 = arith.constant 0.000000e+00 : f32
    %1156 = vector.broadcast %cst_363 : f32 to vector<1x16xf32>
    %1157 = arith.subf %1156, %1155 : vector<1x16xf32>
    %1158 = arith.addf %869, %1157 : vector<1x16xf32>
    %cst_364 = arith.constant 1.000000e+00 : f32
    %1159 = vector.broadcast %cst_364 : f32 to vector<1x16xf32>
    %1160 = arith.mulf %1158, %1159 : vector<1x16xf32>
    %cst_365 = arith.constant dense<0xFF800000> : vector<1xf32>
    %1161 = vector.multi_reduction <maximumf>, %1160, %cst_365 [1] : vector<1x16xf32> to vector<1xf32>
    %1162 = vector.shape_cast %1161 : vector<1xf32> to vector<1x1xf32>
    %1163 = vector.broadcast %1162 : vector<1x1xf32> to vector<1x16xf32>
    %1164 = arith.subf %1160, %1163 : vector<1x16xf32>
    %1165 = math.exp %1164 : vector<1x16xf32>
    %cst_366 = arith.constant dense<0.000000e+00> : vector<1xf32>
    %1166 = vector.multi_reduction <add>, %1165, %cst_366 [1] : vector<1x16xf32> to vector<1xf32>
    %1167 = vector.shape_cast %1166 : vector<1xf32> to vector<1x1xf32>
    %1168 = math.log %1167 : vector<1x1xf32>
    %1169 = arith.addf %1162, %1168 : vector<1x1xf32>
    %cst_367 = arith.constant 2.19722462 : f32
    %1170 = vector.broadcast %cst_367 : f32 to vector<1x1xf32>
    %1171 = arith.subf %1170, %1169 : vector<1x1xf32>
    %cst_368 = arith.constant 1.000000e+00 : f32
    %1172 = vector.broadcast %cst_368 : f32 to vector<1x1xf32>
    %1173 = arith.mulf %1172, %1171 : vector<1x1xf32>
    %1174 = vector.broadcast %1173 : vector<1x1xf32> to vector<1x16xf32>
    %1175 = arith.addf %869, %1174 : vector<1x16xf32>
    %cst_369 = arith.constant 0.000000e+00 : f32
    %1176 = vector.broadcast %cst_369 : f32 to vector<1x16xf32>
    %1177 = arith.maximumf %1175, %1176 : vector<1x16xf32>
    %cst_370 = arith.constant 0.000000e+00 : f32
    %1178 = vector.broadcast %cst_370 : f32 to vector<1x16xf32>
    %1179 = arith.subf %1178, %1177 : vector<1x16xf32>
    %1180 = arith.addf %869, %1179 : vector<1x16xf32>
    %cst_371 = arith.constant 1.000000e+00 : f32
    %1181 = vector.broadcast %cst_371 : f32 to vector<1x16xf32>
    %1182 = arith.mulf %1180, %1181 : vector<1x16xf32>
    %cst_372 = arith.constant dense<0xFF800000> : vector<1xf32>
    %1183 = vector.multi_reduction <maximumf>, %1182, %cst_372 [1] : vector<1x16xf32> to vector<1xf32>
    %1184 = vector.shape_cast %1183 : vector<1xf32> to vector<1x1xf32>
    %1185 = vector.broadcast %1184 : vector<1x1xf32> to vector<1x16xf32>
    %1186 = arith.subf %1182, %1185 : vector<1x16xf32>
    %1187 = math.exp %1186 : vector<1x16xf32>
    %cst_373 = arith.constant dense<0.000000e+00> : vector<1xf32>
    %1188 = vector.multi_reduction <add>, %1187, %cst_373 [1] : vector<1x16xf32> to vector<1xf32>
    %1189 = vector.shape_cast %1188 : vector<1xf32> to vector<1x1xf32>
    %1190 = math.log %1189 : vector<1x1xf32>
    %1191 = arith.addf %1184, %1190 : vector<1x1xf32>
    %cst_374 = arith.constant 2.19722462 : f32
    %1192 = vector.broadcast %cst_374 : f32 to vector<1x1xf32>
    %1193 = arith.subf %1192, %1191 : vector<1x1xf32>
    %cst_375 = arith.constant 1.000000e+00 : f32
    %1194 = vector.broadcast %cst_375 : f32 to vector<1x1xf32>
    %1195 = arith.mulf %1194, %1193 : vector<1x1xf32>
    %1196 = vector.broadcast %1195 : vector<1x1xf32> to vector<1x16xf32>
    %1197 = arith.addf %869, %1196 : vector<1x16xf32>
    %cst_376 = arith.constant 0.000000e+00 : f32
    %1198 = vector.broadcast %cst_376 : f32 to vector<1x16xf32>
    %1199 = arith.maximumf %1197, %1198 : vector<1x16xf32>
    %cst_377 = arith.constant 0.000000e+00 : f32
    %1200 = vector.broadcast %cst_377 : f32 to vector<1x16xf32>
    %1201 = arith.subf %1200, %1199 : vector<1x16xf32>
    %1202 = arith.addf %869, %1201 : vector<1x16xf32>
    %cst_378 = arith.constant 1.000000e+00 : f32
    %1203 = vector.broadcast %cst_378 : f32 to vector<1x16xf32>
    %1204 = arith.mulf %1202, %1203 : vector<1x16xf32>
    %cst_379 = arith.constant dense<0xFF800000> : vector<1xf32>
    %1205 = vector.multi_reduction <maximumf>, %1204, %cst_379 [1] : vector<1x16xf32> to vector<1xf32>
    %1206 = vector.shape_cast %1205 : vector<1xf32> to vector<1x1xf32>
    %1207 = vector.broadcast %1206 : vector<1x1xf32> to vector<1x16xf32>
    %1208 = arith.subf %1204, %1207 : vector<1x16xf32>
    %1209 = math.exp %1208 : vector<1x16xf32>
    %cst_380 = arith.constant dense<0.000000e+00> : vector<1xf32>
    %1210 = vector.multi_reduction <add>, %1209, %cst_380 [1] : vector<1x16xf32> to vector<1xf32>
    %1211 = vector.shape_cast %1210 : vector<1xf32> to vector<1x1xf32>
    %1212 = math.log %1211 : vector<1x1xf32>
    %1213 = arith.addf %1206, %1212 : vector<1x1xf32>
    %cst_381 = arith.constant 2.19722462 : f32
    %1214 = vector.broadcast %cst_381 : f32 to vector<1x1xf32>
    %1215 = arith.subf %1214, %1213 : vector<1x1xf32>
    %cst_382 = arith.constant 1.000000e+00 : f32
    %1216 = vector.broadcast %cst_382 : f32 to vector<1x1xf32>
    %1217 = arith.mulf %1216, %1215 : vector<1x1xf32>
    %1218 = vector.broadcast %1217 : vector<1x1xf32> to vector<1x16xf32>
    %1219 = arith.addf %869, %1218 : vector<1x16xf32>
    %cst_383 = arith.constant 0.000000e+00 : f32
    %1220 = vector.broadcast %cst_383 : f32 to vector<1x16xf32>
    %1221 = arith.maximumf %1219, %1220 : vector<1x16xf32>
    %cst_384 = arith.constant 0.000000e+00 : f32
    %1222 = vector.broadcast %cst_384 : f32 to vector<1x16xf32>
    %1223 = arith.subf %1222, %1221 : vector<1x16xf32>
    %1224 = arith.addf %869, %1223 : vector<1x16xf32>
    %cst_385 = arith.constant 1.000000e+00 : f32
    %1225 = vector.broadcast %cst_385 : f32 to vector<1x16xf32>
    %1226 = arith.mulf %1224, %1225 : vector<1x16xf32>
    %cst_386 = arith.constant dense<0xFF800000> : vector<1xf32>
    %1227 = vector.multi_reduction <maximumf>, %1226, %cst_386 [1] : vector<1x16xf32> to vector<1xf32>
    %1228 = vector.shape_cast %1227 : vector<1xf32> to vector<1x1xf32>
    %1229 = vector.broadcast %1228 : vector<1x1xf32> to vector<1x16xf32>
    %1230 = arith.subf %1226, %1229 : vector<1x16xf32>
    %1231 = math.exp %1230 : vector<1x16xf32>
    %cst_387 = arith.constant dense<0.000000e+00> : vector<1xf32>
    %1232 = vector.multi_reduction <add>, %1231, %cst_387 [1] : vector<1x16xf32> to vector<1xf32>
    %1233 = vector.shape_cast %1232 : vector<1xf32> to vector<1x1xf32>
    %1234 = math.log %1233 : vector<1x1xf32>
    %1235 = arith.addf %1228, %1234 : vector<1x1xf32>
    %cst_388 = arith.constant 2.19722462 : f32
    %1236 = vector.broadcast %cst_388 : f32 to vector<1x1xf32>
    %1237 = arith.subf %1236, %1235 : vector<1x1xf32>
    %cst_389 = arith.constant 1.000000e+00 : f32
    %1238 = vector.broadcast %cst_389 : f32 to vector<1x1xf32>
    %1239 = arith.mulf %1238, %1237 : vector<1x1xf32>
    %1240 = vector.broadcast %1239 : vector<1x1xf32> to vector<1x16xf32>
    %1241 = arith.addf %869, %1240 : vector<1x16xf32>
    %cst_390 = arith.constant 0.000000e+00 : f32
    %1242 = vector.broadcast %cst_390 : f32 to vector<1x16xf32>
    %1243 = arith.maximumf %1241, %1242 : vector<1x16xf32>
    %cst_391 = arith.constant 0.000000e+00 : f32
    %1244 = vector.broadcast %cst_391 : f32 to vector<1x16xf32>
    %1245 = arith.subf %1244, %1243 : vector<1x16xf32>
    %1246 = arith.addf %869, %1245 : vector<1x16xf32>
    %cst_392 = arith.constant 1.000000e+00 : f32
    %1247 = vector.broadcast %cst_392 : f32 to vector<1x16xf32>
    %1248 = arith.mulf %1246, %1247 : vector<1x16xf32>
    %cst_393 = arith.constant dense<0xFF800000> : vector<1xf32>
    %1249 = vector.multi_reduction <maximumf>, %1248, %cst_393 [1] : vector<1x16xf32> to vector<1xf32>
    %1250 = vector.shape_cast %1249 : vector<1xf32> to vector<1x1xf32>
    %1251 = vector.broadcast %1250 : vector<1x1xf32> to vector<1x16xf32>
    %1252 = arith.subf %1248, %1251 : vector<1x16xf32>
    %1253 = math.exp %1252 : vector<1x16xf32>
    %cst_394 = arith.constant dense<0.000000e+00> : vector<1xf32>
    %1254 = vector.multi_reduction <add>, %1253, %cst_394 [1] : vector<1x16xf32> to vector<1xf32>
    %1255 = vector.shape_cast %1254 : vector<1xf32> to vector<1x1xf32>
    %1256 = math.log %1255 : vector<1x1xf32>
    %1257 = arith.addf %1250, %1256 : vector<1x1xf32>
    %cst_395 = arith.constant 2.19722462 : f32
    %1258 = vector.broadcast %cst_395 : f32 to vector<1x1xf32>
    %1259 = arith.subf %1258, %1257 : vector<1x1xf32>
    %cst_396 = arith.constant 1.000000e+00 : f32
    %1260 = vector.broadcast %cst_396 : f32 to vector<1x1xf32>
    %1261 = arith.mulf %1260, %1259 : vector<1x1xf32>
    %1262 = vector.broadcast %1261 : vector<1x1xf32> to vector<1x16xf32>
    %1263 = arith.addf %869, %1262 : vector<1x16xf32>
    %cst_397 = arith.constant 0.000000e+00 : f32
    %1264 = vector.broadcast %cst_397 : f32 to vector<1x16xf32>
    %1265 = arith.maximumf %1263, %1264 : vector<1x16xf32>
    %cst_398 = arith.constant 0.000000e+00 : f32
    %1266 = vector.broadcast %cst_398 : f32 to vector<1x16xf32>
    %1267 = arith.subf %1266, %1265 : vector<1x16xf32>
    %1268 = arith.addf %869, %1267 : vector<1x16xf32>
    %cst_399 = arith.constant 1.000000e+00 : f32
    %1269 = vector.broadcast %cst_399 : f32 to vector<1x16xf32>
    %1270 = arith.mulf %1268, %1269 : vector<1x16xf32>
    %cst_400 = arith.constant dense<0xFF800000> : vector<1xf32>
    %1271 = vector.multi_reduction <maximumf>, %1270, %cst_400 [1] : vector<1x16xf32> to vector<1xf32>
    %1272 = vector.shape_cast %1271 : vector<1xf32> to vector<1x1xf32>
    %1273 = vector.broadcast %1272 : vector<1x1xf32> to vector<1x16xf32>
    %1274 = arith.subf %1270, %1273 : vector<1x16xf32>
    %1275 = math.exp %1274 : vector<1x16xf32>
    %cst_401 = arith.constant dense<0.000000e+00> : vector<1xf32>
    %1276 = vector.multi_reduction <add>, %1275, %cst_401 [1] : vector<1x16xf32> to vector<1xf32>
    %1277 = vector.shape_cast %1276 : vector<1xf32> to vector<1x1xf32>
    %1278 = math.log %1277 : vector<1x1xf32>
    %1279 = arith.addf %1272, %1278 : vector<1x1xf32>
    %cst_402 = arith.constant 2.19722462 : f32
    %1280 = vector.broadcast %cst_402 : f32 to vector<1x1xf32>
    %1281 = arith.subf %1280, %1279 : vector<1x1xf32>
    %cst_403 = arith.constant 1.000000e+00 : f32
    %1282 = vector.broadcast %cst_403 : f32 to vector<1x1xf32>
    %1283 = arith.mulf %1282, %1281 : vector<1x1xf32>
    %1284 = vector.broadcast %1283 : vector<1x1xf32> to vector<1x16xf32>
    %1285 = arith.addf %869, %1284 : vector<1x16xf32>
    %cst_404 = arith.constant 0.000000e+00 : f32
    %1286 = vector.broadcast %cst_404 : f32 to vector<1x16xf32>
    %1287 = arith.maximumf %1285, %1286 : vector<1x16xf32>
    %cst_405 = arith.constant 0.000000e+00 : f32
    %1288 = vector.broadcast %cst_405 : f32 to vector<1x16xf32>
    %1289 = arith.subf %1288, %1287 : vector<1x16xf32>
    %1290 = arith.addf %869, %1289 : vector<1x16xf32>
    %cst_406 = arith.constant 1.000000e+00 : f32
    %1291 = vector.broadcast %cst_406 : f32 to vector<1x16xf32>
    %1292 = arith.mulf %1290, %1291 : vector<1x16xf32>
    %cst_407 = arith.constant dense<0xFF800000> : vector<1xf32>
    %1293 = vector.multi_reduction <maximumf>, %1292, %cst_407 [1] : vector<1x16xf32> to vector<1xf32>
    %1294 = vector.shape_cast %1293 : vector<1xf32> to vector<1x1xf32>
    %1295 = vector.broadcast %1294 : vector<1x1xf32> to vector<1x16xf32>
    %1296 = arith.subf %1292, %1295 : vector<1x16xf32>
    %1297 = math.exp %1296 : vector<1x16xf32>
    %cst_408 = arith.constant dense<0.000000e+00> : vector<1xf32>
    %1298 = vector.multi_reduction <add>, %1297, %cst_408 [1] : vector<1x16xf32> to vector<1xf32>
    %1299 = vector.shape_cast %1298 : vector<1xf32> to vector<1x1xf32>
    %1300 = math.log %1299 : vector<1x1xf32>
    %1301 = arith.addf %1294, %1300 : vector<1x1xf32>
    %cst_409 = arith.constant 2.19722462 : f32
    %1302 = vector.broadcast %cst_409 : f32 to vector<1x1xf32>
    %1303 = arith.subf %1302, %1301 : vector<1x1xf32>
    %cst_410 = arith.constant 1.000000e+00 : f32
    %1304 = vector.broadcast %cst_410 : f32 to vector<1x1xf32>
    %1305 = arith.mulf %1304, %1303 : vector<1x1xf32>
    %1306 = vector.broadcast %1305 : vector<1x1xf32> to vector<1x16xf32>
    %1307 = arith.addf %869, %1306 : vector<1x16xf32>
    %cst_411 = arith.constant 0.000000e+00 : f32
    %1308 = vector.broadcast %cst_411 : f32 to vector<1x16xf32>
    %1309 = arith.maximumf %1307, %1308 : vector<1x16xf32>
    %cst_412 = arith.constant 0.000000e+00 : f32
    %1310 = vector.broadcast %cst_412 : f32 to vector<1x16xf32>
    %1311 = arith.subf %1310, %1309 : vector<1x16xf32>
    %1312 = vector.broadcast %1305 : vector<1x1xf32> to vector<1x16xf32>
    %1313 = arith.addf %869, %1312 : vector<1x16xf32>
    %1314 = arith.addf %1313, %1311 : vector<1x16xf32>
    %cst_413 = arith.constant 1.000000e+00 : f32
    %1315 = vector.broadcast %cst_413 : f32 to vector<1x16xf32>
    %1316 = arith.mulf %1314, %1315 : vector<1x16xf32>
    %1317 = math.exp %1316 : vector<1x16xf32>
    %1318 = tpu.iota {dimensions = array<i32: 0>} : vector<8x1xi32>
    %cst_414 = arith.constant 0.000000e+00 : f32
    %1319 = vector.broadcast %cst_414 : f32 to vector<8x16xf32>
    %cst_415 = arith.constant dense<0xFF800000> : vector<1xf32>
    %1320 = vector.multi_reduction <maximumf>, %1317, %cst_415 [1] : vector<1x16xf32> to vector<1xf32>
    %1321 = vector.shape_cast %1320 : vector<1xf32> to vector<1x1xf32>
    %1322 = vector.broadcast %1321 : vector<1x1xf32> to vector<1x16xf32>
    %1323 = arith.cmpf oeq, %1317, %1322 : vector<1x16xf32>
    %cst_416 = arith.constant 1.600000e+01 : f32
    %1324 = vector.broadcast %cst_416 : f32 to vector<1x16xf32>
    %1325 = arith.select %1323, %3, %1324 : vector<1x16xi1>, vector<1x16xf32>
    %cst_417 = arith.constant dense<0x7F800000> : vector<1xf32>
    %1326 = vector.multi_reduction <minimumf>, %1325, %cst_417 [1] : vector<1x16xf32> to vector<1xf32>
    %1327 = vector.shape_cast %1326 : vector<1xf32> to vector<1x1xf32>
    %1328 = vector.broadcast %1327 : vector<1x1xf32> to vector<1x16xf32>
    %1329 = arith.cmpf oeq, %3, %1328 : vector<1x16xf32>
    %1330 = arith.extui %1329 : vector<1x16xi1> to vector<1x16xi32>
    %1331 = arith.sitofp %1330 : vector<1x16xi32> to vector<1x16xf32>
    %c0_i32_418 = arith.constant 0 : i32
    %1332 = vector.broadcast %c0_i32_418 : i32 to vector<8x1xi32>
    %1333 = arith.cmpi eq, %1318, %1332 : vector<8x1xi32>
    %cst_419 = arith.constant 1.000000e+00 : f32
    %cst_420 = arith.constant 0.000000e+00 : f32
    %1334 = vector.broadcast %cst_419 : f32 to vector<8x1xf32>
    %1335 = vector.broadcast %cst_420 : f32 to vector<8x1xf32>
    %1336 = arith.select %1333, %1334, %1335 : vector<8x1xi1>, vector<8x1xf32>
    %1337 = vector.broadcast %1336 : vector<8x1xf32> to vector<8x16xf32>
    %1338 = vector.broadcast %1331 : vector<1x16xf32> to vector<8x16xf32>
    %1339 = arith.mulf %1337, %1338 : vector<8x16xf32>
    %1340 = arith.addf %1319, %1339 : vector<8x16xf32>
    %cst_421 = arith.constant 5.000000e-01 : f32
    %1341 = vector.broadcast %cst_421 : f32 to vector<1x16xf32>
    %1342 = arith.cmpf ogt, %1331, %1341 : vector<1x16xf32>
    %cst_422 = arith.constant -1.000000e+30 : f32
    %1343 = vector.broadcast %cst_422 : f32 to vector<1x16xf32>
    %1344 = arith.select %1342, %1343, %1317 : vector<1x16xi1>, vector<1x16xf32>
    %cst_423 = arith.constant dense<0xFF800000> : vector<1xf32>
    %1345 = vector.multi_reduction <maximumf>, %1344, %cst_423 [1] : vector<1x16xf32> to vector<1xf32>
    %1346 = vector.shape_cast %1345 : vector<1xf32> to vector<1x1xf32>
    %1347 = vector.broadcast %1346 : vector<1x1xf32> to vector<1x16xf32>
    %1348 = arith.cmpf oeq, %1344, %1347 : vector<1x16xf32>
    %cst_424 = arith.constant 1.600000e+01 : f32
    %1349 = vector.broadcast %cst_424 : f32 to vector<1x16xf32>
    %1350 = arith.select %1348, %3, %1349 : vector<1x16xi1>, vector<1x16xf32>
    %cst_425 = arith.constant dense<0x7F800000> : vector<1xf32>
    %1351 = vector.multi_reduction <minimumf>, %1350, %cst_425 [1] : vector<1x16xf32> to vector<1xf32>
    %1352 = vector.shape_cast %1351 : vector<1xf32> to vector<1x1xf32>
    %1353 = vector.broadcast %1352 : vector<1x1xf32> to vector<1x16xf32>
    %1354 = arith.cmpf oeq, %3, %1353 : vector<1x16xf32>
    %1355 = arith.extui %1354 : vector<1x16xi1> to vector<1x16xi32>
    %1356 = arith.sitofp %1355 : vector<1x16xi32> to vector<1x16xf32>
    %c1_i32_426 = arith.constant 1 : i32
    %1357 = vector.broadcast %c1_i32_426 : i32 to vector<8x1xi32>
    %1358 = arith.cmpi eq, %1318, %1357 : vector<8x1xi32>
    %cst_427 = arith.constant 1.000000e+00 : f32
    %cst_428 = arith.constant 0.000000e+00 : f32
    %1359 = vector.broadcast %cst_427 : f32 to vector<8x1xf32>
    %1360 = vector.broadcast %cst_428 : f32 to vector<8x1xf32>
    %1361 = arith.select %1358, %1359, %1360 : vector<8x1xi1>, vector<8x1xf32>
    %1362 = vector.broadcast %1361 : vector<8x1xf32> to vector<8x16xf32>
    %1363 = vector.broadcast %1356 : vector<1x16xf32> to vector<8x16xf32>
    %1364 = arith.mulf %1362, %1363 : vector<8x16xf32>
    %1365 = arith.addf %1340, %1364 : vector<8x16xf32>
    %cst_429 = arith.constant 5.000000e-01 : f32
    %1366 = vector.broadcast %cst_429 : f32 to vector<1x16xf32>
    %1367 = arith.cmpf ogt, %1356, %1366 : vector<1x16xf32>
    %cst_430 = arith.constant -1.000000e+30 : f32
    %1368 = vector.broadcast %cst_430 : f32 to vector<1x16xf32>
    %1369 = arith.select %1367, %1368, %1344 : vector<1x16xi1>, vector<1x16xf32>
    %cst_431 = arith.constant dense<0xFF800000> : vector<1xf32>
    %1370 = vector.multi_reduction <maximumf>, %1369, %cst_431 [1] : vector<1x16xf32> to vector<1xf32>
    %1371 = vector.shape_cast %1370 : vector<1xf32> to vector<1x1xf32>
    %1372 = vector.broadcast %1371 : vector<1x1xf32> to vector<1x16xf32>
    %1373 = arith.cmpf oeq, %1369, %1372 : vector<1x16xf32>
    %cst_432 = arith.constant 1.600000e+01 : f32
    %1374 = vector.broadcast %cst_432 : f32 to vector<1x16xf32>
    %1375 = arith.select %1373, %3, %1374 : vector<1x16xi1>, vector<1x16xf32>
    %cst_433 = arith.constant dense<0x7F800000> : vector<1xf32>
    %1376 = vector.multi_reduction <minimumf>, %1375, %cst_433 [1] : vector<1x16xf32> to vector<1xf32>
    %1377 = vector.shape_cast %1376 : vector<1xf32> to vector<1x1xf32>
    %1378 = vector.broadcast %1377 : vector<1x1xf32> to vector<1x16xf32>
    %1379 = arith.cmpf oeq, %3, %1378 : vector<1x16xf32>
    %1380 = arith.extui %1379 : vector<1x16xi1> to vector<1x16xi32>
    %1381 = arith.sitofp %1380 : vector<1x16xi32> to vector<1x16xf32>
    %c2_i32_434 = arith.constant 2 : i32
    %1382 = vector.broadcast %c2_i32_434 : i32 to vector<8x1xi32>
    %1383 = arith.cmpi eq, %1318, %1382 : vector<8x1xi32>
    %cst_435 = arith.constant 1.000000e+00 : f32
    %cst_436 = arith.constant 0.000000e+00 : f32
    %1384 = vector.broadcast %cst_435 : f32 to vector<8x1xf32>
    %1385 = vector.broadcast %cst_436 : f32 to vector<8x1xf32>
    %1386 = arith.select %1383, %1384, %1385 : vector<8x1xi1>, vector<8x1xf32>
    %1387 = vector.broadcast %1386 : vector<8x1xf32> to vector<8x16xf32>
    %1388 = vector.broadcast %1381 : vector<1x16xf32> to vector<8x16xf32>
    %1389 = arith.mulf %1387, %1388 : vector<8x16xf32>
    %1390 = arith.addf %1365, %1389 : vector<8x16xf32>
    %cst_437 = arith.constant 5.000000e-01 : f32
    %1391 = vector.broadcast %cst_437 : f32 to vector<1x16xf32>
    %1392 = arith.cmpf ogt, %1381, %1391 : vector<1x16xf32>
    %cst_438 = arith.constant -1.000000e+30 : f32
    %1393 = vector.broadcast %cst_438 : f32 to vector<1x16xf32>
    %1394 = arith.select %1392, %1393, %1369 : vector<1x16xi1>, vector<1x16xf32>
    %cst_439 = arith.constant dense<0xFF800000> : vector<1xf32>
    %1395 = vector.multi_reduction <maximumf>, %1394, %cst_439 [1] : vector<1x16xf32> to vector<1xf32>
    %1396 = vector.shape_cast %1395 : vector<1xf32> to vector<1x1xf32>
    %1397 = vector.broadcast %1396 : vector<1x1xf32> to vector<1x16xf32>
    %1398 = arith.cmpf oeq, %1394, %1397 : vector<1x16xf32>
    %cst_440 = arith.constant 1.600000e+01 : f32
    %1399 = vector.broadcast %cst_440 : f32 to vector<1x16xf32>
    %1400 = arith.select %1398, %3, %1399 : vector<1x16xi1>, vector<1x16xf32>
    %cst_441 = arith.constant dense<0x7F800000> : vector<1xf32>
    %1401 = vector.multi_reduction <minimumf>, %1400, %cst_441 [1] : vector<1x16xf32> to vector<1xf32>
    %1402 = vector.shape_cast %1401 : vector<1xf32> to vector<1x1xf32>
    %1403 = vector.broadcast %1402 : vector<1x1xf32> to vector<1x16xf32>
    %1404 = arith.cmpf oeq, %3, %1403 : vector<1x16xf32>
    %1405 = arith.extui %1404 : vector<1x16xi1> to vector<1x16xi32>
    %1406 = arith.sitofp %1405 : vector<1x16xi32> to vector<1x16xf32>
    %c3_i32_442 = arith.constant 3 : i32
    %1407 = vector.broadcast %c3_i32_442 : i32 to vector<8x1xi32>
    %1408 = arith.cmpi eq, %1318, %1407 : vector<8x1xi32>
    %cst_443 = arith.constant 1.000000e+00 : f32
    %cst_444 = arith.constant 0.000000e+00 : f32
    %1409 = vector.broadcast %cst_443 : f32 to vector<8x1xf32>
    %1410 = vector.broadcast %cst_444 : f32 to vector<8x1xf32>
    %1411 = arith.select %1408, %1409, %1410 : vector<8x1xi1>, vector<8x1xf32>
    %1412 = vector.broadcast %1411 : vector<8x1xf32> to vector<8x16xf32>
    %1413 = vector.broadcast %1406 : vector<1x16xf32> to vector<8x16xf32>
    %1414 = arith.mulf %1412, %1413 : vector<8x16xf32>
    %1415 = arith.addf %1390, %1414 : vector<8x16xf32>
    %cst_445 = arith.constant 5.000000e-01 : f32
    %1416 = vector.broadcast %cst_445 : f32 to vector<1x16xf32>
    %1417 = arith.cmpf ogt, %1406, %1416 : vector<1x16xf32>
    %cst_446 = arith.constant -1.000000e+30 : f32
    %1418 = vector.broadcast %cst_446 : f32 to vector<1x16xf32>
    %1419 = arith.select %1417, %1418, %1394 : vector<1x16xi1>, vector<1x16xf32>
    %cst_447 = arith.constant dense<0xFF800000> : vector<1xf32>
    %1420 = vector.multi_reduction <maximumf>, %1419, %cst_447 [1] : vector<1x16xf32> to vector<1xf32>
    %1421 = vector.shape_cast %1420 : vector<1xf32> to vector<1x1xf32>
    %1422 = vector.broadcast %1421 : vector<1x1xf32> to vector<1x16xf32>
    %1423 = arith.cmpf oeq, %1419, %1422 : vector<1x16xf32>
    %cst_448 = arith.constant 1.600000e+01 : f32
    %1424 = vector.broadcast %cst_448 : f32 to vector<1x16xf32>
    %1425 = arith.select %1423, %3, %1424 : vector<1x16xi1>, vector<1x16xf32>
    %cst_449 = arith.constant dense<0x7F800000> : vector<1xf32>
    %1426 = vector.multi_reduction <minimumf>, %1425, %cst_449 [1] : vector<1x16xf32> to vector<1xf32>
    %1427 = vector.shape_cast %1426 : vector<1xf32> to vector<1x1xf32>
    %1428 = vector.broadcast %1427 : vector<1x1xf32> to vector<1x16xf32>
    %1429 = arith.cmpf oeq, %3, %1428 : vector<1x16xf32>
    %1430 = arith.extui %1429 : vector<1x16xi1> to vector<1x16xi32>
    %1431 = arith.sitofp %1430 : vector<1x16xi32> to vector<1x16xf32>
    %c4_i32_450 = arith.constant 4 : i32
    %1432 = vector.broadcast %c4_i32_450 : i32 to vector<8x1xi32>
    %1433 = arith.cmpi eq, %1318, %1432 : vector<8x1xi32>
    %cst_451 = arith.constant 1.000000e+00 : f32
    %cst_452 = arith.constant 0.000000e+00 : f32
    %1434 = vector.broadcast %cst_451 : f32 to vector<8x1xf32>
    %1435 = vector.broadcast %cst_452 : f32 to vector<8x1xf32>
    %1436 = arith.select %1433, %1434, %1435 : vector<8x1xi1>, vector<8x1xf32>
    %1437 = vector.broadcast %1436 : vector<8x1xf32> to vector<8x16xf32>
    %1438 = vector.broadcast %1431 : vector<1x16xf32> to vector<8x16xf32>
    %1439 = arith.mulf %1437, %1438 : vector<8x16xf32>
    %1440 = arith.addf %1415, %1439 : vector<8x16xf32>
    %cst_453 = arith.constant 5.000000e-01 : f32
    %1441 = vector.broadcast %cst_453 : f32 to vector<1x16xf32>
    %1442 = arith.cmpf ogt, %1431, %1441 : vector<1x16xf32>
    %cst_454 = arith.constant -1.000000e+30 : f32
    %1443 = vector.broadcast %cst_454 : f32 to vector<1x16xf32>
    %1444 = arith.select %1442, %1443, %1419 : vector<1x16xi1>, vector<1x16xf32>
    %cst_455 = arith.constant dense<0xFF800000> : vector<1xf32>
    %1445 = vector.multi_reduction <maximumf>, %1444, %cst_455 [1] : vector<1x16xf32> to vector<1xf32>
    %1446 = vector.shape_cast %1445 : vector<1xf32> to vector<1x1xf32>
    %1447 = vector.broadcast %1446 : vector<1x1xf32> to vector<1x16xf32>
    %1448 = arith.cmpf oeq, %1444, %1447 : vector<1x16xf32>
    %cst_456 = arith.constant 1.600000e+01 : f32
    %1449 = vector.broadcast %cst_456 : f32 to vector<1x16xf32>
    %1450 = arith.select %1448, %3, %1449 : vector<1x16xi1>, vector<1x16xf32>
    %cst_457 = arith.constant dense<0x7F800000> : vector<1xf32>
    %1451 = vector.multi_reduction <minimumf>, %1450, %cst_457 [1] : vector<1x16xf32> to vector<1xf32>
    %1452 = vector.shape_cast %1451 : vector<1xf32> to vector<1x1xf32>
    %1453 = vector.broadcast %1452 : vector<1x1xf32> to vector<1x16xf32>
    %1454 = arith.cmpf oeq, %3, %1453 : vector<1x16xf32>
    %1455 = arith.extui %1454 : vector<1x16xi1> to vector<1x16xi32>
    %1456 = arith.sitofp %1455 : vector<1x16xi32> to vector<1x16xf32>
    %c5_i32_458 = arith.constant 5 : i32
    %1457 = vector.broadcast %c5_i32_458 : i32 to vector<8x1xi32>
    %1458 = arith.cmpi eq, %1318, %1457 : vector<8x1xi32>
    %cst_459 = arith.constant 1.000000e+00 : f32
    %cst_460 = arith.constant 0.000000e+00 : f32
    %1459 = vector.broadcast %cst_459 : f32 to vector<8x1xf32>
    %1460 = vector.broadcast %cst_460 : f32 to vector<8x1xf32>
    %1461 = arith.select %1458, %1459, %1460 : vector<8x1xi1>, vector<8x1xf32>
    %1462 = vector.broadcast %1461 : vector<8x1xf32> to vector<8x16xf32>
    %1463 = vector.broadcast %1456 : vector<1x16xf32> to vector<8x16xf32>
    %1464 = arith.mulf %1462, %1463 : vector<8x16xf32>
    %1465 = arith.addf %1440, %1464 : vector<8x16xf32>
    %cst_461 = arith.constant 5.000000e-01 : f32
    %1466 = vector.broadcast %cst_461 : f32 to vector<1x16xf32>
    %1467 = arith.cmpf ogt, %1456, %1466 : vector<1x16xf32>
    %cst_462 = arith.constant -1.000000e+30 : f32
    %1468 = vector.broadcast %cst_462 : f32 to vector<1x16xf32>
    %1469 = arith.select %1467, %1468, %1444 : vector<1x16xi1>, vector<1x16xf32>
    %cst_463 = arith.constant dense<0xFF800000> : vector<1xf32>
    %1470 = vector.multi_reduction <maximumf>, %1469, %cst_463 [1] : vector<1x16xf32> to vector<1xf32>
    %1471 = vector.shape_cast %1470 : vector<1xf32> to vector<1x1xf32>
    %1472 = vector.broadcast %1471 : vector<1x1xf32> to vector<1x16xf32>
    %1473 = arith.cmpf oeq, %1469, %1472 : vector<1x16xf32>
    %cst_464 = arith.constant 1.600000e+01 : f32
    %1474 = vector.broadcast %cst_464 : f32 to vector<1x16xf32>
    %1475 = arith.select %1473, %3, %1474 : vector<1x16xi1>, vector<1x16xf32>
    %cst_465 = arith.constant dense<0x7F800000> : vector<1xf32>
    %1476 = vector.multi_reduction <minimumf>, %1475, %cst_465 [1] : vector<1x16xf32> to vector<1xf32>
    %1477 = vector.shape_cast %1476 : vector<1xf32> to vector<1x1xf32>
    %1478 = vector.broadcast %1477 : vector<1x1xf32> to vector<1x16xf32>
    %1479 = arith.cmpf oeq, %3, %1478 : vector<1x16xf32>
    %1480 = arith.extui %1479 : vector<1x16xi1> to vector<1x16xi32>
    %1481 = arith.sitofp %1480 : vector<1x16xi32> to vector<1x16xf32>
    %c6_i32_466 = arith.constant 6 : i32
    %1482 = vector.broadcast %c6_i32_466 : i32 to vector<8x1xi32>
    %1483 = arith.cmpi eq, %1318, %1482 : vector<8x1xi32>
    %cst_467 = arith.constant 1.000000e+00 : f32
    %cst_468 = arith.constant 0.000000e+00 : f32
    %1484 = vector.broadcast %cst_467 : f32 to vector<8x1xf32>
    %1485 = vector.broadcast %cst_468 : f32 to vector<8x1xf32>
    %1486 = arith.select %1483, %1484, %1485 : vector<8x1xi1>, vector<8x1xf32>
    %1487 = vector.broadcast %1486 : vector<8x1xf32> to vector<8x16xf32>
    %1488 = vector.broadcast %1481 : vector<1x16xf32> to vector<8x16xf32>
    %1489 = arith.mulf %1487, %1488 : vector<8x16xf32>
    %1490 = arith.addf %1465, %1489 : vector<8x16xf32>
    %cst_469 = arith.constant 5.000000e-01 : f32
    %1491 = vector.broadcast %cst_469 : f32 to vector<1x16xf32>
    %1492 = arith.cmpf ogt, %1481, %1491 : vector<1x16xf32>
    %cst_470 = arith.constant -1.000000e+30 : f32
    %1493 = vector.broadcast %cst_470 : f32 to vector<1x16xf32>
    %1494 = arith.select %1492, %1493, %1469 : vector<1x16xi1>, vector<1x16xf32>
    %cst_471 = arith.constant dense<0xFF800000> : vector<1xf32>
    %1495 = vector.multi_reduction <maximumf>, %1494, %cst_471 [1] : vector<1x16xf32> to vector<1xf32>
    %1496 = vector.shape_cast %1495 : vector<1xf32> to vector<1x1xf32>
    %1497 = vector.broadcast %1496 : vector<1x1xf32> to vector<1x16xf32>
    %1498 = arith.cmpf oeq, %1494, %1497 : vector<1x16xf32>
    %cst_472 = arith.constant 1.600000e+01 : f32
    %1499 = vector.broadcast %cst_472 : f32 to vector<1x16xf32>
    %1500 = arith.select %1498, %3, %1499 : vector<1x16xi1>, vector<1x16xf32>
    %cst_473 = arith.constant dense<0x7F800000> : vector<1xf32>
    %1501 = vector.multi_reduction <minimumf>, %1500, %cst_473 [1] : vector<1x16xf32> to vector<1xf32>
    %1502 = vector.shape_cast %1501 : vector<1xf32> to vector<1x1xf32>
    %1503 = vector.broadcast %1502 : vector<1x1xf32> to vector<1x16xf32>
    %1504 = arith.cmpf oeq, %3, %1503 : vector<1x16xf32>
    %1505 = arith.extui %1504 : vector<1x16xi1> to vector<1x16xi32>
    %1506 = arith.sitofp %1505 : vector<1x16xi32> to vector<1x16xf32>
    %c7_i32_474 = arith.constant 7 : i32
    %1507 = vector.broadcast %c7_i32_474 : i32 to vector<8x1xi32>
    %1508 = arith.cmpi eq, %1318, %1507 : vector<8x1xi32>
    %cst_475 = arith.constant 1.000000e+00 : f32
    %cst_476 = arith.constant 0.000000e+00 : f32
    %1509 = vector.broadcast %cst_475 : f32 to vector<8x1xf32>
    %1510 = vector.broadcast %cst_476 : f32 to vector<8x1xf32>
    %1511 = arith.select %1508, %1509, %1510 : vector<8x1xi1>, vector<8x1xf32>
    %1512 = vector.broadcast %1511 : vector<8x1xf32> to vector<8x16xf32>
    %1513 = vector.broadcast %1506 : vector<1x16xf32> to vector<8x16xf32>
    %1514 = arith.mulf %1512, %1513 : vector<8x16xf32>
    %1515 = arith.addf %1490, %1514 : vector<8x16xf32>
    %cst_477 = arith.constant dense<0.000000e+00> : vector<8x32xf32>
    %1516 = tpu.matmul %858, %1, %cst_477 {dimension_numbers = #tpu.dot_dimension_numbers<[1], [0], [0], [1], [0, 0, 1, 1], [], []>} : vector<8x16xf32>, vector<16x32xf32>, vector<8x32xf32> -> vector<8x32xf32>
    %cst_478 = arith.constant dense<0.000000e+00> : vector<8x32xf32>
    %1517 = tpu.matmul %1515, %1, %cst_478 {dimension_numbers = #tpu.dot_dimension_numbers<[1], [0], [0], [1], [0, 0, 1, 1], [], []>} : vector<8x16xf32>, vector<16x32xf32>, vector<8x32xf32> -> vector<8x32xf32>
    %c0_479 = arith.constant 0 : index
    %c0_480 = arith.constant 0 : index
    %1518 = vector.load %arg21[%c0_479, %c0_480] : memref<2x16xf32, #tpu.memory_space<vmem>>, vector<2x16xf32>
    %c0_481 = arith.constant 0 : index
    %c0_482 = arith.constant 0 : index
    %1519 = vector.load %arg22[%c0_481, %c0_482] : memref<2x16xf32, #tpu.memory_space<vmem>>, vector<2x16xf32>
    %c0_483 = arith.constant 0 : index
    %c0_484 = arith.constant 0 : index
    %1520 = vector.load %arg20[%c0_483, %c0_484] : memref<32x32xf32, #tpu.memory_space<vmem>>, vector<32x32xf32>
    %c0_485 = arith.constant 0 : index
    %c0_486 = arith.constant 0 : index
    %1521 = vector.load %arg14[%c0_485, %c0_486] : memref<1x32xf32, #tpu.memory_space<vmem>>, vector<1x32xf32>
    %c0_487 = arith.constant 0 : index
    %c0_488 = arith.constant 0 : index
    %1522 = vector.load %arg15[%c0_487, %c0_488] : memref<1x32xf32, #tpu.memory_space<vmem>>, vector<1x32xf32>
    %cst_489 = arith.constant dense<0.000000e+00> : vector<8xf32>
    %1523 = vector.multi_reduction <add>, %1516, %cst_489 [1] : vector<8x32xf32> to vector<8xf32>
    %1524 = vector.shape_cast %1523 : vector<8xf32> to vector<8x1xf32>
    %cst_490 = arith.constant 3.200000e+01 : f32
    %1525 = vector.broadcast %cst_490 : f32 to vector<8x1xf32>
    %1526 = arith.divf %1524, %1525 : vector<8x1xf32>
    %1527 = vector.broadcast %1526 : vector<8x1xf32> to vector<8x32xf32>
    %1528 = arith.subf %1516, %1527 : vector<8x32xf32>
    %1529 = arith.mulf %1528, %1528 : vector<8x32xf32>
    %cst_491 = arith.constant dense<0.000000e+00> : vector<8xf32>
    %1530 = vector.multi_reduction <add>, %1529, %cst_491 [1] : vector<8x32xf32> to vector<8xf32>
    %1531 = vector.shape_cast %1530 : vector<8xf32> to vector<8x1xf32>
    %cst_492 = arith.constant 3.200000e+01 : f32
    %1532 = vector.broadcast %cst_492 : f32 to vector<8x1xf32>
    %1533 = arith.divf %1531, %1532 : vector<8x1xf32>
    %1534 = vector.broadcast %1526 : vector<8x1xf32> to vector<8x32xf32>
    %1535 = arith.subf %1516, %1534 : vector<8x32xf32>
    %cst_493 = arith.constant 9.99999974E-6 : f32
    %1536 = vector.broadcast %cst_493 : f32 to vector<8x1xf32>
    %1537 = arith.addf %1533, %1536 : vector<8x1xf32>
    %1538 = math.rsqrt %1537 : vector<8x1xf32>
    %1539 = vector.broadcast %1538 : vector<8x1xf32> to vector<8x32xf32>
    %1540 = arith.mulf %1535, %1539 : vector<8x32xf32>
    %1541 = vector.broadcast %1521 : vector<1x32xf32> to vector<8x32xf32>
    %1542 = arith.mulf %1540, %1541 : vector<8x32xf32>
    %1543 = vector.broadcast %1522 : vector<1x32xf32> to vector<8x32xf32>
    %1544 = arith.addf %1542, %1543 : vector<8x32xf32>
    %c0_494 = arith.constant 0 : index
    %c0_495 = arith.constant 0 : index
    %1545 = vector.load %arg16[%c0_494, %c0_495] : memref<1x32xf32, #tpu.memory_space<vmem>>, vector<1x32xf32>
    %c0_496 = arith.constant 0 : index
    %c0_497 = arith.constant 0 : index
    %1546 = vector.load %arg17[%c0_496, %c0_497] : memref<1x32xf32, #tpu.memory_space<vmem>>, vector<1x32xf32>
    %cst_498 = arith.constant dense<0.000000e+00> : vector<8xf32>
    %1547 = vector.multi_reduction <add>, %1517, %cst_498 [1] : vector<8x32xf32> to vector<8xf32>
    %1548 = vector.shape_cast %1547 : vector<8xf32> to vector<8x1xf32>
    %cst_499 = arith.constant 3.200000e+01 : f32
    %1549 = vector.broadcast %cst_499 : f32 to vector<8x1xf32>
    %1550 = arith.divf %1548, %1549 : vector<8x1xf32>
    %1551 = vector.broadcast %1550 : vector<8x1xf32> to vector<8x32xf32>
    %1552 = arith.subf %1517, %1551 : vector<8x32xf32>
    %1553 = arith.mulf %1552, %1552 : vector<8x32xf32>
    %cst_500 = arith.constant dense<0.000000e+00> : vector<8xf32>
    %1554 = vector.multi_reduction <add>, %1553, %cst_500 [1] : vector<8x32xf32> to vector<8xf32>
    %1555 = vector.shape_cast %1554 : vector<8xf32> to vector<8x1xf32>
    %cst_501 = arith.constant 3.200000e+01 : f32
    %1556 = vector.broadcast %cst_501 : f32 to vector<8x1xf32>
    %1557 = arith.divf %1555, %1556 : vector<8x1xf32>
    %1558 = vector.broadcast %1550 : vector<8x1xf32> to vector<8x32xf32>
    %1559 = arith.subf %1517, %1558 : vector<8x32xf32>
    %cst_502 = arith.constant 9.99999974E-6 : f32
    %1560 = vector.broadcast %cst_502 : f32 to vector<8x1xf32>
    %1561 = arith.addf %1557, %1560 : vector<8x1xf32>
    %1562 = math.rsqrt %1561 : vector<8x1xf32>
    %1563 = vector.broadcast %1562 : vector<8x1xf32> to vector<8x32xf32>
    %1564 = arith.mulf %1559, %1563 : vector<8x32xf32>
    %1565 = vector.broadcast %1545 : vector<1x32xf32> to vector<8x32xf32>
    %1566 = arith.mulf %1564, %1565 : vector<8x32xf32>
    %1567 = vector.broadcast %1546 : vector<1x32xf32> to vector<8x32xf32>
    %1568 = arith.addf %1566, %1567 : vector<8x32xf32>
    %c0_503 = arith.constant 0 : index
    %c0_504 = arith.constant 0 : index
    %1569 = vector.load %arg18[%c0_503, %c0_504] : memref<32x32xf32, #tpu.memory_space<vmem>>, vector<32x32xf32>
    %cst_505 = arith.constant dense<0.000000e+00> : vector<8x32xf32>
    %1570 = tpu.matmul %1544, %1569, %cst_505 {dimension_numbers = #tpu.dot_dimension_numbers<[1], [0], [0], [1], [0, 0, 1, 1], [], []>} : vector<8x32xf32>, vector<32x32xf32>, vector<8x32xf32> -> vector<8x32xf32>
    %c0_506 = arith.constant 0 : index
    %c0_507 = arith.constant 0 : index
    %1571 = vector.load %arg19[%c0_506, %c0_507] : memref<32x64xf32, #tpu.memory_space<vmem>>, vector<32x64xf32>
    %cst_508 = arith.constant dense<0.000000e+00> : vector<8x64xf32>
    %1572 = tpu.matmul %1568, %1571, %cst_508 {dimension_numbers = #tpu.dot_dimension_numbers<[1], [0], [0], [1], [0, 0, 1, 1], [], []>} : vector<8x32xf32>, vector<32x64xf32>, vector<8x64xf32> -> vector<8x64xf32>
    %1573 = vector.extract_strided_slice %1572 {offsets = [0, 0], sizes = [8, 32], strides = [1, 1]} : vector<8x64xf32> to vector<8x32xf32>
    %1574 = vector.extract_strided_slice %1572 {offsets = [0, 32], sizes = [8, 32], strides = [1, 1]} : vector<8x64xf32> to vector<8x32xf32>
    %cst_509 = arith.constant 0.000000e+00 : f32
    %1575 = vector.broadcast %cst_509 : f32 to vector<8x32xf32>
    %1576 = vector.extract_strided_slice %1570 {offsets = [0, 0], sizes = [8, 16], strides = [1, 1]} : vector<8x32xf32> to vector<8x16xf32>
    %cst_510 = arith.constant 2.500000e-01 : f32
    %1577 = vector.broadcast %cst_510 : f32 to vector<8x16xf32>
    %1578 = arith.mulf %1576, %1577 : vector<8x16xf32>
    %1579 = vector.extract_strided_slice %1573 {offsets = [0, 0], sizes = [8, 16], strides = [1, 1]} : vector<8x32xf32> to vector<8x16xf32>
    %1580 = vector.extract_strided_slice %1574 {offsets = [0, 0], sizes = [8, 16], strides = [1, 1]} : vector<8x32xf32> to vector<8x16xf32>
    %1581 = vector.extract_strided_slice %1518 {offsets = [0, 0], sizes = [1, 16], strides = [1, 1]} : vector<2x16xf32> to vector<1x16xf32>
    %1582 = vector.extract_strided_slice %1519 {offsets = [0, 0], sizes = [1, 16], strides = [1, 1]} : vector<2x16xf32> to vector<1x16xf32>
    %1583 = vector.extract_strided_slice %1520 {offsets = [0, 0], sizes = [16, 32], strides = [1, 1]} : vector<32x32xf32> to vector<16x32xf32>
    %cst_511 = arith.constant dense<0.000000e+00> : vector<8x8xf32>
    %1584 = tpu.matmul %1578, %1579, %cst_511 {dimension_numbers = #tpu.dot_dimension_numbers<[1], [1], [0], [0], [0, 0, 1, 0], [], []>} : vector<8x16xf32>, vector<8x16xf32>, vector<8x8xf32> -> vector<8x8xf32>
    %1585 = vector.broadcast %1581 : vector<1x16xf32> to vector<8x16xf32>
    %1586 = arith.mulf %1578, %1585 : vector<8x16xf32>
    %cst_512 = arith.constant dense<0.000000e+00> : vector<8xf32>
    %1587 = vector.multi_reduction <add>, %1586, %cst_512 [1] : vector<8x16xf32> to vector<8xf32>
    %1588 = vector.shape_cast %1587 : vector<8xf32> to vector<8x1xf32>
    %cst_513 = arith.constant dense<0xFF800000> : vector<8xf32>
    %1589 = vector.multi_reduction <maximumf>, %1584, %cst_513 [1] : vector<8x8xf32> to vector<8xf32>
    %1590 = vector.shape_cast %1589 : vector<8xf32> to vector<8x1xf32>
    %1591 = arith.maximumf %1590, %1588 : vector<8x1xf32>
    %1592 = vector.broadcast %1591 : vector<8x1xf32> to vector<8x8xf32>
    %1593 = arith.subf %1584, %1592 : vector<8x8xf32>
    %1594 = math.exp %1593 : vector<8x8xf32>
    %1595 = arith.subf %1588, %1591 : vector<8x1xf32>
    %1596 = math.exp %1595 : vector<8x1xf32>
    %cst_514 = arith.constant dense<0.000000e+00> : vector<8xf32>
    %1597 = vector.multi_reduction <add>, %1594, %cst_514 [1] : vector<8x8xf32> to vector<8xf32>
    %1598 = vector.shape_cast %1597 : vector<8xf32> to vector<8x1xf32>
    %1599 = arith.addf %1598, %1596 : vector<8x1xf32>
    %1600 = tpu.reciprocal %1599 {approx = true} : vector<8x1xf32> -> vector<8x1xf32>
    %cst_515 = arith.constant dense<0.000000e+00> : vector<8x16xf32>
    %1601 = tpu.matmul %1594, %1580, %cst_515 {dimension_numbers = #tpu.dot_dimension_numbers<[1], [0], [0], [1], [0, 0, 1, 1], [], []>} : vector<8x8xf32>, vector<8x16xf32>, vector<8x16xf32> -> vector<8x16xf32>
    %1602 = vector.broadcast %1596 : vector<8x1xf32> to vector<8x16xf32>
    %1603 = vector.broadcast %1582 : vector<1x16xf32> to vector<8x16xf32>
    %1604 = arith.mulf %1602, %1603 : vector<8x16xf32>
    %1605 = arith.addf %1601, %1604 : vector<8x16xf32>
    %1606 = vector.broadcast %1600 : vector<8x1xf32> to vector<8x16xf32>
    %1607 = arith.mulf %1605, %1606 : vector<8x16xf32>
    %cst_516 = arith.constant dense<0.000000e+00> : vector<8x32xf32>
    %1608 = tpu.matmul %1607, %1583, %cst_516 {dimension_numbers = #tpu.dot_dimension_numbers<[1], [0], [0], [1], [0, 0, 1, 1], [], []>} : vector<8x16xf32>, vector<16x32xf32>, vector<8x32xf32> -> vector<8x32xf32>
    %1609 = arith.addf %1575, %1608 : vector<8x32xf32>
    %1610 = vector.extract_strided_slice %1570 {offsets = [0, 16], sizes = [8, 16], strides = [1, 1]} : vector<8x32xf32> to vector<8x16xf32>
    %cst_517 = arith.constant 2.500000e-01 : f32
    %1611 = vector.broadcast %cst_517 : f32 to vector<8x16xf32>
    %1612 = arith.mulf %1610, %1611 : vector<8x16xf32>
    %1613 = vector.extract_strided_slice %1573 {offsets = [0, 16], sizes = [8, 16], strides = [1, 1]} : vector<8x32xf32> to vector<8x16xf32>
    %1614 = vector.extract_strided_slice %1574 {offsets = [0, 16], sizes = [8, 16], strides = [1, 1]} : vector<8x32xf32> to vector<8x16xf32>
    %1615 = vector.extract_strided_slice %1518 {offsets = [1, 0], sizes = [1, 16], strides = [1, 1]} : vector<2x16xf32> to vector<1x16xf32>
    %1616 = vector.extract_strided_slice %1519 {offsets = [1, 0], sizes = [1, 16], strides = [1, 1]} : vector<2x16xf32> to vector<1x16xf32>
    %1617 = vector.extract_strided_slice %1520 {offsets = [16, 0], sizes = [16, 32], strides = [1, 1]} : vector<32x32xf32> to vector<16x32xf32>
    %cst_518 = arith.constant dense<0.000000e+00> : vector<8x8xf32>
    %1618 = tpu.matmul %1612, %1613, %cst_518 {dimension_numbers = #tpu.dot_dimension_numbers<[1], [1], [0], [0], [0, 0, 1, 0], [], []>} : vector<8x16xf32>, vector<8x16xf32>, vector<8x8xf32> -> vector<8x8xf32>
    %1619 = vector.broadcast %1615 : vector<1x16xf32> to vector<8x16xf32>
    %1620 = arith.mulf %1612, %1619 : vector<8x16xf32>
    %cst_519 = arith.constant dense<0.000000e+00> : vector<8xf32>
    %1621 = vector.multi_reduction <add>, %1620, %cst_519 [1] : vector<8x16xf32> to vector<8xf32>
    %1622 = vector.shape_cast %1621 : vector<8xf32> to vector<8x1xf32>
    %cst_520 = arith.constant dense<0xFF800000> : vector<8xf32>
    %1623 = vector.multi_reduction <maximumf>, %1618, %cst_520 [1] : vector<8x8xf32> to vector<8xf32>
    %1624 = vector.shape_cast %1623 : vector<8xf32> to vector<8x1xf32>
    %1625 = arith.maximumf %1624, %1622 : vector<8x1xf32>
    %1626 = vector.broadcast %1625 : vector<8x1xf32> to vector<8x8xf32>
    %1627 = arith.subf %1618, %1626 : vector<8x8xf32>
    %1628 = math.exp %1627 : vector<8x8xf32>
    %1629 = arith.subf %1622, %1625 : vector<8x1xf32>
    %1630 = math.exp %1629 : vector<8x1xf32>
    %cst_521 = arith.constant dense<0.000000e+00> : vector<8xf32>
    %1631 = vector.multi_reduction <add>, %1628, %cst_521 [1] : vector<8x8xf32> to vector<8xf32>
    %1632 = vector.shape_cast %1631 : vector<8xf32> to vector<8x1xf32>
    %1633 = arith.addf %1632, %1630 : vector<8x1xf32>
    %1634 = tpu.reciprocal %1633 {approx = true} : vector<8x1xf32> -> vector<8x1xf32>
    %cst_522 = arith.constant dense<0.000000e+00> : vector<8x16xf32>
    %1635 = tpu.matmul %1628, %1614, %cst_522 {dimension_numbers = #tpu.dot_dimension_numbers<[1], [0], [0], [1], [0, 0, 1, 1], [], []>} : vector<8x8xf32>, vector<8x16xf32>, vector<8x16xf32> -> vector<8x16xf32>
    %1636 = vector.broadcast %1630 : vector<8x1xf32> to vector<8x16xf32>
    %1637 = vector.broadcast %1616 : vector<1x16xf32> to vector<8x16xf32>
    %1638 = arith.mulf %1636, %1637 : vector<8x16xf32>
    %1639 = arith.addf %1635, %1638 : vector<8x16xf32>
    %1640 = vector.broadcast %1634 : vector<8x1xf32> to vector<8x16xf32>
    %1641 = arith.mulf %1639, %1640 : vector<8x16xf32>
    %cst_523 = arith.constant dense<0.000000e+00> : vector<8x32xf32>
    %1642 = tpu.matmul %1641, %1617, %cst_523 {dimension_numbers = #tpu.dot_dimension_numbers<[1], [0], [0], [1], [0, 0, 1, 1], [], []>} : vector<8x16xf32>, vector<16x32xf32>, vector<8x32xf32> -> vector<8x32xf32>
    %1643 = arith.addf %1609, %1642 : vector<8x32xf32>
    %cst_524 = arith.constant dense<0.000000e+00> : vector<16xf32>
    %1644 = vector.multi_reduction <add>, %867, %cst_524 [1] : vector<16x8xf32> to vector<16xf32>
    %1645 = vector.shape_cast %1644 : vector<16xf32> to vector<16x1xf32>
    %cst_525 = arith.constant dense<0.000000e+00> : vector<16x32xf32>
    %1646 = tpu.matmul %867, %1643, %cst_525 {dimension_numbers = #tpu.dot_dimension_numbers<[1], [0], [0], [1], [0, 0, 1, 1], [], []>} : vector<16x8xf32>, vector<8x32xf32>, vector<16x32xf32> -> vector<16x32xf32>
    %cst_526 = arith.constant 1.000000e+00 : f32
    %1647 = vector.broadcast %cst_526 : f32 to vector<16x1xf32>
    %1648 = arith.subf %1647, %1645 : vector<16x1xf32>
    %c0_527 = arith.constant 0 : index
    %c0_528 = arith.constant 0 : index
    %1649 = vector.load %arg7[%c0_527, %c0_528] : memref<1x32xf32, #tpu.memory_space<vmem>>, vector<1x32xf32>
    %1650 = vector.broadcast %1648 : vector<16x1xf32> to vector<16x32xf32>
    %1651 = vector.broadcast %1649 : vector<1x32xf32> to vector<16x32xf32>
    %1652 = arith.mulf %1650, %1651 : vector<16x32xf32>
    %1653 = arith.addf %1646, %1652 : vector<16x32xf32>
    %1654 = arith.addf %1, %113 : vector<16x32xf32>
    %1655 = arith.addf %1654, %1653 : vector<16x32xf32>
    %c0_529 = arith.constant 0 : index
    %c0_530 = arith.constant 0 : index
    %c0_531 = arith.constant 0 : index
    %1656 = vector.load %arg23[%c0_529, %c0_530, %c0_531] : memref<1x16x32xf32, #tpu.memory_space<vmem>>, vector<1x16x32xf32>
    %1657 = vector.shape_cast %1656 : vector<1x16x32xf32> to vector<16x32xf32>
    %1658 = vector.shape_cast %1655 : vector<16x32xf32> to vector<1x16x32xf32>
    tpu.vector_store %arg23[%c0_529, %c0_530, %c0_531], %1658 {strides = array<i32>} : memref<1x16x32xf32, #tpu.memory_space<vmem>>, vector<1x16x32xf32>,
    return
  }
  func.func @transform_0(%arg0: i32) -> (i32, i32, i32) {
    %c0_i32 = arith.constant 0 : i32
    %c0_i32_0 = arith.constant 0 : i32
    %c0_i32_1 = arith.constant 0 : i32
    return %arg0, %c0_i32, %c0_i32_0 : i32, i32, i32
  }
  func.func @transform_1(%arg0: i32) -> (i32, i32) {
    %c0_i32 = arith.constant 0 : i32
    %c0_i32_0 = arith.constant 0 : i32
    %c0_i32_1 = arith.constant 0 : i32
    return %c0_i32, %c0_i32_0 : i32, i32
  }
  func.func @transform_2(%arg0: i32) -> (i32, i32) {
    %c0_i32 = arith.constant 0 : i32
    %c0_i32_0 = arith.constant 0 : i32
    %c0_i32_1 = arith.constant 0 : i32
    return %c0_i32, %c0_i32_0 : i32, i32
  }
  func.func @transform_3(%arg0: i32) -> (i32, i32) {
    %c0_i32 = arith.constant 0 : i32
    %c0_i32_0 = arith.constant 0 : i32
    %c0_i32_1 = arith.constant 0 : i32
    return %c0_i32, %c0_i32_0 : i32, i32
  }
  func.func @transform_4(%arg0: i32) -> (i32, i32) {
    %c0_i32 = arith.constant 0 : i32
    %c0_i32_0 = arith.constant 0 : i32
    %c0_i32_1 = arith.constant 0 : i32
    return %c0_i32, %c0_i32_0 : i32, i32
  }
  func.func @transform_5(%arg0: i32) -> (i32, i32) {
    %c0_i32 = arith.constant 0 : i32
    %c0_i32_0 = arith.constant 0 : i32
    %c0_i32_1 = arith.constant 0 : i32
    return %c0_i32, %c0_i32_0 : i32, i32
  }
  func.func @transform_6(%arg0: i32) -> (i32, i32) {
    %c0_i32 = arith.constant 0 : i32
    %c0_i32_0 = arith.constant 0 : i32
    %c0_i32_1 = arith.constant 0 : i32
    return %c0_i32, %c0_i32_0 : i32, i32
  }
  func.func @transform_7(%arg0: i32) -> (i32, i32) {
    %c0_i32 = arith.constant 0 : i32
    %c0_i32_0 = arith.constant 0 : i32
    %c0_i32_1 = arith.constant 0 : i32
    return %c0_i32, %c0_i32_0 : i32, i32
  }
  func.func @transform_8(%arg0: i32) -> (i32, i32) {
    %c0_i32 = arith.constant 0 : i32
    %c0_i32_0 = arith.constant 0 : i32
    %c0_i32_1 = arith.constant 0 : i32
    return %c0_i32, %c0_i32_0 : i32, i32
  }
  func.func @transform_9(%arg0: i32) -> (i32, i32) {
    %c0_i32 = arith.constant 0 : i32
    %c0_i32_0 = arith.constant 0 : i32
    %c0_i32_1 = arith.constant 0 : i32
    return %c0_i32, %c0_i32_0 : i32, i32
  }
  func.func @transform_10(%arg0: i32) -> (i32, i32) {
    %c0_i32 = arith.constant 0 : i32
    %c0_i32_0 = arith.constant 0 : i32
    %c0_i32_1 = arith.constant 0 : i32
    return %c0_i32, %c0_i32_0 : i32, i32
  }
  func.func @transform_11(%arg0: i32) -> (i32, i32) {
    %c0_i32 = arith.constant 0 : i32
    %c0_i32_0 = arith.constant 0 : i32
    %c0_i32_1 = arith.constant 0 : i32
    return %c0_i32, %c0_i32_0 : i32, i32
  }
  func.func @transform_12(%arg0: i32) -> (i32, i32) {
    %c0_i32 = arith.constant 0 : i32
    %c0_i32_0 = arith.constant 0 : i32
    %c0_i32_1 = arith.constant 0 : i32
    return %c0_i32, %c0_i32_0 : i32, i32
  }
  func.func @transform_13(%arg0: i32) -> (i32, i32) {
    %c0_i32 = arith.constant 0 : i32
    %c0_i32_0 = arith.constant 0 : i32
    %c0_i32_1 = arith.constant 0 : i32
    return %c0_i32, %c0_i32_0 : i32, i32
  }
  func.func @transform_14(%arg0: i32) -> (i32, i32) {
    %c0_i32 = arith.constant 0 : i32
    %c0_i32_0 = arith.constant 0 : i32
    %c0_i32_1 = arith.constant 0 : i32
    return %c0_i32, %c0_i32_0 : i32, i32
  }
  func.func @transform_15(%arg0: i32) -> (i32, i32) {
    %c0_i32 = arith.constant 0 : i32
    %c0_i32_0 = arith.constant 0 : i32
    %c0_i32_1 = arith.constant 0 : i32
    return %c0_i32, %c0_i32_0 : i32, i32
  }
  func.func @transform_16(%arg0: i32) -> (i32, i32) {
    %c0_i32 = arith.constant 0 : i32
    %c0_i32_0 = arith.constant 0 : i32
    %c0_i32_1 = arith.constant 0 : i32
    return %c0_i32, %c0_i32_0 : i32, i32
  }
  func.func @transform_17(%arg0: i32) -> (i32, i32) {
    %c0_i32 = arith.constant 0 : i32
    %c0_i32_0 = arith.constant 0 : i32
    %c0_i32_1 = arith.constant 0 : i32
    return %c0_i32, %c0_i32_0 : i32, i32
  }
  func.func @transform_18(%arg0: i32) -> (i32, i32) {
    %c0_i32 = arith.constant 0 : i32
    %c0_i32_0 = arith.constant 0 : i32
    %c0_i32_1 = arith.constant 0 : i32
    return %c0_i32, %c0_i32_0 : i32, i32
  }
  func.func @transform_19(%arg0: i32) -> (i32, i32) {
    %c0_i32 = arith.constant 0 : i32
    %c0_i32_0 = arith.constant 0 : i32
    %c0_i32_1 = arith.constant 0 : i32
    return %c0_i32, %c0_i32_0 : i32, i32
  }
  func.func @transform_20(%arg0: i32) -> (i32, i32) {
    %c0_i32 = arith.constant 0 : i32
    %c0_i32_0 = arith.constant 0 : i32
    %c0_i32_1 = arith.constant 0 : i32
    return %c0_i32, %c0_i32_0 : i32, i32
  }
  func.func @transform_21(%arg0: i32) -> (i32, i32) {
    %c0_i32 = arith.constant 0 : i32
    %c0_i32_0 = arith.constant 0 : i32
    %c0_i32_1 = arith.constant 0 : i32
    return %c0_i32, %c0_i32_0 : i32, i32
  }
  func.func @transform_22(%arg0: i32) -> (i32, i32, i32) {
    %c0_i32 = arith.constant 0 : i32
    %c0_i32_0 = arith.constant 0 : i32
    %c0_i32_1 = arith.constant 0 : i32
    return %arg0, %c0_i32, %c0_i32_0 : i32, i32, i32
  }
}

module attributes {stable_mosaic.version = 11 : i64} {
  func.func @_head_kernel(%arg0: i32, %arg1: memref<1x16x32xf32, #tpu.memory_space<vmem>>, %arg2: memref<1x32xf32, #tpu.memory_space<vmem>>, %arg3: memref<1x32xf32, #tpu.memory_space<vmem>>, %arg4: memref<32x10xf32, #tpu.memory_space<vmem>>, %arg5: memref<1x10xf32, #tpu.memory_space<vmem>>, %arg6: memref<1x1x10xf32, #tpu.memory_space<vmem>>) attributes {dimension_semantics = [#tpu.dimension_semantics<parallel>], iteration_bounds = array<i64: 2>, scalar_prefetch = 0 : i64, scratch_operands = 0 : i64, tpu.core_type = #tpu.core_type<tc>, window_params = [{transform_indices = @transform_0, window_bounds = array<i64: 1, 16, 32>}, {pipeline_mode = #tpu.pipeline_mode<synchronous>, transform_indices = @transform_1, window_bounds = array<i64: 1, 32>}, {pipeline_mode = #tpu.pipeline_mode<synchronous>, transform_indices = @transform_2, window_bounds = array<i64: 1, 32>}, {pipeline_mode = #tpu.pipeline_mode<synchronous>, transform_indices = @transform_3, window_bounds = array<i64: 32, 10>}, {pipeline_mode = #tpu.pipeline_mode<synchronous>, transform_indices = @transform_4, window_bounds = array<i64: 1, 10>}, {transform_indices = @transform_5, window_bounds = array<i64: 1, 1, 10>}]} {
    %c0 = arith.constant 0 : index
    %c0_0 = arith.constant 0 : index
    %c0_1 = arith.constant 0 : index
    %0 = vector.load %arg1[%c0, %c0_0, %c0_1] : memref<1x16x32xf32, #tpu.memory_space<vmem>>, vector<1x16x32xf32>
    %1 = vector.shape_cast %0 : vector<1x16x32xf32> to vector<16x32xf32>
    %cst = arith.constant dense<0.000000e+00> : vector<32xf32>
    %2 = vector.multi_reduction <add>, %1, %cst [0] : vector<16x32xf32> to vector<32xf32>
    %3 = vector.shape_cast %2 : vector<32xf32> to vector<1x32xf32>
    %cst_2 = arith.constant 1.600000e+01 : f32
    %4 = vector.broadcast %cst_2 : f32 to vector<1x32xf32>
    %5 = arith.divf %3, %4 : vector<1x32xf32>
    %c0_3 = arith.constant 0 : index
    %c0_4 = arith.constant 0 : index
    %6 = vector.load %arg2[%c0_3, %c0_4] : memref<1x32xf32, #tpu.memory_space<vmem>>, vector<1x32xf32>
    %c0_5 = arith.constant 0 : index
    %c0_6 = arith.constant 0 : index
    %7 = vector.load %arg3[%c0_5, %c0_6] : memref<1x32xf32, #tpu.memory_space<vmem>>, vector<1x32xf32>
    %cst_7 = arith.constant dense<0.000000e+00> : vector<1xf32>
    %8 = vector.multi_reduction <add>, %5, %cst_7 [1] : vector<1x32xf32> to vector<1xf32>
    %9 = vector.shape_cast %8 : vector<1xf32> to vector<1x1xf32>
    %cst_8 = arith.constant 3.200000e+01 : f32
    %10 = vector.broadcast %cst_8 : f32 to vector<1x1xf32>
    %11 = arith.divf %9, %10 : vector<1x1xf32>
    %12 = vector.broadcast %11 : vector<1x1xf32> to vector<1x32xf32>
    %13 = arith.subf %5, %12 : vector<1x32xf32>
    %14 = arith.mulf %13, %13 : vector<1x32xf32>
    %cst_9 = arith.constant dense<0.000000e+00> : vector<1xf32>
    %15 = vector.multi_reduction <add>, %14, %cst_9 [1] : vector<1x32xf32> to vector<1xf32>
    %16 = vector.shape_cast %15 : vector<1xf32> to vector<1x1xf32>
    %cst_10 = arith.constant 3.200000e+01 : f32
    %17 = vector.broadcast %cst_10 : f32 to vector<1x1xf32>
    %18 = arith.divf %16, %17 : vector<1x1xf32>
    %19 = vector.broadcast %11 : vector<1x1xf32> to vector<1x32xf32>
    %20 = arith.subf %5, %19 : vector<1x32xf32>
    %cst_11 = arith.constant 9.99999974E-6 : f32
    %21 = vector.broadcast %cst_11 : f32 to vector<1x1xf32>
    %22 = arith.addf %18, %21 : vector<1x1xf32>
    %23 = math.rsqrt %22 : vector<1x1xf32>
    %24 = vector.broadcast %23 : vector<1x1xf32> to vector<1x32xf32>
    %25 = arith.mulf %20, %24 : vector<1x32xf32>
    %26 = arith.mulf %25, %6 : vector<1x32xf32>
    %27 = arith.addf %26, %7 : vector<1x32xf32>
    %c0_12 = arith.constant 0 : index
    %c0_13 = arith.constant 0 : index
    %28 = vector.load %arg4[%c0_12, %c0_13] : memref<32x10xf32, #tpu.memory_space<vmem>>, vector<32x10xf32>
    %cst_14 = arith.constant dense<0.000000e+00> : vector<1x10xf32>
    %29 = tpu.matmul %27, %28, %cst_14 {dimension_numbers = #tpu.dot_dimension_numbers<[1], [0], [0], [1], [0, 0, 1, 1], [], []>} : vector<1x32xf32>, vector<32x10xf32>, vector<1x10xf32> -> vector<1x10xf32>
    %c0_15 = arith.constant 0 : index
    %c0_16 = arith.constant 0 : index
    %30 = vector.load %arg5[%c0_15, %c0_16] : memref<1x10xf32, #tpu.memory_space<vmem>>, vector<1x10xf32>
    %31 = arith.addf %29, %30 : vector<1x10xf32>
    %c0_17 = arith.constant 0 : index
    %c0_18 = arith.constant 0 : index
    %c0_19 = arith.constant 0 : index
    %32 = vector.load %arg6[%c0_17, %c0_18, %c0_19] : memref<1x1x10xf32, #tpu.memory_space<vmem>>, vector<1x1x10xf32>
    %33 = vector.shape_cast %32 : vector<1x1x10xf32> to vector<1x10xf32>
    %34 = vector.shape_cast %31 : vector<1x10xf32> to vector<1x1x10xf32>
    tpu.vector_store %arg6[%c0_17, %c0_18, %c0_19], %34 {strides = array<i32>} : memref<1x1x10xf32, #tpu.memory_space<vmem>>, vector<1x1x10xf32>,
    return
  }
  func.func @transform_0(%arg0: i32) -> (i32, i32, i32) {
    %c0_i32 = arith.constant 0 : i32
    %c0_i32_0 = arith.constant 0 : i32
    %c0_i32_1 = arith.constant 0 : i32
    return %arg0, %c0_i32, %c0_i32_0 : i32, i32, i32
  }
  func.func @transform_1(%arg0: i32) -> (i32, i32) {
    %c0_i32 = arith.constant 0 : i32
    %c0_i32_0 = arith.constant 0 : i32
    %c0_i32_1 = arith.constant 0 : i32
    return %c0_i32, %c0_i32_0 : i32, i32
  }
  func.func @transform_2(%arg0: i32) -> (i32, i32) {
    %c0_i32 = arith.constant 0 : i32
    %c0_i32_0 = arith.constant 0 : i32
    %c0_i32_1 = arith.constant 0 : i32
    return %c0_i32, %c0_i32_0 : i32, i32
  }
  func.func @transform_3(%arg0: i32) -> (i32, i32) {
    %c0_i32 = arith.constant 0 : i32
    %c0_i32_0 = arith.constant 0 : i32
    %c0_i32_1 = arith.constant 0 : i32
    return %c0_i32, %c0_i32_0 : i32, i32
  }
  func.func @transform_4(%arg0: i32) -> (i32, i32) {
    %c0_i32 = arith.constant 0 : i32
    %c0_i32_0 = arith.constant 0 : i32
    %c0_i32_1 = arith.constant 0 : i32
    return %c0_i32, %c0_i32_0 : i32, i32
  }
  func.func @transform_5(%arg0: i32) -> (i32, i32, i32) {
    %c0_i32 = arith.constant 0 : i32
    %c0_i32_0 = arith.constant 0 : i32
    %c0_i32_1 = arith.constant 0 : i32
    return %arg0, %c0_i32, %c0_i32_0 : i32, i32, i32
  }
}

</mosaic_0001>

<bundles_post_ra>
// kernel: _lambda_.6
= control target key start
LH: loop header
LB: loop body
LE: loop exit
PB: predicated region body
PF: predicated region fallthrough
CT: control target
= control target key end

     0   :  { %s641_s27 = smov 0   ;;  %s716_s0 = inlined_call_operand.vmem [shape: f32[32,48], index: 0, kind: input, shape index: {}]   ;;  %s717_s1 = inlined_call_operand.vmem [shape: f32[16,32], index: 1, kind: input, shape index: {}]   ;;  %s718_s2 = inlined_call_operand.vmem [shape: f32[1,48], index: 2, kind: input, shape index: {}]   ;;  %s719_s3 = inlined_call_operand.vmem [shape: f32[1,48], index: 3, kind: input, shape index: {}]   ;;  %s720_s4 = inlined_call_operand.vmem [shape: f32[48,32], index: 4, kind: input, shape index: {}]   ;;  %s721_s5 = inlined_call_operand.vmem [shape: f32[1,32], index: 5, kind: input, shape index: {}, may-alias: {5,7}]   ;;  %s722_s6 = inlined_call_operand.vmem [shape: f32[1,32], index: 6, kind: input, shape index: {}]   ;;  %s723_s7 = inlined_call_operand.vmem [shape: f32[1,32], index: 7, kind: input, shape index: {}, may-alias: {5,7}]   ;;  %s724_s8 = inlined_call_operand.vmem [shape: f32[32,32], index: 8, kind: output, shape index: {}]  }
   0x1 LB: > { %s540_s28 = sadd.s32 4294967295, %s592_s27   ;;  %p544_p0 = scmp.ge.s32.totalorder %s592_s27, 1  ;;  %s592_s27 = sphi %s641_s27, %s18_s27  }
   0x2   : > { %p263_p1 = scmp.lt.s32.totalorder %s592_s27, 3 }
   0x4   : > { %p264_p2 = pnand %p544_p0, %p263_p1 }
   0x5   : > { %s545_s29 = sshll.u32 (!%p264_p2), %s540_s28, 1 }
   0x6   : > { %267 = sbr.rel (%p264_p2) target bundleno = 690 (0x2b2), region = 52  ;;  %p298_p3 = scmp.lt.s32.totalorder (!%p264_p2), %s545_s29, 3 }
   0xb   : > { %s726_s29 = smov (!%p298_p3, %s545_s29), 3  ;;  %vm313_vm0 = vcmask 392192   ;;  %v594_v4 = vmov 48.0   ;;  %v380_v21 = vld [vmem:[%s720_s4 + $0x28] sm:$0xff]  ;;  %v379_v22 = vld [vmem:[%s720_s4 + $0x20] sm:$0xff]  ;;  %v378_v23 = vld [vmem:[%s720_s4 + $0x18] sm:$0xff] }
   0xc   : > { %s546_s30 = sshll.u32 %s726_s29, 3  ;;  %574 = vrcp.f32 %v594_v4  ;;  %401 = vmatpush.msra.mxu0 %v380_v21  ;;  %553 = vmatpush.msra.mxu1 %v380_v21  ;;  %v377_v24 = vld [vmem:[%s720_s4 + $0x10] sm:$0xff]  ;;  %v376_v25 = vld [vmem:[%s720_s4 + $0x8] sm:$0xff]  ;;  %v375_v26 = vld [vmem:[%s720_s4] sm:$0xff]  ;;  %vm416_vm8 = vcmask 261120   ;;  %v595_v62 = vmov 32.0  }
   0xd   : > { %s301_s11 = scalar_lea.vmem %s716_s0, %s546_s30  ;;  %v569_v41 = vld [vmem:[%s718_s2] ss:$0 sm:$0xff]  ;;  %s307_s19 = scalar_lea.vmem %s724_s8, %s546_s30 }
   0xe   : > { %v309_v0 = vld [vmem:[%s301_s11] sm:$0xff]  ;;  %v310_v2 = vld [vmem:[%s301_s11 + $0x8] sm:$0xff]  ;;  %402 = vmatpush.msra.mxu0 %v379_v22  ;;  %554 = vmatpush.msra.mxu1 %v379_v22 }
   0xf   : > { %v314_v1 = vsel %vm313_vm0, %v309_v0, 0.0  ;;  %v317_v3 = vsel %vm313_vm0, %v310_v2, 0.0  ;;  %v570_v45 = vld [vmem:[%s719_s3] ss:$0 sm:$0xff] }
  0x10   : > { %315 = vadd.xlane.f32.xlu0 %v314_v1  ;;  %403 = vmatpush.msra.mxu0 %v378_v23  ;;  %v571_v55 = vld [vmem:[%s721_s5] ss:$0 sm:$0xff] }
  0x11   : > { %555 = vmatpush.msra.mxu1 %v378_v23 }
  0x12   : > { %v575_v5 = vpop.eup %574  ;;  %404 = vmatpush.msra.mxu0 %v377_v24 }
  0x13   : > { %v321_v6 = vmul.f32 48.0, %v575_v5  ;;  %vm325_vm1 = vweird.f32 %v575_v5  ;;  %556 = vmatpush.msra.mxu1 %v377_v24 }
  0x14   : > { %405 = vmatpush.msra.mxu0 %v376_v25 }
  0x15   : > { %v322_v7 = vsub.f32 1.0, %v321_v6  ;;  %557 = vmatpush.msra.mxu1 %v376_v25 }
  0x16   : > { %406 = vmatpush.msra.mxu0 %v375_v26 }
  0x17   : > { %v323_v8 = vmul.f32 %v575_v5, %v322_v7  ;;  %558 = vmatpush.msra.mxu1 %v375_v26 }
  0x18   : > { %318 = vadd.xlane.f32.xlu0 %v317_v3 }
  0x19   : > { %v324_v9 = vadd.f32 %v575_v5, %v323_v8 }
  0x1b   : > { %v326_v10 = vsel %vm325_vm1, %v575_v5, %v324_v9 }
  0x83   : > { %v316_v11 = vpop.xlane.xlu0 %315 }
  0x84   : > { %v327_v12 = vmul.f32 %v326_v10, %v316_v11 }
  0x86   : > { %v329_v13 = vsub.f32 %v309_v0, %v327_v12 }
  0x88   : > { %v331_v14 = vmul.f32 %v329_v13, %v329_v13 }
  0x8a   : > { %v333_v15 = vsel %vm313_vm0, %v331_v14, 0.0 }
  0x8b   : > { %334 = vadd.xlane.f32.xlu1 %v333_v15  ;;  %v319_v16 = vpop.xlane.xlu0 %318 }
  0x8c   : > { %v328_v17 = vmul.f32 %v326_v10, %v319_v16 }
  0x8e   : > { %v330_v18 = vsub.f32 %v310_v2, %v328_v17 }
  0x90   : > { %v332_v19 = vmul.f32 %v330_v18, %v330_v18 }
  0x92   : > { %v336_v20 = vsel %vm313_vm0, %v332_v19, 0.0 }
  0x93   : > { %337 = vadd.xlane.f32.xlu1 %v336_v20 }
  0xfe   : > { %v335_v27 = vpop.xlane.xlu1 %334 }
  0xff   : > { %v339_v28 = vmul.f32 %v335_v27, %v326_v10 }
 0x101   : > { %v341_v29 = vadd.f32 1e-05, %v339_v28 }
 0x103   : > { %576 = vrsqrt.f32 %v341_v29  ;;  %vm349_vm3 = vweird.f32 %v341_v29 }
 0x106   : > { %v338_v30 = vpop.xlane.xlu1 %337 }
 0x107   : > { %v340_v31 = vmul.f32 %v338_v30, %v326_v10 }
 0x109   : > { %v577_v32 = vpop.eup %576  ;;  %v342_v33 = vadd.f32 1e-05, %v340_v31 }
 0x10a   : > { %v344_v34 = vmul.f32 %v577_v32, %v341_v29  ;;  %vm350_vm2 = vweird.f32 %v577_v32  ;;  %v572_v29 = vld [vmem:[%s722_s6] ss:$0 sm:$0xff] }
 0x10b   : > { %578 = vrsqrt.f32 %v342_v33  ;;  %vm351_vm4 = vmor %vm349_vm3, %vm350_vm2  ;;  %vm359_vm6 = vweird.f32 %v342_v33 }
 0x10c   : > { %v345_v35 = vmul.f32 %v577_v32, %v344_v34  ;;  %580 = vrcp.f32 %v595_v62 }
 0x10e   : > { %v346_v36 = vmul.f32 0.5, %v345_v35 }
 0x110   : > { %v347_v37 = vsub.f32 1.5, %v346_v36  ;;  %v478_v36 = vld [vmem:[%s717_s1] sm:$0xff] }
 0x111   : > { %v579_v38 = vpop.eup %578 }
 0x112   : > { %v348_v39 = vmul.f32 %v577_v32, %v347_v37  ;;  %v354_v40 = vmul.f32 %v579_v38, %v342_v33  ;;  %vm360_vm5 = vweird.f32 %v579_v38  ;;  %v581_v63 = vpop.eup %580 }
 0x113   : > { %vm361_vm7 = vmor %vm359_vm6, %vm360_vm5  ;;  %v424_v0 = vmul.f32 32.0, %v581_v63  ;;  %vm428_vm9 = vweird.f32 %v581_v63 }
 0x114   : > { %v352_v42 = vsel %vm351_vm4, %v577_v32, %v348_v39  ;;  %v355_v43 = vmul.f32 %v579_v38, %v354_v40  ;;  %v573_v32 = vld [vmem:[%s723_s7] ss:$0 sm:$0xff] }
 0x115   : > { %v363_v44 = vmul.f32 %v352_v42, %v329_v13  ;;  %v425_v1 = vsub.f32 1.0, %v424_v0 }
 0x116   : > { %v356_v46 = vmul.f32 0.5, %v355_v43 }
 0x117   : > { %v368_v47 = vmul.f32 %v569_v41, %v363_v44  ;;  %v426_v2 = vmul.f32 %v581_v63, %v425_v1  ;;  %v479_v44 = vld [vmem:[%s717_s1 + $0x8] sm:$0xff] }
 0x118   : > { %v357_v48 = vsub.f32 1.5, %v356_v46 }
 0x119   : > { %v373_v49 = vadd.f32 %v570_v45, %v368_v47  ;;  %v427_v3 = vadd.f32 %v581_v63, %v426_v2 }
 0x11a   : > { %v358_v50 = vmul.f32 %v579_v38, %v357_v48 }
 0x11b   : > { %549 = vmatmul.msk.f32.vlgmr.msra.gmra.mxu0 %vm313_vm0, %v373_v49  ;;  %v429_v4 = vsel %vm428_vm9, %v581_v63, %v427_v3 }
 0x11c   : > { %v362_v51 = vsel %vm361_vm7, %v579_v38, %v358_v50 }
 0x11d   : > { %v364_v52 = vmul.f32 %v362_v51, %v330_v18 }
 0x11f   : > { %v369_v53 = vmul.f32 %v569_v41, %v364_v52 }
 0x121   : > { %v374_v54 = vadd.f32 %v570_v45, %v369_v53 }
 0x123   : > { %550 = vmatmul.msk.f32.vlgmr.msra.gmra.mxu1 %vm313_vm0, %v374_v54 }
 0x198   : > { %v408_v56 = vpop.f32.mrf.mxu0 }
 0x199   : > { %v409_v57 = vadd.f32 %v571_v55, %v408_v56 }
 0x19b   : > { %v417_v58 = vsel %vm416_vm8, %v409_v57, 0.0 }
 0x19c   : > { %418 = vadd.xlane.f32.xlu2 %v417_v58 }
 0x1a0   : > { %v411_v59 = vpop.f32.mrf.mxu1 }
 0x1a1   : > { %v412_v60 = vadd.f32 %v571_v55, %v411_v59 }
 0x1a3   : > { %v420_v61 = vsel %vm416_vm8, %v412_v60, 0.0 }
 0x1a4   : > { %421 = vadd.xlane.f32.xlu2 %v420_v61 }
 0x20f   : > { %v419_v5 = vpop.xlane.xlu2 %418 }
 0x210   : > { %v430_v6 = vmul.f32 %v429_v4, %v419_v5 }
 0x212   : > { %v432_v7 = vsub.f32 %v409_v57, %v430_v6 }
 0x214   : > { %v434_v8 = vmul.f32 %v432_v7, %v432_v7 }
 0x216   : > { %v436_v9 = vsel %vm416_vm8, %v434_v8, 0.0 }
 0x217   : > { %437 = vadd.xlane.f32.xlu0 %v436_v9  ;;  %v422_v10 = vpop.xlane.xlu2 %421 }
 0x218   : > { %v431_v11 = vmul.f32 %v429_v4, %v422_v10 }
 0x21a   : > { %v433_v12 = vsub.f32 %v412_v60, %v431_v11 }
 0x21c   : > { %v435_v13 = vmul.f32 %v433_v12, %v433_v12 }
 0x21e   : > { %v439_v14 = vsel %vm416_vm8, %v435_v13, 0.0 }
 0x21f   : > { %440 = vadd.xlane.f32.xlu1 %v439_v14 }
 0x28a   : > { %v438_v15 = vpop.xlane.xlu0 %437 }
 0x28b   : > { %v442_v16 = vmul.f32 %v438_v15, %v429_v4 }
 0x28d   : > { %v444_v17 = vadd.f32 1e-05, %v442_v16 }
 0x28f   : > { %582 = vrsqrt.f32 %v444_v17  ;;  %vm452_vm11 = vweird.f32 %v444_v17 }
 0x292   : > { %v441_v18 = vpop.xlane.xlu1 %440 }
 0x293   : > { %v443_v19 = vmul.f32 %v441_v18, %v429_v4 }
 0x295   : > { %v583_v20 = vpop.eup %582  ;;  %v445_v21 = vadd.f32 1e-05, %v443_v19 }
 0x296   : > { %v447_v22 = vmul.f32 %v583_v20, %v444_v17  ;;  %vm453_vm10 = vweird.f32 %v583_v20 }
 0x297   : > { %584 = vrsqrt.f32 %v445_v21  ;;  %vm454_vm12 = vmor %vm452_vm11, %vm453_vm10  ;;  %vm462_vm14 = vweird.f32 %v445_v21 }
 0x298   : > { %v448_v23 = vmul.f32 %v583_v20, %v447_v22 }
 0x29a   : > { %v449_v24 = vmul.f32 0.5, %v448_v23 }
 0x29c   : > { %v450_v25 = vsub.f32 1.5, %v449_v24 }
 0x29d   : > { %v585_v26 = vpop.eup %584 }
 0x29e   : > { %v451_v27 = vmul.f32 %v583_v20, %v450_v25  ;;  %v457_v28 = vmul.f32 %v585_v26, %v445_v21  ;;  %vm463_vm13 = vweird.f32 %v585_v26 }
 0x29f   : > { %vm464_vm15 = vmor %vm462_vm14, %vm463_vm13 }
 0x2a0   : > { %v455_v30 = vsel %vm454_vm12, %v583_v20, %v451_v27  ;;  %v458_v31 = vmul.f32 %v585_v26, %v457_v28 }
 0x2a1   : > { %v466_v33 = vmul.f32 %v455_v30, %v432_v7 }
 0x2a2   : > { %v459_v34 = vmul.f32 0.5, %v458_v31 }
 0x2a3   : > { %v471_v35 = vmul.f32 %v572_v29, %v466_v33 }
 0x2a4   : > { %v460_v37 = vsub.f32 1.5, %v459_v34 }
 0x2a5   : > { %v476_v38 = vadd.f32 %v573_v32, %v471_v35 }
 0x2a6   : > { %v461_v39 = vmul.f32 %v585_v26, %v460_v37 }
 0x2a7   : > { %v480_v40 = vadd.f32 %v478_v36, %v476_v38 }
 0x2a8   : > { %v465_v41 = vsel %vm464_vm15, %v585_v26, %v461_v39 }
 0x2a9   : > { %482 = vst.msk [vmem:[%s307_s19] sm:$0xff] %vm416_vm8, %v480_v40  ;;  %v467_v42 = vmul.f32 %v465_v41, %v433_v12 }
 0x2ab   : > { %v472_v43 = vmul.f32 %v572_v29, %v467_v42 }
 0x2ad   : > { %v477_v45 = vadd.f32 %v573_v32, %v472_v43 }
 0x2af   : > { %v481_v46 = vadd.f32 %v479_v44, %v477_v45 }
 0x2b1   : > { %483 = vst.msk [vmem:[%s307_s19 + $0x8] sm:$0xff] %vm416_vm8, %v481_v46 }
 0x2b2 PF: > { %s18_s27 = sadd.s32 1, %s592_s27  }
 0x2b3   : > { %p15_p4 = scmp.ge.s32.totalorder %s18_s27, 4  }
 0x2b5   :  { %17 = sbr.rel (!%p15_p4) target bundleno = 1 (0x1), region = 82 }

// kernel: _lambda_.11
= control target key start
LH: loop header
LB: loop body
LE: loop exit
PB: predicated region body
PF: predicated region fallthrough
CT: control target
= control target key end

     0   :  { %10 = vsyncpa [#allocation3], 0  ;;  %s637_s0 = inlined_call_operand.vmem [shape: f32[2,16,32], index: 0, kind: input, shape index: {}]   ;;  %s638_s1 = inlined_call_operand.vmem [shape: f32[1,32], index: 1, kind: input, shape index: {}]   ;;  %s639_s2 = inlined_call_operand.vmem [shape: f32[1,32], index: 2, kind: input, shape index: {}]   ;;  %s640_s3 = inlined_call_operand.vmem [shape: f32[32,10], index: 3, kind: input, shape index: {}]   ;;  %s641_s4 = inlined_call_operand.vmem [shape: f32[1,10], index: 4, kind: input, shape index: {}]   ;;  %s642_s5 = inlined_call_operand.hbm [shape: f32[2,1,10], index: 5, kind: output, shape index: {}]  }
   0x1   :  { %12 = vsyncpa [#allocation3 + $0x1], 0  ;;  %s526_s18 = smov 0   ;;  %s528_s19 = smov 0  }
   0x2   :  { %s530_s20 = smov 0   ;;  %s532_s21 = smov 0  }
   0x3 LB: > { %s547_s22 = sadd.s32 4294967295, %s492_s21   ;;  %s373_s23 = sadd.s32 4294967294, %s492_s21   ;;  %s492_s21 = sphi %s532_s21, %s648_s21   ;;  %s488_s20 = sphi %s530_s20, %s647_s20   ;;  %s484_s19 = sphi %s528_s19, %s646_s19   ;;  %s480_s18 = sphi %s526_s18, %s645_s18  }
   0x4   : > { %s551_s24 = sadd.s32 1, %s492_s21   ;;  %s135_s25 = sadd.s32 1, %s488_s20 }
   0x5   : > { %s132_s26 = ssub.s32 %s492_s21, %s551_s24  ;;  %p145_p0 = scmp.ne.s32.totalorder %s488_s20, %s484_s19 }
   0x6   : > { %p133_p1 = scmp.eq.s32.totalorder %s132_s26, 0  ;;  %p146_p2 = scmp.eq.s32.totalorder %s547_s22, 1 }
   0x7   : > { %p151_p3 = scmp.ne.s32.totalorder %s484_s19, %s480_s18  ;;  %p152_p4 = scmp.eq.s32.totalorder %s373_s23, 1 }
   0x8   : > { %s562_s27 = scalar_select %p133_p1, %s488_s20, %s135_s25  }
   0x9   : > { %p564_p5 = por %p146_p2, %p145_p0  ;;  %p568_p6 = por %p152_p4, %p151_p3 }
   0xa   : > { %p376_p7 = scmp.ge.s32.totalorder %s492_s21, 1  ;;  %p190_p8 = scmp.lt.s32.totalorder %s492_s21, 3 }
   0xc   : > { %p191_p9 = pnand %p376_p7, %p190_p8 }
   0xd   : > { %p217_p10 = scmp.lt.s32.totalorder (!%p191_p9), %s547_s22, 1  ;;  %s450_s25 = scalar_lea.hbm (!%p191_p9), %s642_s5, 2 }
   0xe   : > { %194 = sbr.rel (%p191_p9) target bundleno = 440 (0x1b8), region = 40 }
  0x13   : > { %v494_v0 = vmov 16.0   ;;  %s218_s30 = scalar_select %p217_p10, %s547_s22, 1  ;;  %vm224_vm0 = vcmask 261120   ;;  %v495_v20 = vmov 32.0   ;;  %v278_v32 = vld [vmem:[%s640_s3 + $0x18] sm:$0xff]  ;;  %v277_v33 = vld [vmem:[%s640_s3 + $0x10] sm:$0xff] }
  0x14   : > { %424 = vrcp.f32 %v494_v0  ;;  %295 = vmatpush.msra.mxu0 %v278_v32  ;;  %v276_v34 = vld [vmem:[%s640_s3 + $0x8] sm:$0xff]  ;;  %v275_v35 = vld [vmem:[%s640_s3] sm:$0xff]  ;;  %vm303_vm6 = vcmask 73728  }
  0x15   : > { %s382_s6 = sshll.u32 %s218_s30, 4  ;;  %426 = vrcp.f32 %v495_v20  ;;  %v242_v46 = vld [vmem:[%s638_s1] sm:$0x1] }
  0x16   : > { %s221_s9 = scalar_lea.vmem %s637_s0, %s382_s6  ;;  %296 = vmatpush.msra.mxu0 %v277_v33  ;;  %v243_v48 = vld [vmem:[%s639_s2] sm:$0x1]  ;;  %s215_s6 = sand.u32 1, %s484_s19  }
  0x17   : > { %v222_v1 = vld [vmem:[%s221_s9] sm:$0xff]  ;;  %v223_v2 = vld [vmem:[%s221_s9 + $0x8] sm:$0xff]  ;;  %s314_s9 = scalar_lea.hbm %s642_s5, %s547_s22  ;;  %s216_s12 = scalar_lea.vmem [#allocation2], %s215_s6 }
  0x18   : > { %v225_v4 = vsel %vm224_vm0, %v222_v1, 0.0  ;;  %v226_v5 = vsel %vm224_vm0, %v223_v2, 0.0  ;;  %297 = vmatpush.msra.mxu0 %v276_v34  ;;  %v279_v51 = vld [vmem:[%s641_s4] sm:$0x1]  ;;  %s316_s13 = sshll.u32 %s216_s12, 4  ;;  %s318_s14 = sshll.u32 %s314_s9, 4  ;;  %s317_s13 = int_to_ptr.vmem [resolvable:$true] %s316_s13  ;;  %s319_s14 = int_to_ptr.hbm [resolvable:$true] %s318_s14 }
  0x19   : > { %v227_v6 = vadd.f32 %v226_v5, %v225_v4  ;;  %s306_s15 = scalar_lea.sflag [#allocation3], %s215_s6  ;;  %s444_s16 = sshra.s32 %s319_s14, 4  ;;  %s445_s16 = int_to_ptr.hbm [resolvable:$true] %s444_s16 }
  0x1a   : > { %v425_v3 = vpop.eup %424  ;;  %298 = vmatpush.msra.mxu0 %v275_v35  ;;  %s446_s17 = scalar_lea.hbm %s445_s16, 1  ;;  %p451_p0 = scmp.lt.s32.totalorder %s445_s16, %s642_s5 }
  0x1b   : > { %v235_v7 = vmul.f32 16.0, %v425_v3  ;;  %v228_v8 = vrot.slane %v227_v6, 4  ;;  %vm239_vm1 = vweird.f32 %v425_v3  ;;  %v427_v21 = vpop.eup %426  ;;  %p447_p11 = scmp.ne.s32.totalorder %s445_s16, %s446_s17  ;;  %p452_p1 = scmp.lt.s32.totalorder %s450_s25, %s446_s17 }
  0x1c   : > { %v248_v22 = vmul.f32 32.0, %v427_v21  ;;  %vm252_vm2 = vweird.f32 %v427_v21 }
  0x1d   : > { %v236_v9 = vsub.f32 1.0, %v235_v7  ;;  %v229_v10 = vadd.f32 %v228_v8, %v227_v6  ;;  %p448_p12 = pnand %p447_p11, %p564_p5  ;;  %p453_p2 = por %p452_p1, %p451_p0 }
  0x1e   : > { %v249_v23 = vsub.f32 1.0, %v248_v22 }
  0x1f   : > { %v237_v11 = vmul.f32 %v425_v3, %v236_v9  ;;  %v230_v12 = vrot.slane %v229_v10, 2  ;;  %p449_p13 = pneg %p448_p12 }
  0x20   : > { %v250_v24 = vmul.f32 %v427_v21, %v249_v23 }
  0x21   : > { %v238_v13 = vadd.f32 %v425_v3, %v237_v11  ;;  %v231_v14 = vadd.f32 %v230_v12, %v229_v10  ;;  %p454_p3 = pnand %p453_p2, %p449_p13 }
  0x22   : > { %v251_v25 = vadd.f32 %v427_v21, %v250_v24 }
  0x23   : > { %v232_v15 = vrot.slane %v231_v14, 1  ;;  %v240_v16 = vsel %vm239_vm1, %v425_v3, %v238_v13 }
  0x24   : > { %v253_v26 = vsel %vm252_vm2, %v427_v21, %v251_v25 }
  0x25   : > { %v233_v17 = vadd.f32 %v232_v15, %v231_v14 }
  0x27   : > { %v241_v18 = vmul.f32 %v240_v16, %v233_v17 }
  0x29   : > { %v244_v19 = vsel %vm224_vm0, %v241_v18, 0.0 }
  0x2a   : > { %245 = vadd.xlane.f32.xlu0 %v244_v19 }
  0x9d   : > { %v246_v27 = vpop.xlane.xlu0 %245 }
  0x9e   : > { %v254_v28 = vmul.f32 %v253_v26, %v246_v27 }
  0xa0   : > { %v255_v29 = vsub.f32 %v241_v18, %v254_v28 }
  0xa2   : > { %v256_v30 = vmul.f32 %v255_v29, %v255_v29 }
  0xa4   : > { %v257_v31 = vsel %vm224_vm0, %v256_v30, 0.0 }
  0xa5   : > { %258 = vadd.xlane.f32.xlu0 %v257_v31 }
 0x118   : > { %v259_v36 = vpop.xlane.xlu0 %258 }
 0x119   : > { %v260_v37 = vmul.f32 %v259_v36, %v253_v26 }
 0x11b   : > { %v261_v38 = vadd.f32 1e-05, %v260_v37 }
 0x11d   : > { %428 = vrsqrt.f32 %v261_v38  ;;  %vm268_vm4 = vweird.f32 %v261_v38 }
 0x123   : > { %v429_v39 = vpop.eup %428 }
 0x124   : > { %v263_v40 = vmul.f32 %v429_v39, %v261_v38  ;;  %vm269_vm3 = vweird.f32 %v429_v39 }
 0x125   : > { %vm270_vm5 = vmor %vm268_vm4, %vm269_vm3 }
 0x126   : > { %v264_v41 = vmul.f32 %v429_v39, %v263_v40 }
 0x128   : > { %v265_v42 = vmul.f32 0.5, %v264_v41 }
 0x12a   : > { %v266_v43 = vsub.f32 1.5, %v265_v42 }
 0x12c   : > { %v267_v44 = vmul.f32 %v429_v39, %v266_v43 }
 0x12e   : > { %v271_v45 = vsel %vm270_vm5, %v429_v39, %v267_v44 }
 0x12f   : > { %v272_v47 = vmul.f32 %v271_v45, %v255_v29 }
 0x131   : > { %v273_v49 = vmul.f32 %v272_v47, %v242_v46 }
 0x133   : > { %v274_v50 = vadd.f32 %v273_v49, %v243_v48 }
 0x135   : > { %379 = vmatmul.msk.f32.vlgmr.msra.gmra.mxu0 %vm224_vm0, %v274_v50 }
 0x1b2   : > { %v300_v52 = vpop.f32.mrf.mxu0 }
 0x1b3   : > { %v301_v53 = vadd.f32 %v300_v52, %v279_v51 }
 0x1b5   : > { %304 = vst.msk [vmem:[%s216_s12] sm:$0x1] %vm303_vm6, %v301_v53 }
 0x1b6   : > { %457 = shalt.err (!%p454_p3)
}
 0x1b7   : > { %383 = dma.vmem_to_hbm [thread:$0]  (%p564_p5), %s317_s13, 16, %s319_s14, %s306_s15  }
 0x1b8 PF: > { %p389_p4 = scmp.ge.s32.totalorder %s492_s21, 2  ;;  %s330_s6 = sand.u32 1, %s480_s18  }
 0x1b9   : > { %s331_s7 = scalar_lea.sflag [#allocation3], %s330_s6 }
 0x1ba   : > { %p386_p7 = pnand %p389_p4, %p568_p6 }
 0x1bc   : > { %p387_p8 = pneg %p386_p7 }
 0x1be   : > { %475 = dma.done.wait (%p387_p8), %s331_s7, 16  }
 0x1bf   : > { %477 = vsyncadd (%p387_p8), %s331_s7, 4294967280  ;;  %p15_p9 = scmp.ge.s32.totalorder %s551_s24, 4   ;;  %s645_s18 = smov %s484_s19 }
 0x1c0   : > { %s646_s19 = smov %s488_s20  ;;  %s647_s20 = smov %s562_s27 }
 0x1c1   : > { %s648_s21 = smov %s551_s24  ;;  %17 = sbr.rel (!%p15_p9) target bundleno = 3 (0x3), region = 75 }
 0x1c6   :  { %336 = vsyncpa [#allocation3], 1 }
 0x1c7   :  { %338 = vsyncpa [#allocation3 + $0x1], 1 }

// kernel: _lambda_.8
= control target key start
LH: loop header
LB: loop body
LE: loop exit
PB: predicated region body
PF: predicated region fallthrough
CT: control target
= control target key end

     0   :  { %s1737_s29 = smov 0   ;;  %s2151_s0 = inlined_call_operand.vmem [shape: f32[2,16,32], index: 0, kind: input, shape index: {}]   ;;  %s2152_s1 = inlined_call_operand.vmem [shape: f32[1,32], index: 1, kind: input, shape index: {}]   ;;  %s2153_s2 = inlined_call_operand.vmem [shape: f32[1,32], index: 2, kind: input, shape index: {}, may-alias: {2,8}]   ;;  %s2154_s3 = inlined_call_operand.vmem [shape: f32[1,32], index: 3, kind: input, shape index: {}, may-alias: {3,7,9,13}]   ;;  %s2155_s4 = inlined_call_operand.vmem [shape: f32[32,16], index: 4, kind: input, shape index: {}]   ;;  %s2156_s5 = inlined_call_operand.vmem [shape: f32[1,16], index: 5, kind: input, shape index: {}]   ;;  %s2157_s6 = inlined_call_operand.vmem [shape: f32[16,32], index: 6, kind: input, shape index: {}]   ;;  %s2158_s7 = inlined_call_operand.vmem [shape: f32[1,32], index: 7, kind: input, shape index: {}, may-alias: {3,7,9,13}]   ;;  %s2159_s8 = inlined_call_operand.vmem [shape: f32[1,32], index: 8, kind: input, shape index: {}, may-alias: {2,8}]   ;;  %s2160_s9 = inlined_call_operand.vmem [shape: f32[1,32], index: 9, kind: input, shape index: {}, may-alias: {3,7,9,13}]   ;;  %s2161_s10 = inlined_call_operand.vmem [shape: f32[32,128], index: 10, kind: input, shape index: {}]   ;;  %s2162_s11 = inlined_call_operand.vmem [shape: f32[1,128], index: 11, kind: input, shape index: {}]   ;;  %s2163_s12 = inlined_call_operand.vmem [shape: f32[128,32], index: 12, kind: input, shape index: {}]   ;;  %s2164_s13 = inlined_call_operand.vmem [shape: f32[1,32], index: 13, kind: input, shape index: {}, may-alias: {3,7,9,13}]   ;;  %s2165_s14 = inlined_call_operand.vmem [shape: f32[2,16,32], index: 14, kind: output, shape index: {}]  }
   0x1 LB: > { %s1488_s30 = sadd.s32 4294967295, %s1658_s29   ;;  %p1492_p0 = scmp.ge.s32.totalorder %s1658_s29, 1  ;;  %s1658_s29 = sphi %s1737_s29, %s24_s29  }
   0x2   : > { %p412_p1 = scmp.lt.s32.totalorder %s1658_s29, 3 }
   0x4   : > { %p413_p2 = pnand %p1492_p0, %p412_p1 }
   0x5   : > { %p458_p3 = scmp.lt.s32.totalorder (!%p413_p2), %s1488_s30, 1 }
   0x6   : > { %416 = sbr.rel (%p413_p2) target bundleno = 8254 (0x203e), region = 76 }
   0xb   : > { %s2167_s30 = smov (!%p458_p3, %s1488_s30), 1  ;;  %vm472_vm0 = vcmask 261120   ;;  %v633_v2 = vld [vmem:[%s2152_s1] sm:$0x1]  ;;  %vm666_vm1 = vcmask 122880  }
   0xc   : > { %s1534_s15 = sshll.u32 %s2167_s30, 4 }
   0xd   : > { %s1753_s18 = scalar_lea.vmem %s2151_s0, %s1534_s15 }
   0xe   : > { %v1756_v0 = vld [vmem:[%s1753_s18 + $0x8] sm:$0xff]  ;;  %v1761_v1 = vld [vmem:[%s1753_s18] sm:$0xff] }
   0xf   : > { %1501 = vmatpush.xpose.msk.msra.mxu2 %vm472_vm0, %v1756_v0 }
  0x13   : > { %1502 = vmatpush.xpose.msk.msra.mxu2 %vm472_vm0, %v1761_v1 }
  0x16   : > { %1503 = vmatmul.msk.f32.vlgmr.msra.gmra.mxu2 %vm472_vm0, %v633_v2 }
  0x99   : > { %v1769_v3 = vpop.f32.mrf.mxu2 }
  0x9a   : > { %v663_v4 = vsub.f32 0.0, %v1769_v3 }
  0x9c   : > { %v664_v5 = vadd.f32 %v663_v4, %v1769_v3 }
  0x9e   : > { %v665_v6 = vmul.f32 0.25, %v664_v5 }
  0xa0   : > { %v667_v7 = vsel %vm666_vm1, %v665_v6, -inf }
  0xa1   : > { %668 = vmax.xlane.f32.xlu0 %v667_v7 }
 0x114   : > { %v669_v8 = vpop.xlane.xlu0 %668 }
 0x115   : > { %v670_v9 = vsub.f32 %v665_v6, %v669_v8 }
 0x117   : > { %v671_v10 = vmul.f32 1.442695, %v670_v9 }
 0x119   : > { %1554 = vpow2.f32 %v671_v10 }
 0x11f   : > { %v1555_v11 = vpop.eup %1554 }
 0x120   : > { %v673_v12 = vsel %vm666_vm1, %v1555_v11, 0.0 }
 0x121   : > { %674 = vadd.xlane.f32.xlu0 %v673_v12 }
 0x194   : > { %v675_v13 = vpop.xlane.xlu0 %674 }
 0x195   : > { %1556 = vlog2.f32 %v675_v13 }
 0x19b   : > { %v1557_v14 = vpop.eup %1556 }
 0x19c   : > { %v677_v15 = vmul.f32 0.6931472, %v1557_v14 }
 0x19e   : > { %v678_v16 = vadd.f32 %v677_v15, %v669_v8 }
 0x1a0   : > { %v679_v17 = vsub.f32 2.1972246, %v678_v16 }
 0x1a2   : > { %v680_v18 = vmul.f32 4.0, %v679_v17 }
 0x1a4   : > { %v681_v19 = vadd.f32 %v680_v18, %v1769_v3 }
 0x1a6   : > { %v682_v20 = vmax.f32 %v681_v19, 0.0 }
 0x1a8   : > { %v683_v21 = vsub.f32 0.0, %v682_v20 }
 0x1aa   : > { %v684_v22 = vadd.f32 %v683_v21, %v1769_v3 }
 0x1ac   : > { %v685_v23 = vmul.f32 0.35714287, %v684_v22 }
 0x1ae   : > { %v686_v24 = vsel %vm666_vm1, %v685_v23, -inf }
 0x1af   : > { %687 = vmax.xlane.f32.xlu1 %v686_v24 }
 0x222   : > { %v688_v25 = vpop.xlane.xlu1 %687 }
 0x223   : > { %v689_v26 = vsub.f32 %v685_v23, %v688_v25 }
 0x225   : > { %v690_v27 = vmul.f32 1.442695, %v689_v26 }
 0x227   : > { %1558 = vpow2.f32 %v690_v27 }
 0x22d   : > { %v1559_v28 = vpop.eup %1558 }
 0x22e   : > { %v692_v29 = vsel %vm666_vm1, %v1559_v28, 0.0 }
 0x22f   : > { %693 = vadd.xlane.f32.xlu1 %v692_v29 }
 0x2a2   : > { %v694_v30 = vpop.xlane.xlu1 %693 }
 0x2a3   : > { %1560 = vlog2.f32 %v694_v30 }
 0x2a9   : > { %v1561_v31 = vpop.eup %1560 }
 0x2aa   : > { %v696_v32 = vmul.f32 0.6931472, %v1561_v31 }
 0x2ac   : > { %v697_v33 = vadd.f32 %v696_v32, %v688_v25 }
 0x2ae   : > { %v698_v34 = vsub.f32 2.1972246, %v697_v33 }
 0x2b0   : > { %v699_v35 = vmul.f32 2.8, %v698_v34 }
 0x2b2   : > { %v700_v36 = vadd.f32 %v699_v35, %v1769_v3 }
 0x2b4   : > { %v701_v37 = vmax.f32 %v700_v36, 0.0 }
 0x2b6   : > { %v702_v38 = vsub.f32 0.0, %v701_v37 }
 0x2b8   : > { %v703_v39 = vadd.f32 %v702_v38, %v1769_v3 }
 0x2ba   : > { %v704_v40 = vmul.f32 0.5102041, %v703_v39 }
 0x2bc   : > { %v705_v41 = vsel %vm666_vm1, %v704_v40, -inf }
 0x2bd   : > { %706 = vmax.xlane.f32.xlu2 %v705_v41 }
 0x330   : > { %v707_v42 = vpop.xlane.xlu2 %706 }
 0x331   : > { %v708_v43 = vsub.f32 %v704_v40, %v707_v42 }
 0x333   : > { %v709_v44 = vmul.f32 1.442695, %v708_v43 }
 0x335   : > { %1562 = vpow2.f32 %v709_v44 }
 0x33b   : > { %v1563_v45 = vpop.eup %1562 }
 0x33c   : > { %v711_v46 = vsel %vm666_vm1, %v1563_v45, 0.0 }
 0x33d   : > { %712 = vadd.xlane.f32.xlu2 %v711_v46 }
 0x3b0   : > { %v713_v47 = vpop.xlane.xlu2 %712 }
 0x3b1   : > { %1564 = vlog2.f32 %v713_v47 }
 0x3b7   : > { %v1565_v48 = vpop.eup %1564 }
 0x3b8   : > { %v715_v49 = vmul.f32 0.6931472, %v1565_v48 }
 0x3ba   : > { %v716_v50 = vadd.f32 %v715_v49, %v707_v42 }
 0x3bc   : > { %v717_v51 = vsub.f32 2.1972246, %v716_v50 }
 0x3be   : > { %v718_v52 = vmul.f32 1.96, %v717_v51 }
 0x3c0   : > { %v719_v53 = vadd.f32 %v718_v52, %v1769_v3 }
 0x3c2   : > { %v720_v54 = vmax.f32 %v719_v53, 0.0 }
 0x3c4   : > { %v721_v55 = vsub.f32 0.0, %v720_v54 }
 0x3c6   : > { %v722_v56 = vadd.f32 %v721_v55, %v1769_v3 }
 0x3c8   : > { %v723_v57 = vmul.f32 0.728863, %v722_v56 }
 0x3ca   : > { %v724_v58 = vsel %vm666_vm1, %v723_v57, -inf }
 0x3cb   : > { %725 = vmax.xlane.f32.xlu0 %v724_v58 }
 0x43e   : > { %v726_v59 = vpop.xlane.xlu0 %725 }
 0x43f   : > { %v727_v60 = vsub.f32 %v723_v57, %v726_v59 }
 0x441   : > { %v728_v61 = vmul.f32 1.442695, %v727_v60 }
 0x443   : > { %1566 = vpow2.f32 %v728_v61 }
 0x449   : > { %v1567_v62 = vpop.eup %1566 }
 0x44a   : > { %v730_v63 = vsel %vm666_vm1, %v1567_v62, 0.0 }
 0x44b   : > { %731 = vadd.xlane.f32.xlu1 %v730_v63 }
 0x4be   : > { %v732_v2 = vpop.xlane.xlu1 %731 }
 0x4bf   : > { %1568 = vlog2.f32 %v732_v2 }
 0x4c5   : > { %v1569_v4 = vpop.eup %1568 }
 0x4c6   : > { %v734_v5 = vmul.f32 0.6931472, %v1569_v4 }
 0x4c8   : > { %v735_v6 = vadd.f32 %v734_v5, %v726_v59 }
 0x4ca   : > { %v736_v7 = vsub.f32 2.1972246, %v735_v6 }
 0x4cc   : > { %v737_v8 = vmul.f32 1.372, %v736_v7 }
 0x4ce   : > { %v738_v9 = vadd.f32 %v737_v8, %v1769_v3 }
 0x4d0   : > { %v739_v10 = vmax.f32 %v738_v9, 0.0 }
 0x4d2   : > { %v740_v11 = vsub.f32 0.0, %v739_v10 }
 0x4d4   : > { %v741_v12 = vadd.f32 %v740_v11, %v1769_v3 }
 0x4d6   : > { %v742_v13 = vsel %vm666_vm1, %v741_v12, -inf }
 0x4d7   : > { %743 = vmax.xlane.f32.xlu2 %v742_v13 }
 0x54a   : > { %v744_v14 = vpop.xlane.xlu2 %743 }
 0x54b   : > { %v745_v15 = vsub.f32 %v741_v12, %v744_v14 }
 0x54d   : > { %v746_v16 = vmul.f32 1.442695, %v745_v15 }
 0x54f   : > { %1570 = vpow2.f32 %v746_v16 }
 0x555   : > { %v1571_v17 = vpop.eup %1570 }
 0x556   : > { %v748_v18 = vsel %vm666_vm1, %v1571_v17, 0.0 }
 0x557   : > { %749 = vadd.xlane.f32.xlu0 %v748_v18 }
 0x5ca   : > { %v750_v19 = vpop.xlane.xlu0 %749 }
 0x5cb   : > { %1572 = vlog2.f32 %v750_v19 }
 0x5d1   : > { %v1573_v20 = vpop.eup %1572 }
 0x5d2   : > { %v752_v21 = vmul.f32 0.6931472, %v1573_v20 }
 0x5d4   : > { %v753_v22 = vadd.f32 %v752_v21, %v744_v14 }
 0x5d6   : > { %v754_v23 = vsub.f32 2.1972246, %v753_v22 }
 0x5d8   : > { %v755_v24 = vadd.f32 %v754_v23, %v1769_v3 }
 0x5da   : > { %v756_v25 = vmax.f32 %v755_v24, 0.0 }
 0x5dc   : > { %v757_v26 = vsub.f32 0.0, %v756_v25 }
 0x5de   : > { %v758_v27 = vadd.f32 %v757_v26, %v1769_v3 }
 0x5e0   : > { %v759_v28 = vsel %vm666_vm1, %v758_v27, -inf }
 0x5e1   : > { %760 = vmax.xlane.f32.xlu1 %v759_v28 }
 0x654   : > { %v761_v29 = vpop.xlane.xlu1 %760 }
 0x655   : > { %v762_v30 = vsub.f32 %v758_v27, %v761_v29 }
 0x657   : > { %v763_v31 = vmul.f32 1.442695, %v762_v30 }
 0x659   : > { %1574 = vpow2.f32 %v763_v31 }
 0x65f   : > { %v1575_v32 = vpop.eup %1574 }
 0x660   : > { %v765_v33 = vsel %vm666_vm1, %v1575_v32, 0.0 }
 0x661   : > { %766 = vadd.xlane.f32.xlu2 %v765_v33 }
 0x6d4   : > { %v767_v34 = vpop.xlane.xlu2 %766 }
 0x6d5   : > { %1576 = vlog2.f32 %v767_v34 }
 0x6db   : > { %v1577_v35 = vpop.eup %1576 }
 0x6dc   : > { %v769_v36 = vmul.f32 0.6931472, %v1577_v35 }
 0x6de   : > { %v770_v37 = vadd.f32 %v769_v36, %v761_v29 }
 0x6e0   : > { %v771_v38 = vsub.f32 2.1972246, %v770_v37 }
 0x6e2   : > { %v772_v39 = vadd.f32 %v771_v38, %v1769_v3 }
 0x6e4   : > { %v773_v40 = vmax.f32 %v772_v39, 0.0 }
 0x6e6   : > { %v774_v41 = vsub.f32 0.0, %v773_v40 }
 0x6e8   : > { %v775_v42 = vadd.f32 %v774_v41, %v1769_v3 }
 0x6ea   : > { %v776_v43 = vsel %vm666_vm1, %v775_v42, -inf }
 0x6eb   : > { %777 = vmax.xlane.f32.xlu0 %v776_v43 }
 0x75e   : > { %v778_v44 = vpop.xlane.xlu0 %777 }
 0x75f   : > { %v779_v45 = vsub.f32 %v775_v42, %v778_v44 }
 0x761   : > { %v780_v46 = vmul.f32 1.442695, %v779_v45 }
 0x763   : > { %1578 = vpow2.f32 %v780_v46 }
 0x769   : > { %v1579_v47 = vpop.eup %1578 }
 0x76a   : > { %v782_v48 = vsel %vm666_vm1, %v1579_v47, 0.0 }
 0x76b   : > { %783 = vadd.xlane.f32.xlu1 %v782_v48 }
 0x7de   : > { %v784_v49 = vpop.xlane.xlu1 %783 }
 0x7df   : > { %1580 = vlog2.f32 %v784_v49 }
 0x7e5   : > { %v1581_v50 = vpop.eup %1580 }
 0x7e6   : > { %v786_v51 = vmul.f32 0.6931472, %v1581_v50 }
 0x7e8   : > { %v787_v52 = vadd.f32 %v786_v51, %v778_v44 }
 0x7ea   : > { %v788_v53 = vsub.f32 2.1972246, %v787_v52 }
 0x7ec   : > { %v789_v54 = vadd.f32 %v788_v53, %v1769_v3 }
 0x7ee   : > { %v790_v55 = vmax.f32 %v789_v54, 0.0 }
 0x7f0   : > { %v791_v56 = vsub.f32 0.0, %v790_v55 }
 0x7f2   : > { %v792_v57 = vadd.f32 %v791_v56, %v1769_v3 }
 0x7f4   : > { %v793_v58 = vsel %vm666_vm1, %v792_v57, -inf }
 0x7f5   : > { %794 = vmax.xlane.f32.xlu2 %v793_v58 }
 0x868   : > { %v795_v59 = vpop.xlane.xlu2 %794 }
 0x869   : > { %v796_v60 = vsub.f32 %v792_v57, %v795_v59 }
 0x86b   : > { %v797_v61 = vmul.f32 1.442695, %v796_v60 }
 0x86d   : > { %1582 = vpow2.f32 %v797_v61 }
 0x873   : > { %v1583_v62 = vpop.eup %1582 }
 0x874   : > { %v799_v63 = vsel %vm666_vm1, %v1583_v62, 0.0 }
 0x875   : > { %800 = vadd.xlane.f32.xlu0 %v799_v63 }
 0x8e8   : > { %v801_v2 = vpop.xlane.xlu0 %800 }
 0x8e9   : > { %1584 = vlog2.f32 %v801_v2 }
 0x8ef   : > { %v1585_v4 = vpop.eup %1584 }
 0x8f0   : > { %v803_v5 = vmul.f32 0.6931472, %v1585_v4 }
 0x8f2   : > { %v804_v6 = vadd.f32 %v803_v5, %v795_v59 }
 0x8f4   : > { %v805_v7 = vsub.f32 2.1972246, %v804_v6 }
 0x8f6   : > { %v806_v8 = vadd.f32 %v805_v7, %v1769_v3 }
 0x8f8   : > { %v807_v9 = vmax.f32 %v806_v8, 0.0 }
 0x8fa   : > { %v808_v10 = vsub.f32 0.0, %v807_v9 }
 0x8fc   : > { %v809_v11 = vadd.f32 %v808_v10, %v1769_v3 }
 0x8fe   : > { %v810_v12 = vsel %vm666_vm1, %v809_v11, -inf }
 0x8ff   : > { %811 = vmax.xlane.f32.xlu1 %v810_v12 }
 0x972   : > { %v812_v13 = vpop.xlane.xlu1 %811 }
 0x973   : > { %v813_v14 = vsub.f32 %v809_v11, %v812_v13 }
 0x975   : > { %v814_v15 = vmul.f32 1.442695, %v813_v14 }
 0x977   : > { %1586 = vpow2.f32 %v814_v15 }
 0x97d   : > { %v1587_v16 = vpop.eup %1586 }
 0x97e   : > { %v816_v17 = vsel %vm666_vm1, %v1587_v16, 0.0 }
 0x97f   : > { %817 = vadd.xlane.f32.xlu2 %v816_v17 }
 0x9f2   : > { %v818_v18 = vpop.xlane.xlu2 %817 }
 0x9f3   : > { %1588 = vlog2.f32 %v818_v18 }
 0x9f9   : > { %v1589_v19 = vpop.eup %1588 }
 0x9fa   : > { %v820_v20 = vmul.f32 0.6931472, %v1589_v19 }
 0x9fc   : > { %v821_v21 = vadd.f32 %v820_v20, %v812_v13 }
 0x9fe   : > { %v822_v22 = vsub.f32 2.1972246, %v821_v21 }
 0xa00   : > { %v823_v23 = vadd.f32 %v822_v22, %v1769_v3 }
 0xa02   : > { %v824_v24 = vmax.f32 %v823_v23, 0.0 }
 0xa04   : > { %v825_v25 = vsub.f32 0.0, %v824_v24 }
 0xa06   : > { %v826_v26 = vadd.f32 %v825_v25, %v1769_v3 }
 0xa08   : > { %v827_v27 = vsel %vm666_vm1, %v826_v26, -inf }
 0xa09   : > { %828 = vmax.xlane.f32.xlu0 %v827_v27 }
 0xa7c   : > { %v829_v28 = vpop.xlane.xlu0 %828 }
 0xa7d   : > { %v830_v29 = vsub.f32 %v826_v26, %v829_v28 }
 0xa7f   : > { %v831_v30 = vmul.f32 1.442695, %v830_v29 }
 0xa81   : > { %1590 = vpow2.f32 %v831_v30 }
 0xa87   : > { %v1591_v31 = vpop.eup %1590 }
 0xa88   : > { %v833_v32 = vsel %vm666_vm1, %v1591_v31, 0.0 }
 0xa89   : > { %834 = vadd.xlane.f32.xlu1 %v833_v32 }
 0xafc   : > { %v835_v33 = vpop.xlane.xlu1 %834 }
 0xafd   : > { %1592 = vlog2.f32 %v835_v33 }
 0xb03   : > { %v1593_v34 = vpop.eup %1592 }
 0xb04   : > { %v837_v35 = vmul.f32 0.6931472, %v1593_v34 }
 0xb06   : > { %v838_v36 = vadd.f32 %v837_v35, %v829_v28 }
 0xb08   : > { %v839_v37 = vsub.f32 2.1972246, %v838_v36 }
 0xb0a   : > { %v840_v38 = vadd.f32 %v839_v37, %v1769_v3 }
 0xb0c   : > { %v841_v39 = vmax.f32 %v840_v38, 0.0 }
 0xb0e   : > { %v842_v40 = vsub.f32 0.0, %v841_v39 }
 0xb10   : > { %v843_v41 = vadd.f32 %v842_v40, %v1769_v3 }
 0xb12   : > { %v844_v42 = vsel %vm666_vm1, %v843_v41, -inf }
 0xb13   : > { %845 = vmax.xlane.f32.xlu2 %v844_v42 }
 0xb86   : > { %v846_v43 = vpop.xlane.xlu2 %845 }
 0xb87   : > { %v847_v44 = vsub.f32 %v843_v41, %v846_v43 }
 0xb89   : > { %v848_v45 = vmul.f32 1.442695, %v847_v44 }
 0xb8b   : > { %1594 = vpow2.f32 %v848_v45 }
 0xb91   : > { %v1595_v46 = vpop.eup %1594 }
 0xb92   : > { %v850_v47 = vsel %vm666_vm1, %v1595_v46, 0.0 }
 0xb93   : > { %851 = vadd.xlane.f32.xlu0 %v850_v47 }
 0xc06   : > { %v852_v48 = vpop.xlane.xlu0 %851 }
 0xc07   : > { %1596 = vlog2.f32 %v852_v48 }
 0xc0d   : > { %v1597_v49 = vpop.eup %1596 }
 0xc0e   : > { %v854_v50 = vmul.f32 0.6931472, %v1597_v49 }
 0xc10   : > { %v855_v51 = vadd.f32 %v854_v50, %v846_v43 }
 0xc12   : > { %v856_v52 = vsub.f32 2.1972246, %v855_v51 }
 0xc14   : > { %v857_v53 = vadd.f32 %v856_v52, %v1769_v3 }
 0xc16   : > { %v858_v54 = vmax.f32 %v857_v53, 0.0 }
 0xc18   : > { %v859_v55 = vsub.f32 0.0, %v858_v54 }
 0xc1a   : > { %v860_v56 = vadd.f32 %v859_v55, %v1769_v3 }
 0xc1c   : > { %v861_v57 = vsel %vm666_vm1, %v860_v56, -inf }
 0xc1d   : > { %862 = vmax.xlane.f32.xlu1 %v861_v57 }
 0xc90   : > { %v863_v58 = vpop.xlane.xlu1 %862 }
 0xc91   : > { %v864_v59 = vsub.f32 %v860_v56, %v863_v58 }
 0xc93   : > { %v865_v60 = vmul.f32 1.442695, %v864_v59 }
 0xc95   : > { %1598 = vpow2.f32 %v865_v60 }
 0xc9b   : > { %v1599_v61 = vpop.eup %1598 }
 0xc9c   : > { %v867_v62 = vsel %vm666_vm1, %v1599_v61, 0.0 }
 0xc9d   : > { %868 = vadd.xlane.f32.xlu2 %v867_v62 }
 0xd10   : > { %v869_v63 = vpop.xlane.xlu2 %868 }
 0xd11   : > { %1600 = vlog2.f32 %v869_v63 }
 0xd17   : > { %v1601_v2 = vpop.eup %1600 }
 0xd18   : > { %v871_v4 = vmul.f32 0.6931472, %v1601_v2 }
 0xd1a   : > { %v872_v5 = vadd.f32 %v871_v4, %v863_v58 }
 0xd1c   : > { %v873_v6 = vsub.f32 2.1972246, %v872_v5 }
 0xd1e   : > { %v874_v7 = vadd.f32 %v873_v6, %v1769_v3 }
 0xd20   : > { %v875_v8 = vmax.f32 %v874_v7, 0.0 }
 0xd22   : > { %v876_v9 = vsub.f32 0.0, %v875_v8 }
 0xd24   : > { %v877_v10 = vadd.f32 %v876_v9, %v1769_v3 }
 0xd26   : > { %v878_v11 = vsel %vm666_vm1, %v877_v10, -inf }
 0xd27   : > { %879 = vmax.xlane.f32.xlu0 %v878_v11 }
 0xd9a   : > { %v880_v12 = vpop.xlane.xlu0 %879 }
 0xd9b   : > { %v881_v13 = vsub.f32 %v877_v10, %v880_v12 }
 0xd9d   : > { %v882_v14 = vmul.f32 1.442695, %v881_v13 }
 0xd9f   : > { %1602 = vpow2.f32 %v882_v14 }
 0xda5   : > { %v1603_v15 = vpop.eup %1602 }
 0xda6   : > { %v884_v16 = vsel %vm666_vm1, %v1603_v15, 0.0 }
 0xda7   : > { %885 = vadd.xlane.f32.xlu1 %v884_v16 }
 0xe1a   : > { %v886_v17 = vpop.xlane.xlu1 %885 }
 0xe1b   : > { %1604 = vlog2.f32 %v886_v17 }
 0xe21   : > { %v1605_v18 = vpop.eup %1604 }
 0xe22   : > { %v888_v19 = vmul.f32 0.6931472, %v1605_v18 }
 0xe24   : > { %v889_v20 = vadd.f32 %v888_v19, %v880_v12 }
 0xe26   : > { %v890_v21 = vsub.f32 2.1972246, %v889_v20 }
 0xe28   : > { %v891_v22 = vadd.f32 %v890_v21, %v1769_v3 }
 0xe2a   : > { %v892_v23 = vmax.f32 %v891_v22, 0.0 }
 0xe2c   : > { %v893_v24 = vsub.f32 0.0, %v892_v23 }
 0xe2e   : > { %v894_v25 = vadd.f32 %v893_v24, %v1769_v3 }
 0xe30   : > { %v895_v26 = vsel %vm666_vm1, %v894_v25, -inf }
 0xe31   : > { %896 = vmax.xlane.f32.xlu2 %v895_v26 }
 0xea4   : > { %v897_v27 = vpop.xlane.xlu2 %896 }
 0xea5   : > { %v898_v28 = vsub.f32 %v894_v25, %v897_v27 }
 0xea7   : > { %v899_v29 = vmul.f32 1.442695, %v898_v28 }
 0xea9   : > { %1606 = vpow2.f32 %v899_v29 }
 0xeaf   : > { %v1607_v30 = vpop.eup %1606 }
 0xeb0   : > { %v901_v31 = vsel %vm666_vm1, %v1607_v30, 0.0 }
 0xeb1   : > { %902 = vadd.xlane.f32.xlu0 %v901_v31 }
 0xf24   : > { %v903_v32 = vpop.xlane.xlu0 %902 }
 0xf25   : > { %1608 = vlog2.f32 %v903_v32 }
 0xf2b   : > { %v1609_v33 = vpop.eup %1608 }
 0xf2c   : > { %v905_v34 = vmul.f32 0.6931472, %v1609_v33 }
 0xf2e   : > { %v906_v35 = vadd.f32 %v905_v34, %v897_v27 }
 0xf30   : > { %v907_v36 = vsub.f32 2.1972246, %v906_v35 }
 0xf32   : > { %v908_v37 = vadd.f32 %v907_v36, %v1769_v3 }
 0xf34   : > { %v909_v38 = vmax.f32 %v908_v37, 0.0 }
 0xf36   : > { %v910_v39 = vsub.f32 0.0, %v909_v38 }
 0xf38   : > { %v911_v40 = vadd.f32 %v910_v39, %v1769_v3 }
 0xf3a   : > { %v912_v41 = vsel %vm666_vm1, %v911_v40, -inf }
 0xf3b   : > { %913 = vmax.xlane.f32.xlu1 %v912_v41 }
 0xfae   : > { %v914_v42 = vpop.xlane.xlu1 %913 }
 0xfaf   : > { %v915_v43 = vsub.f32 %v911_v40, %v914_v42 }
 0xfb1   : > { %v916_v44 = vmul.f32 1.442695, %v915_v43 }
 0xfb3   : > { %1610 = vpow2.f32 %v916_v44 }
 0xfb9   : > { %v1611_v45 = vpop.eup %1610 }
 0xfba   : > { %v918_v46 = vsel %vm666_vm1, %v1611_v45, 0.0 }
 0xfbb   : > { %919 = vadd.xlane.f32.xlu2 %v918_v46 }
0x102e   : > { %v920_v47 = vpop.xlane.xlu2 %919 }
0x102f   : > { %1612 = vlog2.f32 %v920_v47 }
0x1035   : > { %v1613_v48 = vpop.eup %1612 }
0x1036   : > { %v922_v49 = vmul.f32 0.6931472, %v1613_v48 }
0x1038   : > { %v923_v50 = vadd.f32 %v922_v49, %v914_v42 }
0x103a   : > { %v924_v51 = vsub.f32 2.1972246, %v923_v50 }
0x103c   : > { %v925_v52 = vadd.f32 %v924_v51, %v1769_v3 }
0x103e   : > { %v926_v53 = vmax.f32 %v925_v52, 0.0 }
0x1040   : > { %v927_v54 = vsub.f32 0.0, %v926_v53 }
0x1042   : > { %v928_v55 = vadd.f32 %v927_v54, %v1769_v3 }
0x1044   : > { %v929_v56 = vsel %vm666_vm1, %v928_v55, -inf }
0x1045   : > { %930 = vmax.xlane.f32.xlu0 %v929_v56 }
0x10b8   : > { %v931_v57 = vpop.xlane.xlu0 %930 }
0x10b9   : > { %v932_v58 = vsub.f32 %v928_v55, %v931_v57 }
0x10bb   : > { %v933_v59 = vmul.f32 1.442695, %v932_v58 }
0x10bd   : > { %1614 = vpow2.f32 %v933_v59 }
0x10c3   : > { %v1615_v60 = vpop.eup %1614 }
0x10c4   : > { %v935_v61 = vsel %vm666_vm1, %v1615_v60, 0.0 }
0x10c5   : > { %936 = vadd.xlane.f32.xlu1 %v935_v61 }
0x1138   : > { %v937_v62 = vpop.xlane.xlu1 %936 }
0x1139   : > { %1616 = vlog2.f32 %v937_v62 }
0x113f   : > { %v1617_v63 = vpop.eup %1616 }
0x1140   : > { %v939_v2 = vmul.f32 0.6931472, %v1617_v63 }
0x1142   : > { %v940_v4 = vadd.f32 %v939_v2, %v931_v57 }
0x1144   : > { %v941_v5 = vsub.f32 2.1972246, %v940_v4 }
0x1146   : > { %v942_v6 = vadd.f32 %v941_v5, %v1769_v3 }
0x1148   : > { %v943_v7 = vmax.f32 %v942_v6, 0.0 }
0x114a   : > { %v944_v8 = vsub.f32 0.0, %v943_v7 }
0x114c   : > { %v945_v9 = vadd.f32 %v944_v8, %v1769_v3 }
0x114e   : > { %v946_v10 = vsel %vm666_vm1, %v945_v9, -inf }
0x114f   : > { %947 = vmax.xlane.f32.xlu2 %v946_v10 }
0x11c2   : > { %v948_v11 = vpop.xlane.xlu2 %947 }
0x11c3   : > { %v949_v12 = vsub.f32 %v945_v9, %v948_v11 }
0x11c5   : > { %v950_v13 = vmul.f32 1.442695, %v949_v12  ;;  %v625_v12 = vlaneseq }
0x11c7   : > { %1618 = vpow2.f32 %v950_v13  ;;  %v1853_v13 = vand.u32 127, %v625_v12 }
0x11cd   : > { %v1619_v14 = vpop.eup %1618 }
0x11ce   : > { %v952_v15 = vsel %vm666_vm1, %v1619_v14, 0.0  ;;  %v1856_v14 = vcvt.s32.f32 %v1853_v13 }
0x11cf   : > { %953 = vadd.xlane.f32.xlu0 %v952_v15 }
0x1242   : > { %v954_v16 = vpop.xlane.xlu0 %953 }
0x1243   : > { %1620 = vlog2.f32 %v954_v16 }
0x1249   : > { %v1621_v17 = vpop.eup %1620 }
0x124a   : > { %v956_v18 = vmul.f32 0.6931472, %v1621_v17 }
0x124c   : > { %v957_v19 = vadd.f32 %v956_v18, %v948_v11  ;;  %v1660_v18 = vmov 0.0  }
0x124e   : > { %v958_v20 = vsub.f32 2.1972246, %v957_v19 }
0x1250   : > { %v959_v21 = vadd.f32 %v958_v20, %v1769_v3 }
0x1252   : > { %v960_v22 = vmax.f32 %v959_v21, 0.0 }
0x1254   : > { %v961_v23 = vsub.f32 0.0, %v960_v22 }
0x1256   : > { %v962_v24 = vadd.f32 %v961_v23, %v1769_v3 }
0x1258   : > { %v963_v25 = vsel %vm666_vm1, %v962_v24, -inf }
0x1259   : > { %964 = vmax.xlane.f32.xlu1 %v963_v25  ;;  %v1868_v25 = vshrl.u32 %v625_v12, 7 }
0x125b   : > { %vm1034_vm6 = vcmp.eq.s32.totalorder %v1868_v25, 0  ;;  %vm1065_vm7 = vcmp.eq.s32.totalorder %v1868_v25, 1  ;;  %vm1096_vm11 = vcmp.eq.s32.totalorder %v1868_v25, 2  ;;  %vm1127_vm15 = vcmp.eq.s32.totalorder %v1868_v25, 3 }
0x12cc   : > { %v965_v26 = vpop.xlane.xlu1 %964 }
0x12cd   : > { %v966_v27 = vsub.f32 %v962_v24, %v965_v26 }
0x12cf   : > { %v967_v28 = vmul.f32 1.442695, %v966_v27 }
0x12d1   : > { %1622 = vpow2.f32 %v967_v28  ;;  %v1035_v28 = vsel %vm1034_vm6, 1.0, %v1660_v18  ;;  %vm1158_vm6 = vcmp.eq.s32.totalorder %v1868_v25, 4 }
0x12d7   : > { %v1623_v29 = vpop.eup %1622 }
0x12d8   : > { %v969_v30 = vsel %vm666_vm1, %v1623_v29, 0.0  ;;  %v1066_v29 = vsel %vm1065_vm7, 1.0, %v1660_v18 }
0x12d9   : > { %970 = vadd.xlane.f32.xlu2 %v969_v30 }
0x134c   : > { %v971_v31 = vpop.xlane.xlu2 %970 }
0x134d   : > { %1624 = vlog2.f32 %v971_v31 }
0x1353   : > { %v1625_v32 = vpop.eup %1624 }
0x1354   : > { %v973_v33 = vmul.f32 0.6931472, %v1625_v32 }
0x1356   : > { %v974_v34 = vadd.f32 %v973_v33, %v965_v26 }
0x1358   : > { %v975_v35 = vsub.f32 2.1972246, %v974_v34 }
0x135a   : > { %v976_v36 = vadd.f32 %v975_v35, %v1769_v3 }
0x135c   : > { %v977_v37 = vmax.f32 %v976_v36, 0.0 }
0x135e   : > { %v978_v38 = vsub.f32 0.0, %v977_v37 }
0x1360   : > { %v979_v39 = vadd.f32 %v978_v38, %v1769_v3 }
0x1362   : > { %v980_v40 = vsel %vm666_vm1, %v979_v39, -inf }
0x1363   : > { %981 = vmax.xlane.f32.xlu0 %v980_v40 }
0x13d6   : > { %v982_v41 = vpop.xlane.xlu0 %981 }
0x13d7   : > { %v983_v42 = vsub.f32 %v979_v39, %v982_v41 }
0x13d9   : > { %v984_v43 = vmul.f32 1.442695, %v983_v42 }
0x13db   : > { %1626 = vpow2.f32 %v984_v43 }
0x13e1   : > { %v1627_v44 = vpop.eup %1626 }
0x13e2   : > { %v986_v45 = vsel %vm666_vm1, %v1627_v44, 0.0 }
0x13e3   : > { %987 = vadd.xlane.f32.xlu1 %v986_v45 }
0x1456   : > { %v988_v46 = vpop.xlane.xlu1 %987 }
0x1457   : > { %1628 = vlog2.f32 %v988_v46 }
0x145d   : > { %v1629_v47 = vpop.eup %1628 }
0x145e   : > { %v990_v48 = vmul.f32 0.6931472, %v1629_v47 }
0x1460   : > { %v991_v49 = vadd.f32 %v990_v48, %v982_v41  ;;  %v1097_v41 = vsel %vm1096_vm11, 1.0, %v1660_v18 }
0x1462   : > { %v992_v50 = vsub.f32 2.1972246, %v991_v49 }
0x1464   : > { %v993_v51 = vadd.f32 %v992_v50, %v1769_v3 }
0x1466   : > { %v994_v52 = vmax.f32 %v993_v51, 0.0 }
0x1468   : > { %v995_v53 = vsub.f32 0.0, %v994_v52  ;;  %v1128_v52 = vsel %vm1127_vm15, 1.0, %v1660_v18  ;;  %vm1189_vm15 = vcmp.eq.s32.totalorder %v1868_v25, 5 }
0x146a   : > { %v996_v54 = vadd.f32 %v995_v53, %v1769_v3 }
0x146c   : > { %v997_v55 = vsel %vm666_vm1, %v996_v54, -inf }
0x146d   : > { %998 = vmax.xlane.f32.xlu2 %v997_v55 }
0x14e0   : > { %v999_v56 = vpop.xlane.xlu2 %998 }
0x14e1   : > { %v1000_v57 = vsub.f32 %v996_v54, %v999_v56 }
0x14e3   : > { %v1001_v58 = vmul.f32 1.442695, %v1000_v57 }
0x14e5   : > { %1630 = vpow2.f32 %v1001_v58 }
0x14eb   : > { %v1631_v59 = vpop.eup %1630 }
0x14ec   : > { %v1003_v60 = vsel %vm666_vm1, %v1631_v59, 0.0  ;;  %v473_v59 = vsel %vm472_vm0, %v1761_v1, 0.0 }
0x14ed   : > { %1004 = vadd.xlane.f32.xlu0 %v1003_v60 }
0x1560   : > { %v1005_v61 = vpop.xlane.xlu0 %1004 }
0x1561   : > { %1632 = vlog2.f32 %v1005_v61 }
0x1567   : > { %v1633_v62 = vpop.eup %1632 }
0x1568   : > { %v1007_v63 = vmul.f32 0.6931472, %v1633_v62 }
0x156a   : > { %v1008_v2 = vadd.f32 %v1007_v63, %v999_v56  ;;  %v476_v63 = vsel %vm472_vm0, %v1756_v0, 0.0 }
0x156c   : > { %v1009_v4 = vsub.f32 2.1972246, %v1008_v2  ;;  %v1661_v2 = vmov 32.0  }
0x156e   : > { %v1010_v5 = vadd.f32 %v1009_v4, %v1769_v3 }
0x1570   : > { %v1011_v6 = vmax.f32 %v1010_v5, 0.0 }
0x1572   : > { %v1012_v7 = vsub.f32 0.0, %v1011_v6 }
0x1574   : > { %v1013_v8 = vadd.f32 %v1012_v7, %v1010_v5 }
0x1576   : > { %v1014_v9 = vmul.f32 1.442695, %v1013_v8 }
0x1578   : > { %1634 = vpow2.f32 %v1014_v9 }
0x1579   : > { %1636 = vrcp.f32 %v1661_v2 }
0x157e   : > { %v1635_v10 = vpop.eup %1634 }
0x157f   : > { %v1016_v11 = vsel %vm666_vm1, %v1635_v10, -inf  ;;  %v1637_v4 = vpop.eup %1636 }
0x1580   : > { %1017 = vmax.xlane.f32.xlu1 %v1016_v11  ;;  %v480_v5 = vmul.f32 32.0, %v1637_v4 }
0x1582   : > { %v481_v6 = vsub.f32 1.0, %v480_v5 }
0x1584   : > { %v482_v7 = vmul.f32 %v1637_v4, %v481_v6 }
0x1586   : > { %v483_v8 = vadd.f32 %v1637_v4, %v482_v7 }
0x15f3   : > { %v1018_v15 = vpop.xlane.xlu1 %1017 }
0x15f4   : > { %vm1019_vm2 = vcmp.eq.f32.partialorder %v1635_v10, %v1018_v15 }
0x15f5   : > { %v1020_v16 = vsel %vm1019_vm2, %v1856_v14, 16.0 }
0x15f6   : > { %v1021_v3 = vsel %vm666_vm1, %v1020_v16, inf }
0x15f7   : > { %1022 = vmin.xlane.f32.xlu2 %v1021_v3  ;;  %v1159_v3 = vsel %vm1158_vm6, 1.0, %v1660_v18 }
0x166a   : > { %v1860_v17 = vpop.xlane.xlu2 %1022 }
0x166b   : > { %vm1024_vm3 = vcmp.eq.f32.partialorder %v1856_v14, %v1860_v17 }
0x166c   : > { %v1504_v19 = vsel %vm1024_vm3, 1.0, %v1660_v18 }
0x166d   : > { %vm1045_vm4 = vcmp.gt.f32.partialorder %v1504_v19, 0.5  ;;  %v1036_v27 = vperm.slane %v1504_v19, 0 }
0x166e   : > { %v1046_v20 = vsel %vm1045_vm4, -1e+30, %v1635_v10 }
0x166f   : > { %v1047_v21 = vsel %vm666_vm1, %v1046_v20, -inf  ;;  %v1037_v33 = vmul.f32 %v1036_v27, %v1035_v28  ;;  %v1926_v28 = vld [vmem:[%s1753_s18 + $0x8] sm:$0xff] }
0x1670   : > { %1048 = vmax.xlane.f32.xlu0 %v1047_v21 }
0x16e3   : > { %v1049_v22 = vpop.xlane.xlu0 %1048 }
0x16e4   : > { %vm1050_vm5 = vcmp.eq.f32.partialorder %v1046_v20, %v1049_v22 }
0x16e5   : > { %v1051_v23 = vsel %vm1050_vm5, %v1856_v14, 16.0  ;;  %vm484_vm5 = vweird.f32 %v1637_v4 }
0x16e6   : > { %v1052_v24 = vsel %vm666_vm1, %v1051_v23, inf  ;;  %v1906_v10 = vsel %vm484_vm5, %v1637_v4, %v483_v8  ;;  %v1190_v4 = vsel %vm1189_vm15, 1.0, %v1660_v18  ;;  %vm595_vm5 = vcmask 130048  }
0x16e7   : > { %1053 = vmin.xlane.f32.xlu1 %v1052_v24  ;;  %vm1070_vm15 = vcmp.eq.s32.totalorder %v1853_v13, 1 }
0x175a   : > { %v1872_v26 = vpop.xlane.xlu1 %1053 }
0x175b   : > { %vm1055_vm8 = vcmp.eq.f32.partialorder %v1856_v14, %v1872_v26 }
0x175c   : > { %v1507_v30 = vsel %vm1055_vm8, 1.0, %v1660_v18 }
0x175d   : > { %v1067_v31 = vperm.slane %v1507_v30, 0  ;;  %vm1076_vm9 = vcmp.gt.f32.partialorder %v1507_v30, 0.5 }
0x175e   : > { %v1077_v32 = vsel %vm1076_vm9, -1e+30, %v1046_v20 }
0x175f   : > { %v1068_v34 = vmul.f32 %v1067_v31, %v1066_v29  ;;  %v1078_v35 = vsel %vm666_vm1, %v1077_v32, -inf  ;;  %v537_v31 = vld [vmem:[%s2155_s4 + $0x18] sm:$0xff] }
0x1760   : > { %1079 = vmax.xlane.f32.xlu2 %v1078_v35  ;;  %560 = vmatpush.msra.mxu0 %v537_v31  ;;  %v534_v35 = vld [vmem:[%s2155_s4] sm:$0xff] }
0x1761   : > { %v1069_v36 = vadd.f32 %v1068_v34, %v1037_v33  ;;  %v535_v34 = vld [vmem:[%s2155_s4 + $0x8] sm:$0xff] }
0x17d3   : > { %v1080_v37 = vpop.xlane.xlu2 %1079 }
0x17d4   : > { %vm1081_vm10 = vcmp.eq.f32.partialorder %v1077_v32, %v1080_v37 }
0x17d5   : > { %v1082_v38 = vsel %vm1081_vm10, %v1856_v14, 16.0 }
0x17d6   : > { %v1083_v39 = vsel %vm666_vm1, %v1082_v38, inf }
0x17d7   : > { %1084 = vmin.xlane.f32.xlu0 %v1083_v39 }
0x184a   : > { %v1883_v40 = vpop.xlane.xlu0 %1084 }
0x184b   : > { %vm1086_vm12 = vcmp.eq.f32.partialorder %v1856_v14, %v1883_v40 }
0x184c   : > { %v1510_v42 = vsel %vm1086_vm12, 1.0, %v1660_v18 }
0x184d   : > { %v1098_v43 = vperm.slane %v1510_v42, 0  ;;  %vm1107_vm13 = vcmp.gt.f32.partialorder %v1510_v42, 0.5 }
0x184e   : > { %v1108_v44 = vsel %vm1107_vm13, -1e+30, %v1077_v32  ;;  %v536_v32 = vld [vmem:[%s2155_s4 + $0x10] sm:$0xff] }
0x184f   : > { %v1099_v45 = vmul.f32 %v1098_v43, %v1097_v41  ;;  %v1109_v46 = vsel %vm666_vm1, %v1108_v44, -inf  ;;  %561 = vmatpush.msra.mxu0 %v536_v32 }
0x1850   : > { %1110 = vmax.xlane.f32.xlu1 %v1109_v46 }
0x1851   : > { %v1100_v47 = vadd.f32 %v1099_v45, %v1069_v36  ;;  %562 = vmatpush.msra.mxu0 %v535_v34 }
0x1853   : > { %563 = vmatpush.msra.mxu0 %v534_v35 }
0x18c3   : > { %v1111_v48 = vpop.xlane.xlu1 %1110 }
0x18c4   : > { %vm1112_vm14 = vcmp.eq.f32.partialorder %v1108_v44, %v1111_v48 }
0x18c5   : > { %v1113_v49 = vsel %vm1112_vm14, %v1856_v14, 16.0 }
0x18c6   : > { %v1114_v50 = vsel %vm666_vm1, %v1113_v49, inf  ;;  %v1546_v49 = vld [vmem:[%s2153_s2] ss:$0 sm:$0xff] }
0x18c7   : > { %1115 = vmin.xlane.f32.xlu2 %v1114_v50 }
0x18cf   : > { %474 = vadd.xlane.f32.xlu2 %v473_v59 }
0x193a   : > { %v1893_v51 = vpop.xlane.xlu2 %1115 }
0x193b   : > { %vm1117_vm2 = vcmp.eq.f32.partialorder %v1856_v14, %v1893_v51 }
0x193c   : > { %v1513_v53 = vsel %vm1117_vm2, 1.0, %v1660_v18 }
0x193d   : > { %v1129_v54 = vperm.slane %v1513_v53, 0  ;;  %vm1138_vm3 = vcmp.gt.f32.partialorder %v1513_v53, 0.5  ;;  %v1547_v53 = vld [vmem:[%s2154_s3] ss:$0 sm:$0xff] }
0x193e   : > { %v1139_v55 = vsel %vm1138_vm3, -1e+30, %v1108_v44 }
0x193f   : > { %v1130_v56 = vmul.f32 %v1129_v54, %v1128_v52  ;;  %v1140_v57 = vsel %vm666_vm1, %v1139_v55, -inf }
0x1940   : > { %1141 = vmax.xlane.f32.xlu0 %v1140_v57 }
0x1941   : > { %v1131_v58 = vadd.f32 %v1130_v56, %v1100_v47 }
0x1942   : > { %v475_v9 = vpop.xlane.xlu2 %474 }
0x1943   : > { %v486_v11 = vmul.f32 %v1906_v10, %v475_v9 }
0x1945   : > { %v488_v12 = vsub.f32 %v1761_v1, %v486_v11 }
0x1947   : > { %v490_v15 = vmul.f32 %v488_v12, %v488_v12 }
0x1948   : > { %477 = vadd.xlane.f32.xlu0 %v476_v63 }
0x1949   : > { %v492_v16 = vsel %vm472_vm0, %v490_v15, 0.0 }
0x194a   : > { %493 = vadd.xlane.f32.xlu2 %v492_v16 }
0x19b3   : > { %v1142_v60 = vpop.xlane.xlu0 %1141 }
0x19b4   : > { %vm1143_vm4 = vcmp.eq.f32.partialorder %v1139_v55, %v1142_v60 }
0x19b5   : > { %v1144_v61 = vsel %vm1143_vm4, %v1856_v14, 16.0 }
0x19b6   : > { %v1145_v62 = vsel %vm666_vm1, %v1144_v61, inf }
0x19b7   : > { %1146 = vmin.xlane.f32.xlu1 %v1145_v62 }
0x19bb   : > { %v478_v24 = vpop.xlane.xlu0 %477 }
0x19bc   : > { %v487_v27 = vmul.f32 %v1906_v10, %v478_v24 }
0x19bd   : > { %v494_v36 = vpop.xlane.xlu2 %493 }
0x19be   : > { %v489_v29 = vsub.f32 %v1926_v28, %v487_v27  ;;  %v498_v37 = vmul.f32 %v494_v36, %v1906_v10  ;;  %v1976_v36 = vld [vmem:[%s1753_s18] sm:$0xff]  ;;  %s467_s18 = scalar_lea.vmem %s2165_s14, %s1534_s15 }
0x19c0   : > { %v491_v30 = vmul.f32 %v489_v29, %v489_v29  ;;  %v500_v38 = vadd.f32 1e-05, %v498_v37 }
0x19c2   : > { %v495_v33 = vsel %vm472_vm0, %v491_v30, 0.0  ;;  %1638 = vrsqrt.f32 %v500_v38  ;;  %vm508_vm10 = vweird.f32 %v500_v38 }
0x19c3   : > { %496 = vadd.xlane.f32.xlu0 %v495_v33 }
0x19c8   : > { %v1639_v43 = vpop.eup %1638 }
0x19c9   : > { %v503_v44 = vmul.f32 %v1639_v43, %v500_v38  ;;  %vm509_vm11 = vweird.f32 %v1639_v43 }
0x19ca   : > { %vm510_vm12 = vmor %vm508_vm10, %vm509_vm11  ;;  %vm1251_vm11 = vcmp.eq.s32.totalorder %v1868_v25, 7 }
0x19cb   : > { %v504_v45 = vmul.f32 %v1639_v43, %v503_v44 }
0x19cd   : > { %v505_v46 = vmul.f32 0.5, %v504_v45 }
0x19cf   : > { %v506_v47 = vsub.f32 1.5, %v505_v46 }
0x19d1   : > { %v507_v48 = vmul.f32 %v1639_v43, %v506_v47 }
0x19d3   : > { %v511_v50 = vsel %vm510_vm12, %v1639_v43, %v507_v48 }
0x19d4   : > { %v522_v52 = vmul.f32 %v511_v50, %v488_v12 }
0x19d6   : > { %v527_v54 = vmul.f32 %v1546_v49, %v522_v52 }
0x1a2a   : > { %v1912_v0 = vpop.xlane.xlu1 %1146 }
0x1a2b   : > { %vm1148_vm7 = vcmp.eq.f32.partialorder %v1856_v14, %v1912_v0 }
0x1a2c   : > { %v1516_v19 = vsel %vm1148_vm7, 1.0, %v1660_v18  ;;  %vm1220_vm7 = vcmp.eq.s32.totalorder %v1868_v25, 6 }
0x1a2d   : > { %v1160_v20 = vperm.slane %v1516_v19, 0  ;;  %vm1169_vm8 = vcmp.gt.f32.partialorder %v1516_v19, 0.5 }
0x1a2e   : > { %v1918_v21 = vsel %vm1169_vm8, -1e+30, %v1139_v55  ;;  %v532_v55 = vadd.f32 %v1547_v53, %v527_v54  ;;  %v1221_v54 = vsel %vm1220_vm7, 1.0, %v1660_v18  ;;  %vm1132_vm7 = vcmp.eq.s32.totalorder %v1853_v13, 3 }
0x1a2f   : > { %v1161_v1 = vmul.f32 %v1160_v20, %v1159_v3  ;;  %v1171_v22 = vsel %vm666_vm1, %v1918_v21, -inf  ;;  %v1548_v20 = vld [vmem:[%s2156_s5] ss:$0 sm:$0xff] }
0x1a30   : > { %1172 = vmax.xlane.f32.xlu1 %v1171_v22  ;;  %1497 = vmatmul.msk.f32.vlgmr.msra.gmra.mxu0 %vm472_vm0, %v532_v55 }
0x1a31   : > { %v1922_v23 = vadd.f32 %v1161_v1, %v1131_v58 }
0x1a36   : > { %v497_v56 = vpop.xlane.xlu0 %496 }
0x1a37   : > { %v499_v57 = vmul.f32 %v497_v56, %v1906_v10 }
0x1a39   : > { %v501_v58 = vadd.f32 1e-05, %v499_v57 }
0x1a3b   : > { %1640 = vrsqrt.f32 %v501_v58  ;;  %vm518_vm13 = vweird.f32 %v501_v58 }
0x1a41   : > { %v1641_v59 = vpop.eup %1640 }
0x1a42   : > { %v513_v60 = vmul.f32 %v1641_v59, %v501_v58  ;;  %vm519_vm14 = vweird.f32 %v1641_v59 }
0x1a43   : > { %vm520_vm3 = vmor %vm518_vm13, %vm519_vm14 }
0x1a44   : > { %v514_v61 = vmul.f32 %v1641_v59, %v513_v60 }
0x1a46   : > { %v515_v62 = vmul.f32 0.5, %v514_v61 }
0x1a48   : > { %v516_v2 = vsub.f32 1.5, %v515_v62 }
0x1a4a   : > { %v517_v6 = vmul.f32 %v1641_v59, %v516_v2 }
0x1a4c   : > { %v521_v9 = vsel %vm520_vm3, %v1641_v59, %v517_v6  ;;  %vm1039_vm3 = vcmp.eq.s32.totalorder %v1853_v13, 0 }
0x1a4d   : > { %v523_v15 = vmul.f32 %v521_v9, %v489_v29  ;;  %v589_v29 = vld [vmem:[%s2157_s6] sm:$0xff] }
0x1a4f   : > { %v528_v3 = vmul.f32 %v1546_v49, %v523_v15 }
0x1a51   : > { %v533_v19 = vadd.f32 %v1547_v53, %v528_v3 }
0x1a53   : > { %1498 = vmatmul.msk.f32.gmra.mxu0 %vm472_vm0, %v533_v19 }
0x1aa3   : > { %v1173_v39 = vpop.xlane.xlu1 %1172 }
0x1aa4   : > { %vm1174_vm9 = vcmp.eq.f32.partialorder %v1918_v21, %v1173_v39 }
0x1aa5   : > { %v1175_v41 = vsel %vm1174_vm9, %v1856_v14, 16.0 }
0x1aa6   : > { %v1176_v42 = vsel %vm666_vm1, %v1175_v41, inf }
0x1aa7   : > { %1177 = vmin.xlane.f32.xlu1 %v1176_v42 }
0x1aad   : > { %v565_v1 = vpop.f32.mrf.mxu0 }
0x1aae   : > { %v566_v22 = vadd.f32 %v1548_v20, %v565_v1 }
0x1ab0   : > { %v573_v24 = vmul.f32 0.044715, %v566_v22  ;;  %v571_v32 = vmul.f32 0.5, %v566_v22 }
0x1ad0   : > { %v568_v41 = vpop.f32.mrf.mxu0 }
0x1ad1   : > { %v569_v42 = vadd.f32 %v1548_v20, %v568_v41 }
0x1ad3   : > { %v574_v43 = vmul.f32 0.044715, %v569_v42  ;;  %v572_v49 = vmul.f32 0.5, %v569_v42 }
0x1ad5   : > { %v576_v44 = vmul.f32 %v574_v43, %v569_v42 }
0x1ad7   : > { %v578_v45 = vmul.f32 %v576_v44, %v569_v42 }
0x1ad9   : > { %v580_v46 = vadd.f32 %v578_v45, %v569_v42  ;;  %v1551_v45 = vld [vmem:[%s2160_s9] ss:$0 sm:$0xff] }
0x1adb   : > { %v582_v47 = vmul.f32 0.7978846, %v580_v46 }
0x1b1a   : > { %v1955_v63 = vpop.xlane.xlu1 %1177 }
0x1b1b   : > { %vm1179_vm2 = vcmp.eq.f32.partialorder %v1856_v14, %v1955_v63 }
0x1b1c   : > { %v1519_v5 = vsel %vm1179_vm2, 1.0, %v1660_v18 }
0x1b1d   : > { %v1191_v7 = vperm.slane %v1519_v5, 0  ;;  %vm1200_vm4 = vcmp.gt.f32.partialorder %v1519_v5, 0.5  ;;  %v1252_v5 = vsel %vm1251_vm11, 1.0, %v1660_v18 }
0x1b1e   : > { %v1201_v8 = vsel %vm1200_vm4, -1e+30, %v1918_v21  ;;  %v575_v21 = vmul.f32 %v573_v24, %v566_v22  ;;  %v1319_v24 = vld [vmem:[%s2161_s10 + $0x10] sm:$0xff] }
0x1b1f   : > { %v1192_v11 = vmul.f32 %v1191_v7, %v1190_v4  ;;  %v1202_v12 = vsel %vm666_vm1, %v1201_v8, -inf }
0x1b20   : > { %1203 = vmax.xlane.f32.xlu2 %v1202_v12  ;;  %v577_v27 = vmul.f32 %v575_v21, %v566_v22  ;;  %v1318_v21 = vld [vmem:[%s2161_s10 + $0x8] sm:$0xff] }
0x1b21   : > { %v1193_v16 = vadd.f32 %v1192_v11, %v1922_v23  ;;  %v590_v23 = vld [vmem:[%s2157_s6 + $0x8] sm:$0xff] }
0x1b22   : > { %v579_v30 = vadd.f32 %v577_v27, %v566_v22  ;;  %616 = vmatpush.msra.mxu3 %v590_v23  ;;  %v1320_v22 = vld [vmem:[%s2161_s10 + $0x18] sm:$0xff]  ;;  %v1317_v27 = vld [vmem:[%s2161_s10] sm:$0xff]  ;;  %v1370_v23 = vld [vmem:[%s2163_s12 + $0x68] sm:$0xff] }
0x1b24   : > { %v581_v31 = vmul.f32 0.7978846, %v579_v30  ;;  %617 = vmatpush.msra.mxu3 %v589_v29  ;;  %v1372_v30 = vld [vmem:[%s2163_s12 + $0x78] sm:$0xff] }
0x1b25   : > { %1377 = vmatpush.msra.mxu1 %v1372_v30 }
0x1b26   : > { %1642 = vtanh.f32 %v581_v31  ;;  %1279 = vmatpush.msrb.mxu3 %v1926_v28  ;;  %v1371_v31 = vld [vmem:[%s2163_s12 + $0x70] sm:$0xff] }
0x1b27   : > { %1644 = vtanh.f32 %v582_v47  ;;  %1378 = vmatpush.msra.mxu1 %v1371_v31 }
0x1b28   : > { %1280 = vmatpush.msrb.mxu3 %v1976_v36 }
0x1b29   : > { %1379 = vmatpush.msra.mxu1 %v1370_v23 }
0x1b2c   : > { %v1643_v33 = vpop.eup %1642 }
0x1b2d   : > { %v585_v34 = vadd.f32 1.0, %v1643_v33  ;;  %v1645_v48 = vpop.eup %1644  ;;  %v1369_v33 = vld [vmem:[%s2163_s12 + $0x60] sm:$0xff] }
0x1b2e   : > { %v586_v50 = vadd.f32 1.0, %v1645_v48  ;;  %1380 = vmatpush.msra.mxu1 %v1369_v33  ;;  %v1368_v48 = vld [vmem:[%s2163_s12 + $0x58] sm:$0xff] }
0x1b2f   : > { %v587_v35 = vmul.f32 %v585_v34, %v571_v32 }
0x1b30   : > { %v588_v52 = vmul.f32 %v586_v50, %v572_v49  ;;  %1381 = vmatpush.msra.mxu1 %v1368_v48  ;;  %v1367_v49 = vld [vmem:[%s2163_s12 + $0x50] sm:$0xff]  ;;  %v1366_v50 = vld [vmem:[%s2163_s12 + $0x48] sm:$0xff] }
0x1b31   : > { %1499 = vmatmul.msk.f32.vlgmr.msra.gmra.mxu3 %vm595_vm5, %v587_v35 }
0x1b32   : > { %1340 = vmatpush.msra.mxu3 %v1320_v22  ;;  %1382 = vmatpush.msra.mxu1 %v1367_v49  ;;  %v1027_v22 = vperm.slane %v1860_v17, 0  ;;  %v1151_v17 = vperm.slane %v1912_v0, 0 }
0x1b34   : > { %1341 = vmatpush.msra.mxu3 %v1319_v24  ;;  %1383 = vmatpush.msra.mxu1 %v1366_v50  ;;  %v1089_v24 = vperm.slane %v1883_v40, 0 }
0x1b36   : > { %1342 = vmatpush.msra.mxu3 %v1318_v21  ;;  %v630_v21 = vadd.s32 8, %v1868_v25 }
0x1b38   : > { %1343 = vmatpush.msra.mxu3 %v1317_v27  ;;  %v1120_v27 = vperm.slane %v1893_v51, 0  ;;  %v2091_v40 = vcvt.s32.f32 %v630_v21  ;;  %v1182_v51 = vperm.slane %v1955_v63, 0 }
0x1b39   : > { %1500 = vmatmul.msk.f32.gmra.mxu3 %vm595_vm5, %v588_v52  ;;  %v1365_v52 = vld [vmem:[%s2163_s12 + $0x40] sm:$0xff] }
0x1b3a   : > { %1384 = vmatpush.msra.mxu1 %v1365_v52 }
0x1b93   : > { %v1204_v37 = vpop.xlane.xlu2 %1203 }
0x1b94   : > { %vm1205_vm6 = vcmp.eq.f32.partialorder %v1201_v8, %v1204_v37 }
0x1b95   : > { %v1206_v38 = vsel %vm1205_vm6, %v1856_v14, 16.0 }
0x1b96   : > { %v1207_v39 = vsel %vm666_vm1, %v1206_v38, inf }
0x1b97   : > { %1208 = vmin.xlane.f32.xlu0 %v1207_v39 }
0x1bb4   : > { %v2001_v11 = vpop.f32.mrf.mxu3 }
0x1bbc   : > { %v2003_v12 = vpop.f32.mrf.mxu3 }
0x1c0a   : > { %v1984_v53 = vpop.xlane.xlu0 %1208 }
0x1c0b   : > { %vm1210_vm8 = vcmp.eq.f32.partialorder %v1856_v14, %v1984_v53  ;;  %v1213_v0 = vperm.slane %v1984_v53, 0 }
0x1c0c   : > { %v1522_v55 = vsel %vm1210_vm8, 1.0, %v1660_v18 }
0x1c0d   : > { %v1222_v56 = vperm.slane %v1522_v55, 0  ;;  %vm1231_vm9 = vcmp.gt.f32.partialorder %v1522_v55, 0.5  ;;  %v1363_v55 = vld [vmem:[%s2163_s12 + $0x30] sm:$0xff] }
0x1c0e   : > { %v1232_v57 = vsel %vm1231_vm9, -1e+30, %v1201_v8 }
0x1c0f   : > { %v1223_v58 = vmul.f32 %v1222_v56, %v1221_v54  ;;  %v1233_v59 = vsel %vm666_vm1, %v1232_v57, -inf  ;;  %v1364_v54 = vld [vmem:[%s2163_s12 + $0x38] sm:$0xff]  ;;  %v1362_v56 = vld [vmem:[%s2163_s12 + $0x28] sm:$0xff] }
0x1c10   : > { %1234 = vmax.xlane.f32.xlu1 %v1233_v59  ;;  %1385 = vmatpush.msra.mxu1 %v1364_v54  ;;  %v1359_v59 = vld [vmem:[%s2163_s12 + $0x10] sm:$0xff] }
0x1c11   : > { %v1224_v60 = vadd.f32 %v1223_v58, %v1193_v16  ;;  %v1360_v58 = vld [vmem:[%s2163_s12 + $0x18] sm:$0xff] }
0x1c12   : > { %1386 = vmatpush.msra.mxu1 %v1363_v55 }
0x1c14   : > { %1387 = vmatpush.msra.mxu1 %v1362_v56 }
0x1c83   : > { %v1235_v61 = vpop.xlane.xlu1 %1234 }
0x1c84   : > { %vm1236_vm10 = vcmp.eq.f32.partialorder %v1232_v57, %v1235_v61  ;;  %v1361_v57 = vld [vmem:[%s2163_s12 + $0x20] sm:$0xff] }
0x1c85   : > { %v1237_v62 = vsel %vm1236_vm10, %v1856_v14, 16.0  ;;  %1388 = vmatpush.msra.mxu1 %v1361_v57  ;;  %v1357_v61 = vld [vmem:[%s2163_s12] sm:$0xff]  ;;  %vm1163_vm10 = vcmp.eq.s32.totalorder %v1853_v13, 4 }
0x1c86   : > { %v1238_v2 = vsel %vm666_vm1, %v1237_v62, inf  ;;  %v1552_v62 = vld [vmem:[%s2162_s11] ss:$0 sm:$0xff] }
0x1c87   : > { %1239 = vmin.xlane.f32.xlu2 %v1238_v2  ;;  %1389 = vmatpush.msra.mxu1 %v1360_v58 }
0x1c89   : > { %1390 = vmatpush.msra.mxu1 %v1359_v59 }
0x1cfa   : > { %v1994_v4 = vpop.xlane.xlu2 %1239 }
0x1cfb   : > { %vm1241_vm12 = vcmp.eq.f32.partialorder %v1856_v14, %v1994_v4  ;;  %v1244_v63 = vperm.slane %v1994_v4, 0 }
0x1cfc   : > { %v1525_v6 = vsel %vm1241_vm12, 1.0, %v1660_v18  ;;  %vm1029_vm12 = vcmp.eq.f32.partialorder %v2091_v40, %v1027_v22 }
0x1cfd   : > { %v1253_v7 = vperm.slane %v1525_v6, 0 }
0x1cff   : > { %v1254_v8 = vmul.f32 %v1253_v7, %v1252_v5 }
0x1d01   : > { %v1255_v9 = vadd.f32 %v1254_v8, %v1224_v60  ;;  %v1358_v60 = vld [vmem:[%s2163_s12 + $0x8] sm:$0xff] }
0x1d02   : > { %1391 = vmatpush.msra.mxu1 %v1358_v60 }
0x1d03   : > { %1528 = vmatmul.msk.f32.vlgmr.msrb.gmra.mxu3 %vm595_vm5, %v1255_v9  ;;  %vm1101_vm5 = vcmp.eq.s32.totalorder %v1853_v13, 2 }
0x1d04   : > { %1392 = vmatpush.msra.mxu1 %v1357_v61  ;;  %v1102_v23 = vsel %vm1101_vm5, 1.0, %v1660_v18 }
0x1d86   : > { %v1282_v15 = vpop.f32.mrf.mxu3 }
0x1d87   : > { %v1287_v16 = vsel %vm472_vm0, %v1282_v15, 0.0 }
0x1d88   : > { %1288 = vadd.xlane.f32.xlu0 %v1287_v16 }
0x1dfb   : > { %v1289_v3 = vpop.xlane.xlu0 %1288 }
0x1dfc   : > { %v1290_v14 = vmul.f32 %v1289_v3, %v1906_v10 }
0x1dfe   : > { %v1291_v19 = vsub.f32 %v1282_v15, %v1290_v14 }
0x1e00   : > { %v1292_v20 = vmul.f32 %v1291_v19, %v1291_v19 }
0x1e02   : > { %v1293_v1 = vsel %vm472_vm0, %v1292_v20, 0.0  ;;  %v1058_v20 = vperm.slane %v1872_v26, 0  ;;  %v1071_v26 = vsel %vm1070_vm15, 1.0, %v1660_v18  ;;  %vm1225_vm15 = vcmp.eq.s32.totalorder %v1853_v13, 6 }
0x1e03   : > { %1294 = vadd.xlane.f32.xlu1 %v1293_v1  ;;  %v631_v1 = vcvt.s32.f32 %v1868_v25  ;;  %v1040_v25 = vsel %vm1039_vm3, 1.0, %v1660_v18  ;;  %vm1122_vm3 = vcmp.eq.f32.partialorder %v2091_v40, %v1120_v27  ;;  %v1226_v48 = vsel %vm1225_vm15, 1.0, %v1660_v18 }
0x1e04   : > { %vm1060_vm9 = vcmp.eq.f32.partialorder %v2091_v40, %v1058_v20  ;;  %v1515_v55 = vsel %vm1122_vm3, 1.0, %v1660_v18 }
0x1e05   : > { %vm1059_vm2 = vcmp.eq.f32.partialorder %v631_v1, %v1058_v20  ;;  %vm1028_vm4 = vcmp.eq.f32.partialorder %v631_v1, %v1027_v22  ;;  %vm1090_vm6 = vcmp.eq.f32.partialorder %v631_v1, %v1089_v24  ;;  %vm1121_vm8 = vcmp.eq.f32.partialorder %v631_v1, %v1120_v27 }
0x1e06   : > { %v1508_v30 = vsel %vm1059_vm2, 1.0, %v1660_v18  ;;  %v1505_v31 = vsel %vm1028_vm4, 1.0, %v1660_v18  ;;  %vm1152_vm11 = vcmp.eq.f32.partialorder %v631_v1, %v1151_v17  ;;  %vm1214_vm2 = vcmp.eq.f32.partialorder %v631_v1, %v1213_v0 }
0x1e07   : > { %v1041_v33 = vmul.f32 %v1505_v31, %v1040_v25  ;;  %v1517_v53 = vsel %vm1152_vm11, 1.0, %v1660_v18  ;;  %vm1256_vm4 = vcmp.eq.s32.totalorder %v1853_v13, 7  ;;  %vm1245_vm5 = vcmp.eq.f32.partialorder %v631_v1, %v1244_v63 }
0x1e08   : > { %v1523_v49 = vsel %vm1214_vm2, 1.0, %v1660_v18  ;;  %v1257_v56 = vsel %vm1256_vm4, 1.0, %v1660_v18  ;;  %v1526_v57 = vsel %vm1245_vm5, 1.0, %v1660_v18 }
0x1e09   : > { %v1227_v59 = vmul.f32 %v1523_v49, %v1226_v48 }
0x1e76   : > { %v1295_v29 = vpop.xlane.xlu1 %1294 }
0x1e77   : > { %v1296_v32 = vmul.f32 %v1295_v29, %v1906_v10  ;;  %v1550_v10 = vld [vmem:[%s2159_s8] ss:$0 sm:$0xff]  ;;  %v1511_v29 = vsel %vm1090_vm6, 1.0, %v1660_v18  ;;  %vm1153_vm6 = vcmp.eq.f32.partialorder %v2091_v40, %v1151_v17 }
0x1e78   : > { %v1518_v61 = vsel %vm1153_vm6, 1.0, %v1660_v18 }
0x1e79   : > { %v1297_v34 = vadd.f32 1e-05, %v1296_v32  ;;  %v1072_v32 = vmul.f32 %v1508_v30, %v1071_v26 }
0x1e7b   : > { %1646 = vrsqrt.f32 %v1297_v34  ;;  %vm1304_vm13 = vweird.f32 %v1297_v34 }
0x1e81   : > { %v1647_v35 = vpop.eup %1646 }
0x1e82   : > { %v1299_v37 = vmul.f32 %v1647_v35, %v1297_v34  ;;  %vm1305_vm1 = vweird.f32 %v1647_v35  ;;  %v1103_v34 = vmul.f32 %v1511_v29, %v1102_v23 }
0x1e83   : > { %vm1306_vm14 = vmor %vm1304_vm13, %vm1305_vm1  ;;  %vm1194_vm1 = vcmp.eq.s32.totalorder %v1853_v13, 5  ;;  %vm1183_vm13 = vcmp.eq.f32.partialorder %v631_v1, %v1182_v51 }
0x1e84   : > { %v1300_v38 = vmul.f32 %v1647_v35, %v1299_v37  ;;  %v1514_v37 = vsel %vm1121_vm8, 1.0, %v1660_v18  ;;  %v1520_v4 = vsel %vm1183_vm13, 1.0, %v1660_v18  ;;  %vm1215_vm8 = vcmp.eq.f32.partialorder %v2091_v40, %v1213_v0 }
0x1e86   : > { %v1301_v39 = vmul.f32 0.5, %v1300_v38  ;;  %v1509_v38 = vsel %vm1060_vm9, 1.0, %v1660_v18  ;;  %vm1246_vm9 = vcmp.eq.f32.partialorder %v2091_v40, %v1244_v63 }
0x1e87   : > { %v1527_v22 = vsel %vm1246_vm9, 1.0, %v1660_v18 }
0x1e88   : > { %v1302_v41 = vsub.f32 1.5, %v1301_v39  ;;  %v1074_v39 = vadd.f32 %v1072_v32, %v1041_v33 }
0x1e8a   : > { %v1303_v42 = vmul.f32 %v1647_v35, %v1302_v41  ;;  %v1164_v41 = vsel %vm1163_vm10, 1.0, %v1660_v18  ;;  %vm1397_vm10 = vcmask 64512  }
0x1e8c   : > { %v1307_v43 = vsel %vm1306_vm14, %v1647_v35, %v1303_v42  ;;  %v1133_v35 = vsel %vm1132_vm7, 1.0, %v1660_v18  ;;  %vm1091_vm14 = vcmp.eq.f32.partialorder %v2091_v40, %v1089_v24  ;;  %vm1184_vm7 = vcmp.eq.f32.partialorder %v2091_v40, %v1182_v51  ;;  %v1549_v40 = vld [vmem:[%s2158_s7] ss:$0 sm:$0xff] }
0x1e8d   : > { %v1308_v44 = vmul.f32 %v1307_v43, %v1291_v19  ;;  %v1134_v42 = vmul.f32 %v1514_v37, %v1133_v35  ;;  %v1105_v43 = vadd.f32 %v1103_v34, %v1074_v39  ;;  %v623_v29 = vadd.f32 %v1549_v40, %v2003_v12 }
0x1e8f   : > { %v1312_v46 = vmul.f32 %v1550_v10, %v1308_v44  ;;  %v1506_v10 = vsel %vm1029_vm12, 1.0, %v1660_v18  ;;  %v1195_v44 = vsel %vm1194_vm1, 1.0, %v1660_v18  ;;  %v1136_v50 = vadd.f32 %v1134_v42, %v1105_v43 }
0x1e90   : > { %v1196_v52 = vmul.f32 %v1520_v4, %v1195_v44  ;;  %v1042_v54 = vmul.f32 %v1506_v10, %v1040_v25  ;;  %v620_v25 = vadd.f32 %v1549_v40, %v2001_v11  ;;  %v1428_v51 = vadd.f32 %v1926_v28, %v623_v29 }
0x1e91   : > { %v1316_v47 = vadd.f32 %v1551_v45, %v1312_v46  ;;  %v1165_v45 = vmul.f32 %v1517_v53, %v1164_v41  ;;  %v1073_v46 = vmul.f32 %v1509_v38, %v1071_v26  ;;  %v1259_v26 = vmul.f32 %v1527_v22, %v1257_v56 }
0x1e92   : > { %v1427_v31 = vadd.f32 %v1976_v36, %v620_v25 }
0x1e93   : > { %1529 = vmatmul.msk.f32.vlgmr.msra.gmra.mxu3 %vm472_vm0, %v1316_v47  ;;  %v1512_v47 = vsel %vm1091_vm14, 1.0, %v1660_v18  ;;  %v1167_v58 = vadd.f32 %v1165_v45, %v1136_v50  ;;  %v1075_v60 = vadd.f32 %v1073_v46, %v1042_v54 }
0x1e94   : > { %v1104_v13 = vmul.f32 %v1512_v47, %v1102_v23 }
0x1f16   : > { %v1345_v2 = vpop.f32.mrf.mxu3 }
0x1f17   : > { %v1346_v5 = vadd.f32 %v1552_v62, %v1345_v2  ;;  %v1553_v62 = vld [vmem:[%s2164_s13] ss:$0 sm:$0xff]  ;;  %v1135_v2 = vmul.f32 %v1515_v55, %v1133_v35 }
0x1f19   : > { %v1349_v6 = vmul.f32 0.044715, %v1346_v5  ;;  %v1348_v3 = vmul.f32 0.5, %v1346_v5 }
0x1f1b   : > { %v1350_v7 = vmul.f32 %v1349_v6, %v1346_v5  ;;  %v1258_v6 = vmul.f32 %v1526_v57, %v1257_v56 }
0x1f1d   : > { %v1351_v8 = vmul.f32 %v1350_v7, %v1346_v5  ;;  %v1521_v7 = vsel %vm1184_vm7, 1.0, %v1660_v18 }
0x1f1e   : > { %v1197_v20 = vmul.f32 %v1521_v7, %v1195_v44 }
0x1f1f   : > { %v1352_v9 = vadd.f32 %v1351_v8, %v1346_v5  ;;  %v1198_v5 = vadd.f32 %v1196_v52, %v1167_v58  ;;  %v1106_v8 = vadd.f32 %v1104_v13, %v1075_v60 }
0x1f21   : > { %v1353_v15 = vmul.f32 0.7978846, %v1352_v9  ;;  %v1166_v9 = vmul.f32 %v1518_v61, %v1164_v41 }
0x1f23   : > { %1648 = vtanh.f32 %v1353_v15  ;;  %v1229_v15 = vadd.f32 %v1227_v59, %v1198_v5 }
0x1f25   : > { %v1260_v1 = vadd.f32 %v1258_v6, %v1229_v15 }
0x1f29   : > { %v1649_v16 = vpop.eup %1648 }
0x1f2a   : > { %v1355_v14 = vadd.f32 1.0, %v1649_v16 }
0x1f2c   : > { %v1356_v19 = vmul.f32 %v1355_v14, %v1348_v3  ;;  %v1524_v3 = vsel %vm1215_vm8, 1.0, %v1660_v18 }
0x1f2d   : > { %v1228_v21 = vmul.f32 %v1524_v3, %v1226_v48 }
0x1f2e   : > { %1393 = vmatmul.f32.vlgmr.msra.gmra.mxu1 %v1356_v19  ;;  %v1137_v19 = vadd.f32 %v1135_v2, %v1106_v8 }
0x1f30   : > { %v1168_v24 = vadd.f32 %v1166_v9, %v1137_v19 }
0x1f32   : > { %v1199_v27 = vadd.f32 %v1197_v20, %v1168_v24 }
0x1f34   : > { %v1230_v30 = vadd.f32 %v1228_v21, %v1199_v27 }
0x1f36   : > { %v1261_v17 = vadd.f32 %v1259_v26, %v1230_v30 }
0x1fab   : > { %v1394_v16 = vpop.f32.mrf.mxu1 }
0x1fac   : > { %v1395_v14 = vadd.f32 %v1553_v62, %v1394_v16 }
0x1fae   : > { %1419 = vmatpush.msrb.mxu2 %v1395_v14 }
0x1faf   : > { %1530 = vmatmul.msk.f32.vlgmr.msrb.gmra.mxu2 %vm1397_vm10, %v1260_v1 }
0x1fb7   : > { %1531 = vmatmul.msk.f32.gmra.mxu2 %vm1397_vm10, %v1261_v17 }
0x2032   : > { %v1421_v18 = vpop.f32.mrf.mxu2 }
0x2033   : > { %v1429_v23 = vadd.f32 %v1427_v31, %v1421_v18 }
0x2035   : > { %1431 = vst.msk [vmem:[%s467_s18] sm:$0xff] %vm472_vm0, %v1429_v23 }
0x203a   : > { %v1424_v32 = vpop.f32.mrf.mxu2 }
0x203b   : > { %v1430_v0 = vadd.f32 %v1428_v51, %v1424_v32 }
0x203d   : > { %1432 = vst.msk [vmem:[%s467_s18 + $0x8] sm:$0xff] %vm472_vm0, %v1430_v0 }
0x203e PF: > { %s24_s29 = sadd.s32 1, %s1658_s29  }
0x203f   : > { %p21_p4 = scmp.ge.s32.totalorder %s24_s29, 4  }
0x2041   :  { %23 = sbr.rel (!%p21_p4) target bundleno = 1 (0x1), region = 106 }

// kernel: _lambda_.7
= control target key start
LH: loop header
LB: loop body
LE: loop exit
PB: predicated region body
PF: predicated region fallthrough
CT: control target
= control target key end

     0   :  { %s4147_s0 = inlined_call_operand.vmem [shape: f32[2,16,32], index: 0, kind: input, shape index: {}]   ;;  %s4148_s1 = inlined_call_operand.vmem [shape: f32[16,16], index: 1, kind: input, shape index: {}]   ;;  %s4149_s2 = inlined_call_operand.vmem [shape: f32[1,16], index: 2, kind: input, shape index: {}]   ;;  %s4150_s3 = inlined_call_operand.vmem [shape: f32[16,1], index: 3, kind: input, shape index: {}]   ;;  %s4151_s4 = inlined_call_operand.vmem [shape: f32[1,32], index: 4, kind: input, shape index: {}]   ;;  %s4152_s5 = inlined_call_operand.vmem [shape: f32[1,32], index: 5, kind: input, shape index: {}]   ;;  %s4153_s6 = inlined_call_operand.vmem [shape: f32[1,32], index: 6, kind: input, shape index: {}]   ;;  %s4154_s7 = inlined_call_operand.vmem [shape: f32[1,32], index: 7, kind: input, shape index: {}, may-alias: {7,13,15}]   ;;  %s4155_s8 = inlined_call_operand.vmem [shape: f32[1,32], index: 8, kind: input, shape index: {}, may-alias: {8,14,16}]   ;;  %s4156_s9 = inlined_call_operand.vmem [shape: f32[32,48], index: 9, kind: input, shape index: {}]   ;;  %s4157_s10 = inlined_call_operand.vmem [shape: f32[16,32], index: 10, kind: input, shape index: {}]   ;;  %s4158_s11 = inlined_call_operand.vmem [shape: f32[2,8], index: 11, kind: input, shape index: {}]   ;;  %s4159_s12 = inlined_call_operand.vmem [shape: f32[2,8], index: 12, kind: input, shape index: {}]   ;;  %s4160_s13 = inlined_call_operand.vmem [shape: f32[1,32], index: 13, kind: input, shape index: {}, may-alias: {7,13,15}]   ;;  %s4161_s14 = inlined_call_operand.vmem [shape: f32[1,32], index: 14, kind: input, shape index: {}, may-alias: {8,14,16}]   ;;  %s4162_s15 = inlined_call_operand.vmem [shape: f32[1,32], index: 15, kind: input, shape index: {}, may-alias: {7,13,15}]   ;;  %s4163_s16 = inlined_call_operand.vmem [shape: f32[1,32], index: 16, kind: input, shape index: {}, may-alias: {8,14,16}]   ;;  %s4164_s17 = inlined_call_operand.vmem [shape: f32[32,32], index: 17, kind: input, shape index: {}]   ;;  %s4165_s18 = inlined_call_operand.vmem [shape: f32[32,64], index: 18, kind: input, shape index: {}]   ;;  %s4166_s19 = inlined_call_operand.vmem [shape: f32[32,32], index: 19, kind: input, shape index: {}]   ;;  %s4167_s20 = inlined_call_operand.vmem [shape: f32[2,16], index: 20, kind: input, shape index: {}]   ;;  %s4168_s21 = inlined_call_operand.vmem [shape: f32[2,16], index: 21, kind: input, shape index: {}]   ;;  %s4169_s22 = inlined_call_operand.vmem [shape: f32[2,16,32], index: 22, kind: output, shape index: {}]  }
   0x1   :  { %4172 = sst [smem:[#allocation2_spill]] %s4147_s0 }
   0x2   :  { %4173 = sst [smem:[#allocation3_spill]] %s4148_s1 }
   0x3   :  { %4174 = sst [smem:[#allocation4_spill]] %s4149_s2 }
   0x4   :  { %4175 = sst [smem:[#allocation5_spill]] %s4150_s3  ;;  %s3346_s3 = smov 0  }
   0x5   :  { %4176 = sst [smem:[#allocation6_spill]] %s4151_s4 }
   0x6   :  { %4177 = sst [smem:[#allocation7_spill]] %s4152_s5 }
   0x7   :  { %4178 = sst [smem:[#allocation8_spill]] %s4153_s6 }
   0x8 LB: > { %s2836_s28 = sadd.s32 4294967295, %s3218_s3   ;;  %p2840_p0 = scmp.ge.s32.totalorder %s3218_s3, 1  ;;  %s3218_s3 = sphi %s3346_s3, %s32_s3  }
   0x9   : > { %p612_p1 = scmp.lt.s32.totalorder %s3218_s3, 3 }
   0xb   : > { %p613_p2 = pnand %p2840_p0, %p612_p1 }
   0xc   : > { %p674_p3 = scmp.lt.s32.totalorder (!%p613_p2), %s2836_s28, 1  ;;  %s4179_s0 = sld [smem:[#allocation2_spill]] (!%p613_p2) }
   0xd   : > { %616 = sbr.rel (%p613_p2) target bundleno = 9292 (0x244c), region = 108  ;;  %s3221_s5 = smov (!%p613_p2), 104  }
   0xe   : > { %s3222_s24 = smov (!%p613_p2), 112   ;;  %s3223_s6 = smov (!%p613_p2), 120  }
   0xf   : > { %s4180_s2 = sld [smem:[#allocation6_spill]] (!%p613_p2)  ;;  %s3227_s25 = smov (!%p613_p2), 88  }
  0x10   : > { %s4181_s4 = sld [smem:[#allocation7_spill]] (!%p613_p2)  ;;  %s3228_s30 = smov (!%p613_p2), 16  }
  0x11   : > { %s4184_s27 = sld [smem:[#allocation5_spill]] (!%p613_p2) }
  0x12   : > { %s4187_s28 = smov (!%p674_p3, %s2836_s28), 1  ;;  %vm697_vm0 = vcmask 261120   ;;  %v3220_v4 = vmov 32.0   ;;  %v762_v21 = vld [vmem:[%s4156_s9 + $0x18] sm:$0xff]  ;;  %v761_v22 = vld [vmem:[%s4156_s9 + $0x10] sm:$0xff]  ;;  %v760_v23 = vld [vmem:[%s4156_s9 + $0x8] sm:$0xff] }
  0x13   : > { %s2917_s29 = sshll.u32 %s4187_s28, 4  ;;  %3000 = vrcp.f32 %v3220_v4  ;;  %781 = vmatpush.msra.mxu0 %v762_v21  ;;  %v759_v24 = vld [vmem:[%s4156_s9] sm:$0xff]  ;;  %vm800_vm8 = vcmask 64512   ;;  %vm1141_vm10 = vcmask 122880   ;;  %s4185_s1 = sld [smem:[#allocation8_spill]] }
  0x14   : > { %s3362_s23 = scalar_lea.vmem %s4179_s0, %s2917_s29  ;;  %v2993_v39 = vld [vmem:[%s4154_s7] ss:$0 sm:$0xff] }
  0x15   : > { %v3365_v0 = vld [vmem:[%s3362_s23] sm:$0xff]  ;;  %v3370_v2 = vld [vmem:[%s3362_s23 + $0x8] sm:$0xff]  ;;  %782 = vmatpush.msra.mxu0 %v761_v22 }
  0x16   : > { %v698_v1 = vsel %vm697_vm0, %v3365_v0, 0.0  ;;  %v701_v3 = vsel %vm697_vm0, %v3370_v2, 0.0  ;;  %v2994_v43 = vld [vmem:[%s4155_s8] ss:$0 sm:$0xff] }
  0x17   : > { %699 = vadd.xlane.f32.xlu0 %v698_v1  ;;  %783 = vmatpush.msra.mxu0 %v760_v23  ;;  %v1108_v63 = vld [vmem:[%s4180_s2] sm:$0x1]  ;;  %s4183_s2 = sld [smem:[#allocation4_spill]] }
  0x18   : > { %v1837_v1 = vld [vmem:[%s4181_s4] sm:$0x1]  ;;  %s3225_s4 = smov 8  }
  0x19   : > { %v3001_v5 = vpop.eup %3000  ;;  %784 = vmatpush.msra.mxu0 %v759_v24 }
  0x1a   : > { %v705_v6 = vmul.f32 32.0, %v3001_v5  ;;  %vm709_vm1 = vweird.f32 %v3001_v5 }
  0x1c   : > { %v706_v7 = vsub.f32 1.0, %v705_v6 }
  0x1e   : > { %v707_v8 = vmul.f32 %v3001_v5, %v706_v7 }
  0x1f   : > { %702 = vadd.xlane.f32.xlu0 %v701_v3 }
  0x20   : > { %v708_v9 = vadd.f32 %v3001_v5, %v707_v8 }
  0x22   : > { %v3374_v10 = vsel %vm709_vm1, %v3001_v5, %v708_v9 }
  0x8a   : > { %v700_v11 = vpop.xlane.xlu0 %699 }
  0x8b   : > { %v711_v12 = vmul.f32 %v3374_v10, %v700_v11 }
  0x8d   : > { %v713_v13 = vsub.f32 %v3365_v0, %v711_v12 }
  0x8f   : > { %v715_v14 = vmul.f32 %v713_v13, %v713_v13 }
  0x91   : > { %v717_v15 = vsel %vm697_vm0, %v715_v14, 0.0 }
  0x92   : > { %718 = vadd.xlane.f32.xlu1 %v717_v15  ;;  %v703_v16 = vpop.xlane.xlu0 %702 }
  0x93   : > { %v712_v17 = vmul.f32 %v3374_v10, %v703_v16 }
  0x95   : > { %v714_v18 = vsub.f32 %v3370_v2, %v712_v17 }
  0x97   : > { %v716_v19 = vmul.f32 %v714_v18, %v714_v18 }
  0x99   : > { %v720_v20 = vsel %vm697_vm0, %v716_v19, 0.0 }
  0x9a   : > { %721 = vadd.xlane.f32.xlu1 %v720_v20 }
 0x105   : > { %v719_v25 = vpop.xlane.xlu1 %718 }
 0x106   : > { %v723_v26 = vmul.f32 %v719_v25, %v3374_v10 }
 0x108   : > { %v725_v27 = vadd.f32 1e-05, %v723_v26 }
 0x10a   : > { %3002 = vrsqrt.f32 %v725_v27  ;;  %vm733_vm3 = vweird.f32 %v725_v27 }
 0x10d   : > { %v722_v28 = vpop.xlane.xlu1 %721 }
 0x10e   : > { %v724_v29 = vmul.f32 %v722_v28, %v3374_v10 }
 0x110   : > { %v3003_v30 = vpop.eup %3002  ;;  %v726_v31 = vadd.f32 1e-05, %v724_v29 }
 0x111   : > { %v728_v32 = vmul.f32 %v3003_v30, %v725_v27  ;;  %vm734_vm2 = vweird.f32 %v3003_v30 }
 0x112   : > { %3004 = vrsqrt.f32 %v726_v31  ;;  %vm735_vm4 = vmor %vm733_vm3, %vm734_vm2  ;;  %vm743_vm6 = vweird.f32 %v726_v31 }
 0x113   : > { %v729_v33 = vmul.f32 %v3003_v30, %v728_v32 }
 0x115   : > { %v730_v34 = vmul.f32 0.5, %v729_v33 }
 0x117   : > { %v731_v35 = vsub.f32 1.5, %v730_v34 }
 0x118   : > { %v3005_v36 = vpop.eup %3004 }
 0x119   : > { %v732_v37 = vmul.f32 %v3003_v30, %v731_v35  ;;  %v738_v38 = vmul.f32 %v3005_v36, %v726_v31  ;;  %vm744_vm5 = vweird.f32 %v3005_v36 }
 0x11a   : > { %vm745_vm7 = vmor %vm743_vm6, %vm744_vm5 }
 0x11b   : > { %v739_v40 = vmul.f32 %v3005_v36, %v738_v38  ;;  %v736_v41 = vsel %vm735_vm4, %v3003_v30, %v732_v37 }
 0x11c   : > { %v747_v42 = vmul.f32 %v736_v41, %v713_v13 }
 0x11d   : > { %v740_v44 = vmul.f32 0.5, %v739_v40 }
 0x11e   : > { %v752_v45 = vmul.f32 %v2993_v39, %v747_v42 }
 0x11f   : > { %v741_v46 = vsub.f32 1.5, %v740_v44 }
 0x120   : > { %v757_v47 = vadd.f32 %v2994_v43, %v752_v45 }
 0x121   : > { %v742_v48 = vmul.f32 %v3005_v36, %v741_v46 }
 0x122   : > { %2845 = vmatmul.msk.f32.vlgmr.msra.gmra.mxu0 %vm697_vm0, %v757_v47 }
 0x123   : > { %v746_v49 = vsel %vm745_vm7, %v3005_v36, %v742_v48 }
 0x124   : > { %v748_v50 = vmul.f32 %v746_v49, %v714_v18 }
 0x126   : > { %v753_v51 = vmul.f32 %v2993_v39, %v748_v50 }
 0x128   : > { %v758_v52 = vadd.f32 %v2994_v43, %v753_v51 }
 0x12a   : > { %2846 = vmatmul.msk.f32.gmra.mxu0 %vm697_vm0, %v758_v52 }
 0x19f   : > { %v3404_v53 = vpop.f32.mrf.mxu0 }
 0x1a0   : > { %922 = vrot.lane.b32.xlu1 %v3404_v53, %s3221_s5  ;;  %v3415_v55 = vmul.f32 0.35355338, %v3404_v53 }
 0x1a7   : > { %v3407_v54 = vpop.f32.mrf.mxu0 }
 0x1a8   : > { %924 = vrot.lane.b32.xlu0 %v3407_v54, %s3221_s5  ;;  %798 = vrot.lane.b32.xlu2 %v3407_v54, %s3222_s24  ;;  %v3420_v56 = vmul.f32 0.35355338, %v3407_v54  ;;  %s4182_s5 = sld [smem:[#allocation3_spill]] }
 0x1b0   : > { %796 = vrot.lane.b32.xlu2 %v3404_v53, %s3222_s24 }
 0x1b8   : > { %918 = vrot.lane.b32.xlu2 %v3415_v55, %s3223_s6 }
 0x1c0   : > { %920 = vrot.lane.b32.xlu2 %v3420_v56, %s3223_s6 }
 0x202   : > { %v799_v57 = vpop.permute.xlu2 %798 }
 0x203   : > { %2847 = vmatpush.xpose.msk.msra.mxu1 %vm800_vm8, %v799_v57  ;;  %2919 = vmatpush.xpose.msk.msra.mxu3 %vm800_vm8, %v799_v57 }
 0x20a   : > { %v797_v58 = vpop.permute.xlu2 %796 }
 0x20b   : > { %2848 = vmatpush.xpose.msk.msra.mxu1 %vm800_vm8, %v797_v58  ;;  %2920 = vmatpush.xpose.msk.msra.mxu3 %vm800_vm8, %v797_v58 }
 0x20e   : > { %2849 = vmatmul.msk.f32.vlgmr.msra.gmra.mxu1 %vm800_vm8, %v3415_v55  ;;  %2850 = vmatmul.msk.f32.vlgmr.msra.gmra.mxu3 %vm800_vm8, %v3420_v56 }
 0x212   : > { %v923_v60 = vpop.permute.xlu1 %922  ;;  %v919_v61 = vpop.permute.xlu2 %918 }
 0x21a   : > { %v925_v59 = vpop.permute.xlu0 %924  ;;  %v921_v62 = vpop.permute.xlu2 %920 }
 0x21b   : > { %2853 = vmatpush.xpose.msk.msrb.mxu3 %vm800_vm8, %v925_v59 }
 0x21f   : > { %2854 = vmatpush.xpose.msk.msrb.mxu3 %vm800_vm8, %v923_v60 }
 0x222   : > { %2855 = vmatmul.msk.f32.vlgmr.msrb.gmra.mxu3 %vm800_vm8, %v919_v61 }
 0x223   : > { %2863 = vmatpush.xpose.msk.msra.mxu3 %vm697_vm0, %v3370_v2 }
 0x227   : > { %2864 = vmatpush.xpose.msk.msra.mxu3 %vm697_vm0, %v3365_v0 }
 0x22a   : > { %2856 = vmatmul.msk.f32.gmra.mxu3 %vm800_vm8, %v921_v62 }
 0x22b   : > { %2890 = vmatpush.xpose.msk.msrb.mxu3 %vm697_vm0, %v3370_v2 }
 0x22f   : > { %2891 = vmatpush.xpose.msk.msrb.mxu3 %vm697_vm0, %v3365_v0  ;;  %v3457_v0 = vld [vmem:[%s4182_s5] sm:$0xff] }
 0x230   : > { %vm834_vm9 = vcmp.gt.f32.partialorder %v3457_v0, 0.5 }
 0x232   : > { %2865 = vmatmul.msk.f32.vlgmr.msra.gmra.mxu3 %vm697_vm0, %v1108_v63 }
 0x23a   : > { %2892 = vmatmul.msk.f32.vlgmr.msrb.gmra.mxu3 %vm697_vm0, %v1837_v1 }
 0x291   : > { %v3452_v3 = vpop.f32.mrf.mxu3 }
 0x2a5   : > { %v951_v2 = vpop.f32.mrf.mxu3 }
 0x2a6   : > { %v3462_v4 = vsel %vm834_vm9, %v951_v2, -1e+30 }
 0x2ad   : > { %v3464_v5 = vpop.f32.mrf.mxu3 }
 0x2b5   : > { %v3466_v6 = vpop.f32.mrf.mxu3 }
 0x2b6   : > { %v1138_v7 = vsub.f32 0.0, %v3466_v6 }
 0x2b8   : > { %v1139_v8 = vadd.f32 %v1138_v7, %v3466_v6 }
 0x2ba   : > { %v1140_v9 = vmul.f32 0.25, %v1139_v8 }
 0x2bc   : > { %v1142_v11 = vsel %vm1141_vm10, %v1140_v9, -inf }
 0x2bd   : > { %v3471_v12 = vpop.f32.mrf.mxu3  ;;  %1143 = vmax.xlane.f32.xlu0 %v1142_v11 }
 0x2be   : > { %v1861_v13 = vsub.f32 0.0, %v3471_v12 }
 0x2c0   : > { %v1862_v14 = vadd.f32 %v1861_v13, %v3471_v12 }
 0x2c2   : > { %v1863_v15 = vmul.f32 0.25, %v1862_v14 }
 0x2c4   : > { %v1864_v16 = vsel %vm1141_vm10, %v1863_v15, -inf }
 0x2c5   : > { %1865 = vmax.xlane.f32.xlu2 %v1864_v16 }
 0x330   : > { %v1144_v17 = vpop.xlane.xlu0 %1143 }
 0x331   : > { %v1145_v18 = vsub.f32 %v1140_v9, %v1144_v17 }
 0x333   : > { %v1146_v19 = vmul.f32 1.442695, %v1145_v18 }
 0x335   : > { %3006 = vpow2.f32 %v1146_v19 }
 0x338   : > { %v1866_v20 = vpop.xlane.xlu2 %1865 }
 0x339   : > { %v1867_v21 = vsub.f32 %v1863_v15, %v1866_v20 }
 0x33b   : > { %v3007_v22 = vpop.eup %3006  ;;  %v1868_v23 = vmul.f32 1.442695, %v1867_v21 }
 0x33c   : > { %v1148_v24 = vsel %vm1141_vm10, %v3007_v22, 0.0 }
 0x33d   : > { %3008 = vpow2.f32 %v1868_v23  ;;  %1149 = vadd.xlane.f32.xlu2 %v1148_v24 }
 0x343   : > { %v3009_v25 = vpop.eup %3008 }
 0x344   : > { %v1870_v26 = vsel %vm1141_vm10, %v3009_v25, 0.0 }
 0x345   : > { %1871 = vadd.xlane.f32.xlu1 %v1870_v26 }
 0x3b0   : > { %v1150_v27 = vpop.xlane.xlu2 %1149 }
 0x3b1   : > { %3010 = vlog2.f32 %v1150_v27 }
 0x3b7   : > { %v3011_v28 = vpop.eup %3010 }
 0x3b8   : > { %v1152_v29 = vmul.f32 0.6931472, %v3011_v28  ;;  %v1872_v30 = vpop.xlane.xlu1 %1871 }
 0x3b9   : > { %3012 = vlog2.f32 %v1872_v30 }
 0x3ba   : > { %v1153_v31 = vadd.f32 %v1152_v29, %v1144_v17 }
 0x3bc   : > { %v1154_v32 = vsub.f32 2.1972246, %v1153_v31 }
 0x3be   : > { %v1155_v33 = vmul.f32 4.0, %v1154_v32 }
 0x3bf   : > { %v3013_v34 = vpop.eup %3012 }
 0x3c0   : > { %v1874_v35 = vmul.f32 0.6931472, %v3013_v34  ;;  %v1156_v36 = vadd.f32 %v1155_v33, %v3466_v6 }
 0x3c2   : > { %v1875_v37 = vadd.f32 %v1874_v35, %v1866_v20  ;;  %v1157_v38 = vmax.f32 %v1156_v36, 0.0 }
 0x3c4   : > { %v1876_v39 = vsub.f32 2.1972246, %v1875_v37  ;;  %v1158_v40 = vsub.f32 0.0, %v1157_v38 }
 0x3c6   : > { %v1877_v41 = vmul.f32 4.0, %v1876_v39  ;;  %v1159_v42 = vadd.f32 %v1158_v40, %v3466_v6 }
 0x3c8   : > { %v1160_v43 = vmul.f32 0.35714287, %v1159_v42  ;;  %v1878_v44 = vadd.f32 %v1877_v41, %v3471_v12 }
 0x3ca   : > { %v1161_v45 = vsel %vm1141_vm10, %v1160_v43, -inf  ;;  %v1879_v46 = vmax.f32 %v1878_v44, 0.0 }
 0x3cb   : > { %1162 = vmax.xlane.f32.xlu2 %v1161_v45 }
 0x3cc   : > { %v1880_v47 = vsub.f32 0.0, %v1879_v46 }
 0x3ce   : > { %v1881_v48 = vadd.f32 %v1880_v47, %v3471_v12 }
 0x3d0   : > { %v1882_v49 = vmul.f32 0.35714287, %v1881_v48 }
 0x3d2   : > { %v1883_v50 = vsel %vm1141_vm10, %v1882_v49, -inf }
 0x3d3   : > { %1884 = vmax.xlane.f32.xlu0 %v1883_v50 }
 0x43e   : > { %v1163_v51 = vpop.xlane.xlu2 %1162 }
 0x43f   : > { %v1164_v52 = vsub.f32 %v1160_v43, %v1163_v51 }
 0x441   : > { %v1165_v57 = vmul.f32 1.442695, %v1164_v52 }
 0x443   : > { %3014 = vpow2.f32 %v1165_v57 }
 0x446   : > { %v1885_v58 = vpop.xlane.xlu0 %1884 }
 0x447   : > { %v1886_v59 = vsub.f32 %v1882_v49, %v1885_v58 }
 0x449   : > { %v3015_v60 = vpop.eup %3014  ;;  %v1887_v61 = vmul.f32 1.442695, %v1886_v59 }
 0x44a   : > { %v1167_v62 = vsel %vm1141_vm10, %v3015_v60, 0.0 }
 0x44b   : > { %3016 = vpow2.f32 %v1887_v61  ;;  %1168 = vadd.xlane.f32.xlu0 %v1167_v62 }
 0x451   : > { %v3017_v63 = vpop.eup %3016 }
 0x452   : > { %v1889_v1 = vsel %vm1141_vm10, %v3017_v63, 0.0 }
 0x453   : > { %1890 = vadd.xlane.f32.xlu1 %v1889_v1 }
 0x4be   : > { %v1169_v2 = vpop.xlane.xlu0 %1168 }
 0x4bf   : > { %3018 = vlog2.f32 %v1169_v2 }
 0x4c5   : > { %v3019_v7 = vpop.eup %3018 }
 0x4c6   : > { %v1171_v8 = vmul.f32 0.6931472, %v3019_v7  ;;  %v1891_v9 = vpop.xlane.xlu1 %1890 }
 0x4c7   : > { %3020 = vlog2.f32 %v1891_v9 }
 0x4c8   : > { %v1172_v11 = vadd.f32 %v1171_v8, %v1163_v51 }
 0x4ca   : > { %v1173_v13 = vsub.f32 2.1972246, %v1172_v11 }
 0x4cc   : > { %v1174_v14 = vmul.f32 2.8, %v1173_v13 }
 0x4cd   : > { %v3021_v15 = vpop.eup %3020 }
 0x4ce   : > { %v1893_v16 = vmul.f32 0.6931472, %v3021_v15  ;;  %v1175_v17 = vadd.f32 %v1174_v14, %v3466_v6 }
 0x4d0   : > { %v1894_v18 = vadd.f32 %v1893_v16, %v1885_v58  ;;  %v1176_v19 = vmax.f32 %v1175_v17, 0.0 }
 0x4d2   : > { %v1895_v20 = vsub.f32 2.1972246, %v1894_v18  ;;  %v1177_v21 = vsub.f32 0.0, %v1176_v19 }
 0x4d4   : > { %v1896_v22 = vmul.f32 2.8, %v1895_v20  ;;  %v1178_v23 = vadd.f32 %v1177_v21, %v3466_v6 }
 0x4d6   : > { %v1179_v24 = vmul.f32 0.5102041, %v1178_v23  ;;  %v1897_v25 = vadd.f32 %v1896_v22, %v3471_v12 }
 0x4d8   : > { %v1180_v26 = vsel %vm1141_vm10, %v1179_v24, -inf  ;;  %v1898_v27 = vmax.f32 %v1897_v25, 0.0 }
 0x4d9   : > { %1181 = vmax.xlane.f32.xlu1 %v1180_v26 }
 0x4da   : > { %v1899_v28 = vsub.f32 0.0, %v1898_v27 }
 0x4dc   : > { %v1900_v29 = vadd.f32 %v1899_v28, %v3471_v12 }
 0x4de   : > { %v1901_v30 = vmul.f32 0.5102041, %v1900_v29 }
 0x4e0   : > { %v1902_v31 = vsel %vm1141_vm10, %v1901_v30, -inf }
 0x4e1   : > { %1903 = vmax.xlane.f32.xlu2 %v1902_v31 }
 0x54c   : > { %v1182_v32 = vpop.xlane.xlu1 %1181 }
 0x54d   : > { %v1183_v33 = vsub.f32 %v1179_v24, %v1182_v32 }
 0x54f   : > { %v1184_v34 = vmul.f32 1.442695, %v1183_v33 }
 0x551   : > { %3022 = vpow2.f32 %v1184_v34 }
 0x554   : > { %v1904_v35 = vpop.xlane.xlu2 %1903 }
 0x555   : > { %v1905_v36 = vsub.f32 %v1901_v30, %v1904_v35 }
 0x557   : > { %v3023_v37 = vpop.eup %3022  ;;  %v1906_v38 = vmul.f32 1.442695, %v1905_v36 }
 0x558   : > { %v1186_v39 = vsel %vm1141_vm10, %v3023_v37, 0.0 }
 0x559   : > { %3024 = vpow2.f32 %v1906_v38  ;;  %1187 = vadd.xlane.f32.xlu2 %v1186_v39 }
 0x55f   : > { %v3025_v40 = vpop.eup %3024 }
 0x560   : > { %v1908_v41 = vsel %vm1141_vm10, %v3025_v40, 0.0 }
 0x561   : > { %1909 = vadd.xlane.f32.xlu0 %v1908_v41 }
 0x5cc   : > { %v1188_v42 = vpop.xlane.xlu2 %1187 }
 0x5cd   : > { %3026 = vlog2.f32 %v1188_v42 }
 0x5d3   : > { %v3027_v43 = vpop.eup %3026 }
 0x5d4   : > { %v1190_v44 = vmul.f32 0.6931472, %v3027_v43  ;;  %v1910_v45 = vpop.xlane.xlu0 %1909 }
 0x5d5   : > { %3028 = vlog2.f32 %v1910_v45 }
 0x5d6   : > { %v1191_v46 = vadd.f32 %v1190_v44, %v1182_v32 }
 0x5d8   : > { %v1192_v47 = vsub.f32 2.1972246, %v1191_v46 }
 0x5da   : > { %v1193_v48 = vmul.f32 1.96, %v1192_v47 }
 0x5db   : > { %v3029_v49 = vpop.eup %3028 }
 0x5dc   : > { %v1912_v50 = vmul.f32 0.6931472, %v3029_v49  ;;  %v1194_v51 = vadd.f32 %v1193_v48, %v3466_v6 }
 0x5de   : > { %v1913_v52 = vadd.f32 %v1912_v50, %v1904_v35  ;;  %v1195_v57 = vmax.f32 %v1194_v51, 0.0 }
 0x5e0   : > { %v1914_v58 = vsub.f32 2.1972246, %v1913_v52  ;;  %v1196_v59 = vsub.f32 0.0, %v1195_v57 }
 0x5e2   : > { %v1915_v60 = vmul.f32 1.96, %v1914_v58  ;;  %v1197_v61 = vadd.f32 %v1196_v59, %v3466_v6 }
 0x5e4   : > { %v1198_v62 = vmul.f32 0.728863, %v1197_v61  ;;  %v1916_v63 = vadd.f32 %v1915_v60, %v3471_v12 }
 0x5e6   : > { %v1199_v1 = vsel %vm1141_vm10, %v1198_v62, -inf  ;;  %v1917_v2 = vmax.f32 %v1916_v63, 0.0 }
 0x5e7   : > { %1200 = vmax.xlane.f32.xlu0 %v1199_v1 }
 0x5e8   : > { %v1918_v7 = vsub.f32 0.0, %v1917_v2 }
 0x5ea   : > { %v1919_v8 = vadd.f32 %v1918_v7, %v3471_v12 }
 0x5ec   : > { %v1920_v9 = vmul.f32 0.728863, %v1919_v8 }
 0x5ee   : > { %v1921_v11 = vsel %vm1141_vm10, %v1920_v9, -inf }
 0x5ef   : > { %1922 = vmax.xlane.f32.xlu1 %v1921_v11 }
 0x65a   : > { %v1201_v13 = vpop.xlane.xlu0 %1200 }
 0x65b   : > { %v1202_v14 = vsub.f32 %v1198_v62, %v1201_v13 }
 0x65d   : > { %v1203_v15 = vmul.f32 1.442695, %v1202_v14 }
 0x65f   : > { %3030 = vpow2.f32 %v1203_v15 }
 0x662   : > { %v1923_v16 = vpop.xlane.xlu1 %1922 }
 0x663   : > { %v1924_v17 = vsub.f32 %v1920_v9, %v1923_v16 }
 0x665   : > { %v3031_v18 = vpop.eup %3030  ;;  %v1925_v19 = vmul.f32 1.442695, %v1924_v17 }
 0x666   : > { %v1205_v20 = vsel %vm1141_vm10, %v3031_v18, 0.0 }
 0x667   : > { %3032 = vpow2.f32 %v1925_v19  ;;  %1206 = vadd.xlane.f32.xlu1 %v1205_v20 }
 0x66d   : > { %v3033_v21 = vpop.eup %3032 }
 0x66e   : > { %v1927_v22 = vsel %vm1141_vm10, %v3033_v21, 0.0 }
 0x66f   : > { %1928 = vadd.xlane.f32.xlu2 %v1927_v22 }
 0x6da   : > { %v1207_v23 = vpop.xlane.xlu1 %1206 }
 0x6db   : > { %3034 = vlog2.f32 %v1207_v23 }
 0x6e1   : > { %v3035_v24 = vpop.eup %3034 }
 0x6e2   : > { %v1209_v25 = vmul.f32 0.6931472, %v3035_v24  ;;  %v1929_v26 = vpop.xlane.xlu2 %1928 }
 0x6e3   : > { %3036 = vlog2.f32 %v1929_v26 }
 0x6e4   : > { %v1210_v27 = vadd.f32 %v1209_v25, %v1201_v13 }
 0x6e6   : > { %v1211_v28 = vsub.f32 2.1972246, %v1210_v27 }
 0x6e8   : > { %v1212_v29 = vmul.f32 1.372, %v1211_v28 }
 0x6e9   : > { %v3037_v30 = vpop.eup %3036 }
 0x6ea   : > { %v1931_v31 = vmul.f32 0.6931472, %v3037_v30  ;;  %v1213_v32 = vadd.f32 %v1212_v29, %v3466_v6 }
 0x6ec   : > { %v1932_v33 = vadd.f32 %v1931_v31, %v1923_v16  ;;  %v1214_v34 = vmax.f32 %v1213_v32, 0.0 }
 0x6ee   : > { %v1933_v35 = vsub.f32 2.1972246, %v1932_v33  ;;  %v1215_v36 = vsub.f32 0.0, %v1214_v34 }
 0x6f0   : > { %v1934_v37 = vmul.f32 1.372, %v1933_v35  ;;  %v1216_v38 = vadd.f32 %v1215_v36, %v3466_v6 }
 0x6f2   : > { %v1217_v39 = vsel %vm1141_vm10, %v1216_v38, -inf  ;;  %v1935_v40 = vadd.f32 %v1934_v37, %v3471_v12 }
 0x6f3   : > { %1218 = vmax.xlane.f32.xlu2 %v1217_v39 }
 0x6f4   : > { %v1936_v41 = vmax.f32 %v1935_v40, 0.0 }
 0x6f6   : > { %v1937_v42 = vsub.f32 0.0, %v1936_v41 }
 0x6f8   : > { %v1938_v43 = vadd.f32 %v1937_v42, %v3471_v12 }
 0x6fa   : > { %v1939_v44 = vsel %vm1141_vm10, %v1938_v43, -inf }
 0x6fb   : > { %1940 = vmax.xlane.f32.xlu0 %v1939_v44 }
 0x766   : > { %v1219_v45 = vpop.xlane.xlu2 %1218 }
 0x767   : > { %v1220_v46 = vsub.f32 %v1216_v38, %v1219_v45 }
 0x769   : > { %v1221_v47 = vmul.f32 1.442695, %v1220_v46 }
 0x76b   : > { %3038 = vpow2.f32 %v1221_v47 }
 0x76e   : > { %v1941_v48 = vpop.xlane.xlu0 %1940 }
 0x76f   : > { %v1942_v49 = vsub.f32 %v1938_v43, %v1941_v48 }
 0x771   : > { %v3039_v50 = vpop.eup %3038  ;;  %v1943_v51 = vmul.f32 1.442695, %v1942_v49 }
 0x772   : > { %v1223_v52 = vsel %vm1141_vm10, %v3039_v50, 0.0 }
 0x773   : > { %3040 = vpow2.f32 %v1943_v51  ;;  %1224 = vadd.xlane.f32.xlu0 %v1223_v52 }
 0x779   : > { %v3041_v57 = vpop.eup %3040 }
 0x77a   : > { %v1945_v58 = vsel %vm1141_vm10, %v3041_v57, 0.0 }
 0x77b   : > { %1946 = vadd.xlane.f32.xlu1 %v1945_v58 }
 0x7e6   : > { %v1225_v59 = vpop.xlane.xlu0 %1224 }
 0x7e7   : > { %3042 = vlog2.f32 %v1225_v59 }
 0x7ed   : > { %v3043_v60 = vpop.eup %3042 }
 0x7ee   : > { %v1227_v61 = vmul.f32 0.6931472, %v3043_v60  ;;  %v1947_v62 = vpop.xlane.xlu1 %1946 }
 0x7ef   : > { %3044 = vlog2.f32 %v1947_v62 }
 0x7f0   : > { %v1228_v63 = vadd.f32 %v1227_v61, %v1219_v45 }
 0x7f2   : > { %v1229_v1 = vsub.f32 2.1972246, %v1228_v63 }
 0x7f4   : > { %v1230_v2 = vadd.f32 %v1229_v1, %v3466_v6 }
 0x7f5   : > { %v3045_v7 = vpop.eup %3044 }
 0x7f6   : > { %v1949_v8 = vmul.f32 0.6931472, %v3045_v7  ;;  %v1231_v9 = vmax.f32 %v1230_v2, 0.0 }
 0x7f8   : > { %v1950_v11 = vadd.f32 %v1949_v8, %v1941_v48  ;;  %v1232_v13 = vsub.f32 0.0, %v1231_v9 }
 0x7fa   : > { %v1951_v14 = vsub.f32 2.1972246, %v1950_v11  ;;  %v1233_v15 = vadd.f32 %v1232_v13, %v3466_v6 }
 0x7fc   : > { %v1234_v16 = vsel %vm1141_vm10, %v1233_v15, -inf  ;;  %v1952_v17 = vadd.f32 %v1951_v14, %v3471_v12 }
 0x7fd   : > { %1235 = vmax.xlane.f32.xlu1 %v1234_v16 }
 0x7fe   : > { %v1953_v18 = vmax.f32 %v1952_v17, 0.0 }
 0x800   : > { %v1954_v19 = vsub.f32 0.0, %v1953_v18 }
 0x802   : > { %v1955_v20 = vadd.f32 %v1954_v19, %v3471_v12 }
 0x804   : > { %v1956_v21 = vsel %vm1141_vm10, %v1955_v20, -inf }
 0x805   : > { %1957 = vmax.xlane.f32.xlu2 %v1956_v21 }
 0x870   : > { %v1236_v22 = vpop.xlane.xlu1 %1235 }
 0x871   : > { %v1237_v23 = vsub.f32 %v1233_v15, %v1236_v22 }
 0x873   : > { %v1238_v24 = vmul.f32 1.442695, %v1237_v23 }
 0x875   : > { %3046 = vpow2.f32 %v1238_v24 }
 0x878   : > { %v1958_v25 = vpop.xlane.xlu2 %1957 }
 0x879   : > { %v1959_v26 = vsub.f32 %v1955_v20, %v1958_v25 }
 0x87b   : > { %v3047_v27 = vpop.eup %3046  ;;  %v1960_v28 = vmul.f32 1.442695, %v1959_v26 }
 0x87c   : > { %v1240_v29 = vsel %vm1141_vm10, %v3047_v27, 0.0 }
 0x87d   : > { %3048 = vpow2.f32 %v1960_v28  ;;  %1241 = vadd.xlane.f32.xlu2 %v1240_v29 }
 0x883   : > { %v3049_v30 = vpop.eup %3048 }
 0x884   : > { %v1962_v31 = vsel %vm1141_vm10, %v3049_v30, 0.0 }
 0x885   : > { %1963 = vadd.xlane.f32.xlu0 %v1962_v31 }
 0x8f0   : > { %v1242_v32 = vpop.xlane.xlu2 %1241 }
 0x8f1   : > { %3050 = vlog2.f32 %v1242_v32 }
 0x8f7   : > { %v3051_v33 = vpop.eup %3050 }
 0x8f8   : > { %v1244_v34 = vmul.f32 0.6931472, %v3051_v33  ;;  %v1964_v35 = vpop.xlane.xlu0 %1963 }
 0x8f9   : > { %3052 = vlog2.f32 %v1964_v35 }
 0x8fa   : > { %v1245_v36 = vadd.f32 %v1244_v34, %v1236_v22 }
 0x8fc   : > { %v1246_v37 = vsub.f32 2.1972246, %v1245_v36 }
 0x8fe   : > { %v1247_v38 = vadd.f32 %v1246_v37, %v3466_v6 }
 0x8ff   : > { %v3053_v39 = vpop.eup %3052 }
 0x900   : > { %v1966_v40 = vmul.f32 0.6931472, %v3053_v39  ;;  %v1248_v41 = vmax.f32 %v1247_v38, 0.0 }
 0x902   : > { %v1967_v42 = vadd.f32 %v1966_v40, %v1958_v25  ;;  %v1249_v43 = vsub.f32 0.0, %v1248_v41 }
 0x904   : > { %v1968_v44 = vsub.f32 2.1972246, %v1967_v42  ;;  %v1250_v45 = vadd.f32 %v1249_v43, %v3466_v6 }
 0x906   : > { %v1251_v46 = vsel %vm1141_vm10, %v1250_v45, -inf  ;;  %v1969_v47 = vadd.f32 %v1968_v44, %v3471_v12 }
 0x907   : > { %1252 = vmax.xlane.f32.xlu0 %v1251_v46 }
 0x908   : > { %v1970_v48 = vmax.f32 %v1969_v47, 0.0 }
 0x90a   : > { %v1971_v49 = vsub.f32 0.0, %v1970_v48 }
 0x90c   : > { %v1972_v50 = vadd.f32 %v1971_v49, %v3471_v12 }
 0x90e   : > { %v1973_v51 = vsel %vm1141_vm10, %v1972_v50, -inf }
 0x90f   : > { %1974 = vmax.xlane.f32.xlu1 %v1973_v51 }
 0x97a   : > { %v1253_v52 = vpop.xlane.xlu0 %1252 }
 0x97b   : > { %v1254_v57 = vsub.f32 %v1250_v45, %v1253_v52 }
 0x97d   : > { %v1255_v58 = vmul.f32 1.442695, %v1254_v57 }
 0x97f   : > { %3054 = vpow2.f32 %v1255_v58 }
 0x982   : > { %v1975_v59 = vpop.xlane.xlu1 %1974 }
 0x983   : > { %v1976_v60 = vsub.f32 %v1972_v50, %v1975_v59 }
 0x985   : > { %v3055_v61 = vpop.eup %3054  ;;  %v1977_v62 = vmul.f32 1.442695, %v1976_v60 }
 0x986   : > { %v1257_v63 = vsel %vm1141_vm10, %v3055_v61, 0.0 }
 0x987   : > { %3056 = vpow2.f32 %v1977_v62  ;;  %1258 = vadd.xlane.f32.xlu1 %v1257_v63 }
 0x98d   : > { %v3057_v1 = vpop.eup %3056 }
 0x98e   : > { %v1979_v2 = vsel %vm1141_vm10, %v3057_v1, 0.0 }
 0x98f   : > { %1980 = vadd.xlane.f32.xlu2 %v1979_v2 }
 0x9fa   : > { %v1259_v7 = vpop.xlane.xlu1 %1258 }
 0x9fb   : > { %3058 = vlog2.f32 %v1259_v7 }
 0xa01   : > { %v3059_v8 = vpop.eup %3058 }
 0xa02   : > { %v1261_v9 = vmul.f32 0.6931472, %v3059_v8  ;;  %v1981_v11 = vpop.xlane.xlu2 %1980 }
 0xa03   : > { %3060 = vlog2.f32 %v1981_v11 }
 0xa04   : > { %v1262_v13 = vadd.f32 %v1261_v9, %v1253_v52 }
 0xa06   : > { %v1263_v14 = vsub.f32 2.1972246, %v1262_v13 }
 0xa08   : > { %v1264_v15 = vadd.f32 %v1263_v14, %v3466_v6 }
 0xa09   : > { %v3061_v16 = vpop.eup %3060 }
 0xa0a   : > { %v1983_v17 = vmul.f32 0.6931472, %v3061_v16  ;;  %v1265_v18 = vmax.f32 %v1264_v15, 0.0 }
 0xa0c   : > { %v1984_v19 = vadd.f32 %v1983_v17, %v1975_v59  ;;  %v1266_v20 = vsub.f32 0.0, %v1265_v18 }
 0xa0e   : > { %v1985_v21 = vsub.f32 2.1972246, %v1984_v19  ;;  %v1267_v22 = vadd.f32 %v1266_v20, %v3466_v6 }
 0xa10   : > { %v1268_v23 = vsel %vm1141_vm10, %v1267_v22, -inf  ;;  %v1986_v24 = vadd.f32 %v1985_v21, %v3471_v12 }
 0xa11   : > { %1269 = vmax.xlane.f32.xlu2 %v1268_v23 }
 0xa12   : > { %v1987_v25 = vmax.f32 %v1986_v24, 0.0 }
 0xa14   : > { %v1988_v26 = vsub.f32 0.0, %v1987_v25 }
 0xa16   : > { %v1989_v27 = vadd.f32 %v1988_v26, %v3471_v12 }
 0xa18   : > { %v1990_v28 = vsel %vm1141_vm10, %v1989_v27, -inf }
 0xa19   : > { %1991 = vmax.xlane.f32.xlu0 %v1990_v28 }
 0xa84   : > { %v1270_v29 = vpop.xlane.xlu2 %1269 }
 0xa85   : > { %v1271_v30 = vsub.f32 %v1267_v22, %v1270_v29 }
 0xa87   : > { %v1272_v31 = vmul.f32 1.442695, %v1271_v30 }
 0xa89   : > { %3062 = vpow2.f32 %v1272_v31 }
 0xa8c   : > { %v1992_v32 = vpop.xlane.xlu0 %1991 }
 0xa8d   : > { %v1993_v33 = vsub.f32 %v1989_v27, %v1992_v32 }
 0xa8f   : > { %v3063_v34 = vpop.eup %3062  ;;  %v1994_v35 = vmul.f32 1.442695, %v1993_v33 }
 0xa90   : > { %v1274_v36 = vsel %vm1141_vm10, %v3063_v34, 0.0 }
 0xa91   : > { %3064 = vpow2.f32 %v1994_v35  ;;  %1275 = vadd.xlane.f32.xlu0 %v1274_v36 }
 0xa97   : > { %v3065_v37 = vpop.eup %3064 }
 0xa98   : > { %v1996_v38 = vsel %vm1141_vm10, %v3065_v37, 0.0 }
 0xa99   : > { %1997 = vadd.xlane.f32.xlu1 %v1996_v38 }
 0xb04   : > { %v1276_v39 = vpop.xlane.xlu0 %1275 }
 0xb05   : > { %3066 = vlog2.f32 %v1276_v39 }
 0xb0b   : > { %v3067_v40 = vpop.eup %3066 }
 0xb0c   : > { %v1278_v41 = vmul.f32 0.6931472, %v3067_v40  ;;  %v1998_v42 = vpop.xlane.xlu1 %1997 }
 0xb0d   : > { %3068 = vlog2.f32 %v1998_v42 }
 0xb0e   : > { %v1279_v43 = vadd.f32 %v1278_v41, %v1270_v29 }
 0xb10   : > { %v1280_v44 = vsub.f32 2.1972246, %v1279_v43 }
 0xb12   : > { %v1281_v45 = vadd.f32 %v1280_v44, %v3466_v6 }
 0xb13   : > { %v3069_v46 = vpop.eup %3068 }
 0xb14   : > { %v2000_v47 = vmul.f32 0.6931472, %v3069_v46  ;;  %v1282_v48 = vmax.f32 %v1281_v45, 0.0 }
 0xb16   : > { %v2001_v49 = vadd.f32 %v2000_v47, %v1992_v32  ;;  %v1283_v50 = vsub.f32 0.0, %v1282_v48 }
 0xb18   : > { %v2002_v51 = vsub.f32 2.1972246, %v2001_v49  ;;  %v1284_v52 = vadd.f32 %v1283_v50, %v3466_v6 }
 0xb1a   : > { %v1285_v57 = vsel %vm1141_vm10, %v1284_v52, -inf  ;;  %v2003_v58 = vadd.f32 %v2002_v51, %v3471_v12 }
 0xb1b   : > { %1286 = vmax.xlane.f32.xlu1 %v1285_v57 }
 0xb1c   : > { %v2004_v59 = vmax.f32 %v2003_v58, 0.0 }
 0xb1e   : > { %v2005_v60 = vsub.f32 0.0, %v2004_v59 }
 0xb20   : > { %v2006_v61 = vadd.f32 %v2005_v60, %v3471_v12 }
 0xb22   : > { %v2007_v62 = vsel %vm1141_vm10, %v2006_v61, -inf }
 0xb23   : > { %2008 = vmax.xlane.f32.xlu2 %v2007_v62 }
 0xb8e   : > { %v1287_v63 = vpop.xlane.xlu1 %1286 }
 0xb8f   : > { %v1288_v1 = vsub.f32 %v1284_v52, %v1287_v63 }
 0xb91   : > { %v1289_v2 = vmul.f32 1.442695, %v1288_v1 }
 0xb93   : > { %3070 = vpow2.f32 %v1289_v2 }
 0xb96   : > { %v2009_v7 = vpop.xlane.xlu2 %2008 }
 0xb97   : > { %v2010_v8 = vsub.f32 %v2006_v61, %v2009_v7 }
 0xb99   : > { %v3071_v9 = vpop.eup %3070  ;;  %v2011_v11 = vmul.f32 1.442695, %v2010_v8 }
 0xb9a   : > { %v1291_v13 = vsel %vm1141_vm10, %v3071_v9, 0.0 }
 0xb9b   : > { %3072 = vpow2.f32 %v2011_v11  ;;  %1292 = vadd.xlane.f32.xlu2 %v1291_v13 }
 0xba1   : > { %v3073_v14 = vpop.eup %3072 }
 0xba2   : > { %v2013_v15 = vsel %vm1141_vm10, %v3073_v14, 0.0 }
 0xba3   : > { %2014 = vadd.xlane.f32.xlu0 %v2013_v15 }
 0xc0e   : > { %v1293_v16 = vpop.xlane.xlu2 %1292 }
 0xc0f   : > { %3074 = vlog2.f32 %v1293_v16 }
 0xc15   : > { %v3075_v17 = vpop.eup %3074 }
 0xc16   : > { %v1295_v18 = vmul.f32 0.6931472, %v3075_v17  ;;  %v2015_v19 = vpop.xlane.xlu0 %2014 }
 0xc17   : > { %3076 = vlog2.f32 %v2015_v19 }
 0xc18   : > { %v1296_v20 = vadd.f32 %v1295_v18, %v1287_v63 }
 0xc1a   : > { %v1297_v21 = vsub.f32 2.1972246, %v1296_v20 }
 0xc1c   : > { %v1298_v22 = vadd.f32 %v1297_v21, %v3466_v6 }
 0xc1d   : > { %v3077_v23 = vpop.eup %3076 }
 0xc1e   : > { %v2017_v24 = vmul.f32 0.6931472, %v3077_v23  ;;  %v1299_v25 = vmax.f32 %v1298_v22, 0.0 }
 0xc20   : > { %v2018_v26 = vadd.f32 %v2017_v24, %v2009_v7  ;;  %v1300_v27 = vsub.f32 0.0, %v1299_v25 }
 0xc22   : > { %v2019_v28 = vsub.f32 2.1972246, %v2018_v26  ;;  %v1301_v29 = vadd.f32 %v1300_v27, %v3466_v6 }
 0xc24   : > { %v1302_v30 = vsel %vm1141_vm10, %v1301_v29, -inf  ;;  %v2020_v31 = vadd.f32 %v2019_v28, %v3471_v12 }
 0xc25   : > { %1303 = vmax.xlane.f32.xlu0 %v1302_v30 }
 0xc26   : > { %v2021_v32 = vmax.f32 %v2020_v31, 0.0 }
 0xc28   : > { %v2022_v33 = vsub.f32 0.0, %v2021_v32 }
 0xc2a   : > { %v2023_v34 = vadd.f32 %v2022_v33, %v3471_v12 }
 0xc2c   : > { %v2024_v35 = vsel %vm1141_vm10, %v2023_v34, -inf }
 0xc2d   : > { %2025 = vmax.xlane.f32.xlu1 %v2024_v35 }
 0xc98   : > { %v1304_v36 = vpop.xlane.xlu0 %1303 }
 0xc99   : > { %v1305_v37 = vsub.f32 %v1301_v29, %v1304_v36 }
 0xc9b   : > { %v1306_v38 = vmul.f32 1.442695, %v1305_v37 }
 0xc9d   : > { %3078 = vpow2.f32 %v1306_v38 }
 0xca0   : > { %v2026_v39 = vpop.xlane.xlu1 %2025 }
 0xca1   : > { %v2027_v40 = vsub.f32 %v2023_v34, %v2026_v39 }
 0xca3   : > { %v3079_v41 = vpop.eup %3078  ;;  %v2028_v42 = vmul.f32 1.442695, %v2027_v40 }
 0xca4   : > { %v1308_v43 = vsel %vm1141_vm10, %v3079_v41, 0.0 }
 0xca5   : > { %3080 = vpow2.f32 %v2028_v42  ;;  %1309 = vadd.xlane.f32.xlu1 %v1308_v43 }
 0xcab   : > { %v3081_v44 = vpop.eup %3080 }
 0xcac   : > { %v2030_v45 = vsel %vm1141_vm10, %v3081_v44, 0.0 }
 0xcad   : > { %2031 = vadd.xlane.f32.xlu2 %v2030_v45 }
 0xd18   : > { %v1310_v46 = vpop.xlane.xlu1 %1309 }
 0xd19   : > { %3082 = vlog2.f32 %v1310_v46 }
 0xd1f   : > { %v3083_v47 = vpop.eup %3082 }
 0xd20   : > { %v1312_v48 = vmul.f32 0.6931472, %v3083_v47  ;;  %v2032_v49 = vpop.xlane.xlu2 %2031 }
 0xd21   : > { %3084 = vlog2.f32 %v2032_v49 }
 0xd22   : > { %v1313_v50 = vadd.f32 %v1312_v48, %v1304_v36 }
 0xd24   : > { %v1314_v51 = vsub.f32 2.1972246, %v1313_v50 }
 0xd26   : > { %v1315_v52 = vadd.f32 %v1314_v51, %v3466_v6 }
 0xd27   : > { %v3085_v57 = vpop.eup %3084 }
 0xd28   : > { %v2034_v58 = vmul.f32 0.6931472, %v3085_v57  ;;  %v1316_v59 = vmax.f32 %v1315_v52, 0.0 }
 0xd2a   : > { %v2035_v60 = vadd.f32 %v2034_v58, %v2026_v39  ;;  %v1317_v61 = vsub.f32 0.0, %v1316_v59 }
 0xd2c   : > { %v2036_v62 = vsub.f32 2.1972246, %v2035_v60  ;;  %v1318_v63 = vadd.f32 %v1317_v61, %v3466_v6 }
 0xd2e   : > { %v1319_v1 = vsel %vm1141_vm10, %v1318_v63, -inf  ;;  %v2037_v2 = vadd.f32 %v2036_v62, %v3471_v12 }
 0xd2f   : > { %1320 = vmax.xlane.f32.xlu2 %v1319_v1 }
 0xd30   : > { %v2038_v7 = vmax.f32 %v2037_v2, 0.0 }
 0xd32   : > { %v2039_v8 = vsub.f32 0.0, %v2038_v7 }
 0xd34   : > { %v2040_v9 = vadd.f32 %v2039_v8, %v3471_v12 }
 0xd36   : > { %v2041_v11 = vsel %vm1141_vm10, %v2040_v9, -inf }
 0xd37   : > { %2042 = vmax.xlane.f32.xlu0 %v2041_v11 }
 0xda2   : > { %v1321_v13 = vpop.xlane.xlu2 %1320 }
 0xda3   : > { %v1322_v14 = vsub.f32 %v1318_v63, %v1321_v13 }
 0xda5   : > { %v1323_v15 = vmul.f32 1.442695, %v1322_v14 }
 0xda7   : > { %3086 = vpow2.f32 %v1323_v15 }
 0xdaa   : > { %v2043_v16 = vpop.xlane.xlu0 %2042 }
 0xdab   : > { %v2044_v17 = vsub.f32 %v2040_v9, %v2043_v16 }
 0xdad   : > { %v3087_v18 = vpop.eup %3086  ;;  %v2045_v19 = vmul.f32 1.442695, %v2044_v17 }
 0xdae   : > { %v1325_v20 = vsel %vm1141_vm10, %v3087_v18, 0.0 }
 0xdaf   : > { %3088 = vpow2.f32 %v2045_v19  ;;  %1326 = vadd.xlane.f32.xlu0 %v1325_v20 }
 0xdb5   : > { %v3089_v21 = vpop.eup %3088 }
 0xdb6   : > { %v2047_v22 = vsel %vm1141_vm10, %v3089_v21, 0.0 }
 0xdb7   : > { %2048 = vadd.xlane.f32.xlu1 %v2047_v22 }
 0xe22   : > { %v1327_v23 = vpop.xlane.xlu0 %1326 }
 0xe23   : > { %3090 = vlog2.f32 %v1327_v23 }
 0xe29   : > { %v3091_v24 = vpop.eup %3090 }
 0xe2a   : > { %v1329_v25 = vmul.f32 0.6931472, %v3091_v24  ;;  %v2049_v26 = vpop.xlane.xlu1 %2048 }
 0xe2b   : > { %3092 = vlog2.f32 %v2049_v26 }
 0xe2c   : > { %v1330_v27 = vadd.f32 %v1329_v25, %v1321_v13 }
 0xe2e   : > { %v1331_v28 = vsub.f32 2.1972246, %v1330_v27 }
 0xe30   : > { %v1332_v29 = vadd.f32 %v1331_v28, %v3466_v6 }
 0xe31   : > { %v3093_v30 = vpop.eup %3092 }
 0xe32   : > { %v2051_v31 = vmul.f32 0.6931472, %v3093_v30  ;;  %v1333_v32 = vmax.f32 %v1332_v29, 0.0 }
 0xe34   : > { %v2052_v33 = vadd.f32 %v2051_v31, %v2043_v16  ;;  %v1334_v34 = vsub.f32 0.0, %v1333_v32 }
 0xe36   : > { %v2053_v35 = vsub.f32 2.1972246, %v2052_v33  ;;  %v1335_v36 = vadd.f32 %v1334_v34, %v3466_v6 }
 0xe38   : > { %v1336_v37 = vsel %vm1141_vm10, %v1335_v36, -inf  ;;  %v2054_v38 = vadd.f32 %v2053_v35, %v3471_v12 }
 0xe39   : > { %1337 = vmax.xlane.f32.xlu1 %v1336_v37 }
 0xe3a   : > { %v2055_v39 = vmax.f32 %v2054_v38, 0.0 }
 0xe3c   : > { %v2056_v40 = vsub.f32 0.0, %v2055_v39 }
 0xe3e   : > { %v2057_v41 = vadd.f32 %v2056_v40, %v3471_v12 }
 0xe40   : > { %v2058_v42 = vsel %vm1141_vm10, %v2057_v41, -inf }
 0xe41   : > { %2059 = vmax.xlane.f32.xlu2 %v2058_v42 }
 0xeac   : > { %v1338_v43 = vpop.xlane.xlu1 %1337 }
 0xead   : > { %v1339_v44 = vsub.f32 %v1335_v36, %v1338_v43 }
 0xeaf   : > { %v1340_v45 = vmul.f32 1.442695, %v1339_v44 }
 0xeb1   : > { %3094 = vpow2.f32 %v1340_v45 }
 0xeb4   : > { %v2060_v46 = vpop.xlane.xlu2 %2059 }
 0xeb5   : > { %v2061_v47 = vsub.f32 %v2057_v41, %v2060_v46 }
 0xeb7   : > { %v3095_v48 = vpop.eup %3094  ;;  %v2062_v49 = vmul.f32 1.442695, %v2061_v47 }
 0xeb8   : > { %v1342_v50 = vsel %vm1141_vm10, %v3095_v48, 0.0 }
 0xeb9   : > { %3096 = vpow2.f32 %v2062_v49  ;;  %1343 = vadd.xlane.f32.xlu2 %v1342_v50 }
 0xebf   : > { %v3097_v51 = vpop.eup %3096 }
 0xec0   : > { %v2064_v52 = vsel %vm1141_vm10, %v3097_v51, 0.0 }
 0xec1   : > { %2065 = vadd.xlane.f32.xlu0 %v2064_v52 }
 0xf2c   : > { %v1344_v57 = vpop.xlane.xlu2 %1343 }
 0xf2d   : > { %3098 = vlog2.f32 %v1344_v57 }
 0xf33   : > { %v3099_v58 = vpop.eup %3098 }
 0xf34   : > { %v1346_v59 = vmul.f32 0.6931472, %v3099_v58  ;;  %v2066_v60 = vpop.xlane.xlu0 %2065 }
 0xf35   : > { %3100 = vlog2.f32 %v2066_v60 }
 0xf36   : > { %v1347_v61 = vadd.f32 %v1346_v59, %v1338_v43 }
 0xf38   : > { %v1348_v62 = vsub.f32 2.1972246, %v1347_v61 }
 0xf3a   : > { %v1349_v63 = vadd.f32 %v1348_v62, %v3466_v6 }
 0xf3b   : > { %v3101_v1 = vpop.eup %3100 }
 0xf3c   : > { %v2068_v2 = vmul.f32 0.6931472, %v3101_v1  ;;  %v1350_v7 = vmax.f32 %v1349_v63, 0.0 }
 0xf3e   : > { %v2069_v8 = vadd.f32 %v2068_v2, %v2060_v46  ;;  %v1351_v9 = vsub.f32 0.0, %v1350_v7 }
 0xf40   : > { %v2070_v11 = vsub.f32 2.1972246, %v2069_v8  ;;  %v1352_v13 = vadd.f32 %v1351_v9, %v3466_v6 }
 0xf42   : > { %v1353_v14 = vsel %vm1141_vm10, %v1352_v13, -inf  ;;  %v2071_v15 = vadd.f32 %v2070_v11, %v3471_v12 }
 0xf43   : > { %1354 = vmax.xlane.f32.xlu0 %v1353_v14 }
 0xf44   : > { %v2072_v16 = vmax.f32 %v2071_v15, 0.0 }
 0xf46   : > { %v2073_v17 = vsub.f32 0.0, %v2072_v16 }
 0xf48   : > { %v2074_v18 = vadd.f32 %v2073_v17, %v3471_v12 }
 0xf4a   : > { %v2075_v19 = vsel %vm1141_vm10, %v2074_v18, -inf }
 0xf4b   : > { %2076 = vmax.xlane.f32.xlu1 %v2075_v19 }
 0xfb6   : > { %v1355_v20 = vpop.xlane.xlu0 %1354 }
 0xfb7   : > { %v1356_v21 = vsub.f32 %v1352_v13, %v1355_v20 }
 0xfb9   : > { %v1357_v22 = vmul.f32 1.442695, %v1356_v21 }
 0xfbb   : > { %3102 = vpow2.f32 %v1357_v22 }
 0xfbe   : > { %v2077_v23 = vpop.xlane.xlu1 %2076 }
 0xfbf   : > { %v2078_v24 = vsub.f32 %v2074_v18, %v2077_v23 }
 0xfc1   : > { %v3103_v25 = vpop.eup %3102  ;;  %v2079_v26 = vmul.f32 1.442695, %v2078_v24 }
 0xfc2   : > { %v1359_v27 = vsel %vm1141_vm10, %v3103_v25, 0.0 }
 0xfc3   : > { %3104 = vpow2.f32 %v2079_v26  ;;  %1360 = vadd.xlane.f32.xlu1 %v1359_v27 }
 0xfc9   : > { %v3105_v28 = vpop.eup %3104 }
 0xfca   : > { %v2081_v29 = vsel %vm1141_vm10, %v3105_v28, 0.0 }
 0xfcb   : > { %2082 = vadd.xlane.f32.xlu2 %v2081_v29 }
0x1036   : > { %v1361_v30 = vpop.xlane.xlu1 %1360 }
0x1037   : > { %3106 = vlog2.f32 %v1361_v30 }
0x103d   : > { %v3107_v31 = vpop.eup %3106 }
0x103e   : > { %v1363_v32 = vmul.f32 0.6931472, %v3107_v31  ;;  %v2083_v33 = vpop.xlane.xlu2 %2082 }
0x103f   : > { %3108 = vlog2.f32 %v2083_v33 }
0x1040   : > { %v1364_v34 = vadd.f32 %v1363_v32, %v1355_v20 }
0x1042   : > { %v1365_v35 = vsub.f32 2.1972246, %v1364_v34 }
0x1044   : > { %v1366_v36 = vadd.f32 %v1365_v35, %v3466_v6 }
0x1045   : > { %v3109_v37 = vpop.eup %3108 }
0x1046   : > { %v2085_v38 = vmul.f32 0.6931472, %v3109_v37  ;;  %v1367_v39 = vmax.f32 %v1366_v36, 0.0 }
0x1048   : > { %v2086_v40 = vadd.f32 %v2085_v38, %v2077_v23  ;;  %v1368_v41 = vsub.f32 0.0, %v1367_v39 }
0x104a   : > { %v2087_v42 = vsub.f32 2.1972246, %v2086_v40  ;;  %v1369_v43 = vadd.f32 %v1368_v41, %v3466_v6 }
0x104c   : > { %v1370_v44 = vsel %vm1141_vm10, %v1369_v43, -inf  ;;  %v2088_v45 = vadd.f32 %v2087_v42, %v3471_v12 }
0x104d   : > { %1371 = vmax.xlane.f32.xlu2 %v1370_v44 }
0x104e   : > { %v2089_v46 = vmax.f32 %v2088_v45, 0.0 }
0x1050   : > { %v2090_v47 = vsub.f32 0.0, %v2089_v46 }
0x1052   : > { %v2091_v48 = vadd.f32 %v2090_v47, %v3471_v12 }
0x1054   : > { %v2092_v49 = vsel %vm1141_vm10, %v2091_v48, -inf }
0x1055   : > { %2093 = vmax.xlane.f32.xlu0 %v2092_v49 }
0x10c0   : > { %v1372_v50 = vpop.xlane.xlu2 %1371 }
0x10c1   : > { %v1373_v51 = vsub.f32 %v1369_v43, %v1372_v50 }
0x10c3   : > { %v1374_v52 = vmul.f32 1.442695, %v1373_v51 }
0x10c5   : > { %3110 = vpow2.f32 %v1374_v52 }
0x10c8   : > { %v2094_v57 = vpop.xlane.xlu0 %2093 }
0x10c9   : > { %v2095_v58 = vsub.f32 %v2091_v48, %v2094_v57 }
0x10cb   : > { %v3111_v59 = vpop.eup %3110  ;;  %v2096_v60 = vmul.f32 1.442695, %v2095_v58 }
0x10cc   : > { %v1376_v61 = vsel %vm1141_vm10, %v3111_v59, 0.0 }
0x10cd   : > { %3112 = vpow2.f32 %v2096_v60  ;;  %1377 = vadd.xlane.f32.xlu0 %v1376_v61 }
0x10d3   : > { %v3113_v62 = vpop.eup %3112 }
0x10d4   : > { %v2098_v63 = vsel %vm1141_vm10, %v3113_v62, 0.0 }
0x10d5   : > { %2099 = vadd.xlane.f32.xlu1 %v2098_v63 }
0x1140   : > { %v1378_v1 = vpop.xlane.xlu0 %1377 }
0x1141   : > { %3114 = vlog2.f32 %v1378_v1 }
0x1147   : > { %v3115_v2 = vpop.eup %3114 }
0x1148   : > { %v1380_v7 = vmul.f32 0.6931472, %v3115_v2  ;;  %v2100_v8 = vpop.xlane.xlu1 %2099 }
0x1149   : > { %3116 = vlog2.f32 %v2100_v8 }
0x114a   : > { %v1381_v9 = vadd.f32 %v1380_v7, %v1372_v50 }
0x114c   : > { %v1382_v11 = vsub.f32 2.1972246, %v1381_v9 }
0x114e   : > { %v1383_v13 = vadd.f32 %v1382_v11, %v3466_v6 }
0x114f   : > { %v3117_v14 = vpop.eup %3116 }
0x1150   : > { %v2102_v15 = vmul.f32 0.6931472, %v3117_v14  ;;  %v1384_v16 = vmax.f32 %v1383_v13, 0.0 }
0x1152   : > { %v2103_v17 = vadd.f32 %v2102_v15, %v2094_v57  ;;  %v1385_v18 = vsub.f32 0.0, %v1384_v16 }
0x1154   : > { %v2104_v19 = vsub.f32 2.1972246, %v2103_v17  ;;  %v1386_v20 = vadd.f32 %v1385_v18, %v3466_v6 }
0x1156   : > { %v1387_v21 = vsel %vm1141_vm10, %v1386_v20, -inf  ;;  %v2105_v22 = vadd.f32 %v2104_v19, %v3471_v12 }
0x1157   : > { %1388 = vmax.xlane.f32.xlu1 %v1387_v21 }
0x1158   : > { %v2106_v23 = vmax.f32 %v2105_v22, 0.0 }
0x115a   : > { %v2107_v24 = vsub.f32 0.0, %v2106_v23 }
0x115c   : > { %v2108_v25 = vadd.f32 %v2107_v24, %v3471_v12 }
0x115e   : > { %v2109_v26 = vsel %vm1141_vm10, %v2108_v25, -inf }
0x115f   : > { %2110 = vmax.xlane.f32.xlu2 %v2109_v26 }
0x11ca   : > { %v1389_v27 = vpop.xlane.xlu1 %1388 }
0x11cb   : > { %v1390_v28 = vsub.f32 %v1386_v20, %v1389_v27 }
0x11cd   : > { %v1391_v29 = vmul.f32 1.442695, %v1390_v28 }
0x11cf   : > { %3118 = vpow2.f32 %v1391_v29 }
0x11d2   : > { %v2111_v30 = vpop.xlane.xlu2 %2110 }
0x11d3   : > { %v2112_v31 = vsub.f32 %v2108_v25, %v2111_v30 }
0x11d5   : > { %v3119_v32 = vpop.eup %3118  ;;  %v2113_v33 = vmul.f32 1.442695, %v2112_v31 }
0x11d6   : > { %v1393_v34 = vsel %vm1141_vm10, %v3119_v32, 0.0 }
0x11d7   : > { %3120 = vpow2.f32 %v2113_v33  ;;  %1394 = vadd.xlane.f32.xlu2 %v1393_v34 }
0x11dd   : > { %v3121_v35 = vpop.eup %3120 }
0x11de   : > { %v2115_v36 = vsel %vm1141_vm10, %v3121_v35, 0.0 }
0x11df   : > { %2116 = vadd.xlane.f32.xlu0 %v2115_v36 }
0x124a   : > { %v1395_v37 = vpop.xlane.xlu2 %1394 }
0x124b   : > { %3122 = vlog2.f32 %v1395_v37 }
0x1251   : > { %v3123_v38 = vpop.eup %3122 }
0x1252   : > { %v1397_v39 = vmul.f32 0.6931472, %v3123_v38  ;;  %v2117_v40 = vpop.xlane.xlu0 %2116 }
0x1253   : > { %3124 = vlog2.f32 %v2117_v40 }
0x1254   : > { %v1398_v41 = vadd.f32 %v1397_v39, %v1389_v27 }
0x1256   : > { %v1399_v42 = vsub.f32 2.1972246, %v1398_v41 }
0x1258   : > { %v1400_v43 = vadd.f32 %v1399_v42, %v3466_v6 }
0x1259   : > { %v3125_v44 = vpop.eup %3124 }
0x125a   : > { %v2119_v45 = vmul.f32 0.6931472, %v3125_v44  ;;  %v1401_v46 = vmax.f32 %v1400_v43, 0.0 }
0x125c   : > { %v2120_v47 = vadd.f32 %v2119_v45, %v2111_v30  ;;  %v1402_v48 = vsub.f32 0.0, %v1401_v46 }
0x125e   : > { %v2121_v49 = vsub.f32 2.1972246, %v2120_v47  ;;  %v1403_v50 = vadd.f32 %v1402_v48, %v3466_v6 }
0x1260   : > { %v1404_v51 = vsel %vm1141_vm10, %v1403_v50, -inf  ;;  %v2122_v52 = vadd.f32 %v2121_v49, %v3471_v12 }
0x1261   : > { %1405 = vmax.xlane.f32.xlu0 %v1404_v51 }
0x1262   : > { %v2123_v57 = vmax.f32 %v2122_v52, 0.0 }
0x1264   : > { %v2124_v58 = vsub.f32 0.0, %v2123_v57 }
0x1266   : > { %v2125_v59 = vadd.f32 %v2124_v58, %v3471_v12 }
0x1268   : > { %v2126_v60 = vsel %vm1141_vm10, %v2125_v59, -inf }
0x1269   : > { %2127 = vmax.xlane.f32.xlu1 %v2126_v60 }
0x12d4   : > { %v1406_v61 = vpop.xlane.xlu0 %1405 }
0x12d5   : > { %v1407_v62 = vsub.f32 %v1403_v50, %v1406_v61 }
0x12d7   : > { %v1408_v63 = vmul.f32 1.442695, %v1407_v62 }
0x12d9   : > { %3126 = vpow2.f32 %v1408_v63 }
0x12dc   : > { %v2128_v1 = vpop.xlane.xlu1 %2127 }
0x12dd   : > { %v2129_v2 = vsub.f32 %v2125_v59, %v2128_v1 }
0x12df   : > { %v3127_v7 = vpop.eup %3126  ;;  %v2130_v8 = vmul.f32 1.442695, %v2129_v2 }
0x12e0   : > { %v1410_v9 = vsel %vm1141_vm10, %v3127_v7, 0.0 }
0x12e1   : > { %3128 = vpow2.f32 %v2130_v8  ;;  %1411 = vadd.xlane.f32.xlu1 %v1410_v9 }
0x12e7   : > { %v3129_v11 = vpop.eup %3128 }
0x12e8   : > { %v2132_v13 = vsel %vm1141_vm10, %v3129_v11, 0.0 }
0x12e9   : > { %2133 = vadd.xlane.f32.xlu2 %v2132_v13 }
0x1354   : > { %v1412_v14 = vpop.xlane.xlu1 %1411 }
0x1355   : > { %3130 = vlog2.f32 %v1412_v14 }
0x135b   : > { %v3131_v15 = vpop.eup %3130 }
0x135c   : > { %v1414_v16 = vmul.f32 0.6931472, %v3131_v15  ;;  %v2134_v17 = vpop.xlane.xlu2 %2133 }
0x135d   : > { %3132 = vlog2.f32 %v2134_v17 }
0x135e   : > { %v1415_v18 = vadd.f32 %v1414_v16, %v1406_v61 }
0x1360   : > { %v1416_v19 = vsub.f32 2.1972246, %v1415_v18 }
0x1362   : > { %v1417_v20 = vadd.f32 %v1416_v19, %v3466_v6 }
0x1363   : > { %v3133_v21 = vpop.eup %3132 }
0x1364   : > { %v2136_v22 = vmul.f32 0.6931472, %v3133_v21  ;;  %v1418_v23 = vmax.f32 %v1417_v20, 0.0 }
0x1366   : > { %v2137_v24 = vadd.f32 %v2136_v22, %v2128_v1  ;;  %v1419_v25 = vsub.f32 0.0, %v1418_v23 }
0x1368   : > { %v2138_v26 = vsub.f32 2.1972246, %v2137_v24  ;;  %v1420_v27 = vadd.f32 %v1419_v25, %v3466_v6 }
0x136a   : > { %v1421_v28 = vsel %vm1141_vm10, %v1420_v27, -inf  ;;  %v2139_v29 = vadd.f32 %v2138_v26, %v3471_v12 }
0x136b   : > { %1422 = vmax.xlane.f32.xlu2 %v1421_v28 }
0x136c   : > { %v2140_v30 = vmax.f32 %v2139_v29, 0.0 }
0x136e   : > { %v2141_v31 = vsub.f32 0.0, %v2140_v30 }
0x1370   : > { %v2142_v32 = vadd.f32 %v2141_v31, %v3471_v12 }
0x1372   : > { %v2143_v33 = vsel %vm1141_vm10, %v2142_v32, -inf }
0x1373   : > { %2144 = vmax.xlane.f32.xlu0 %v2143_v33 }
0x13de   : > { %v1423_v34 = vpop.xlane.xlu2 %1422 }
0x13df   : > { %v1424_v35 = vsub.f32 %v1420_v27, %v1423_v34 }
0x13e1   : > { %v1425_v36 = vmul.f32 1.442695, %v1424_v35 }
0x13e3   : > { %3134 = vpow2.f32 %v1425_v36 }
0x13e6   : > { %v2145_v37 = vpop.xlane.xlu0 %2144 }
0x13e7   : > { %v2146_v38 = vsub.f32 %v2142_v32, %v2145_v37 }
0x13e9   : > { %v3135_v39 = vpop.eup %3134  ;;  %v2147_v40 = vmul.f32 1.442695, %v2146_v38 }
0x13ea   : > { %v1427_v41 = vsel %vm1141_vm10, %v3135_v39, 0.0 }
0x13eb   : > { %3136 = vpow2.f32 %v2147_v40  ;;  %1428 = vadd.xlane.f32.xlu0 %v1427_v41 }
0x13f1   : > { %v3137_v42 = vpop.eup %3136 }
0x13f2   : > { %v2149_v43 = vsel %vm1141_vm10, %v3137_v42, 0.0 }
0x13f3   : > { %2150 = vadd.xlane.f32.xlu1 %v2149_v43 }
0x145e   : > { %v1429_v44 = vpop.xlane.xlu0 %1428 }
0x145f   : > { %3138 = vlog2.f32 %v1429_v44 }
0x1465   : > { %v3139_v45 = vpop.eup %3138 }
0x1466   : > { %v1431_v46 = vmul.f32 0.6931472, %v3139_v45  ;;  %v2151_v47 = vpop.xlane.xlu1 %2150 }
0x1467   : > { %3140 = vlog2.f32 %v2151_v47 }
0x1468   : > { %v1432_v48 = vadd.f32 %v1431_v46, %v1423_v34 }
0x146a   : > { %v1433_v49 = vsub.f32 2.1972246, %v1432_v48 }
0x146c   : > { %v1434_v50 = vadd.f32 %v1433_v49, %v3466_v6 }
0x146d   : > { %v3141_v51 = vpop.eup %3140 }
0x146e   : > { %v2153_v52 = vmul.f32 0.6931472, %v3141_v51  ;;  %v1435_v57 = vmax.f32 %v1434_v50, 0.0 }
0x1470   : > { %v2154_v58 = vadd.f32 %v2153_v52, %v2145_v37  ;;  %v1436_v59 = vsub.f32 0.0, %v1435_v57 }
0x1472   : > { %v2155_v60 = vsub.f32 2.1972246, %v2154_v58  ;;  %v1437_v61 = vadd.f32 %v1436_v59, %v3466_v6 }
0x1474   : > { %v1438_v62 = vsel %vm1141_vm10, %v1437_v61, -inf  ;;  %v2156_v63 = vadd.f32 %v2155_v60, %v3471_v12 }
0x1475   : > { %1439 = vmax.xlane.f32.xlu1 %v1438_v62 }
0x1476   : > { %v2157_v1 = vmax.f32 %v2156_v63, 0.0 }
0x1478   : > { %v2158_v2 = vsub.f32 0.0, %v2157_v1 }
0x147a   : > { %v2159_v7 = vadd.f32 %v2158_v2, %v3471_v12 }
0x147c   : > { %v2160_v8 = vsel %vm1141_vm10, %v2159_v7, -inf }
0x147d   : > { %2161 = vmax.xlane.f32.xlu2 %v2160_v8 }
0x14e8   : > { %v1440_v9 = vpop.xlane.xlu1 %1439 }
0x14e9   : > { %v1441_v11 = vsub.f32 %v1437_v61, %v1440_v9 }
0x14eb   : > { %v1442_v13 = vmul.f32 1.442695, %v1441_v11 }
0x14ed   : > { %3142 = vpow2.f32 %v1442_v13 }
0x14f0   : > { %v2162_v14 = vpop.xlane.xlu2 %2161 }
0x14f1   : > { %v2163_v15 = vsub.f32 %v2159_v7, %v2162_v14 }
0x14f3   : > { %v3143_v16 = vpop.eup %3142  ;;  %v2164_v17 = vmul.f32 1.442695, %v2163_v15 }
0x14f4   : > { %v1444_v18 = vsel %vm1141_vm10, %v3143_v16, 0.0 }
0x14f5   : > { %3144 = vpow2.f32 %v2164_v17  ;;  %1445 = vadd.xlane.f32.xlu2 %v1444_v18 }
0x14fb   : > { %v3145_v19 = vpop.eup %3144 }
0x14fc   : > { %v2166_v20 = vsel %vm1141_vm10, %v3145_v19, 0.0 }
0x14fd   : > { %2167 = vadd.xlane.f32.xlu0 %v2166_v20 }
0x1568   : > { %v1446_v21 = vpop.xlane.xlu2 %1445 }
0x1569   : > { %3146 = vlog2.f32 %v1446_v21 }
0x156f   : > { %v3147_v22 = vpop.eup %3146 }
0x1570   : > { %v1448_v23 = vmul.f32 0.6931472, %v3147_v22  ;;  %v2168_v24 = vpop.xlane.xlu0 %2167 }
0x1571   : > { %3148 = vlog2.f32 %v2168_v24 }
0x1572   : > { %v1449_v25 = vadd.f32 %v1448_v23, %v1440_v9 }
0x1574   : > { %v1450_v26 = vsub.f32 2.1972246, %v1449_v25 }
0x1576   : > { %v1451_v27 = vadd.f32 %v1450_v26, %v3466_v6 }
0x1577   : > { %v3149_v28 = vpop.eup %3148 }
0x1578   : > { %v2170_v29 = vmul.f32 0.6931472, %v3149_v28  ;;  %v1452_v30 = vmax.f32 %v1451_v27, 0.0 }
0x157a   : > { %v2171_v31 = vadd.f32 %v2170_v29, %v2162_v14  ;;  %v1453_v32 = vsub.f32 0.0, %v1452_v30 }
0x157c   : > { %v2172_v33 = vsub.f32 2.1972246, %v2171_v31  ;;  %v1454_v34 = vadd.f32 %v1453_v32, %v3466_v6 }
0x157e   : > { %v1455_v35 = vsel %vm1141_vm10, %v1454_v34, -inf  ;;  %v2173_v36 = vadd.f32 %v2172_v33, %v3471_v12 }
0x157f   : > { %1456 = vmax.xlane.f32.xlu0 %v1455_v35 }
0x1580   : > { %v2174_v37 = vmax.f32 %v2173_v36, 0.0 }
0x1582   : > { %v2175_v38 = vsub.f32 0.0, %v2174_v37 }
0x1584   : > { %v2176_v39 = vadd.f32 %v2175_v38, %v3471_v12 }
0x1586   : > { %v2177_v40 = vsel %vm1141_vm10, %v2176_v39, -inf }
0x1587   : > { %2178 = vmax.xlane.f32.xlu1 %v2177_v40 }
0x15f2   : > { %v1457_v41 = vpop.xlane.xlu0 %1456 }
0x15f3   : > { %v1458_v42 = vsub.f32 %v1454_v34, %v1457_v41 }
0x15f5   : > { %v1459_v43 = vmul.f32 1.442695, %v1458_v42 }
0x15f7   : > { %3150 = vpow2.f32 %v1459_v43 }
0x15fa   : > { %v2179_v44 = vpop.xlane.xlu1 %2178 }
0x15fb   : > { %v2180_v45 = vsub.f32 %v2176_v39, %v2179_v44 }
0x15fd   : > { %v3151_v46 = vpop.eup %3150  ;;  %v2181_v47 = vmul.f32 1.442695, %v2180_v45 }
0x15fe   : > { %v1461_v48 = vsel %vm1141_vm10, %v3151_v46, 0.0 }
0x15ff   : > { %3152 = vpow2.f32 %v2181_v47  ;;  %1462 = vadd.xlane.f32.xlu1 %v1461_v48 }
0x1605   : > { %v3153_v49 = vpop.eup %3152 }
0x1606   : > { %v2183_v50 = vsel %vm1141_vm10, %v3153_v49, 0.0 }
0x1607   : > { %2184 = vadd.xlane.f32.xlu2 %v2183_v50 }
0x1672   : > { %v1463_v51 = vpop.xlane.xlu1 %1462 }
0x1673   : > { %3154 = vlog2.f32 %v1463_v51  ;;  %v3637_v51 = vld [vmem:[%s4183_s2] sm:$0x1]  ;;  %s683_s2 = scalar_lea.vmem %s4169_s22, %s2917_s29 }
0x1679   : > { %v3155_v52 = vpop.eup %3154 }
0x167a   : > { %v1465_v57 = vmul.f32 0.6931472, %v3155_v52  ;;  %v2185_v58 = vpop.xlane.xlu2 %2184 }
0x167b   : > { %3156 = vlog2.f32 %v2185_v58 }
0x167c   : > { %v1466_v59 = vadd.f32 %v1465_v57, %v1457_v41 }
0x167e   : > { %v1467_v60 = vsub.f32 2.1972246, %v1466_v59 }
0x1680   : > { %v1468_v61 = vadd.f32 %v1467_v60, %v3466_v6 }
0x1681   : > { %v3157_v62 = vpop.eup %3156 }
0x1682   : > { %v2187_v63 = vmul.f32 0.6931472, %v3157_v62  ;;  %v1469_v1 = vmax.f32 %v1468_v61, 0.0  ;;  %v3224_v62 = vmov 0.0  }
0x1684   : > { %v2188_v2 = vadd.f32 %v2187_v63, %v2179_v44  ;;  %v1470_v7 = vsub.f32 0.0, %v1469_v1 }
0x1686   : > { %v2189_v8 = vsub.f32 2.1972246, %v2188_v2  ;;  %v1471_v9 = vadd.f32 %v1470_v7, %v3466_v6 }
0x1688   : > { %v1472_v11 = vsel %vm1141_vm10, %v1471_v9, -inf  ;;  %v2190_v13 = vadd.f32 %v2189_v8, %v3471_v12 }
0x1689   : > { %1473 = vmax.xlane.f32.xlu2 %v1472_v11 }
0x168a   : > { %v2191_v14 = vmax.f32 %v2190_v13, 0.0 }
0x168c   : > { %v2192_v15 = vsub.f32 0.0, %v2191_v14 }
0x168e   : > { %v2193_v16 = vadd.f32 %v2192_v15, %v3471_v12 }
0x1690   : > { %v2194_v17 = vsel %vm1141_vm10, %v2193_v16, -inf }
0x1691   : > { %2195 = vmax.xlane.f32.xlu0 %v2194_v17 }
0x16fc   : > { %v1474_v18 = vpop.xlane.xlu2 %1473 }
0x16fd   : > { %v1475_v19 = vsub.f32 %v1471_v9, %v1474_v18 }
0x16ff   : > { %v1476_v20 = vmul.f32 1.442695, %v1475_v19  ;;  %v1491_v19 = vlaneseq }
0x1701   : > { %3158 = vpow2.f32 %v1476_v20  ;;  %v3657_v20 = vshrl.u32 %v1491_v19, 7 }
0x1703   : > { %vm1513_vm4 = vcmp.eq.s32.totalorder %v3657_v20, 0  ;;  %vm1556_vm5 = vcmp.eq.s32.totalorder %v3657_v20, 1 }
0x1704   : > { %v2196_v21 = vpop.xlane.xlu0 %2195 }
0x1705   : > { %v2197_v22 = vsub.f32 %v2193_v16, %v2196_v21 }
0x1707   : > { %v3159_v23 = vpop.eup %3158  ;;  %v2198_v24 = vmul.f32 1.442695, %v2197_v22 }
0x1708   : > { %v1478_v25 = vsel %vm1141_vm10, %v3159_v23, 0.0  ;;  %v1514_v23 = vsel %vm1513_vm4, 1.0, %v3224_v62 }
0x1709   : > { %3160 = vpow2.f32 %v2198_v24  ;;  %1479 = vadd.xlane.f32.xlu0 %v1478_v25  ;;  %v1557_v25 = vsel %vm1556_vm5, 1.0, %v3224_v62 }
0x170f   : > { %v3161_v26 = vpop.eup %3160 }
0x1710   : > { %v2200_v27 = vsel %vm1141_vm10, %v3161_v26, 0.0 }
0x1711   : > { %2201 = vadd.xlane.f32.xlu1 %v2200_v27 }
0x177c   : > { %v1480_v28 = vpop.xlane.xlu0 %1479 }
0x177d   : > { %3162 = vlog2.f32 %v1480_v28 }
0x1783   : > { %v3163_v29 = vpop.eup %3162 }
0x1784   : > { %v1482_v30 = vmul.f32 0.6931472, %v3163_v29  ;;  %v2202_v31 = vpop.xlane.xlu1 %2201 }
0x1785   : > { %3164 = vlog2.f32 %v2202_v31 }
0x1786   : > { %v1483_v32 = vadd.f32 %v1482_v30, %v1474_v18 }
0x1788   : > { %v1484_v33 = vsub.f32 2.1972246, %v1483_v32 }
0x178a   : > { %v1485_v34 = vadd.f32 %v1484_v33, %v3466_v6 }
0x178b   : > { %v3165_v35 = vpop.eup %3164 }
0x178c   : > { %v1486_v36 = vmax.f32 %v1485_v34, 0.0  ;;  %v2204_v37 = vmul.f32 0.6931472, %v3165_v35 }
0x178e   : > { %v1487_v38 = vsub.f32 0.0, %v1486_v36  ;;  %v2205_v39 = vadd.f32 %v2204_v37, %v2196_v21 }
0x1790   : > { %v1488_v40 = vadd.f32 %v1487_v38, %v1485_v34  ;;  %v2206_v41 = vsub.f32 2.1972246, %v2205_v39 }
0x1792   : > { %v1489_v42 = vmul.f32 1.442695, %v1488_v40  ;;  %v2207_v43 = vadd.f32 %v2206_v41, %v3471_v12 }
0x1794   : > { %3166 = vpow2.f32 %v1489_v42  ;;  %v2208_v44 = vmax.f32 %v2207_v43, 0.0 }
0x1796   : > { %v2209_v45 = vsub.f32 0.0, %v2208_v44 }
0x1798   : > { %v2210_v46 = vadd.f32 %v2209_v45, %v2207_v43 }
0x179a   : > { %v3167_v47 = vpop.eup %3166  ;;  %v2211_v48 = vmul.f32 1.442695, %v2210_v46 }
0x179b   : > { %v1495_v49 = vsel %vm1141_vm10, %v3167_v47, -inf }
0x179c   : > { %3168 = vpow2.f32 %v2211_v48  ;;  %1496 = vmax.xlane.f32.xlu1 %v1495_v49 }
0x17a2   : > { %v3169_v6 = vpop.eup %3168 }
0x17a3   : > { %v2213_v50 = vsel %vm1141_vm10, %v3169_v6, -inf }
0x17a4   : > { %2214 = vmax.xlane.f32.xlu2 %v2213_v50 }
0x180f   : > { %v1497_v12 = vpop.xlane.xlu1 %1496 }
0x1810   : > { %vm1498_vm11 = vcmp.eq.f32.partialorder %v3167_v47, %v1497_v12 }
0x1811   : > { %v1499_v52 = vsel %vm1498_vm11, %v3637_v51, 16.0 }
0x1812   : > { %v1500_v57 = vsel %vm1141_vm10, %v1499_v52, inf }
0x1813   : > { %1501 = vmin.xlane.f32.xlu2 %v1500_v57 }
0x1817   : > { %v2215_v58 = vpop.xlane.xlu2 %2214 }
0x1818   : > { %vm2216_vm12 = vcmp.eq.f32.partialorder %v3169_v6, %v2215_v58 }
0x1819   : > { %v2217_v59 = vsel %vm2216_vm12, %v3637_v51, 16.0 }
0x181a   : > { %v2218_v60 = vsel %vm1141_vm10, %v2217_v59, inf }
0x181b   : > { %2219 = vmin.xlane.f32.xlu0 %v2218_v60 }
0x1886   : > { %v3643_v61 = vpop.xlane.xlu2 %1501 }
0x1887   : > { %vm1503_vm13 = vcmp.eq.f32.partialorder %v3637_v51, %v3643_v61 }
0x1888   : > { %v2866_v63 = vsel %vm1503_vm13, 1.0, %v3224_v62 }
0x1889   : > { %vm1536_vm14 = vcmp.gt.f32.partialorder %v2866_v63, 0.5  ;;  %v1516_v22 = vperm.slane %v2866_v63, 0 }
0x188a   : > { %v1537_v1 = vsel %vm1536_vm14, -1e+30, %v3167_v47 }
0x188b   : > { %v1538_v2 = vsel %vm1141_vm10, %v1537_v1, -inf  ;;  %v1518_v28 = vmul.f32 %v1516_v22, %v1514_v23 }
0x188c   : > { %1539 = vmax.xlane.f32.xlu0 %v1538_v2 }
0x188e   : > { %v2220_v7 = vpop.xlane.xlu0 %2219 }
0x188f   : > { %vm2221_vm15 = vcmp.eq.f32.partialorder %v3637_v51, %v2220_v7 }
0x1890   : > { %v2893_v8 = vsel %vm2221_vm15, 1.0, %v3224_v62  ;;  %vm1599_vm15 = vcmp.eq.s32.totalorder %v3657_v20, 2 }
0x1891   : > { %vm2229_vm1 = vcmp.gt.f32.partialorder %v2893_v8, 0.5  ;;  %v2225_v33 = vperm.slane %v2893_v8, 0  ;;  %v1600_v49 = vsel %vm1599_vm15, 1.0, %v3224_v62  ;;  %vm847_vm15 = vcmask 130048  }
0x1892   : > { %v2230_v9 = vsel %vm2229_vm1, -1e+30, %v3169_v6 }
0x1893   : > { %v2231_v11 = vsel %vm1141_vm10, %v2230_v9, -inf  ;;  %v2227_v37 = vmul.f32 %v2225_v33, %v1514_v23 }
0x1894   : > { %2232 = vmax.xlane.f32.xlu1 %v2231_v11 }
0x18ff   : > { %v1540_v13 = vpop.xlane.xlu0 %1539 }
0x1900   : > { %vm1541_vm2 = vcmp.eq.f32.partialorder %v1537_v1, %v1540_v13 }
0x1901   : > { %v1542_v14 = vsel %vm1541_vm2, %v3637_v51, 16.0 }
0x1902   : > { %v1543_v15 = vsel %vm1141_vm10, %v1542_v14, inf }
0x1903   : > { %1544 = vmin.xlane.f32.xlu1 %v1543_v15 }
0x1907   : > { %v2233_v16 = vpop.xlane.xlu1 %2232 }
0x1908   : > { %vm2234_vm3 = vcmp.eq.f32.partialorder %v2230_v9, %v2233_v16 }
0x1909   : > { %v2235_v17 = vsel %vm2234_vm3, %v3637_v51, 16.0 }
0x190a   : > { %v2236_v18 = vsel %vm1141_vm10, %v2235_v17, inf }
0x190b   : > { %2237 = vmin.xlane.f32.xlu2 %v2236_v18 }
0x1976   : > { %v3661_v21 = vpop.xlane.xlu1 %1544 }
0x1977   : > { %vm1546_vm6 = vcmp.eq.f32.partialorder %v3637_v51, %v3661_v21 }
0x1978   : > { %v2869_v24 = vsel %vm1546_vm6, 1.0, %v3224_v62 }
0x1979   : > { %v1559_v26 = vperm.slane %v2869_v24, 0  ;;  %vm1579_vm7 = vcmp.gt.f32.partialorder %v2869_v24, 0.5 }
0x197a   : > { %v1580_v27 = vsel %vm1579_vm7, -1e+30, %v1537_v1  ;;  %vm1642_vm7 = vcmp.eq.s32.totalorder %v3657_v20, 3 }
0x197b   : > { %v1581_v29 = vsel %vm1141_vm10, %v1580_v27, -inf  ;;  %v1561_v30 = vmul.f32 %v1559_v26, %v1557_v25  ;;  %v1643_v18 = vsel %vm1642_vm7, 1.0, %v3224_v62 }
0x197c   : > { %1582 = vmax.xlane.f32.xlu2 %v1581_v29 }
0x197d   : > { %v1562_v31 = vadd.f32 %v1561_v30, %v1518_v28 }
0x197e   : > { %v2238_v32 = vpop.xlane.xlu2 %2237 }
0x197f   : > { %vm2239_vm11 = vcmp.eq.f32.partialorder %v3637_v51, %v2238_v32 }
0x1980   : > { %v2894_v34 = vsel %vm2239_vm11, 1.0, %v3224_v62 }
0x1981   : > { %v2243_v35 = vperm.slane %v2894_v34, 0  ;;  %vm2247_vm12 = vcmp.gt.f32.partialorder %v2894_v34, 0.5  ;;  %v691_v34 = vld [vmem:[%s4158_s11] sm:$0x3] }
0x1982   : > { %v2248_v36 = vsel %vm2247_vm12, -1e+30, %v2230_v9 }
0x1983   : > { %v2245_v38 = vmul.f32 %v2243_v35, %v1557_v25  ;;  %v2249_v39 = vsel %vm1141_vm10, %v2248_v36, -inf  ;;  %v959_v35 = vperm.slane %v691_v34, 1 }
0x1984   : > { %2250 = vmax.xlane.f32.xlu0 %v2249_v39  ;;  %v838_v39 = vperm.slane %v691_v34, 0 }
0x1985   : > { %v2246_v40 = vadd.f32 %v2245_v38, %v2227_v37 }
0x19ef   : > { %v1583_v41 = vpop.xlane.xlu2 %1582 }
0x19f0   : > { %vm1584_vm13 = vcmp.eq.f32.partialorder %v1580_v27, %v1583_v41 }
0x19f1   : > { %v1585_v42 = vsel %vm1584_vm13, %v3637_v51, 16.0 }
0x19f2   : > { %v1586_v43 = vsel %vm1141_vm10, %v1585_v42, inf }
0x19f3   : > { %1587 = vmin.xlane.f32.xlu0 %v1586_v43 }
0x19f7   : > { %v2251_v44 = vpop.xlane.xlu0 %2250 }
0x19f8   : > { %vm2252_vm14 = vcmp.eq.f32.partialorder %v2248_v36, %v2251_v44 }
0x19f9   : > { %v2253_v45 = vsel %vm2252_vm14, %v3637_v51, 16.0 }
0x19fa   : > { %v2254_v46 = vsel %vm1141_vm10, %v2253_v45, inf }
0x19fb   : > { %2255 = vmin.xlane.f32.xlu1 %v2254_v46 }
0x1a66   : > { %v3677_v47 = vpop.xlane.xlu0 %1587 }
0x1a67   : > { %vm1589_vm1 = vcmp.eq.f32.partialorder %v3637_v51, %v3677_v47 }
0x1a68   : > { %v2872_v48 = vsel %vm1589_vm1, 1.0, %v3224_v62 }
0x1a69   : > { %v1602_v6 = vperm.slane %v2872_v48, 0  ;;  %vm1622_vm2 = vcmp.gt.f32.partialorder %v2872_v48, 0.5 }
0x1a6a   : > { %v1623_v50 = vsel %vm1622_vm2, -1e+30, %v1580_v27  ;;  %vm1685_vm2 = vcmp.eq.s32.totalorder %v3657_v20, 4 }
0x1a6b   : > { %v1624_v12 = vsel %vm1141_vm10, %v1623_v50, -inf  ;;  %v1604_v52 = vmul.f32 %v1602_v6, %v1600_v49  ;;  %v1686_v6 = vsel %vm1685_vm2, 1.0, %v3224_v62 }
0x1a6c   : > { %1625 = vmax.xlane.f32.xlu1 %v1624_v12 }
0x1a6d   : > { %v1605_v57 = vadd.f32 %v1604_v52, %v1562_v31 }
0x1a6e   : > { %v2256_v58 = vpop.xlane.xlu1 %2255 }
0x1a6f   : > { %vm2257_vm3 = vcmp.eq.f32.partialorder %v3637_v51, %v2256_v58 }
0x1a70   : > { %v2895_v59 = vsel %vm2257_vm3, 1.0, %v3224_v62 }
0x1a71   : > { %v2261_v60 = vperm.slane %v2895_v59, 0  ;;  %vm2265_vm4 = vcmp.gt.f32.partialorder %v2895_v59, 0.5 }
0x1a72   : > { %v2266_v63 = vsel %vm2265_vm4, -1e+30, %v2248_v36  ;;  %v828_v36 = vpop.f32.mrf.mxu1 }
0x1a73   : > { %v2263_v1 = vmul.f32 %v2261_v60, %v1600_v49  ;;  %v2267_v2 = vsel %vm1141_vm10, %v2266_v63, -inf  ;;  %v3707_v37 = vsel %vm834_vm9, %v828_v36, -1e+30 }
0x1a74   : > { %2268 = vmax.xlane.f32.xlu2 %v2267_v2  ;;  %v848_v38 = vsel %vm847_vm15, %v3707_v37, -inf }
0x1a75   : > { %v2264_v7 = vadd.f32 %v2263_v1, %v2246_v40  ;;  %v840_v40 = vmul.f32 %v838_v39, %v3420_v56 }
0x1a77   : > { %v844_v41 = vsel %vm800_vm8, %v840_v40, 0.0 }
0x1adf   : > { %v1626_v8 = vpop.xlane.xlu1 %1625 }
0x1ae0   : > { %vm1627_vm5 = vcmp.eq.f32.partialorder %v1623_v50, %v1626_v8 }
0x1ae1   : > { %v1628_v9 = vsel %vm1627_vm5, %v3637_v51, 16.0 }
0x1ae2   : > { %v1629_v11 = vsel %vm1141_vm10, %v1628_v9, inf }
0x1ae3   : > { %1630 = vmin.xlane.f32.xlu2 %v1629_v11 }
0x1ae7   : > { %v2269_v13 = vpop.xlane.xlu2 %2268 }
0x1ae8   : > { %vm2270_vm6 = vcmp.eq.f32.partialorder %v2266_v63, %v2269_v13 }
0x1ae9   : > { %v2271_v14 = vsel %vm2270_vm6, %v3637_v51, 16.0 }
0x1aea   : > { %v2272_v15 = vsel %vm1141_vm10, %v2271_v14, inf  ;;  %v839_v14 = vmul.f32 %v838_v39, %v3415_v55 }
0x1aeb   : > { %2273 = vmin.xlane.f32.xlu0 %v2272_v15 }
0x1aec   : > { %v841_v15 = vsel %vm800_vm8, %v839_v14, 0.0 }
0x1b56   : > { %v3692_v16 = vpop.xlane.xlu2 %1630 }
0x1b57   : > { %vm1632_vm11 = vcmp.eq.f32.partialorder %v3637_v51, %v3692_v16 }
0x1b58   : > { %v2875_v17 = vsel %vm1632_vm11, 1.0, %v3224_v62 }
0x1b59   : > { %v1645_v22 = vperm.slane %v2875_v17, 0  ;;  %vm1665_vm12 = vcmp.gt.f32.partialorder %v2875_v17, 0.5 }
0x1b5a   : > { %v1666_v23 = vsel %vm1665_vm12, -1e+30, %v1623_v50 }
0x1b5b   : > { %v1667_v24 = vsel %vm1141_vm10, %v1666_v23, -inf  ;;  %v1647_v25 = vmul.f32 %v1645_v22, %v1643_v18 }
0x1b5c   : > { %1668 = vmax.xlane.f32.xlu0 %v1667_v24 }
0x1b5d   : > { %v1648_v26 = vadd.f32 %v1647_v25, %v1605_v57 }
0x1b5e   : > { %v2274_v27 = vpop.xlane.xlu0 %2273 }
0x1b5f   : > { %vm2275_vm13 = vcmp.eq.f32.partialorder %v3637_v51, %v2274_v27 }
0x1b60   : > { %v2896_v28 = vsel %vm2275_vm13, 1.0, %v3224_v62  ;;  %vm1728_vm13 = vcmp.eq.s32.totalorder %v3657_v20, 5 }
0x1b61   : > { %v2279_v29 = vperm.slane %v2896_v28, 0  ;;  %vm2283_vm14 = vcmp.gt.f32.partialorder %v2896_v28, 0.5  ;;  %v1729_v39 = vsel %vm1728_vm13, 1.0, %v3224_v62 }
0x1b62   : > { %v2284_v30 = vsel %vm2283_vm14, -1e+30, %v2266_v63 }
0x1b63   : > { %v2281_v31 = vmul.f32 %v2279_v29, %v1643_v18  ;;  %v2285_v32 = vsel %vm1141_vm10, %v2284_v30, -inf  ;;  %v687_v18 = vld [vmem:[%s4182_s5 + $0x8] sm:$0xff] }
0x1b64   : > { %2286 = vmax.xlane.f32.xlu1 %v2285_v32  ;;  %vm835_vm11 = vcmp.gt.f32.partialorder %v687_v18, 0.5 }
0x1b65   : > { %v2282_v33 = vadd.f32 %v2281_v31, %v2264_v7  ;;  %v3762_v29 = vsel %vm835_vm11, %v3464_v5, -1e+30 }
0x1b66   : > { %v983_v32 = vsel %vm847_vm15, %v3762_v29, -inf }
0x1b70   : > { %961 = vrot.lane.b32.xlu0 %v959_v35, %s3225_s4  ;;  %v3775_v35 = vld [vmem:[%s4184_s27 + $0x8] sm:$0xff] }
0x1b9a   : > { %849 = vmax.xlane.f32.xlu0 %v848_v38 }
0x1ba2   : > { %845 = vadd.xlane.f32.xlu0 %v844_v41 }
0x1bcf   : > { %v1669_v42 = vpop.xlane.xlu0 %1668 }
0x1bd0   : > { %vm1670_vm1 = vcmp.eq.f32.partialorder %v1666_v23, %v1669_v42 }
0x1bd1   : > { %v1671_v43 = vsel %vm1670_vm1, %v3637_v51, 16.0 }
0x1bd2   : > { %v1672_v44 = vsel %vm1141_vm10, %v1671_v43, inf }
0x1bd3   : > { %1673 = vmin.xlane.f32.xlu1 %v1672_v44 }
0x1bd7   : > { %v2287_v0 = vpop.xlane.xlu1 %2286 }
0x1bd8   : > { %vm2288_vm9 = vcmp.eq.f32.partialorder %v2284_v30, %v2287_v0 }
0x1bd9   : > { %v2289_v45 = vsel %vm2288_vm9, %v3637_v51, 16.0 }
0x1bda   : > { %v2290_v46 = vsel %vm1141_vm10, %v2289_v45, inf }
0x1bdb   : > { %2291 = vmin.xlane.f32.xlu2 %v2290_v46 }
0x1be2   : > { %v962_v9 = vpop.permute.xlu0 %961 }
0x1be3   : > { %v965_v11 = vmul.f32 %v962_v9, %v3420_v56  ;;  %v964_v13 = vmul.f32 %v962_v9, %v3415_v55 }
0x1c0d   : > { %v850_v34 = vpop.xlane.xlu0 %849 }
0x1c15   : > { %v846_v36 = vpop.xlane.xlu0 %845 }
0x1c46   : > { %v3718_v48 = vpop.xlane.xlu1 %1673 }
0x1c47   : > { %vm1675_vm3 = vcmp.eq.f32.partialorder %v3637_v51, %v3718_v48  ;;  %v1678_v5 = vperm.slane %v3718_v48, 0 }
0x1c48   : > { %v2878_v49 = vsel %vm1675_vm3, 1.0, %v3224_v62 }
0x1c49   : > { %v1688_v50 = vperm.slane %v2878_v49, 0  ;;  %vm1708_vm4 = vcmp.gt.f32.partialorder %v2878_v49, 0.5  ;;  %vm1680_vm14 = vcmp.eq.f32.partialorder %v3775_v35, %v1678_v5 }
0x1c4a   : > { %v3724_v12 = vsel %vm1708_vm4, -1e+30, %v1666_v23  ;;  %v3751_v23 = vsel %vm835_vm11, %v3452_v3, -1e+30  ;;  %v980_v3 = vsel %vm847_vm15, %v3462_v4, -inf  ;;  %v3791_v41 = vsel %vm1680_vm14, 1.0, %v3224_v62 }
0x1c4b   : > { %v1710_v52 = vsel %vm1141_vm10, %v3724_v12, -inf  ;;  %v1690_v57 = vmul.f32 %v1688_v50, %v1686_v6 }
0x1c4c   : > { %1711 = vmax.xlane.f32.xlu1 %v1710_v52 }
0x1c4d   : > { %v3728_v58 = vadd.f32 %v1690_v57, %v1648_v26  ;;  %v851_v26 = vsel %vm847_vm15, %v3751_v23, -inf }
0x1c4e   : > { %v2292_v59 = vpop.xlane.xlu2 %2291 }
0x1c4f   : > { %vm2293_vm5 = vcmp.eq.f32.partialorder %v3637_v51, %v2292_v59 }
0x1c50   : > { %v2897_v60 = vsel %vm2293_vm5, 1.0, %v3224_v62 }
0x1c51   : > { %v2297_v63 = vperm.slane %v2897_v60, 0  ;;  %vm2301_vm6 = vcmp.gt.f32.partialorder %v2897_v60, 0.5 }
0x1c52   : > { %v3732_v1 = vsel %vm2301_vm6, -1e+30, %v2284_v30 }
0x1c53   : > { %v2299_v2 = vmul.f32 %v2297_v63, %v1686_v6  ;;  %v2303_v7 = vsel %vm1141_vm10, %v3732_v1, -inf }
0x1c54   : > { %2304 = vmax.xlane.f32.xlu2 %v2303_v7 }
0x1c55   : > { %v3736_v8 = vadd.f32 %v2299_v2, %v2282_v33  ;;  %v2940_v33 = vpack.i.bf16 %v3404_v53, %v3407_v54 }
0x1c65   : > { %970 = vrot.lane.b32.xlu1 %v965_v11, %s3223_s6 }
0x1c6c   : > { %968 = vrot.lane.b32.xlu2 %v964_v13, %s3223_s6  ;;  %s3226_s6 = smov 96  }
0x1c8f   : > { %842 = vadd.xlane.f32.xlu1 %v841_v15  ;;  %v3831_v15 = vld [vmem:[%s4159_s12] sm:$0x3] }
0x1c90   : > { %v878_v18 = vperm.slane %v3831_v15, 0 }
0x1cbf   : > { %v1712_v17 = vpop.xlane.xlu1 %1711 }
0x1cc0   : > { %vm1713_vm7 = vcmp.eq.f32.partialorder %v3724_v12, %v1712_v17 }
0x1cc1   : > { %v1714_v56 = vsel %vm1713_vm7, %v3637_v51, 16.0  ;;  %vm1771_vm7 = vcmp.eq.s32.totalorder %v3657_v20, 6 }
0x1cc2   : > { %v1715_v22 = vsel %vm1141_vm10, %v1714_v56, inf }
0x1cc3   : > { %1716 = vmin.xlane.f32.xlu2 %v1715_v22 }
0x1cc7   : > { %v2305_v55 = vpop.xlane.xlu2 %2304 }
0x1cc8   : > { %vm2306_vm12 = vcmp.eq.f32.partialorder %v3732_v1, %v2305_v55 }
0x1cc9   : > { %v2307_v24 = vsel %vm2306_vm12, %v3637_v51, 16.0 }
0x1cca   : > { %v2308_v25 = vsel %vm1141_vm10, %v2307_v24, inf }
0x1ccb   : > { %2309 = vmin.xlane.f32.xlu0 %v2308_v25  ;;  %852 = vmax.xlane.f32.xlu2 %v851_v26 }
0x1ccf   : > { %v969_v27 = vpop.permute.xlu2 %968 }
0x1cd0   : > { %v974_v28 = vsel %vm800_vm8, %v969_v27, 0.0 }
0x1cd1   : > { %975 = vadd.xlane.f32.xlu1 %v974_v28 }
0x1cd3   : > { %981 = vmax.xlane.f32.xlu2 %v980_v3 }
0x1cd7   : > { %v971_v30 = vpop.permute.xlu1 %970 }
0x1cd8   : > { %v977_v31 = vsel %vm800_vm8, %v971_v30, 0.0 }
0x1cd9   : > { %978 = vadd.xlane.f32.xlu1 %v977_v31 }
0x1cdb   : > { %984 = vmax.xlane.f32.xlu2 %v983_v32 }
0x1cdf   : > { %2941 = vrot.lane.b32.xlu0 %v2940_v33, %s3226_s6 }
0x1cf2   : > { %2946 = vrot.lane.b32.xlu1 %v2940_v33, %s3227_s25 }
0x1d02   : > { %v3803_v46 = vpop.xlane.xlu1 %842 }
0x1d36   : > { %v3777_v38 = vpop.xlane.xlu2 %1716 }
0x1d37   : > { %v1721_v53 = vperm.slane %v3777_v38, 0  ;;  %vm1718_vm1 = vcmp.eq.f32.partialorder %v3637_v51, %v3777_v38 }
0x1d38   : > { %v2881_v54 = vsel %vm1718_vm1, 1.0, %v3224_v62 }
0x1d39   : > { %vm1723_vm9 = vcmp.eq.f32.partialorder %v3775_v35, %v1721_v53  ;;  %v1731_v40 = vperm.slane %v2881_v54, 0  ;;  %vm1751_vm2 = vcmp.gt.f32.partialorder %v2881_v54, 0.5 }
0x1d3a   : > { %v3794_v42 = vsel %vm1723_vm9, 1.0, %v3224_v62  ;;  %v3797_v43 = vsel %vm1751_vm2, -1e+30, %v3724_v12 }
0x1d3b   : > { %v2983_v44 = vpack.i.bf16 %v3794_v42, %v3791_v41  ;;  %v1753_v0 = vsel %vm1141_vm10, %v3797_v43, -inf  ;;  %v1733_v45 = vmul.f32 %v1731_v40, %v1729_v39  ;;  %v2403_v41 = vld [vmem:[%s4166_s19] sm:$0xff] }
0x1d3c   : > { %1754 = vmax.xlane.f32.xlu2 %v1753_v0 }
0x1d3d   : > { %v3806_v49 = vadd.f32 %v1733_v45, %v3728_v58  ;;  %v3816_v58 = vmax.f32 %v850_v34, %v3803_v46 }
0x1d3e   : > { %v853_v6 = vpop.xlane.xlu2 %852  ;;  %v2310_v50 = vpop.xlane.xlu0 %2309 }
0x1d3f   : > { %v855_v52 = vmax.f32 %v853_v6, %v846_v36  ;;  %vm2311_vm3 = vcmp.eq.f32.partialorder %v3637_v51, %v2310_v50  ;;  %v3866_v6 = vld [vmem:[%s3362_s23] sm:$0xff] }
0x1d40   : > { %v2898_v12 = vsel %vm2311_vm3, 1.0, %v3224_v62 }
0x1d41   : > { %v863_v57 = vsub.f32 %v846_v36, %v855_v52  ;;  %v2315_v59 = vperm.slane %v2898_v12, 0  ;;  %vm2319_vm4 = vcmp.gt.f32.partialorder %v2898_v12, 0.5  ;;  %v857_v25 = vsub.f32 %v3751_v23, %v855_v52 }
0x1d42   : > { %v3811_v60 = vsel %vm2319_vm4, -1e+30, %v3732_v1  ;;  %v856_v1 = vsub.f32 %v3707_v37, %v3816_v58 }
0x1d43   : > { %v866_v63 = vmul.f32 1.442695, %v863_v57  ;;  %v2317_v2 = vmul.f32 %v2315_v59, %v1729_v39  ;;  %v2321_v7 = vsel %vm1141_vm10, %v3811_v60, -inf  ;;  %v860_v31 = vmul.f32 1.442695, %v857_v25 }
0x1d44   : > { %v3818_v9 = vpop.xlane.xlu1 %975  ;;  %2322 = vmax.xlane.f32.xlu0 %v2321_v7  ;;  %v858_v56 = vmul.f32 1.442695, %v856_v1 }
0x1d45   : > { %v3821_v11 = vadd.f32 %v2317_v2, %v3736_v8  ;;  %3170 = vpow2.f32 %v866_v63  ;;  %v862_v2 = vsub.f32 %v3803_v46, %v3816_v58 }
0x1d46   : > { %v982_v13 = vpop.xlane.xlu2 %981  ;;  %3172 = vpow2.f32 %v858_v56 }
0x1d47   : > { %v3824_v14 = vmax.f32 %v982_v13, %v3818_v9  ;;  %v864_v7 = vmul.f32 1.442695, %v862_v2 }
0x1d49   : > { %v994_v17 = vsub.f32 %v3818_v9, %v3824_v14  ;;  %v1010_v9 = vperm.slane %v3831_v15, 1 }
0x1d4b   : > { %v3836_v8 = vpop.eup %3170 }
0x1d4c   : > { %v880_v22 = vmul.f32 %v3836_v8, %v878_v18  ;;  %v3839_v55 = vpop.xlane.xlu1 %978  ;;  %v3849_v33 = vpop.eup %3172 }
0x1d4e   : > { %v985_v24 = vpop.xlane.xlu2 %984 }
0x1d4f   : > { %v3842_v37 = vmax.f32 %v985_v24, %v3839_v55 }
0x1d51   : > { %v989_v26 = vsub.f32 %v3762_v29, %v3842_v37  ;;  %v995_v27 = vsub.f32 %v3839_v55, %v3842_v37  ;;  %v2942_v28 = vpop.permute.xlu0 %2941  ;;  %v988_v29 = vsub.f32 %v3462_v4, %v3824_v14  ;;  %v3862_v4 = vld [vmem:[%s3362_s23 + $0x8] sm:$0xff] }
0x1d52   : > { %v2943_v3 = vunpack.i.l.bf16 %v2942_v28  ;;  %v2944_v32 = vunpack.i.h.bf16 %v2942_v28 }
0x1d53   : > { %v992_v30 = vmul.f32 1.442695, %v989_v26  ;;  %v990_v54 = vmul.f32 1.442695, %v988_v29 }
0x1d54   : > { %907 = vmatpush.msra.mxu2 %v2943_v3  ;;  %v1772_v3 = vsel %vm1771_vm7, 1.0, %v3224_v62 }
0x1d55   : > { %3174 = vpow2.f32 %v992_v30 }
0x1d56   : > { %908 = vmatpush.msra.mxu2 %v2944_v32  ;;  %3176 = vpow2.f32 %v860_v31 }
0x1d57   : > { %2851 = vmatmul.msk.f32.vlgmr.msra.gmra.mxu2 %vm847_vm15, %v3849_v33  ;;  %3178 = vpow2.f32 %v990_v54 }
0x1d58   : > { %3180 = vpow2.f32 %v864_v7 }
0x1d5b   : > { %v3175_v23 = vpop.eup %3174 }
0x1d5c   : > { %v1003_v34 = vsel %vm847_vm15, %v3175_v23, 0.0  ;;  %v3856_v36 = vpop.eup %3176 }
0x1d5d   : > { %1004 = vadd.xlane.f32.xlu0 %v1003_v34  ;;  %v3179_v45 = vpop.eup %3178 }
0x1d5e   : > { %v3878_v13 = vpop.eup %3180 }
0x1d5f   : > { %2852 = vmatmul.msk.f32.gmra.mxu2 %vm847_vm15, %v3856_v36  ;;  %v879_v1 = vmul.f32 %v3878_v13, %v878_v18 }
0x1d64   : > { %v2947_v39 = vpop.permute.xlu1 %2946 }
0x1d65   : > { %v2948_v40 = vunpack.i.l.bf16 %v2947_v39  ;;  %v2949_v0 = vunpack.i.h.bf16 %v2947_v39 }
0x1d67   : > { %1039 = vmatpush.msrb.mxu2 %v2948_v40  ;;  %v1000_v40 = vsel %vm847_vm15, %v3179_v45, 0.0 }
0x1d69   : > { %1040 = vmatpush.msrb.mxu2 %v2949_v0 }
0x1d6a   : > { %2857 = vmatmul.msk.f32.vlgmr.msrb.gmra.mxu2 %vm847_vm15, %v3179_v45 }
0x1d6b   : > { %2372 = vmatpush.msra.mxu2 %v3862_v4 }
0x1d6d   : > { %2373 = vmatpush.msra.mxu2 %v3866_v6 }
0x1d72   : > { %2858 = vmatmul.msk.f32.gmra.mxu2 %vm847_vm15, %v3175_v23 }
0x1daf   : > { %v1755_v52 = vpop.xlane.xlu2 %1754 }
0x1db0   : > { %vm1756_vm6 = vcmp.eq.f32.partialorder %v3797_v43, %v1755_v52 }
0x1db1   : > { %v1757_v59 = vsel %vm1756_vm6, %v3637_v51, 16.0 }
0x1db2   : > { %v1758_v63 = vsel %vm1141_vm10, %v1757_v59, inf }
0x1db7   : > { %v2323_v50 = vpop.xlane.xlu0 %2322 }
0x1db8   : > { %vm2324_vm5 = vcmp.eq.f32.partialorder %v3811_v60, %v2323_v50 }
0x1db9   : > { %v2325_v12 = vsel %vm2324_vm5, %v3637_v51, 16.0 }
0x1dba   : > { %v2326_v57 = vsel %vm1141_vm10, %v2325_v12, inf }
0x1dbb   : > { %2327 = vmin.xlane.f32.xlu2 %v2326_v57  ;;  %v998_v57 = vmul.f32 1.442695, %v995_v27 }
0x1dc3   : > { %1759 = vmin.xlane.f32.xlu2 %v1758_v63 }
0x1dd0   : > { %v1005_v14 = vpop.xlane.xlu0 %1004 }
0x1dda   : > { %v910_v56 = vpop.f32.mrf.mxu2 }
0x1ddb   : > { %v3881_v24 = vadd.f32 %v910_v56, %v879_v1 }
0x1de2   : > { %v913_v25 = vpop.f32.mrf.mxu2 }
0x1de3   : > { %v3883_v26 = vadd.f32 %v913_v25, %v880_v22 }
0x1ded   : > { %v1042_v2 = vpop.f32.mrf.mxu2 }
0x1e2e   : > { %v2328_v28 = vpop.xlane.xlu2 %2327 }
0x1e2f   : > { %vm2329_vm11 = vcmp.eq.f32.partialorder %v3637_v51, %v2328_v28 }
0x1e30   : > { %v2899_v46 = vsel %vm2329_vm11, 1.0, %v3224_v62 }
0x1e31   : > { %v2333_v58 = vperm.slane %v2899_v46, 0  ;;  %vm2337_vm12 = vcmp.gt.f32.partialorder %v2899_v46, 0.5  ;;  %v1045_v46 = vpop.f32.mrf.mxu2 }
0x1e32   : > { %v2338_v30 = vsel %vm2337_vm12, -1e+30, %v3811_v60 }
0x1e33   : > { %v2335_v18 = vmul.f32 %v2333_v58, %v1772_v3  ;;  %v2339_v31 = vsel %vm1141_vm10, %v2338_v30, -inf }
0x1e34   : > { %2340 = vmax.xlane.f32.xlu1 %v2339_v31 }
0x1e35   : > { %v2336_v22 = vadd.f32 %v2335_v18, %v3821_v11  ;;  %v694_v11 = vld [vmem:[%s4157_s10 + $0x8] sm:$0xff] }
0x1e36   : > { %v3892_v32 = vpop.xlane.xlu2 %1759  ;;  %1071 = vmatpush.msrb.mxu0 %v694_v11 }
0x1e37   : > { %vm1761_vm13 = vcmp.eq.f32.partialorder %v3637_v51, %v3892_v32 }
0x1e38   : > { %v2884_v23 = vsel %vm1761_vm13, 1.0, %v3224_v62  ;;  %2395 = vmatpush.msra.mxu0 %v3862_v4 }
0x1e39   : > { %v1774_v29 = vperm.slane %v2884_v23, 0  ;;  %vm1794_vm14 = vcmp.gt.f32.partialorder %v2884_v23, 0.5 }
0x1e3a   : > { %v1795_v34 = vsel %vm1794_vm14, -1e+30, %v3797_v43  ;;  %2396 = vmatpush.msra.mxu0 %v3866_v6 }
0x1e3b   : > { %v1776_v54 = vmul.f32 %v1774_v29, %v1772_v3  ;;  %v1796_v60 = vsel %vm1141_vm10, %v1795_v34, -inf }
0x1e3c   : > { %1797 = vmax.xlane.f32.xlu2 %v1796_v60 }
0x1e3d   : > { %v1777_v39 = vadd.f32 %v1776_v54, %v3806_v49  ;;  %v996_v49 = vmul.f32 1.442695, %v994_v17 }
0x1e3f   : > { %3182 = vpow2.f32 %v996_v49  ;;  %v868_v49 = vsel %vm847_vm15, %v3849_v33, 0.0 }
0x1e40   : > { %3184 = vpow2.f32 %v998_v57 }
0x1e44   : > { %1001 = vadd.xlane.f32.xlu2 %v1000_v40 }
0x1e45   : > { %v3183_v59 = vpop.eup %3182 }
0x1e46   : > { %v3185_v17 = vpop.eup %3184  ;;  %v1011_v1 = vmul.f32 %v3183_v59, %v1010_v9 }
0x1e47   : > { %v1007_v56 = vadd.f32 %v3185_v17, %v1005_v14  ;;  %v1012_v55 = vmul.f32 %v3185_v17, %v1010_v9 }
0x1e48   : > { %v1043_v25 = vadd.f32 %v1042_v2, %v1011_v1  ;;  %v871_v2 = vsel %vm847_vm15, %v3856_v36, 0.0  ;;  %v2501_v36 = vld [vmem:[%s4165_s18 + $0x18] sm:$0xff] }
0x1e49   : > { %v1046_v37 = vadd.f32 %v1045_v46, %v1012_v55  ;;  %2517 = vmatpush.msra.mxu3 %v2501_v36 }
0x1ea7   : > { %v2341_v0 = vpop.xlane.xlu1 %2340 }
0x1ea8   : > { %vm2342_vm1 = vcmp.eq.f32.partialorder %v2338_v30, %v2341_v0 }
0x1ea9   : > { %v2343_v43 = vsel %vm2342_vm1, %v3637_v51, 16.0 }
0x1eaa   : > { %v2344_v50 = vsel %vm1141_vm10, %v2343_v43, inf }
0x1eab   : > { %2345 = vmin.xlane.f32.xlu2 %v2344_v50 }
0x1eaf   : > { %v1798_v45 = vpop.xlane.xlu2 %1797 }
0x1eb0   : > { %vm1799_vm9 = vcmp.eq.f32.partialorder %v1795_v34, %v1798_v45 }
0x1eb1   : > { %v1800_v52 = vsel %vm1799_vm9, %v3637_v51, 16.0 }
0x1eb2   : > { %v1801_v12 = vsel %vm1141_vm10, %v1800_v52, inf  ;;  %vm1814_vm10 = vcmp.eq.s32.totalorder %v3657_v20, 7 }
0x1eb3   : > { %1802 = vmin.xlane.f32.xlu0 %v1801_v12  ;;  %v1815_v30 = vsel %vm1814_vm10, 1.0, %v3224_v62 }
0x1eb7   : > { %v1002_v63 = vpop.xlane.xlu2 %1001 }
0x1eb8   : > { %v1006_v7 = vadd.f32 %v3183_v59, %v1002_v63 }
0x1eba   : > { %3186 = vrcp.f32 %v1006_v7 }
0x1ebb   : > { %3188 = vrcp.f32 %v1007_v56 }
0x1ec0   : > { %v3187_v28 = vpop.eup %3186 }
0x1ec1   : > { %v1048_v3 = vmul.f32 %v3187_v28, %v1043_v25  ;;  %v3189_v27 = vpop.eup %3188  ;;  %v2500_v28 = vld [vmem:[%s4165_s18 + $0x10] sm:$0xff] }
0x1ec2   : > { %v1049_v58 = vmul.f32 %v3189_v27, %v1046_v37  ;;  %2518 = vmatpush.msra.mxu3 %v2500_v28  ;;  %v2474_v37 = vld [vmem:[%s4164_s17 + $0x18] sm:$0xff]  ;;  %v2473_v27 = vld [vmem:[%s4164_s17 + $0x10] sm:$0xff] }
0x1ec3   : > { %2859 = vmatmul.msk.f32.vlgmr.msrb.gmra.mxu0 %vm800_vm8, %v1048_v3 }
0x1ecb   : > { %2860 = vmatmul.msk.f32.gmra.mxu0 %vm800_vm8, %v1049_v58  ;;  %v2472_v58 = vld [vmem:[%s4164_s17 + $0x8] sm:$0xff] }
0x1f1e   : > { %v2346_v15 = vpop.xlane.xlu2 %2345 }
0x1f1f   : > { %vm2347_vm2 = vcmp.eq.f32.partialorder %v3637_v51, %v2346_v15 }
0x1f20   : > { %v2900_v18 = vsel %vm2347_vm2, 1.0, %v3224_v62 }
0x1f21   : > { %v2351_v31 = vperm.slane %v2900_v18, 0 }
0x1f23   : > { %v2353_v23 = vmul.f32 %v2351_v31, %v1815_v30 }
0x1f25   : > { %v2354_v29 = vadd.f32 %v2353_v23, %v2336_v22  ;;  %v2401_v23 = vld [vmem:[%s4167_s20] sm:$0x3] }
0x1f26   : > { %v3923_v34 = vpop.xlane.xlu0 %1802 }
0x1f27   : > { %vm1804_vm3 = vcmp.eq.f32.partialorder %v3637_v51, %v3923_v34  ;;  %2902 = vmatmul.msk.f32.vlgmr.msra.gmra.mxu0 %vm847_vm15, %v2354_v29 }
0x1f28   : > { %v2887_v54 = vsel %vm1804_vm3, 1.0, %v3224_v62 }
0x1f29   : > { %v1817_v20 = vperm.slane %v2887_v54, 0  ;;  %v2629_v54 = vperm.slane %v2401_v23, 1 }
0x1f2b   : > { %v1819_v60 = vmul.f32 %v1817_v20, %v1815_v30  ;;  %v2471_v30 = vld [vmem:[%s4164_s17] sm:$0xff] }
0x1f2d   : > { %v1820_v40 = vadd.f32 %v1819_v60, %v1777_v39  ;;  %v693_v39 = vld [vmem:[%s4157_s10] sm:$0xff] }
0x1f2e   : > { %1100 = vmatpush.msrb.mxu1 %v693_v39  ;;  %v2995_v39 = vld [vmem:[%s4162_s15] ss:$0 sm:$0xff] }
0x1f2f   : > { %2901 = vmatmul.msk.f32.vlgmr.msra.gmra.mxu2 %vm847_vm15, %v1820_v40 }
0x1f30   : > { %2490 = vmatpush.msra.mxu1 %v2474_v37  ;;  %v3229_v37 = vmov 0  }
0x1f31   : > { %2956 = vset.pattern.permute.xlu0 %v3229_v37  ;;  %2962 = vset.pattern.permute.xlu1 %v3229_v37 }
0x1f32   : > { %2491 = vmatpush.msra.mxu1 %v2473_v27  ;;  %2950 = vset.pattern.permute.xlu2 %v3229_v37  ;;  %v2552_v27 = vperm.slane %v2401_v23, 0 }
0x1f34   : > { %2492 = vmatpush.msra.mxu1 %v2472_v58 }
0x1f36   : > { %2493 = vmatpush.msra.mxu1 %v2471_v30  ;;  %v1549_v30 = vperm.slane %v3661_v21, 0  ;;  %v1592_v21 = vperm.slane %v3677_v47, 0 }
0x1f38   : > { %vm1551_vm14 = vcmp.eq.f32.partialorder %v3775_v35, %v1549_v30  ;;  %vm1594_vm9 = vcmp.eq.f32.partialorder %v3775_v35, %v1592_v21 }
0x1f39   : > { %v2871_v23 = vsel %vm1551_vm14, 1.0, %v3224_v62 }
0x1f40   : > { %v3930_v11 = vpop.f32.mrf.mxu0 }
0x1f48   : > { %v3932_v0 = vpop.f32.mrf.mxu0 }
0x1fa4   : > { %v2398_v43 = vpop.f32.mrf.mxu0 }
0x1fa5   : > { %v2441_v22 = vsel %vm697_vm0, %v2398_v43, 0.0 }
0x1fa6   : > { %2442 = vadd.xlane.f32.xlu2 %v2441_v22 }
0x1fb2   : > { %v2375_v50 = vpop.f32.mrf.mxu2 }
0x1fb3   : > { %v2409_v51 = vsel %vm697_vm0, %v2375_v50, 0.0 }
0x1fb4   : > { %2410 = vadd.xlane.f32.xlu0 %v2409_v51 }
0x1fbc   : > { %869 = vadd.xlane.f32.xlu0 %v868_v49 }
0x2019   : > { %v2443_v45 = vpop.xlane.xlu2 %2442 }
0x201a   : > { %v2444_v52 = vmul.f32 %v2443_v45, %v3374_v10 }
0x201c   : > { %v3942_v12 = vsub.f32 %v2398_v43, %v2444_v52  ;;  %v2997_v52 = vld [vmem:[%s4163_s16] ss:$0 sm:$0xff] }
0x201e   : > { %v2446_v57 = vmul.f32 %v3942_v12, %v3942_v12 }
0x2020   : > { %v2447_v59 = vsel %vm697_vm0, %v2446_v57, 0.0 }
0x2021   : > { %2448 = vadd.xlane.f32.xlu2 %v2447_v59 }
0x2027   : > { %v2411_v63 = vpop.xlane.xlu0 %2410 }
0x2028   : > { %v2412_v33 = vmul.f32 %v2411_v63, %v3374_v10 }
0x2029   : > { %872 = vadd.xlane.f32.xlu2 %v871_v2 }
0x202a   : > { %v3950_v7 = vsub.f32 %v2375_v50, %v2412_v33 }
0x202c   : > { %v2414_v9 = vmul.f32 %v3950_v7, %v3950_v7 }
0x202e   : > { %v2415_v14 = vsel %vm697_vm0, %v2414_v9, 0.0 }
0x202f   : > { %2416 = vadd.xlane.f32.xlu1 %v2415_v14  ;;  %v870_v17 = vpop.xlane.xlu0 %869 }
0x2030   : > { %v874_v1 = vadd.f32 %v3878_v13, %v870_v17  ;;  %v2499_v13 = vld [vmem:[%s4165_s18 + $0x8] sm:$0xff] }
0x2031   : > { %2519 = vmatpush.msra.mxu3 %v2499_v13 }
0x2032   : > { %3190 = vrcp.f32 %v874_v1 }
0x2038   : > { %v3191_v56 = vpop.eup %3190 }
0x2039   : > { %v916_v25 = vmul.f32 %v3191_v56, %v3881_v24  ;;  %v2498_v24 = vld [vmem:[%s4165_s18] sm:$0xff] }
0x203a   : > { %2520 = vmatpush.msra.mxu3 %v2498_v24  ;;  %v2998_v56 = vld [vmem:[%s4161_s14] ss:$0 sm:$0xff] }
0x203b   : > { %2861 = vmatmul.msk.f32.vlgmr.msrb.gmra.mxu1 %vm800_vm8, %v916_v25 }
0x2041   : > { %2631 = vrot.lane.b32.xlu2 %v2629_v54, %s3228_s30 }
0x2094   : > { %v2449_v3 = vpop.xlane.xlu2 %2448 }
0x2095   : > { %v2450_v46 = vmul.f32 %v2449_v3, %v3374_v10 }
0x2097   : > { %v2451_v55 = vadd.f32 1e-05, %v2450_v46 }
0x2099   : > { %3192 = vrsqrt.f32 %v2451_v55  ;;  %vm2458_vm5 = vweird.f32 %v2451_v55 }
0x209c   : > { %v873_v15 = vpop.xlane.xlu2 %872 }
0x209d   : > { %v875_v18 = vadd.f32 %v3836_v8, %v873_v15 }
0x209f   : > { %v3193_v31 = vpop.eup %3192  ;;  %3194 = vrcp.f32 %v875_v18  ;;  %v4020_v18 = vld [vmem:[%s4184_s27] sm:$0xff] }
0x20a0   : > { %v2453_v29 = vmul.f32 %v3193_v31, %v2451_v55  ;;  %vm2459_vm4 = vweird.f32 %v3193_v31  ;;  %vm1550_vm13 = vcmp.eq.f32.partialorder %v4020_v18, %v1549_v30 }
0x20a1   : > { %vm2460_vm6 = vmor %vm2458_vm5, %vm2459_vm4  ;;  %vm1593_vm4 = vcmp.eq.f32.partialorder %v4020_v18, %v1592_v21  ;;  %vm1722_vm5 = vcmp.eq.f32.partialorder %v4020_v18, %v1721_v53 }
0x20a2   : > { %v2454_v20 = vmul.f32 %v3193_v31, %v2453_v29  ;;  %v2417_v60 = vpop.xlane.xlu1 %2416  ;;  %v1764_v29 = vperm.slane %v3892_v32, 0 }
0x20a3   : > { %v2418_v40 = vmul.f32 %v2417_v60, %v3374_v10  ;;  %v1807_v60 = vperm.slane %v3923_v34, 0 }
0x20a4   : > { %v2455_v43 = vmul.f32 0.5, %v2454_v20  ;;  %vm1765_vm1 = vcmp.eq.f32.partialorder %v4020_v18, %v1764_v29  ;;  %vm1766_vm2 = vcmp.eq.f32.partialorder %v3775_v35, %v1764_v29 }
0x20a5   : > { %v3195_v22 = vpop.eup %3194  ;;  %v2419_v50 = vadd.f32 1e-05, %v2418_v40  ;;  %v2885_v20 = vsel %vm1765_vm1, 1.0, %v3224_v62  ;;  %v2874_v40 = vsel %vm1594_vm9, 1.0, %v3224_v62  ;;  %vm1809_vm10 = vcmp.eq.f32.partialorder %v3775_v35, %v1807_v60 }
0x20a6   : > { %v2456_v8 = vsub.f32 1.5, %v2455_v43  ;;  %v917_v51 = vmul.f32 %v3195_v22, %v3883_v26  ;;  %v2973_v43 = vpack.i.bf16 %v2885_v20, %v2874_v40  ;;  %v2889_v32 = vsel %vm1809_vm10, 1.0, %v3224_v62 }
0x20a7   : > { %3196 = vrsqrt.f32 %v2419_v50  ;;  %vm2426_vm11 = vweird.f32 %v2419_v50  ;;  %v2886_v47 = vsel %vm1766_vm2, 1.0, %v3224_v62  ;;  %v4087_v20 = vand.u32 127, %v1491_v19 }
0x20a8   : > { %v2457_v49 = vmul.f32 %v3193_v31, %v2456_v8  ;;  %2862 = vmatmul.msk.f32.gmra.mxu1 %vm800_vm8, %v917_v51  ;;  %v2988_v22 = vpack.i.bf16 %v2889_v32, %v2886_v47 }
0x20a9   : > { %vm1563_vm14 = vcmp.eq.s32.totalorder %v4087_v20, 1  ;;  %vm1606_vm1 = vcmp.eq.s32.totalorder %v4087_v20, 2  ;;  %vm1520_vm9 = vcmp.eq.s32.totalorder %v4087_v20, 0  ;;  %vm1778_vm10 = vcmp.eq.s32.totalorder %v4087_v20, 6 }
0x20aa   : > { %v2461_v45 = vsel %vm2460_vm6, %v3193_v31, %v2457_v49  ;;  %v2870_v31 = vsel %vm1550_vm13, 1.0, %v3224_v62  ;;  %v1635_v49 = vperm.slane %v3692_v16, 0  ;;  %vm1679_vm6 = vcmp.eq.f32.partialorder %v4020_v18, %v1678_v5 }
0x20ab   : > { %v2462_v10 = vmul.f32 %v2461_v45, %v3942_v12  ;;  %v2996_v12 = vld [vmem:[%s4160_s13] ss:$0 sm:$0xff]  ;;  %v2957_v54 = vpack.i.bf16 %v2871_v23, %v2870_v31  ;;  %v2873_v45 = vsel %vm1593_vm4, 1.0, %v3224_v62  ;;  %v2882_v16 = vsel %vm1722_vm5, 1.0, %v3224_v62  ;;  %v2406_v31 = vld [vmem:[%s4166_s19 + $0x18] sm:$0xff] }
0x20ac   : > { %vm1636_vm3 = vcmp.eq.f32.partialorder %v4020_v18, %v1635_v49  ;;  %v1564_v19 = vsel %vm1563_vm14, 1.0, %v3224_v62  ;;  %vm1649_vm2 = vcmp.eq.s32.totalorder %v4087_v20, 3  ;;  %vm1735_vm4 = vcmp.eq.s32.totalorder %v4087_v20, 5 }
0x20ad   : > { %v3197_v57 = vpop.eup %3196  ;;  %v2466_v59 = vmul.f32 %v2995_v39, %v2462_v10  ;;  %v2876_v39 = vsel %vm1636_vm3, 1.0, %v3224_v62  ;;  %vm1692_vm3 = vcmp.eq.s32.totalorder %v4087_v20, 4 }
0x20ae   : > { %v2421_v26 = vmul.f32 %v3197_v57, %v2419_v50  ;;  %vm2427_vm7 = vweird.f32 %v3197_v57  ;;  %v2963_v10 = vpack.i.bf16 %v2876_v39, %v2873_v45 }
0x20af   : > { %v2470_v63 = vadd.f32 %v2997_v52, %v2466_v59  ;;  %vm2428_vm12 = vmor %vm2426_vm11, %vm2427_vm7  ;;  %v2879_v52 = vsel %vm1679_vm6, 1.0, %v3224_v62  ;;  %vm1808_vm7 = vcmp.eq.f32.partialorder %v4020_v18, %v1807_v60  ;;  %vm1637_vm11 = vcmp.eq.f32.partialorder %v3775_v35, %v1635_v49 }
0x20b0   : > { %v2422_v33 = vmul.f32 %v3197_v57, %v2421_v26  ;;  %v2888_v59 = vsel %vm1808_vm7, 1.0, %v3224_v62  ;;  %v2877_v38 = vsel %vm1637_vm11, 1.0, %v3224_v62 }
0x20b1   : > { %2904 = vmatmul.msk.f32.vlgmr.msra.gmra.mxu3 %vm697_vm0, %v2470_v63  ;;  %v2978_v53 = vpack.i.bf16 %v2888_v59, %v2877_v38  ;;  %v1521_v38 = vsel %vm1520_vm9, 1.0, %v3224_v62 }
0x20b2   : > { %v2423_v2 = vmul.f32 0.5, %v2422_v33 }
0x20b4   : > { %v2424_v9 = vsub.f32 1.5, %v2423_v2 }
0x20b6   : > { %v2425_v14 = vmul.f32 %v3197_v57, %v2424_v9 }
0x20b8   : > { %v2429_v17 = vsel %vm2428_vm12, %v3197_v57, %v2425_v14  ;;  %v4006_v28 = vpop.f32.mrf.mxu1  ;;  %v2968_v57 = vpack.i.bf16 %v2882_v16, %v2879_v52  ;;  %v1607_v52 = vsel %vm1606_vm1, 1.0, %v3224_v62 }
0x20b9   : > { %v2430_v1 = vmul.f32 %v2429_v17, %v3950_v7  ;;  %v2632_v7 = vpop.permute.xlu2 %2631 }
0x20bb   : > { %v2434_v25 = vmul.f32 %v2996_v12, %v2430_v1 }
0x20bd   : > { %v2438_v36 = vadd.f32 %v2998_v56, %v2434_v25 }
0x20bf   : > { %2903 = vmatmul.msk.f32.vlgmr.msra.gmra.mxu1 %vm697_vm0, %v2438_v36 }
0x2125   : > { %v4008_v13 = vpop.f32.mrf.mxu1 }
0x2134   : > { %v2522_v24 = vpop.f32.mrf.mxu3 }
0x2135   : > { %2905 = vmatpush.xpose.msk.msrb.mxu2 %vm847_vm15, %v2522_v24  ;;  %2603 = vrot.lane.b32.xlu1 %v2522_v24, %s3222_s24 }
0x2139   : > { %2703 = vmatpush.msra.mxu2 %v2406_v31 }
0x213c   : > { %v2495_v3 = vpop.f32.mrf.mxu1 }
0x213d   : > { %v2525_v46 = vmul.f32 0.25, %v2495_v3 }
0x213f   : > { %2601 = vrot.lane.b32.xlu0 %v2525_v46, %s3222_s24  ;;  %2906 = vmatmul.msk.f32.vlgmr.msrb.gmra.mxu2 %vm847_vm15, %v2525_v46  ;;  %v2634_v55 = vmul.f32 %v2632_v7, %v2525_v46  ;;  %v2553_v58 = vmul.f32 %v2552_v27, %v2525_v46  ;;  %v1506_v27 = vperm.slane %v3643_v61, 0  ;;  %v2405_v61 = vld [vmem:[%s4166_s19 + $0x10] sm:$0xff] }
0x2140   : > { %2704 = vmatpush.msra.mxu2 %v2405_v61 }
0x2141   : > { %v2554_v15 = vsel %vm847_vm15, %v2553_v58, 0.0  ;;  %vm1507_vm12 = vcmp.eq.f32.partialorder %v4020_v18, %v1506_v27  ;;  %vm1508_vm13 = vcmp.eq.f32.partialorder %v3775_v35, %v1506_v27  ;;  %v2404_v35 = vld [vmem:[%s4166_s19 + $0x8] sm:$0xff] }
0x2142   : > { %v2867_v58 = vsel %vm1507_vm12, 1.0, %v3224_v62 }
0x2147   : > { %2636 = vrot.lane.b32.xlu0 %v2634_v55, %s3222_s24  ;;  %s3230_s24 = smov 80  }
0x2171   : > { %2555 = vadd.xlane.f32.xlu0 %v2554_v15  ;;  %v2868_v15 = vsel %vm1508_vm13, 1.0, %v3224_v62 }
0x2172   : > { %v2951_v30 = vpack.i.bf16 %v2868_v15, %v2867_v58 }
0x2185   : > { %2574 = vrot.lane.b32.xlu0 %v2522_v24, %s3226_s6 }
0x218d   : > { %2958 = vperm.xlu0 %2956, %v2957_v54  }
0x2195   : > { %2974 = vperm.xlu0 %2956, %v2973_v43   ;;  %v2402_v43 = vld [vmem:[%s4168_s21] sm:$0x3] }
0x2196   : > { %v2572_v49 = vperm.slane %v2402_v43, 0 }
0x219d   : > { %2989 = vperm.xlu0 %2956, %v2988_v22  }
0x21a7   : > { %v2604_v50 = vpop.permute.xlu1 %2603 }
0x21a8   : > { %2908 = vmatpush.xpose.msk.msrb.mxu1 %vm847_vm15, %v2604_v50 }
0x21b1   : > { %v2602_v8 = vpop.permute.xlu0 %2601 }
0x21b2   : > { %2909 = vmatmul.msk.f32.vlgmr.msrb.gmra.mxu1 %vm847_vm15, %v2602_v8  ;;  %v2657_v8 = vperm.slane %v2402_v43, 1 }
0x21b9   : > { %v2637_v34 = vpop.permute.xlu0 %2636 }
0x21ba   : > { %v2639_v51 = vsel %vm847_vm15, %v2637_v34, 0.0 }
0x21bb   : > { %2640 = vadd.xlane.f32.xlu1 %v2639_v51 }
0x21c2   : > { %v2549_v33 = vpop.f32.mrf.mxu2 }
0x21c3   : > { %v2557_v2 = vsel %vm800_vm8, %v2549_v33, -inf }
0x21d4   : > { %2659 = vrot.lane.b32.xlu1 %v2522_v24, %s3230_s24 }
0x21dc   : > { %2964 = vperm.xlu1 %2962, %v2963_v10  }
0x21e4   : > { %2969 = vperm.xlu1 %2962, %v2968_v57   ;;  %v2556_v26 = vpop.xlane.xlu0 %2555 }
0x21ec   : > { %2979 = vperm.xlu1 %2962, %v2978_v53  }
0x21f7   : > { %v2575_v48 = vpop.permute.xlu0 %2574 }
0x21f8   : > { %2595 = vmatpush.msrb.mxu0 %v2575_v48 }
0x21fa   : > { %2726 = vmatpush.msra.mxu0 %v2404_v35  ;;  %v1736_v35 = vsel %vm1735_vm4, 1.0, %v3224_v62 }
0x21fc   : > { %2727 = vmatpush.msra.mxu0 %v2403_v41 }
0x21ff   : > { %v2959_v21 = vpop.permute.xlu0 %2958 }
0x2200   : > { %v2961_v34 = vunpack.i.h.bf16 %v2959_v21  ;;  %v2960_v39 = vunpack.i.l.bf16 %v2959_v21 }
0x2202   : > { %v1576_v16 = vmul.f32 %v2961_v34, %v1564_v19 }
0x2207   : > { %v4095_v51 = vpop.permute.xlu0 %2974 }
0x2208   : > { %v2976_v45 = vunpack.i.l.bf16 %v4095_v51 }
0x220f   : > { %v2990_v31 = vpop.permute.xlu0 %2989 }
0x2210   : > { %v2991_v43 = vunpack.i.l.bf16 %v2990_v31 }
0x222e   : > { %v2641_v9 = vpop.xlane.xlu1 %2640 }
0x222f   : > { %v2626_v5 = vpop.f32.mrf.mxu1 }
0x2230   : > { %v2642_v63 = vsel %vm800_vm8, %v2626_v5, -inf }
0x2231   : > { %2643 = vmax.xlane.f32.xlu2 %v2642_v63 }
0x2239   : > { %2558 = vmax.xlane.f32.xlu2 %v2557_v2 }
0x2246   : > { %v2660_v14 = vpop.permute.xlu1 %2659 }
0x2247   : > { %2680 = vmatpush.msrb.mxu3 %v2660_v14  ;;  %v1619_v14 = vmul.f32 %v2976_v45, %v1607_v52 }
0x224e   : > { %v4084_v23 = vpop.permute.xlu1 %2964 }
0x2256   : > { %v4092_v47 = vpop.permute.xlu1 %2969 }
0x22a4   : > { %v2644_v12 = vpop.xlane.xlu2 %2643 }
0x22a5   : > { %v2645_v17 = vmax.f32 %v2644_v12, %v2641_v9  ;;  %v2980_v12 = vpop.permute.xlu1 %2979 }
0x22a6   : > { %v2981_v27 = vunpack.i.l.bf16 %v2980_v12 }
0x22a7   : > { %v2646_v1 = vsub.f32 %v2626_v5, %v2645_v17  ;;  %v2649_v42 = vsub.f32 %v2641_v9, %v2645_v17  ;;  %v2966_v5 = vunpack.i.l.bf16 %v4084_v23  ;;  %v1575_v9 = vmul.f32 %v2960_v39, %v1564_v19 }
0x22a9   : > { %v2647_v56 = vmul.f32 1.442695, %v2646_v1  ;;  %v2650_v18 = vmul.f32 1.442695, %v2649_v42 }
0x22ab   : > { %3198 = vpow2.f32 %v2647_v56 }
0x22ac   : > { %v2559_v25 = vpop.xlane.xlu2 %2558 }
0x22ad   : > { %v2560_v36 = vmax.f32 %v2559_v25, %v2556_v26  ;;  %v1650_v25 = vsel %vm1649_vm2, 1.0, %v3224_v62 }
0x22af   : > { %v2561_v24 = vsub.f32 %v2549_v33, %v2560_v36 }
0x22b1   : > { %v3199_v3 = vpop.eup %3198  ;;  %v2562_v46 = vmul.f32 1.442695, %v2561_v24 }
0x22b2   : > { %2910 = vmatmul.msk.f32.vlgmr.msrb.gmra.mxu3 %vm800_vm8, %v3199_v3  ;;  %v2652_v7 = vsel %vm800_vm8, %v3199_v3, 0.0 }
0x22b3   : > { %3200 = vpow2.f32 %v2562_v46  ;;  %2653 = vadd.xlane.f32.xlu2 %v2652_v7  ;;  %v1693_v46 = vsel %vm1692_vm3, 1.0, %v3224_v62  ;;  %v2971_v7 = vunpack.i.l.bf16 %v4092_v47 }
0x22b4   : > { %3202 = vpow2.f32 %v2650_v18  ;;  %v1779_v18 = vsel %vm1778_vm10, 1.0, %v3224_v62 }
0x22b9   : > { %v3201_v55 = vpop.eup %3200 }
0x22ba   : > { %2907 = vmatmul.msk.f32.vlgmr.msrb.gmra.mxu0 %vm800_vm8, %v3201_v55  ;;  %v2567_v37 = vsel %vm800_vm8, %v3201_v55, 0.0  ;;  %v3203_v60 = vpop.eup %3202 }
0x22bb   : > { %2568 = vadd.xlane.f32.xlu2 %v2567_v37  ;;  %v2658_v10 = vmul.f32 %v3203_v60, %v2657_v8  ;;  %v1618_v37 = vmul.f32 %v2966_v5, %v1607_v52 }
0x22d3   : > { %2952 = vperm.xlu2 %2950, %v2951_v30   ;;  %v2972_v30 = vunpack.i.h.bf16 %v4092_v47  ;;  %v2982_v47 = vunpack.i.h.bf16 %v2980_v12 }
0x22db   : > { %2984 = vperm.xlu2 %2950, %v2983_v44   ;;  %v2564_v44 = vsub.f32 %v2556_v26, %v2560_v36  ;;  %v2967_v36 = vunpack.i.h.bf16 %v4084_v23  ;;  %v1704_v23 = vmul.f32 %v2971_v7, %v1693_v46 }
0x22dd   : > { %v2565_v29 = vmul.f32 1.442695, %v2564_v44  ;;  %v1661_v61 = vmul.f32 %v2967_v36, %v1650_v25  ;;  %v2977_v44 = vunpack.i.h.bf16 %v4095_v51  ;;  %v2992_v51 = vunpack.i.h.bf16 %v2990_v31 }
0x22df   : > { %3204 = vpow2.f32 %v2565_v29  ;;  %v1790_v34 = vmul.f32 %v2977_v44, %v1779_v18 }
0x22e5   : > { %v3205_v32 = vpop.eup %3204 }
0x22e6   : > { %v2573_v26 = vmul.f32 %v3205_v32, %v2572_v49 }
0x2326   : > { %v2654_v54 = vpop.xlane.xlu2 %2653 }
0x2327   : > { %v2655_v40 = vadd.f32 %v3203_v60, %v2654_v54  ;;  %v1662_v54 = vmul.f32 %v2981_v27, %v1650_v25 }
0x2329   : > { %3206 = vrcp.f32 %v2655_v40 }
0x232e   : > { %v2569_v22 = vpop.xlane.xlu2 %2568 }
0x232f   : > { %v2570_v50 = vadd.f32 %v3205_v32, %v2569_v22  ;;  %v3207_v48 = vpop.eup %3206  ;;  %v1747_v32 = vmul.f32 %v2972_v30, %v1736_v35 }
0x2331   : > { %3208 = vrcp.f32 %v2570_v50 }
0x2335   : > { %v2682_v57 = vpop.f32.mrf.mxu3 }
0x2336   : > { %v2683_v59 = vadd.f32 %v2682_v57, %v2658_v10  ;;  %v2953_v53 = vpop.permute.xlu2 %2952  ;;  %v1791_v10 = vmul.f32 %v2991_v43, %v1779_v18 }
0x2337   : > { %v2955_v63 = vunpack.i.h.bf16 %v2953_v53  ;;  %v2954_v33 = vunpack.i.l.bf16 %v2953_v53  ;;  %v2597_v2 = vpop.f32.mrf.mxu0  ;;  %v3209_v56 = vpop.eup %3208 }
0x2338   : > { %v2685_v17 = vmul.f32 %v3207_v48, %v2683_v59  ;;  %v2598_v1 = vadd.f32 %v2597_v2, %v2573_v26  ;;  %v2999_v2 = vld [vmem:[%s4185_s1] ss:$0 sm:$0xff] }
0x2339   : > { %v1533_v24 = vmul.f32 %v2955_v63, %v1521_v38  ;;  %v1532_v3 = vmul.f32 %v2954_v33, %v1521_v38 }
0x233a   : > { %v2600_v55 = vmul.f32 %v3209_v56, %v2598_v1  ;;  %2911 = vmatmul.msk.f32.vlgmr.msra.gmra.mxu2 %vm847_vm15, %v2685_v17 }
0x233b   : > { %v1578_v58 = vadd.f32 %v1576_v16, %v1533_v24  ;;  %v1577_v15 = vadd.f32 %v1575_v9, %v1532_v3  ;;  %v1106_v3 = vadd.f32 %v4008_v13, %v3932_v0 }
0x233c   : > { %2912 = vmatmul.msk.f32.vlgmr.msra.gmra.mxu0 %vm847_vm15, %v2600_v55  ;;  %vm1821_vm15 = vcmp.eq.s32.totalorder %v4087_v20, 7 }
0x233d   : > { %v1621_v41 = vadd.f32 %v1619_v14, %v1578_v58  ;;  %v1620_v42 = vadd.f32 %v1618_v37, %v1577_v15  ;;  %v1822_v45 = vsel %vm1821_vm15, 1.0, %v3224_v62  ;;  %v1103_v14 = vadd.f32 %v4006_v28, %v3930_v11 }
0x233e   : > { %v2985_v29 = vpop.permute.xlu2 %2984  ;;  %v1833_v16 = vmul.f32 %v2982_v47, %v1822_v45  ;;  %v1834_v59 = vmul.f32 %v2992_v51, %v1822_v45  ;;  %v2776_v28 = vadd.f32 %v3862_v4, %v1106_v3 }
0x233f   : > { %v1663_v21 = vadd.f32 %v1661_v61, %v1620_v42  ;;  %v2987_v60 = vunpack.i.h.bf16 %v2985_v29  ;;  %v2986_v40 = vunpack.i.l.bf16 %v2985_v29  ;;  %v1664_v22 = vadd.f32 %v1662_v54, %v1621_v41 }
0x2340   : > { %v2775_v56 = vadd.f32 %v3866_v6, %v1103_v14 }
0x2341   : > { %v1705_v50 = vmul.f32 %v2986_v40, %v1693_v46  ;;  %v1706_v8 = vadd.f32 %v1704_v23, %v1663_v21  ;;  %v1748_v19 = vmul.f32 %v2987_v60, %v1736_v35 }
0x2343   : > { %v1707_v49 = vadd.f32 %v1705_v50, %v1664_v22  ;;  %v1749_v39 = vadd.f32 %v1747_v32, %v1706_v8 }
0x2345   : > { %v1750_v52 = vadd.f32 %v1748_v19, %v1707_v49  ;;  %v1792_v57 = vadd.f32 %v1790_v34, %v1749_v39 }
0x2347   : > { %v1835_v38 = vadd.f32 %v1833_v16, %v1792_v57  ;;  %v1793_v20 = vadd.f32 %v1791_v10, %v1750_v52 }
0x2349   : > { %v2732_v53 = vsel %vm800_vm8, %v1835_v38, 0.0  ;;  %v1836_v26 = vadd.f32 %v1834_v59, %v1793_v20 }
0x234a   : > { %2733 = vadd.xlane.f32.xlu1 %v2732_v53 }
0x234b   : > { %v2735_v48 = vsel %vm800_vm8, %v1836_v26, 0.0 }
0x234c   : > { %2736 = vadd.xlane.f32.xlu2 %v2735_v48 }
0x23b9   : > { %v2729_v5 = vpop.f32.mrf.mxu0 }
0x23bd   : > { %v2706_v63 = vpop.f32.mrf.mxu2  ;;  %v2734_v62 = vpop.xlane.xlu1 %2733 }
0x23be   : > { %v2730_v33 = vadd.f32 %v2729_v5, %v2706_v63  ;;  %v2738_v9 = vsub.f32 1.0, %v2734_v62 }
0x23bf   : > { %v2737_v17 = vpop.xlane.xlu2 %2736 }
0x23c0   : > { %2767 = vmatpush.msra.mxu1 %v2730_v33  ;;  %v2744_v12 = vmul.f32 %v2999_v2, %v2738_v9  ;;  %v2739_v36 = vsub.f32 1.0, %v2737_v17 }
0x23c1   : > { %2913 = vmatmul.msk.f32.vlgmr.msra.gmra.mxu1 %vm800_vm8, %v1835_v38 }
0x23c2   : > { %v2745_v46 = vmul.f32 %v2999_v2, %v2739_v36 }
0x23c9   : > { %2914 = vmatmul.msk.f32.gmra.mxu1 %vm800_vm8, %v1836_v26 }
0x243e   : > { %v2769_v1 = vpop.f32.mrf.mxu1 }
0x243f   : > { %v2770_v25 = vadd.f32 %v2769_v1, %v2744_v12 }
0x2441   : > { %v2777_v24 = vadd.f32 %v2775_v56, %v2770_v25 }
0x2443   : > { %2779 = vst.msk [vmem:[%s683_s2] sm:$0xff] %vm697_vm0, %v2777_v24 }
0x2446   : > { %v2772_v11 = vpop.f32.mrf.mxu1 }
0x2447   : > { %v2773_v7 = vadd.f32 %v2772_v11, %v2745_v46 }
0x2449   : > { %v2778_v55 = vadd.f32 %v2776_v28, %v2773_v7 }
0x244b   : > { %2780 = vst.msk [vmem:[%s683_s2 + $0x8] sm:$0xff] %vm697_vm0, %v2778_v55 }
0x244c PF: > { %s32_s3 = sadd.s32 1, %s3218_s3  }
0x244d   : > { %p29_p4 = scmp.ge.s32.totalorder %s32_s3, 4  }
0x244f   :  { %31 = sbr.rel (!%p29_p4) target bundleno = 8 (0x8), region = 138 }

</bundles_post_ra>
